<compile_context>
chip_gen: v5e
topology: v5e:2x2
jax: 0.10.0
libtpu: 0.0.40
codegen_flags: <defaults>
</compile_context>

<pallas_src>
import numpy as np
import jax
import jax.numpy as jnp
from jax.experimental import pallas as pl
from jax.experimental.pallas import tpu as pltpu

F_IN = 128      # frequency bins (fixed by fc in_features = 4*10 + 128)
OUTDIM = 10     # len(classes)
H = 10          # LSTM hidden size
G = 32          # lane-padded per-gate width: [fwd(10) | bwd(10) | zero-pad(12)]
BLK_W = 128     # input columns per LSTM timestep (conv1 w-stride 8 * conv2 w-stride 16)

_PH = jax.lax.Precision.HIGHEST


# ------------------------------ Pallas kernel -------------------------------

def _vpu_matmul(x, w):
    """(Bb, K) @ (K, N) as VPU broadcast-FMA; K <= 20 everywhere it is used."""
    acc = x[:, 0:1] * w[0:1, :]
    for k in range(1, x.shape[1]):
        acc = acc + x[:, k:k + 1] * w[k:k + 1, :]
    return acc


def _bird_kernel(x_ref, weff_ref,
                 wih0_ref, whh0_ref, b0_ref,
                 wih1_ref, whh1_ref, b1_ref,
                 fch0_ref, fch1_ref, fcavg_ref, fcb_ref,
                 out_ref,
                 sum_ref, g0a_ref, g0b_ref, g1a_ref, g1b_ref, h0f_ref, h0b_ref):
    tgrid = pl.program_id(1)
    n_tg = pl.num_programs(1)
    T = g0a_ref.shape[0]              # static: number of LSTM timesteps
    Bb = x_ref.shape[0]               # static: batch rows in this block
    TB = x_ref.shape[2] // BLK_W      # static: timesteps handled per grid step

    @pl.when(tgrid == 0)
    def _init():
        sum_ref[...] = jnp.zeros_like(sum_ref)

    # ---------------- streaming phase: TB timesteps per grid step ----------------
    w0f = wih0_ref[0:H, :]            # layer-0 fwd-direction input weights (10, 128)
    w0b = wih0_ref[H:2 * H, :]        # layer-0 bwd-direction input weights (10, 128)
    t0 = tgrid * TB
    mean_part = jnp.zeros((Bb, F_IN), jnp.float32)
    for tb in range(TB):
        xb = x_ref[:, :, tb * BLK_W:(tb + 1) * BLK_W]          # (Bb, 128, 128)
        # running sum for torch.mean(input, dim=2)
        mean_part = mean_part + jnp.sum(xb, axis=2)
        # fused conv1∘conv2 + layer-0 LSTM input projection (bias folded on host)
        ga = jnp.zeros((Bb, 4 * G), jnp.float32)
        gb = jnp.zeros((Bb, 4 * G), jnp.float32)
        for c in range(OUTDIM):
            # sublane-axis reduce first (plain VPU adds), then ONE small lane reduce
            rs = jnp.sum(xb * weff_ref[c], axis=1)             # (Bb, 128)
            s = jnp.sum(rs, axis=1, keepdims=True)             # (Bb, 1)
            ga = ga + s * w0f[c:c + 1, :]
            gb = gb + s * w0b[c:c + 1, :]
        g0a_ref[t0 + tb] = ga          # fwd-direction gate pre-activations (input part)
        g0b_ref[t0 + tb] = gb          # bwd-direction gate pre-activations (input part)
    sum_ref[...] += mean_part

    # -------- last block: bi-LSTM + mean + FC, all from VMEM scratch --------
    @pl.when(tgrid == n_tg - 1)
    def _finalize():
        avg = sum_ref[...] * (1.0 / float(T * BLK_W))          # (Bb, 128)

        def lstm_step(gx, h, c, whh, bias):
            # gate lanes: [i | f | g | o], each G=32 wide = [fwd(10) bwd(10) pad(12)];
            # pad columns have zero weights/bias and provably stay 0.
            gates = gx + _vpu_matmul(h[:, 0:2 * H], whh) + bias     # (Bb, 128)
            sg = jax.nn.sigmoid(gates)      # whole-vreg EUP call, sliced afterwards
            th = jnp.tanh(gates)
            i_g = sg[:, 0 * G:1 * G]
            f_g = sg[:, 1 * G:2 * G]
            g_g = th[:, 2 * G:3 * G]
            o_g = sg[:, 3 * G:4 * G]
            c_new = f_g * c + i_g * g_g
            h_new = o_g * jnp.tanh(c_new)
            return h_new, c_new

        zeros = jnp.zeros((Bb, G), jnp.float32)
        unroll = T <= 8

        # ----- layer 0: forward and backward directions advanced together -----
        whh0 = whh0_ref[...]
        b0 = b0_ref[...]

        def l0_body(s, carry):
            h, c = carry
            r = T - 1 - s
            gx = g0a_ref[s] + g0b_ref[r]
            h, c = lstm_step(gx, h, c, whh0, b0)
            h0f_ref[s] = h[:, 0:H]         # fwd output at time s
            h0b_ref[r] = h[:, H:2 * H]     # bwd output at time r
            return h, c

        h0, _ = jax.lax.fori_loop(0, T, l0_body, (zeros, zeros), unroll=unroll)

        # ----- layer-1 input projections hoisted out of the recurrence (all T) -----
        h0f_all = h0f_ref[...]             # (T, Bb, 10)
        h0b_all = h0b_ref[...]
        w1_ff = wih1_ref[0:H, :]
        w1_fb = wih1_ref[H:2 * H, :]
        w1_bf = wih1_ref[2 * H:3 * H, :]
        w1_bb = wih1_ref[3 * H:4 * H, :]
        g1a = jnp.zeros((T, Bb, 4 * G), jnp.float32)
        g1b = jnp.zeros((T, Bb, 4 * G), jnp.float32)
        for k in range(H):
            fk = h0f_all[:, :, k:k + 1]
            bk = h0b_all[:, :, k:k + 1]
            g1a = g1a + fk * w1_ff[k:k + 1, :] + bk * w1_fb[k:k + 1, :]
            g1b = g1b + fk * w1_bf[k:k + 1, :] + bk * w1_bb[k:k + 1, :]
        g1a_ref[...] = g1a
        g1b_ref[...] = g1b

        # ----- layer 1 (inter-layer dropout p=0.2 is identity at inference) -----
        whh1 = whh1_ref[...]
        b1 = b1_ref[...]

        def l1_body(s, carry):
            h, c = carry
            r = T - 1 - s
            gx = g1a_ref[s] + g1b_ref[r]
            return lstm_step(gx, h, c, whh1, b1)

        h1, _ = jax.lax.fori_loop(0, T, l1_body, (zeros, zeros), unroll=unroll)

        # ----- final FC: feats = [h_l0f, h_l0b, h_l1f, h_l1b, avg] -----
        out = (_vpu_matmul(h0[:, 0:2 * H], fch0_ref[...])
               + _vpu_matmul(h1[:, 0:2 * H], fch1_ref[...])
               + fcb_ref[...])
        # avg term: 10 multiply + lane-reduce passes (transposed fc slice) instead
        # of a 128-step serial broadcast-FMA chain.
        col_ids = jax.lax.broadcasted_iota(jnp.int32, (Bb, OUTDIM), 1)
        for c2 in range(OUTDIM):
            s2 = jnp.sum(avg * fcavg_ref[c2:c2 + 1, :], axis=1, keepdims=True)
            out = out + jnp.where(col_ids == c2, s2, 0.0)
        out_ref[0] = out


# ------------------------- weight preprocessing (JAX) ------------------------

def _fuse_conv_weights(params):
    """Collapse conv1(1→32,(16,8),s=(16,8)) ∘ conv2(32→10,(8,16),s=(1,16)) -- which
    have no nonlinearity in between -- into one (10, 128, 128) weight per timestep."""
    w1 = params["conv1_w"].reshape(32, 16, 8)              # (c1, p, q)
    b1 = params["conv1_b"]
    w2 = params["conv2_w"]                                 # (c2, c1, i, j)
    b2 = params["conv2_b"]
    w_eff = jnp.einsum("kcij,cpq->kipjq", w2, w1,
                       precision=_PH).reshape(OUTDIM, 128, 128)   # h = 16i+p, w = 8j+q
    b_eff = (b2 + jnp.einsum("kcij,c->k", w2, b1, precision=_PH)).reshape(1, OUTDIM)
    return w_eff, b_eff


def _pack_bilstm_layer(fwd, bwd, in_per_dir):
    """Pack one bidirectional LSTM layer into lane-padded block-diagonal form.

    Gate lane layout (4*G = 128): [i_f i_b 0 | f_f f_b 0 | g_f g_b 0 | o_f o_b 0];
    hidden/cell lane layout (G = 32): [h_f(10) h_b(10) 0(12)].
    wih rows 0:in_per_dir map the forward-direction input, rows in_per_dir:2*in_per_dir
    the backward-direction input.  whh is trimmed to its 20 real rows.
    """
    wih_f, whh_f, b_f = fwd
    wih_b, whh_b, b_b = bwd
    wih = jnp.zeros((2 * in_per_dir, 4 * G), jnp.float32)
    whh = jnp.zeros((2 * H, 4 * G), jnp.float32)
    bias = jnp.zeros((1, 4 * G), jnp.float32)
    for g in range(4):                                     # gate order i, f, g, o
        src = slice(g * H, (g + 1) * H)
        dst_f = slice(g * G, g * G + H)
        dst_b = slice(g * G + H, g * G + 2 * H)
        wih = wih.at[0:in_per_dir, dst_f].set(wih_f[:, src])
        wih = wih.at[in_per_dir:2 * in_per_dir, dst_b].set(wih_b[:, src])
        whh = whh.at[0:H, dst_f].set(whh_f[:, src])
        whh = whh.at[H:2 * H, dst_b].set(whh_b[:, src])
        bias = bias.at[0, dst_f].set(b_f[src])
        bias = bias.at[0, dst_b].set(b_b[src])
    return wih, whh, bias


# --------------------------- block-size selection ----------------------------

def _num_tensorcores():
    """TensorCores visible to a Pallas 'parallel' grid dim (1 on v5e/v6e)."""
    try:
        kind = jax.devices()[0].device_kind.lower()
    except Exception:
        return 1
    return 2 if any(tag in kind for tag in ("v4", "v5p", "v7", "7x")) else 1


def _choose_blocks(B, T):
    nb = _num_tensorcores()
    if B % nb != 0:
        nb = 1
    # keep the per-block gate-preactivation scratch (4 * T*Bb*512 B) modest for long clips
    while (B // nb) > 8 and B % (nb * 2) == 0 and 4 * T * (B // nb) * 4 * G * 4 > 8 * 2**20:
        nb *= 2
    Bb = B // nb
    # several LSTM timesteps per grid step: larger contiguous DMAs, fewer grid steps;
    # cap the double-buffered input block (~12 MiB) so it also fits v7x's 64 MiB VMEM.
    TB = 1
    for d in range(min(T, 8), 0, -1):
        if T % d == 0 and 2 * Bb * d * F_IN * BLK_W * 4 <= 12 * 2**20:
            TB = d
            break
    return nb, Bb, TB


# --------------------------------- wrapper -----------------------------------

def bird_model_forward(x, params):
    x = x.astype(jnp.float32)
    B, Fdim, W = x.shape
    assert Fdim == F_IN, "model fixes 128 frequency bins (fc in_features = 40 + 128)"
    assert W % BLK_W == 0, "stride==kernel exact-cover assumed (W multiple of 128)"
    T = W // BLK_W

    w_eff, b_eff = _fuse_conv_weights(params)
    wih0, whh0, b0 = _pack_bilstm_layer(params["lstm"]["l0f"], params["lstm"]["l0b"], H)
    wih1, whh1, b1 = _pack_bilstm_layer(params["lstm"]["l1f"], params["lstm"]["l1b"], 2 * H)
    # Fold the conv bias through the layer-0 input projection into the layer-0 bias
    # (the LSTM input is y + b_eff and the b_eff part is constant per step).
    b0 = (b0 + jnp.dot(b_eff, wih0[0:H, :], precision=_PH)
             + jnp.dot(b_eff, wih0[H:2 * H, :], precision=_PH))

    fc_w = params["fc_w"]                                      # (168, 10), stored (in, out)
    fch0 = fc_w[0:2 * H, :]                                    # layer-0 final hidden (fwd|bwd)
    fch1 = fc_w[2 * H:4 * H, :]                                # layer-1 final hidden (fwd|bwd)
    fcavg = jnp.transpose(fc_w[4 * H:4 * H + F_IN, :])         # (10, 128), transposed
    fcb = params["fc_b"].reshape(1, OUTDIM)

    nb, Bb, TB = _choose_blocks(B, T)
    n_tg = T // TB

    def _full(a):
        nd = a.ndim
        return pl.BlockSpec(a.shape, lambda bi, t, _nd=nd: (0,) * _nd)

    out3 = pl.pallas_call(
        _bird_kernel,
        out_shape=jax.ShapeDtypeStruct((nb, Bb, OUTDIM), jnp.float32),
        grid_spec=pltpu.PrefetchScalarGridSpec(
            num_scalar_prefetch=0,
            grid=(nb, n_tg),
            in_specs=[
                pl.BlockSpec((Bb, F_IN, TB * BLK_W), lambda bi, t: (bi, 0, t)),
                _full(w_eff),
                _full(wih0), _full(whh0), _full(b0),
                _full(wih1), _full(whh1), _full(b1),
                _full(fch0), _full(fch1), _full(fcavg), _full(fcb),
            ],
            out_specs=pl.BlockSpec((1, Bb, OUTDIM), lambda bi, t: (bi, 0, 0)),
            scratch_shapes=[
                pltpu.VMEM((Bb, F_IN), jnp.float32),          # running sum for the mean
                pltpu.VMEM((T, Bb, 4 * G), jnp.float32),      # layer-0 fwd gate pre-acts
                pltpu.VMEM((T, Bb, 4 * G), jnp.float32),      # layer-0 bwd gate pre-acts
                pltpu.VMEM((T, Bb, 4 * G), jnp.float32),      # layer-1 fwd gate pre-acts
                pltpu.VMEM((T, Bb, 4 * G), jnp.float32),      # layer-1 bwd gate pre-acts
                pltpu.VMEM((T, Bb, H), jnp.float32),          # layer-0 fwd hidden per t
                pltpu.VMEM((T, Bb, H), jnp.float32),          # layer-0 bwd hidden per t
            ],
        ),
        compiler_params=pltpu.CompilerParams(
            dimension_semantics=("parallel", "arbitrary"),
            vmem_limit_bytes=32 * 1024 * 1024,
        ),
    )(x, w_eff, wih0, whh0, b0, wih1, whh1, b1, fch0, fch1, fcavg, fcb)
    return out3.reshape(B, OUTDIM)


# ------------------------------ parameters -----------------------------------

def init_params(key):
    keys = jax.random.split(key, 20)

    def nrm(k, shape, scale=0.1):
        return (scale * jax.random.normal(k, shape)).astype(jnp.float32)

    params = {
        "conv1_w": nrm(keys[0], (32, 1, 16, 8)),
        "conv1_b": nrm(keys[1], (32,)),
        "conv2_w": nrm(keys[2], (10, 32, 8, 16)),
        "conv2_b": nrm(keys[3], (10,)),
        "fc_w":    nrm(keys[4], (4 * H + F_IN, OUTDIM)),   # stored (in, out)
        "fc_b":    nrm(keys[5], (OUTDIM,)),
    }
    # Per-direction LSTM weights stored pre-transposed: x @ W_ih -> (in, 4H);
    # bias is the combined b_ih + b_hh.  Gate order i, f, g, o (PyTorch).
    # TODO(synk): when loading a real PyTorch checkpoint, transpose weight_ih/hh
    # and sum bias_ih + bias_hh into this layout.
    lstm = {}
    in_sizes = {"l0f": H, "l0b": H, "l1f": 2 * H, "l1b": 2 * H}
    kidx = 6
    for name, insz in in_sizes.items():
        wih = nrm(keys[kidx], (insz, 4 * H)); kidx += 1
        whh = nrm(keys[kidx], (H, 4 * H)); kidx += 1
        b = nrm(keys[kidx], (4 * H,)); kidx += 1
        lstm[name] = (wih, whh, b)
    params["lstm"] = lstm
    return params


# ------------------------ pure-JAX reference (checking) ----------------------

def reference_forward(x, params):
    B, F, W = x.shape
    T = W // BLK_W
    avg = jnp.mean(x, axis=2)                              # (B, 128)

    w1 = params["conv1_w"].reshape(32, 16, 8)
    b1 = params["conv1_b"]
    xp = x.reshape(B, 8, 16, W // 8, 8)                    # (b, i, p, j, q)
    c1 = jnp.einsum("bipjq,cpq->bcij", xp, w1, precision=_PH) + b1[None, :, None, None]

    w2 = params["conv2_w"]
    b2 = params["conv2_b"]
    c1r = c1.reshape(B, 32, 8, T, 16)                      # (b, c, i, t, j)
    seq = jnp.einsum("bcitj,kcij->tbk", c1r, w2, precision=_PH) + b2[None, None, :]

    def cell(xt, h, c, w):
        wih, whh, b = w
        gates = jnp.dot(xt, wih, precision=_PH) + jnp.dot(h, whh, precision=_PH) + b
        i = jax.nn.sigmoid(gates[:, 0:H])
        f = jax.nn.sigmoid(gates[:, H:2 * H])
        g = jnp.tanh(gates[:, 2 * H:3 * H])
        o = jax.nn.sigmoid(gates[:, 3 * H:4 * H])
        c = f * c + i * g
        return o * jnp.tanh(c), c

    def run(xs, w, reverse):
        h = jnp.zeros((B, H), jnp.float32)
        c = jnp.zeros((B, H), jnp.float32)
        outs = [None] * T
        order = range(T - 1, -1, -1) if reverse else range(T)
        for t in order:
            h, c = cell(xs[t], h, c, w)
            outs[t] = h
        return outs, h

    xs0 = [seq[t] for t in range(T)]
    o0f, h0f = run(xs0, params["lstm"]["l0f"], False)
    o0b, h0b = run(xs0, params["lstm"]["l0b"], True)
    xs1 = [jnp.concatenate([o0f[t], o0b[t]], axis=1) for t in range(T)]
    _, h1f = run(xs1, params["lstm"]["l1f"], False)
    _, h1b = run(xs1, params["lstm"]["l1b"], True)

    feats = jnp.concatenate([h0f, h0b, h1f, h1b, avg], axis=1)   # (B, 168)
    return jnp.dot(feats, params["fc_w"], precision=_PH) + params["fc_b"][None, :]


# ----------------------------------- main -------------------------------------

if __name__ == "__main__":
    key = jax.random.PRNGKey(0)
    pkey, xkey = jax.random.split(key)
    params = init_params(pkey)

    B, W = 2, 256            # W=256 -> conv1 width 32 -> LSTM sequence length T=2
    x = jax.random.normal(xkey, (B, F_IN, W), dtype=jnp.float32)

    fwd = jax.jit(bird_model_forward)
    out = jax.block_until_ready(fwd(x, params))
    assert out.shape == (B, OUTDIM) and out.dtype == jnp.float32

    ref = jax.block_until_ready(jax.jit(reference_forward)(x, params))
    np.testing.assert_allclose(np.asarray(out), np.asarray(ref), atol=2e-3, rtol=2e-3)
    print("KERNEL_OK")
</pallas_src>

<mosaic_0001>
module attributes {stable_mosaic.version = 11 : i64} {
  func.func @_bird_kernel(%arg0: i32, %arg1: i32, %arg2: memref<2x128x256xf32, #tpu.memory_space<vmem>>, %arg3: memref<10x128x128xf32, #tpu.memory_space<vmem>>, %arg4: memref<20x128xf32, #tpu.memory_space<vmem>>, %arg5: memref<20x128xf32, #tpu.memory_space<vmem>>, %arg6: memref<1x128xf32, #tpu.memory_space<vmem>>, %arg7: memref<40x128xf32, #tpu.memory_space<vmem>>, %arg8: memref<20x128xf32, #tpu.memory_space<vmem>>, %arg9: memref<1x128xf32, #tpu.memory_space<vmem>>, %arg10: memref<20x10xf32, #tpu.memory_space<vmem>>, %arg11: memref<20x10xf32, #tpu.memory_space<vmem>>, %arg12: memref<10x128xf32, #tpu.memory_space<vmem>>, %arg13: memref<1x10xf32, #tpu.memory_space<vmem>>, %arg14: memref<1x2x10xf32, #tpu.memory_space<vmem>>, %arg15: memref<2x128xf32, #tpu.memory_space<vmem>>, %arg16: memref<2x2x128xf32, #tpu.memory_space<vmem>>, %arg17: memref<2x2x128xf32, #tpu.memory_space<vmem>>, %arg18: memref<2x2x128xf32, #tpu.memory_space<vmem>>, %arg19: memref<2x2x128xf32, #tpu.memory_space<vmem>>, %arg20: memref<2x2x10xf32, #tpu.memory_space<vmem>>, %arg21: memref<2x2x10xf32, #tpu.memory_space<vmem>>) attributes {dimension_semantics = [#tpu.dimension_semantics<parallel>, #tpu.dimension_semantics<arbitrary>], iteration_bounds = array<i64: 1, 1>, scalar_prefetch = 0 : i64, scratch_operands = 7 : i64, tpu.core_type = #tpu.core_type<tc>, window_params = [{transform_indices = @transform_0, window_bounds = array<i64: 2, 128, 256>}, {pipeline_mode = #tpu.pipeline_mode<synchronous>, transform_indices = @transform_1, window_bounds = array<i64: 10, 128, 128>}, {pipeline_mode = #tpu.pipeline_mode<synchronous>, transform_indices = @transform_2, window_bounds = array<i64: 20, 128>}, {pipeline_mode = #tpu.pipeline_mode<synchronous>, transform_indices = @transform_3, window_bounds = array<i64: 20, 128>}, {pipeline_mode = #tpu.pipeline_mode<synchronous>, transform_indices = @transform_4, window_bounds = array<i64: 1, 128>}, {pipeline_mode = #tpu.pipeline_mode<synchronous>, transform_indices = @transform_5, window_bounds = array<i64: 40, 128>}, {pipeline_mode = #tpu.pipeline_mode<synchronous>, transform_indices = @transform_6, window_bounds = array<i64: 20, 128>}, {pipeline_mode = #tpu.pipeline_mode<synchronous>, transform_indices = @transform_7, window_bounds = array<i64: 1, 128>}, {pipeline_mode = #tpu.pipeline_mode<synchronous>, transform_indices = @transform_8, window_bounds = array<i64: 20, 10>}, {pipeline_mode = #tpu.pipeline_mode<synchronous>, transform_indices = @transform_9, window_bounds = array<i64: 20, 10>}, {pipeline_mode = #tpu.pipeline_mode<synchronous>, transform_indices = @transform_10, window_bounds = array<i64: 10, 128>}, {pipeline_mode = #tpu.pipeline_mode<synchronous>, transform_indices = @transform_11, window_bounds = array<i64: 1, 10>}, {transform_indices = @transform_12, window_bounds = array<i64: 1, 2, 10>}]} {
    %c0_i32 = arith.constant 0 : i32
    %0 = arith.cmpi eq, %arg1, %c0_i32 : i32
    %1 = arith.extui %0 : i1 to i32
    %c0_i32_0 = arith.constant 0 : i32
    %2 = arith.cmpi ne, %1, %c0_i32_0 : i32
    scf.if %2 {
      %cst_122 = arith.constant 0.000000e+00 : f32
      %403 = vector.broadcast %cst_122 : f32 to vector<2x128xf32>
      %c0_123 = arith.constant 0 : index
      %c0_124 = arith.constant 0 : index
      %404 = vector.load %arg15[%c0_123, %c0_124] : memref<2x128xf32, #tpu.memory_space<vmem>>, vector<2x128xf32>
      tpu.vector_store %arg15[%c0_123, %c0_124], %403 {strides = array<i32>} : memref<2x128xf32, #tpu.memory_space<vmem>>, vector<2x128xf32>,
    } else {
    }
    %c0 = arith.constant 0 : index
    %c0_1 = arith.constant 0 : index
    %3 = vector.load %arg4[%c0, %c0_1] : memref<20x128xf32, #tpu.memory_space<vmem>>, vector<10x128xf32>
    %c10 = arith.constant 10 : index
    %c0_2 = arith.constant 0 : index
    %4 = vector.load %arg4[%c10, %c0_2] : memref<20x128xf32, #tpu.memory_space<vmem>>, vector<10x128xf32>
    %c2_i32 = arith.constant 2 : i32
    %5 = arith.muli %arg1, %c2_i32 : i32
    %cst = arith.constant 0.000000e+00 : f32
    %6 = vector.broadcast %cst : f32 to vector<2x128xf32>
    %c0_3 = arith.constant 0 : index
    %c0_4 = arith.constant 0 : index
    %c0_5 = arith.constant 0 : index
    %7 = vector.load %arg2[%c0_3, %c0_4, %c0_5] : memref<2x128x256xf32, #tpu.memory_space<vmem>>, vector<2x128x128xf32>
    %cst_6 = arith.constant dense<0.000000e+00> : vector<2x128xf32>
    %8 = vector.multi_reduction <add>, %7, %cst_6 [2] : vector<2x128x128xf32> to vector<2x128xf32>
    %9 = arith.addf %6, %8 : vector<2x128xf32>
    %cst_7 = arith.constant 0.000000e+00 : f32
    %10 = vector.broadcast %cst_7 : f32 to vector<2x128xf32>
    %cst_8 = arith.constant 0.000000e+00 : f32
    %11 = vector.broadcast %cst_8 : f32 to vector<2x128xf32>
    %c0_9 = arith.constant 0 : index
    %c0_10 = arith.constant 0 : index
    %c0_11 = arith.constant 0 : index
    %12 = vector.load %arg3[%c0_9, %c0_10, %c0_11] : memref<10x128x128xf32, #tpu.memory_space<vmem>>, vector<1x128x128xf32>
    %13 = vector.shape_cast %12 : vector<1x128x128xf32> to vector<128x128xf32>
    %14 = vector.shape_cast %13 : vector<128x128xf32> to vector<1x128x128xf32>
    %15 = vector.broadcast %14 : vector<1x128x128xf32> to vector<2x128x128xf32>
    %16 = arith.mulf %7, %15 : vector<2x128x128xf32>
    %cst_12 = arith.constant dense<0.000000e+00> : vector<2x128xf32>
    %17 = vector.multi_reduction <add>, %16, %cst_12 [1] : vector<2x128x128xf32> to vector<2x128xf32>
    %cst_13 = arith.constant dense<0.000000e+00> : vector<2xf32>
    %18 = vector.multi_reduction <add>, %17, %cst_13 [1] : vector<2x128xf32> to vector<2xf32>
    %19 = vector.shape_cast %18 : vector<2xf32> to vector<2x1xf32>
    %20 = vector.extract_strided_slice %3 {offsets = [0, 0], sizes = [1, 128], strides = [1, 1]} : vector<10x128xf32> to vector<1x128xf32>
    %21 = vector.broadcast %19 : vector<2x1xf32> to vector<2x128xf32>
    %22 = vector.broadcast %20 : vector<1x128xf32> to vector<2x128xf32>
    %23 = arith.mulf %21, %22 : vector<2x128xf32>
    %24 = arith.addf %10, %23 : vector<2x128xf32>
    %25 = vector.extract_strided_slice %4 {offsets = [0, 0], sizes = [1, 128], strides = [1, 1]} : vector<10x128xf32> to vector<1x128xf32>
    %26 = vector.broadcast %19 : vector<2x1xf32> to vector<2x128xf32>
    %27 = vector.broadcast %25 : vector<1x128xf32> to vector<2x128xf32>
    %28 = arith.mulf %26, %27 : vector<2x128xf32>
    %29 = arith.addf %11, %28 : vector<2x128xf32>
    %c1 = arith.constant 1 : index
    %c0_14 = arith.constant 0 : index
    %c0_15 = arith.constant 0 : index
    %30 = vector.load %arg3[%c1, %c0_14, %c0_15] : memref<10x128x128xf32, #tpu.memory_space<vmem>>, vector<1x128x128xf32>
    %31 = vector.shape_cast %30 : vector<1x128x128xf32> to vector<128x128xf32>
    %32 = vector.shape_cast %31 : vector<128x128xf32> to vector<1x128x128xf32>
    %33 = vector.broadcast %32 : vector<1x128x128xf32> to vector<2x128x128xf32>
    %34 = arith.mulf %7, %33 : vector<2x128x128xf32>
    %cst_16 = arith.constant dense<0.000000e+00> : vector<2x128xf32>
    %35 = vector.multi_reduction <add>, %34, %cst_16 [1] : vector<2x128x128xf32> to vector<2x128xf32>
    %cst_17 = arith.constant dense<0.000000e+00> : vector<2xf32>
    %36 = vector.multi_reduction <add>, %35, %cst_17 [1] : vector<2x128xf32> to vector<2xf32>
    %37 = vector.shape_cast %36 : vector<2xf32> to vector<2x1xf32>
    %38 = vector.extract_strided_slice %3 {offsets = [1, 0], sizes = [1, 128], strides = [1, 1]} : vector<10x128xf32> to vector<1x128xf32>
    %39 = vector.broadcast %37 : vector<2x1xf32> to vector<2x128xf32>
    %40 = vector.broadcast %38 : vector<1x128xf32> to vector<2x128xf32>
    %41 = arith.mulf %39, %40 : vector<2x128xf32>
    %42 = arith.addf %24, %41 : vector<2x128xf32>
    %43 = vector.extract_strided_slice %4 {offsets = [1, 0], sizes = [1, 128], strides = [1, 1]} : vector<10x128xf32> to vector<1x128xf32>
    %44 = vector.broadcast %37 : vector<2x1xf32> to vector<2x128xf32>
    %45 = vector.broadcast %43 : vector<1x128xf32> to vector<2x128xf32>
    %46 = arith.mulf %44, %45 : vector<2x128xf32>
    %47 = arith.addf %29, %46 : vector<2x128xf32>
    %c2 = arith.constant 2 : index
    %c0_18 = arith.constant 0 : index
    %c0_19 = arith.constant 0 : index
    %48 = vector.load %arg3[%c2, %c0_18, %c0_19] : memref<10x128x128xf32, #tpu.memory_space<vmem>>, vector<1x128x128xf32>
    %49 = vector.shape_cast %48 : vector<1x128x128xf32> to vector<128x128xf32>
    %50 = vector.shape_cast %49 : vector<128x128xf32> to vector<1x128x128xf32>
    %51 = vector.broadcast %50 : vector<1x128x128xf32> to vector<2x128x128xf32>
    %52 = arith.mulf %7, %51 : vector<2x128x128xf32>
    %cst_20 = arith.constant dense<0.000000e+00> : vector<2x128xf32>
    %53 = vector.multi_reduction <add>, %52, %cst_20 [1] : vector<2x128x128xf32> to vector<2x128xf32>
    %cst_21 = arith.constant dense<0.000000e+00> : vector<2xf32>
    %54 = vector.multi_reduction <add>, %53, %cst_21 [1] : vector<2x128xf32> to vector<2xf32>
    %55 = vector.shape_cast %54 : vector<2xf32> to vector<2x1xf32>
    %56 = vector.extract_strided_slice %3 {offsets = [2, 0], sizes = [1, 128], strides = [1, 1]} : vector<10x128xf32> to vector<1x128xf32>
    %57 = vector.broadcast %55 : vector<2x1xf32> to vector<2x128xf32>
    %58 = vector.broadcast %56 : vector<1x128xf32> to vector<2x128xf32>
    %59 = arith.mulf %57, %58 : vector<2x128xf32>
    %60 = arith.addf %42, %59 : vector<2x128xf32>
    %61 = vector.extract_strided_slice %4 {offsets = [2, 0], sizes = [1, 128], strides = [1, 1]} : vector<10x128xf32> to vector<1x128xf32>
    %62 = vector.broadcast %55 : vector<2x1xf32> to vector<2x128xf32>
    %63 = vector.broadcast %61 : vector<1x128xf32> to vector<2x128xf32>
    %64 = arith.mulf %62, %63 : vector<2x128xf32>
    %65 = arith.addf %47, %64 : vector<2x128xf32>
    %c3 = arith.constant 3 : index
    %c0_22 = arith.constant 0 : index
    %c0_23 = arith.constant 0 : index
    %66 = vector.load %arg3[%c3, %c0_22, %c0_23] : memref<10x128x128xf32, #tpu.memory_space<vmem>>, vector<1x128x128xf32>
    %67 = vector.shape_cast %66 : vector<1x128x128xf32> to vector<128x128xf32>
    %68 = vector.shape_cast %67 : vector<128x128xf32> to vector<1x128x128xf32>
    %69 = vector.broadcast %68 : vector<1x128x128xf32> to vector<2x128x128xf32>
    %70 = arith.mulf %7, %69 : vector<2x128x128xf32>
    %cst_24 = arith.constant dense<0.000000e+00> : vector<2x128xf32>
    %71 = vector.multi_reduction <add>, %70, %cst_24 [1] : vector<2x128x128xf32> to vector<2x128xf32>
    %cst_25 = arith.constant dense<0.000000e+00> : vector<2xf32>
    %72 = vector.multi_reduction <add>, %71, %cst_25 [1] : vector<2x128xf32> to vector<2xf32>
    %73 = vector.shape_cast %72 : vector<2xf32> to vector<2x1xf32>
    %74 = vector.extract_strided_slice %3 {offsets = [3, 0], sizes = [1, 128], strides = [1, 1]} : vector<10x128xf32> to vector<1x128xf32>
    %75 = vector.broadcast %73 : vector<2x1xf32> to vector<2x128xf32>
    %76 = vector.broadcast %74 : vector<1x128xf32> to vector<2x128xf32>
    %77 = arith.mulf %75, %76 : vector<2x128xf32>
    %78 = arith.addf %60, %77 : vector<2x128xf32>
    %79 = vector.extract_strided_slice %4 {offsets = [3, 0], sizes = [1, 128], strides = [1, 1]} : vector<10x128xf32> to vector<1x128xf32>
    %80 = vector.broadcast %73 : vector<2x1xf32> to vector<2x128xf32>
    %81 = vector.broadcast %79 : vector<1x128xf32> to vector<2x128xf32>
    %82 = arith.mulf %80, %81 : vector<2x128xf32>
    %83 = arith.addf %65, %82 : vector<2x128xf32>
    %c4 = arith.constant 4 : index
    %c0_26 = arith.constant 0 : index
    %c0_27 = arith.constant 0 : index
    %84 = vector.load %arg3[%c4, %c0_26, %c0_27] : memref<10x128x128xf32, #tpu.memory_space<vmem>>, vector<1x128x128xf32>
    %85 = vector.shape_cast %84 : vector<1x128x128xf32> to vector<128x128xf32>
    %86 = vector.shape_cast %85 : vector<128x128xf32> to vector<1x128x128xf32>
    %87 = vector.broadcast %86 : vector<1x128x128xf32> to vector<2x128x128xf32>
    %88 = arith.mulf %7, %87 : vector<2x128x128xf32>
    %cst_28 = arith.constant dense<0.000000e+00> : vector<2x128xf32>
    %89 = vector.multi_reduction <add>, %88, %cst_28 [1] : vector<2x128x128xf32> to vector<2x128xf32>
    %cst_29 = arith.constant dense<0.000000e+00> : vector<2xf32>
    %90 = vector.multi_reduction <add>, %89, %cst_29 [1] : vector<2x128xf32> to vector<2xf32>
    %91 = vector.shape_cast %90 : vector<2xf32> to vector<2x1xf32>
    %92 = vector.extract_strided_slice %3 {offsets = [4, 0], sizes = [1, 128], strides = [1, 1]} : vector<10x128xf32> to vector<1x128xf32>
    %93 = vector.broadcast %91 : vector<2x1xf32> to vector<2x128xf32>
    %94 = vector.broadcast %92 : vector<1x128xf32> to vector<2x128xf32>
    %95 = arith.mulf %93, %94 : vector<2x128xf32>
    %96 = arith.addf %78, %95 : vector<2x128xf32>
    %97 = vector.extract_strided_slice %4 {offsets = [4, 0], sizes = [1, 128], strides = [1, 1]} : vector<10x128xf32> to vector<1x128xf32>
    %98 = vector.broadcast %91 : vector<2x1xf32> to vector<2x128xf32>
    %99 = vector.broadcast %97 : vector<1x128xf32> to vector<2x128xf32>
    %100 = arith.mulf %98, %99 : vector<2x128xf32>
    %101 = arith.addf %83, %100 : vector<2x128xf32>
    %c5 = arith.constant 5 : index
    %c0_30 = arith.constant 0 : index
    %c0_31 = arith.constant 0 : index
    %102 = vector.load %arg3[%c5, %c0_30, %c0_31] : memref<10x128x128xf32, #tpu.memory_space<vmem>>, vector<1x128x128xf32>
    %103 = vector.shape_cast %102 : vector<1x128x128xf32> to vector<128x128xf32>
    %104 = vector.shape_cast %103 : vector<128x128xf32> to vector<1x128x128xf32>
    %105 = vector.broadcast %104 : vector<1x128x128xf32> to vector<2x128x128xf32>
    %106 = arith.mulf %7, %105 : vector<2x128x128xf32>
    %cst_32 = arith.constant dense<0.000000e+00> : vector<2x128xf32>
    %107 = vector.multi_reduction <add>, %106, %cst_32 [1] : vector<2x128x128xf32> to vector<2x128xf32>
    %cst_33 = arith.constant dense<0.000000e+00> : vector<2xf32>
    %108 = vector.multi_reduction <add>, %107, %cst_33 [1] : vector<2x128xf32> to vector<2xf32>
    %109 = vector.shape_cast %108 : vector<2xf32> to vector<2x1xf32>
    %110 = vector.extract_strided_slice %3 {offsets = [5, 0], sizes = [1, 128], strides = [1, 1]} : vector<10x128xf32> to vector<1x128xf32>
    %111 = vector.broadcast %109 : vector<2x1xf32> to vector<2x128xf32>
    %112 = vector.broadcast %110 : vector<1x128xf32> to vector<2x128xf32>
    %113 = arith.mulf %111, %112 : vector<2x128xf32>
    %114 = arith.addf %96, %113 : vector<2x128xf32>
    %115 = vector.extract_strided_slice %4 {offsets = [5, 0], sizes = [1, 128], strides = [1, 1]} : vector<10x128xf32> to vector<1x128xf32>
    %116 = vector.broadcast %109 : vector<2x1xf32> to vector<2x128xf32>
    %117 = vector.broadcast %115 : vector<1x128xf32> to vector<2x128xf32>
    %118 = arith.mulf %116, %117 : vector<2x128xf32>
    %119 = arith.addf %101, %118 : vector<2x128xf32>
    %c6 = arith.constant 6 : index
    %c0_34 = arith.constant 0 : index
    %c0_35 = arith.constant 0 : index
    %120 = vector.load %arg3[%c6, %c0_34, %c0_35] : memref<10x128x128xf32, #tpu.memory_space<vmem>>, vector<1x128x128xf32>
    %121 = vector.shape_cast %120 : vector<1x128x128xf32> to vector<128x128xf32>
    %122 = vector.shape_cast %121 : vector<128x128xf32> to vector<1x128x128xf32>
    %123 = vector.broadcast %122 : vector<1x128x128xf32> to vector<2x128x128xf32>
    %124 = arith.mulf %7, %123 : vector<2x128x128xf32>
    %cst_36 = arith.constant dense<0.000000e+00> : vector<2x128xf32>
    %125 = vector.multi_reduction <add>, %124, %cst_36 [1] : vector<2x128x128xf32> to vector<2x128xf32>
    %cst_37 = arith.constant dense<0.000000e+00> : vector<2xf32>
    %126 = vector.multi_reduction <add>, %125, %cst_37 [1] : vector<2x128xf32> to vector<2xf32>
    %127 = vector.shape_cast %126 : vector<2xf32> to vector<2x1xf32>
    %128 = vector.extract_strided_slice %3 {offsets = [6, 0], sizes = [1, 128], strides = [1, 1]} : vector<10x128xf32> to vector<1x128xf32>
    %129 = vector.broadcast %127 : vector<2x1xf32> to vector<2x128xf32>
    %130 = vector.broadcast %128 : vector<1x128xf32> to vector<2x128xf32>
    %131 = arith.mulf %129, %130 : vector<2x128xf32>
    %132 = arith.addf %114, %131 : vector<2x128xf32>
    %133 = vector.extract_strided_slice %4 {offsets = [6, 0], sizes = [1, 128], strides = [1, 1]} : vector<10x128xf32> to vector<1x128xf32>
    %134 = vector.broadcast %127 : vector<2x1xf32> to vector<2x128xf32>
    %135 = vector.broadcast %133 : vector<1x128xf32> to vector<2x128xf32>
    %136 = arith.mulf %134, %135 : vector<2x128xf32>
    %137 = arith.addf %119, %136 : vector<2x128xf32>
    %c7 = arith.constant 7 : index
    %c0_38 = arith.constant 0 : index
    %c0_39 = arith.constant 0 : index
    %138 = vector.load %arg3[%c7, %c0_38, %c0_39] : memref<10x128x128xf32, #tpu.memory_space<vmem>>, vector<1x128x128xf32>
    %139 = vector.shape_cast %138 : vector<1x128x128xf32> to vector<128x128xf32>
    %140 = vector.shape_cast %139 : vector<128x128xf32> to vector<1x128x128xf32>
    %141 = vector.broadcast %140 : vector<1x128x128xf32> to vector<2x128x128xf32>
    %142 = arith.mulf %7, %141 : vector<2x128x128xf32>
    %cst_40 = arith.constant dense<0.000000e+00> : vector<2x128xf32>
    %143 = vector.multi_reduction <add>, %142, %cst_40 [1] : vector<2x128x128xf32> to vector<2x128xf32>
    %cst_41 = arith.constant dense<0.000000e+00> : vector<2xf32>
    %144 = vector.multi_reduction <add>, %143, %cst_41 [1] : vector<2x128xf32> to vector<2xf32>
    %145 = vector.shape_cast %144 : vector<2xf32> to vector<2x1xf32>
    %146 = vector.extract_strided_slice %3 {offsets = [7, 0], sizes = [1, 128], strides = [1, 1]} : vector<10x128xf32> to vector<1x128xf32>
    %147 = vector.broadcast %145 : vector<2x1xf32> to vector<2x128xf32>
    %148 = vector.broadcast %146 : vector<1x128xf32> to vector<2x128xf32>
    %149 = arith.mulf %147, %148 : vector<2x128xf32>
    %150 = arith.addf %132, %149 : vector<2x128xf32>
    %151 = vector.extract_strided_slice %4 {offsets = [7, 0], sizes = [1, 128], strides = [1, 1]} : vector<10x128xf32> to vector<1x128xf32>
    %152 = vector.broadcast %145 : vector<2x1xf32> to vector<2x128xf32>
    %153 = vector.broadcast %151 : vector<1x128xf32> to vector<2x128xf32>
    %154 = arith.mulf %152, %153 : vector<2x128xf32>
    %155 = arith.addf %137, %154 : vector<2x128xf32>
    %c8 = arith.constant 8 : index
    %c0_42 = arith.constant 0 : index
    %c0_43 = arith.constant 0 : index
    %156 = vector.load %arg3[%c8, %c0_42, %c0_43] : memref<10x128x128xf32, #tpu.memory_space<vmem>>, vector<1x128x128xf32>
    %157 = vector.shape_cast %156 : vector<1x128x128xf32> to vector<128x128xf32>
    %158 = vector.shape_cast %157 : vector<128x128xf32> to vector<1x128x128xf32>
    %159 = vector.broadcast %158 : vector<1x128x128xf32> to vector<2x128x128xf32>
    %160 = arith.mulf %7, %159 : vector<2x128x128xf32>
    %cst_44 = arith.constant dense<0.000000e+00> : vector<2x128xf32>
    %161 = vector.multi_reduction <add>, %160, %cst_44 [1] : vector<2x128x128xf32> to vector<2x128xf32>
    %cst_45 = arith.constant dense<0.000000e+00> : vector<2xf32>
    %162 = vector.multi_reduction <add>, %161, %cst_45 [1] : vector<2x128xf32> to vector<2xf32>
    %163 = vector.shape_cast %162 : vector<2xf32> to vector<2x1xf32>
    %164 = vector.extract_strided_slice %3 {offsets = [8, 0], sizes = [1, 128], strides = [1, 1]} : vector<10x128xf32> to vector<1x128xf32>
    %165 = vector.broadcast %163 : vector<2x1xf32> to vector<2x128xf32>
    %166 = vector.broadcast %164 : vector<1x128xf32> to vector<2x128xf32>
    %167 = arith.mulf %165, %166 : vector<2x128xf32>
    %168 = arith.addf %150, %167 : vector<2x128xf32>
    %169 = vector.extract_strided_slice %4 {offsets = [8, 0], sizes = [1, 128], strides = [1, 1]} : vector<10x128xf32> to vector<1x128xf32>
    %170 = vector.broadcast %163 : vector<2x1xf32> to vector<2x128xf32>
    %171 = vector.broadcast %169 : vector<1x128xf32> to vector<2x128xf32>
    %172 = arith.mulf %170, %171 : vector<2x128xf32>
    %173 = arith.addf %155, %172 : vector<2x128xf32>
    %c9 = arith.constant 9 : index
    %c0_46 = arith.constant 0 : index
    %c0_47 = arith.constant 0 : index
    %174 = vector.load %arg3[%c9, %c0_46, %c0_47] : memref<10x128x128xf32, #tpu.memory_space<vmem>>, vector<1x128x128xf32>
    %175 = vector.shape_cast %174 : vector<1x128x128xf32> to vector<128x128xf32>
    %176 = vector.shape_cast %175 : vector<128x128xf32> to vector<1x128x128xf32>
    %177 = vector.broadcast %176 : vector<1x128x128xf32> to vector<2x128x128xf32>
    %178 = arith.mulf %7, %177 : vector<2x128x128xf32>
    %cst_48 = arith.constant dense<0.000000e+00> : vector<2x128xf32>
    %179 = vector.multi_reduction <add>, %178, %cst_48 [1] : vector<2x128x128xf32> to vector<2x128xf32>
    %cst_49 = arith.constant dense<0.000000e+00> : vector<2xf32>
    %180 = vector.multi_reduction <add>, %179, %cst_49 [1] : vector<2x128xf32> to vector<2xf32>
    %181 = vector.shape_cast %180 : vector<2xf32> to vector<2x1xf32>
    %182 = vector.extract_strided_slice %3 {offsets = [9, 0], sizes = [1, 128], strides = [1, 1]} : vector<10x128xf32> to vector<1x128xf32>
    %183 = vector.broadcast %181 : vector<2x1xf32> to vector<2x128xf32>
    %184 = vector.broadcast %182 : vector<1x128xf32> to vector<2x128xf32>
    %185 = arith.mulf %183, %184 : vector<2x128xf32>
    %186 = arith.addf %168, %185 : vector<2x128xf32>
    %187 = vector.extract_strided_slice %4 {offsets = [9, 0], sizes = [1, 128], strides = [1, 1]} : vector<10x128xf32> to vector<1x128xf32>
    %188 = vector.broadcast %181 : vector<2x1xf32> to vector<2x128xf32>
    %189 = vector.broadcast %187 : vector<1x128xf32> to vector<2x128xf32>
    %190 = arith.mulf %188, %189 : vector<2x128xf32>
    %191 = arith.addf %173, %190 : vector<2x128xf32>
    %c0_i32_50 = arith.constant 0 : i32
    %192 = arith.addi %5, %c0_i32_50 : i32
    %193 = arith.index_cast %192 : i32 to index
    %c0_51 = arith.constant 0 : index
    %c0_52 = arith.constant 0 : index
    %194 = vector.load %arg16[%193, %c0_51, %c0_52] : memref<2x2x128xf32, #tpu.memory_space<vmem>>, vector<1x2x128xf32>
    %195 = vector.shape_cast %194 : vector<1x2x128xf32> to vector<2x128xf32>
    %196 = vector.shape_cast %186 : vector<2x128xf32> to vector<1x2x128xf32>
    tpu.vector_store %arg16[%193, %c0_51, %c0_52], %196 {strides = array<i32>} : memref<2x2x128xf32, #tpu.memory_space<vmem>>, vector<1x2x128xf32>,
    %c0_i32_53 = arith.constant 0 : i32
    %197 = arith.addi %5, %c0_i32_53 : i32
    %198 = arith.index_cast %197 : i32 to index
    %c0_54 = arith.constant 0 : index
    %c0_55 = arith.constant 0 : index
    %199 = vector.load %arg17[%198, %c0_54, %c0_55] : memref<2x2x128xf32, #tpu.memory_space<vmem>>, vector<1x2x128xf32>
    %200 = vector.shape_cast %199 : vector<1x2x128xf32> to vector<2x128xf32>
    %201 = vector.shape_cast %191 : vector<2x128xf32> to vector<1x2x128xf32>
    tpu.vector_store %arg17[%198, %c0_54, %c0_55], %201 {strides = array<i32>} : memref<2x2x128xf32, #tpu.memory_space<vmem>>, vector<1x2x128xf32>,
    %c0_56 = arith.constant 0 : index
    %c0_57 = arith.constant 0 : index
    %c128 = arith.constant 128 : index
    %202 = vector.load %arg2[%c0_56, %c0_57, %c128] : memref<2x128x256xf32, #tpu.memory_space<vmem>>, vector<2x128x128xf32>
    %cst_58 = arith.constant dense<0.000000e+00> : vector<2x128xf32>
    %203 = vector.multi_reduction <add>, %202, %cst_58 [2] : vector<2x128x128xf32> to vector<2x128xf32>
    %204 = arith.addf %9, %203 : vector<2x128xf32>
    %cst_59 = arith.constant 0.000000e+00 : f32
    %205 = vector.broadcast %cst_59 : f32 to vector<2x128xf32>
    %cst_60 = arith.constant 0.000000e+00 : f32
    %206 = vector.broadcast %cst_60 : f32 to vector<2x128xf32>
    %c0_61 = arith.constant 0 : index
    %c0_62 = arith.constant 0 : index
    %c0_63 = arith.constant 0 : index
    %207 = vector.load %arg3[%c0_61, %c0_62, %c0_63] : memref<10x128x128xf32, #tpu.memory_space<vmem>>, vector<1x128x128xf32>
    %208 = vector.shape_cast %207 : vector<1x128x128xf32> to vector<128x128xf32>
    %209 = vector.shape_cast %208 : vector<128x128xf32> to vector<1x128x128xf32>
    %210 = vector.broadcast %209 : vector<1x128x128xf32> to vector<2x128x128xf32>
    %211 = arith.mulf %202, %210 : vector<2x128x128xf32>
    %cst_64 = arith.constant dense<0.000000e+00> : vector<2x128xf32>
    %212 = vector.multi_reduction <add>, %211, %cst_64 [1] : vector<2x128x128xf32> to vector<2x128xf32>
    %cst_65 = arith.constant dense<0.000000e+00> : vector<2xf32>
    %213 = vector.multi_reduction <add>, %212, %cst_65 [1] : vector<2x128xf32> to vector<2xf32>
    %214 = vector.shape_cast %213 : vector<2xf32> to vector<2x1xf32>
    %215 = vector.extract_strided_slice %3 {offsets = [0, 0], sizes = [1, 128], strides = [1, 1]} : vector<10x128xf32> to vector<1x128xf32>
    %216 = vector.broadcast %214 : vector<2x1xf32> to vector<2x128xf32>
    %217 = vector.broadcast %215 : vector<1x128xf32> to vector<2x128xf32>
    %218 = arith.mulf %216, %217 : vector<2x128xf32>
    %219 = arith.addf %205, %218 : vector<2x128xf32>
    %220 = vector.extract_strided_slice %4 {offsets = [0, 0], sizes = [1, 128], strides = [1, 1]} : vector<10x128xf32> to vector<1x128xf32>
    %221 = vector.broadcast %214 : vector<2x1xf32> to vector<2x128xf32>
    %222 = vector.broadcast %220 : vector<1x128xf32> to vector<2x128xf32>
    %223 = arith.mulf %221, %222 : vector<2x128xf32>
    %224 = arith.addf %206, %223 : vector<2x128xf32>
    %c1_66 = arith.constant 1 : index
    %c0_67 = arith.constant 0 : index
    %c0_68 = arith.constant 0 : index
    %225 = vector.load %arg3[%c1_66, %c0_67, %c0_68] : memref<10x128x128xf32, #tpu.memory_space<vmem>>, vector<1x128x128xf32>
    %226 = vector.shape_cast %225 : vector<1x128x128xf32> to vector<128x128xf32>
    %227 = vector.shape_cast %226 : vector<128x128xf32> to vector<1x128x128xf32>
    %228 = vector.broadcast %227 : vector<1x128x128xf32> to vector<2x128x128xf32>
    %229 = arith.mulf %202, %228 : vector<2x128x128xf32>
    %cst_69 = arith.constant dense<0.000000e+00> : vector<2x128xf32>
    %230 = vector.multi_reduction <add>, %229, %cst_69 [1] : vector<2x128x128xf32> to vector<2x128xf32>
    %cst_70 = arith.constant dense<0.000000e+00> : vector<2xf32>
    %231 = vector.multi_reduction <add>, %230, %cst_70 [1] : vector<2x128xf32> to vector<2xf32>
    %232 = vector.shape_cast %231 : vector<2xf32> to vector<2x1xf32>
    %233 = vector.extract_strided_slice %3 {offsets = [1, 0], sizes = [1, 128], strides = [1, 1]} : vector<10x128xf32> to vector<1x128xf32>
    %234 = vector.broadcast %232 : vector<2x1xf32> to vector<2x128xf32>
    %235 = vector.broadcast %233 : vector<1x128xf32> to vector<2x128xf32>
    %236 = arith.mulf %234, %235 : vector<2x128xf32>
    %237 = arith.addf %219, %236 : vector<2x128xf32>
    %238 = vector.extract_strided_slice %4 {offsets = [1, 0], sizes = [1, 128], strides = [1, 1]} : vector<10x128xf32> to vector<1x128xf32>
    %239 = vector.broadcast %232 : vector<2x1xf32> to vector<2x128xf32>
    %240 = vector.broadcast %238 : vector<1x128xf32> to vector<2x128xf32>
    %241 = arith.mulf %239, %240 : vector<2x128xf32>
    %242 = arith.addf %224, %241 : vector<2x128xf32>
    %c2_71 = arith.constant 2 : index
    %c0_72 = arith.constant 0 : index
    %c0_73 = arith.constant 0 : index
    %243 = vector.load %arg3[%c2_71, %c0_72, %c0_73] : memref<10x128x128xf32, #tpu.memory_space<vmem>>, vector<1x128x128xf32>
    %244 = vector.shape_cast %243 : vector<1x128x128xf32> to vector<128x128xf32>
    %245 = vector.shape_cast %244 : vector<128x128xf32> to vector<1x128x128xf32>
    %246 = vector.broadcast %245 : vector<1x128x128xf32> to vector<2x128x128xf32>
    %247 = arith.mulf %202, %246 : vector<2x128x128xf32>
    %cst_74 = arith.constant dense<0.000000e+00> : vector<2x128xf32>
    %248 = vector.multi_reduction <add>, %247, %cst_74 [1] : vector<2x128x128xf32> to vector<2x128xf32>
    %cst_75 = arith.constant dense<0.000000e+00> : vector<2xf32>
    %249 = vector.multi_reduction <add>, %248, %cst_75 [1] : vector<2x128xf32> to vector<2xf32>
    %250 = vector.shape_cast %249 : vector<2xf32> to vector<2x1xf32>
    %251 = vector.extract_strided_slice %3 {offsets = [2, 0], sizes = [1, 128], strides = [1, 1]} : vector<10x128xf32> to vector<1x128xf32>
    %252 = vector.broadcast %250 : vector<2x1xf32> to vector<2x128xf32>
    %253 = vector.broadcast %251 : vector<1x128xf32> to vector<2x128xf32>
    %254 = arith.mulf %252, %253 : vector<2x128xf32>
    %255 = arith.addf %237, %254 : vector<2x128xf32>
    %256 = vector.extract_strided_slice %4 {offsets = [2, 0], sizes = [1, 128], strides = [1, 1]} : vector<10x128xf32> to vector<1x128xf32>
    %257 = vector.broadcast %250 : vector<2x1xf32> to vector<2x128xf32>
    %258 = vector.broadcast %256 : vector<1x128xf32> to vector<2x128xf32>
    %259 = arith.mulf %257, %258 : vector<2x128xf32>
    %260 = arith.addf %242, %259 : vector<2x128xf32>
    %c3_76 = arith.constant 3 : index
    %c0_77 = arith.constant 0 : index
    %c0_78 = arith.constant 0 : index
    %261 = vector.load %arg3[%c3_76, %c0_77, %c0_78] : memref<10x128x128xf32, #tpu.memory_space<vmem>>, vector<1x128x128xf32>
    %262 = vector.shape_cast %261 : vector<1x128x128xf32> to vector<128x128xf32>
    %263 = vector.shape_cast %262 : vector<128x128xf32> to vector<1x128x128xf32>
    %264 = vector.broadcast %263 : vector<1x128x128xf32> to vector<2x128x128xf32>
    %265 = arith.mulf %202, %264 : vector<2x128x128xf32>
    %cst_79 = arith.constant dense<0.000000e+00> : vector<2x128xf32>
    %266 = vector.multi_reduction <add>, %265, %cst_79 [1] : vector<2x128x128xf32> to vector<2x128xf32>
    %cst_80 = arith.constant dense<0.000000e+00> : vector<2xf32>
    %267 = vector.multi_reduction <add>, %266, %cst_80 [1] : vector<2x128xf32> to vector<2xf32>
    %268 = vector.shape_cast %267 : vector<2xf32> to vector<2x1xf32>
    %269 = vector.extract_strided_slice %3 {offsets = [3, 0], sizes = [1, 128], strides = [1, 1]} : vector<10x128xf32> to vector<1x128xf32>
    %270 = vector.broadcast %268 : vector<2x1xf32> to vector<2x128xf32>
    %271 = vector.broadcast %269 : vector<1x128xf32> to vector<2x128xf32>
    %272 = arith.mulf %270, %271 : vector<2x128xf32>
    %273 = arith.addf %255, %272 : vector<2x128xf32>
    %274 = vector.extract_strided_slice %4 {offsets = [3, 0], sizes = [1, 128], strides = [1, 1]} : vector<10x128xf32> to vector<1x128xf32>
    %275 = vector.broadcast %268 : vector<2x1xf32> to vector<2x128xf32>
    %276 = vector.broadcast %274 : vector<1x128xf32> to vector<2x128xf32>
    %277 = arith.mulf %275, %276 : vector<2x128xf32>
    %278 = arith.addf %260, %277 : vector<2x128xf32>
    %c4_81 = arith.constant 4 : index
    %c0_82 = arith.constant 0 : index
    %c0_83 = arith.constant 0 : index
    %279 = vector.load %arg3[%c4_81, %c0_82, %c0_83] : memref<10x128x128xf32, #tpu.memory_space<vmem>>, vector<1x128x128xf32>
    %280 = vector.shape_cast %279 : vector<1x128x128xf32> to vector<128x128xf32>
    %281 = vector.shape_cast %280 : vector<128x128xf32> to vector<1x128x128xf32>
    %282 = vector.broadcast %281 : vector<1x128x128xf32> to vector<2x128x128xf32>
    %283 = arith.mulf %202, %282 : vector<2x128x128xf32>
    %cst_84 = arith.constant dense<0.000000e+00> : vector<2x128xf32>
    %284 = vector.multi_reduction <add>, %283, %cst_84 [1] : vector<2x128x128xf32> to vector<2x128xf32>
    %cst_85 = arith.constant dense<0.000000e+00> : vector<2xf32>
    %285 = vector.multi_reduction <add>, %284, %cst_85 [1] : vector<2x128xf32> to vector<2xf32>
    %286 = vector.shape_cast %285 : vector<2xf32> to vector<2x1xf32>
    %287 = vector.extract_strided_slice %3 {offsets = [4, 0], sizes = [1, 128], strides = [1, 1]} : vector<10x128xf32> to vector<1x128xf32>
    %288 = vector.broadcast %286 : vector<2x1xf32> to vector<2x128xf32>
    %289 = vector.broadcast %287 : vector<1x128xf32> to vector<2x128xf32>
    %290 = arith.mulf %288, %289 : vector<2x128xf32>
    %291 = arith.addf %273, %290 : vector<2x128xf32>
    %292 = vector.extract_strided_slice %4 {offsets = [4, 0], sizes = [1, 128], strides = [1, 1]} : vector<10x128xf32> to vector<1x128xf32>
    %293 = vector.broadcast %286 : vector<2x1xf32> to vector<2x128xf32>
    %294 = vector.broadcast %292 : vector<1x128xf32> to vector<2x128xf32>
    %295 = arith.mulf %293, %294 : vector<2x128xf32>
    %296 = arith.addf %278, %295 : vector<2x128xf32>
    %c5_86 = arith.constant 5 : index
    %c0_87 = arith.constant 0 : index
    %c0_88 = arith.constant 0 : index
    %297 = vector.load %arg3[%c5_86, %c0_87, %c0_88] : memref<10x128x128xf32, #tpu.memory_space<vmem>>, vector<1x128x128xf32>
    %298 = vector.shape_cast %297 : vector<1x128x128xf32> to vector<128x128xf32>
    %299 = vector.shape_cast %298 : vector<128x128xf32> to vector<1x128x128xf32>
    %300 = vector.broadcast %299 : vector<1x128x128xf32> to vector<2x128x128xf32>
    %301 = arith.mulf %202, %300 : vector<2x128x128xf32>
    %cst_89 = arith.constant dense<0.000000e+00> : vector<2x128xf32>
    %302 = vector.multi_reduction <add>, %301, %cst_89 [1] : vector<2x128x128xf32> to vector<2x128xf32>
    %cst_90 = arith.constant dense<0.000000e+00> : vector<2xf32>
    %303 = vector.multi_reduction <add>, %302, %cst_90 [1] : vector<2x128xf32> to vector<2xf32>
    %304 = vector.shape_cast %303 : vector<2xf32> to vector<2x1xf32>
    %305 = vector.extract_strided_slice %3 {offsets = [5, 0], sizes = [1, 128], strides = [1, 1]} : vector<10x128xf32> to vector<1x128xf32>
    %306 = vector.broadcast %304 : vector<2x1xf32> to vector<2x128xf32>
    %307 = vector.broadcast %305 : vector<1x128xf32> to vector<2x128xf32>
    %308 = arith.mulf %306, %307 : vector<2x128xf32>
    %309 = arith.addf %291, %308 : vector<2x128xf32>
    %310 = vector.extract_strided_slice %4 {offsets = [5, 0], sizes = [1, 128], strides = [1, 1]} : vector<10x128xf32> to vector<1x128xf32>
    %311 = vector.broadcast %304 : vector<2x1xf32> to vector<2x128xf32>
    %312 = vector.broadcast %310 : vector<1x128xf32> to vector<2x128xf32>
    %313 = arith.mulf %311, %312 : vector<2x128xf32>
    %314 = arith.addf %296, %313 : vector<2x128xf32>
    %c6_91 = arith.constant 6 : index
    %c0_92 = arith.constant 0 : index
    %c0_93 = arith.constant 0 : index
    %315 = vector.load %arg3[%c6_91, %c0_92, %c0_93] : memref<10x128x128xf32, #tpu.memory_space<vmem>>, vector<1x128x128xf32>
    %316 = vector.shape_cast %315 : vector<1x128x128xf32> to vector<128x128xf32>
    %317 = vector.shape_cast %316 : vector<128x128xf32> to vector<1x128x128xf32>
    %318 = vector.broadcast %317 : vector<1x128x128xf32> to vector<2x128x128xf32>
    %319 = arith.mulf %202, %318 : vector<2x128x128xf32>
    %cst_94 = arith.constant dense<0.000000e+00> : vector<2x128xf32>
    %320 = vector.multi_reduction <add>, %319, %cst_94 [1] : vector<2x128x128xf32> to vector<2x128xf32>
    %cst_95 = arith.constant dense<0.000000e+00> : vector<2xf32>
    %321 = vector.multi_reduction <add>, %320, %cst_95 [1] : vector<2x128xf32> to vector<2xf32>
    %322 = vector.shape_cast %321 : vector<2xf32> to vector<2x1xf32>
    %323 = vector.extract_strided_slice %3 {offsets = [6, 0], sizes = [1, 128], strides = [1, 1]} : vector<10x128xf32> to vector<1x128xf32>
    %324 = vector.broadcast %322 : vector<2x1xf32> to vector<2x128xf32>
    %325 = vector.broadcast %323 : vector<1x128xf32> to vector<2x128xf32>
    %326 = arith.mulf %324, %325 : vector<2x128xf32>
    %327 = arith.addf %309, %326 : vector<2x128xf32>
    %328 = vector.extract_strided_slice %4 {offsets = [6, 0], sizes = [1, 128], strides = [1, 1]} : vector<10x128xf32> to vector<1x128xf32>
    %329 = vector.broadcast %322 : vector<2x1xf32> to vector<2x128xf32>
    %330 = vector.broadcast %328 : vector<1x128xf32> to vector<2x128xf32>
    %331 = arith.mulf %329, %330 : vector<2x128xf32>
    %332 = arith.addf %314, %331 : vector<2x128xf32>
    %c7_96 = arith.constant 7 : index
    %c0_97 = arith.constant 0 : index
    %c0_98 = arith.constant 0 : index
    %333 = vector.load %arg3[%c7_96, %c0_97, %c0_98] : memref<10x128x128xf32, #tpu.memory_space<vmem>>, vector<1x128x128xf32>
    %334 = vector.shape_cast %333 : vector<1x128x128xf32> to vector<128x128xf32>
    %335 = vector.shape_cast %334 : vector<128x128xf32> to vector<1x128x128xf32>
    %336 = vector.broadcast %335 : vector<1x128x128xf32> to vector<2x128x128xf32>
    %337 = arith.mulf %202, %336 : vector<2x128x128xf32>
    %cst_99 = arith.constant dense<0.000000e+00> : vector<2x128xf32>
    %338 = vector.multi_reduction <add>, %337, %cst_99 [1] : vector<2x128x128xf32> to vector<2x128xf32>
    %cst_100 = arith.constant dense<0.000000e+00> : vector<2xf32>
    %339 = vector.multi_reduction <add>, %338, %cst_100 [1] : vector<2x128xf32> to vector<2xf32>
    %340 = vector.shape_cast %339 : vector<2xf32> to vector<2x1xf32>
    %341 = vector.extract_strided_slice %3 {offsets = [7, 0], sizes = [1, 128], strides = [1, 1]} : vector<10x128xf32> to vector<1x128xf32>
    %342 = vector.broadcast %340 : vector<2x1xf32> to vector<2x128xf32>
    %343 = vector.broadcast %341 : vector<1x128xf32> to vector<2x128xf32>
    %344 = arith.mulf %342, %343 : vector<2x128xf32>
    %345 = arith.addf %327, %344 : vector<2x128xf32>
    %346 = vector.extract_strided_slice %4 {offsets = [7, 0], sizes = [1, 128], strides = [1, 1]} : vector<10x128xf32> to vector<1x128xf32>
    %347 = vector.broadcast %340 : vector<2x1xf32> to vector<2x128xf32>
    %348 = vector.broadcast %346 : vector<1x128xf32> to vector<2x128xf32>
    %349 = arith.mulf %347, %348 : vector<2x128xf32>
    %350 = arith.addf %332, %349 : vector<2x128xf32>
    %c8_101 = arith.constant 8 : index
    %c0_102 = arith.constant 0 : index
    %c0_103 = arith.constant 0 : index
    %351 = vector.load %arg3[%c8_101, %c0_102, %c0_103] : memref<10x128x128xf32, #tpu.memory_space<vmem>>, vector<1x128x128xf32>
    %352 = vector.shape_cast %351 : vector<1x128x128xf32> to vector<128x128xf32>
    %353 = vector.shape_cast %352 : vector<128x128xf32> to vector<1x128x128xf32>
    %354 = vector.broadcast %353 : vector<1x128x128xf32> to vector<2x128x128xf32>
    %355 = arith.mulf %202, %354 : vector<2x128x128xf32>
    %cst_104 = arith.constant dense<0.000000e+00> : vector<2x128xf32>
    %356 = vector.multi_reduction <add>, %355, %cst_104 [1] : vector<2x128x128xf32> to vector<2x128xf32>
    %cst_105 = arith.constant dense<0.000000e+00> : vector<2xf32>
    %357 = vector.multi_reduction <add>, %356, %cst_105 [1] : vector<2x128xf32> to vector<2xf32>
    %358 = vector.shape_cast %357 : vector<2xf32> to vector<2x1xf32>
    %359 = vector.extract_strided_slice %3 {offsets = [8, 0], sizes = [1, 128], strides = [1, 1]} : vector<10x128xf32> to vector<1x128xf32>
    %360 = vector.broadcast %358 : vector<2x1xf32> to vector<2x128xf32>
    %361 = vector.broadcast %359 : vector<1x128xf32> to vector<2x128xf32>
    %362 = arith.mulf %360, %361 : vector<2x128xf32>
    %363 = arith.addf %345, %362 : vector<2x128xf32>
    %364 = vector.extract_strided_slice %4 {offsets = [8, 0], sizes = [1, 128], strides = [1, 1]} : vector<10x128xf32> to vector<1x128xf32>
    %365 = vector.broadcast %358 : vector<2x1xf32> to vector<2x128xf32>
    %366 = vector.broadcast %364 : vector<1x128xf32> to vector<2x128xf32>
    %367 = arith.mulf %365, %366 : vector<2x128xf32>
    %368 = arith.addf %350, %367 : vector<2x128xf32>
    %c9_106 = arith.constant 9 : index
    %c0_107 = arith.constant 0 : index
    %c0_108 = arith.constant 0 : index
    %369 = vector.load %arg3[%c9_106, %c0_107, %c0_108] : memref<10x128x128xf32, #tpu.memory_space<vmem>>, vector<1x128x128xf32>
    %370 = vector.shape_cast %369 : vector<1x128x128xf32> to vector<128x128xf32>
    %371 = vector.shape_cast %370 : vector<128x128xf32> to vector<1x128x128xf32>
    %372 = vector.broadcast %371 : vector<1x128x128xf32> to vector<2x128x128xf32>
    %373 = arith.mulf %202, %372 : vector<2x128x128xf32>
    %cst_109 = arith.constant dense<0.000000e+00> : vector<2x128xf32>
    %374 = vector.multi_reduction <add>, %373, %cst_109 [1] : vector<2x128x128xf32> to vector<2x128xf32>
    %cst_110 = arith.constant dense<0.000000e+00> : vector<2xf32>
    %375 = vector.multi_reduction <add>, %374, %cst_110 [1] : vector<2x128xf32> to vector<2xf32>
    %376 = vector.shape_cast %375 : vector<2xf32> to vector<2x1xf32>
    %377 = vector.extract_strided_slice %3 {offsets = [9, 0], sizes = [1, 128], strides = [1, 1]} : vector<10x128xf32> to vector<1x128xf32>
    %378 = vector.broadcast %376 : vector<2x1xf32> to vector<2x128xf32>
    %379 = vector.broadcast %377 : vector<1x128xf32> to vector<2x128xf32>
    %380 = arith.mulf %378, %379 : vector<2x128xf32>
    %381 = arith.addf %363, %380 : vector<2x128xf32>
    %382 = vector.extract_strided_slice %4 {offsets = [9, 0], sizes = [1, 128], strides = [1, 1]} : vector<10x128xf32> to vector<1x128xf32>
    %383 = vector.broadcast %376 : vector<2x1xf32> to vector<2x128xf32>
    %384 = vector.broadcast %382 : vector<1x128xf32> to vector<2x128xf32>
    %385 = arith.mulf %383, %384 : vector<2x128xf32>
    %386 = arith.addf %368, %385 : vector<2x128xf32>
    %c1_i32 = arith.constant 1 : i32
    %387 = arith.addi %5, %c1_i32 : i32
    %388 = arith.index_cast %387 : i32 to index
    %c0_111 = arith.constant 0 : index
    %c0_112 = arith.constant 0 : index
    %389 = vector.load %arg16[%388, %c0_111, %c0_112] : memref<2x2x128xf32, #tpu.memory_space<vmem>>, vector<1x2x128xf32>
    %390 = vector.shape_cast %389 : vector<1x2x128xf32> to vector<2x128xf32>
    %391 = vector.shape_cast %381 : vector<2x128xf32> to vector<1x2x128xf32>
    tpu.vector_store %arg16[%388, %c0_111, %c0_112], %391 {strides = array<i32>} : memref<2x2x128xf32, #tpu.memory_space<vmem>>, vector<1x2x128xf32>,
    %c1_i32_113 = arith.constant 1 : i32
    %392 = arith.addi %5, %c1_i32_113 : i32
    %393 = arith.index_cast %392 : i32 to index
    %c0_114 = arith.constant 0 : index
    %c0_115 = arith.constant 0 : index
    %394 = vector.load %arg17[%393, %c0_114, %c0_115] : memref<2x2x128xf32, #tpu.memory_space<vmem>>, vector<1x2x128xf32>
    %395 = vector.shape_cast %394 : vector<1x2x128xf32> to vector<2x128xf32>
    %396 = vector.shape_cast %386 : vector<2x128xf32> to vector<1x2x128xf32>
    tpu.vector_store %arg17[%393, %c0_114, %c0_115], %396 {strides = array<i32>} : memref<2x2x128xf32, #tpu.memory_space<vmem>>, vector<1x2x128xf32>,
    %c0_116 = arith.constant 0 : index
    %c0_117 = arith.constant 0 : index
    %397 = vector.load %arg15[%c0_116, %c0_117] : memref<2x128xf32, #tpu.memory_space<vmem>>, vector<2x128xf32>
    %398 = arith.addf %397, %204 : vector<2x128xf32>
    %c0_118 = arith.constant 0 : index
    %c0_119 = arith.constant 0 : index
    %399 = vector.load %arg15[%c0_118, %c0_119] : memref<2x128xf32, #tpu.memory_space<vmem>>, vector<2x128xf32>
    tpu.vector_store %arg15[%c0_118, %c0_119], %398 {strides = array<i32>} : memref<2x128xf32, #tpu.memory_space<vmem>>, vector<2x128xf32>,
    %c0_i32_120 = arith.constant 0 : i32
    %400 = arith.cmpi eq, %arg1, %c0_i32_120 : i32
    %401 = arith.extui %400 : i1 to i32
    %c0_i32_121 = arith.constant 0 : i32
    %402 = arith.cmpi ne, %401, %c0_i32_121 : i32
    scf.if %402 {
      %c0_122 = arith.constant 0 : index
      %c0_123 = arith.constant 0 : index
      %403 = vector.load %arg15[%c0_122, %c0_123] : memref<2x128xf32, #tpu.memory_space<vmem>>, vector<2x128xf32>
      %cst_124 = arith.constant 3.906250e-03 : f32
      %404 = vector.broadcast %cst_124 : f32 to vector<2x128xf32>
      %405 = arith.mulf %403, %404 : vector<2x128xf32>
      %cst_125 = arith.constant 0.000000e+00 : f32
      %406 = vector.broadcast %cst_125 : f32 to vector<2x32xf32>
      %c0_126 = arith.constant 0 : index
      %c0_127 = arith.constant 0 : index
      %407 = vector.load %arg5[%c0_126, %c0_127] : memref<20x128xf32, #tpu.memory_space<vmem>>, vector<20x128xf32>
      %c0_128 = arith.constant 0 : index
      %c0_129 = arith.constant 0 : index
      %408 = vector.load %arg6[%c0_128, %c0_129] : memref<1x128xf32, #tpu.memory_space<vmem>>, vector<1x128xf32>
      %c0_i32_130 = arith.constant 0 : i32
      %c1_i32_131 = arith.constant 1 : i32
      %409 = arith.subi %c1_i32_131, %c0_i32_130 : i32
      %410 = arith.index_cast %c0_i32_130 : i32 to index
      %c0_132 = arith.constant 0 : index
      %c0_133 = arith.constant 0 : index
      %411 = vector.load %arg16[%410, %c0_132, %c0_133] : memref<2x2x128xf32, #tpu.memory_space<vmem>>, vector<1x2x128xf32>
      %412 = vector.shape_cast %411 : vector<1x2x128xf32> to vector<2x128xf32>
      %413 = arith.index_cast %409 : i32 to index
      %c0_134 = arith.constant 0 : index
      %c0_135 = arith.constant 0 : index
      %414 = vector.load %arg17[%413, %c0_134, %c0_135] : memref<2x2x128xf32, #tpu.memory_space<vmem>>, vector<1x2x128xf32>
      %415 = vector.shape_cast %414 : vector<1x2x128xf32> to vector<2x128xf32>
      %416 = arith.addf %412, %415 : vector<2x128xf32>
      %417 = vector.extract_strided_slice %406 {offsets = [0, 0], sizes = [2, 20], strides = [1, 1]} : vector<2x32xf32> to vector<2x20xf32>
      %418 = vector.extract_strided_slice %417 {offsets = [0, 0], sizes = [2, 1], strides = [1, 1]} : vector<2x20xf32> to vector<2x1xf32>
      %419 = vector.extract_strided_slice %407 {offsets = [0, 0], sizes = [1, 128], strides = [1, 1]} : vector<20x128xf32> to vector<1x128xf32>
      %420 = vector.broadcast %418 : vector<2x1xf32> to vector<2x128xf32>
      %421 = vector.broadcast %419 : vector<1x128xf32> to vector<2x128xf32>
      %422 = arith.mulf %420, %421 : vector<2x128xf32>
      %423 = vector.extract_strided_slice %417 {offsets = [0, 1], sizes = [2, 1], strides = [1, 1]} : vector<2x20xf32> to vector<2x1xf32>
      %424 = vector.extract_strided_slice %407 {offsets = [1, 0], sizes = [1, 128], strides = [1, 1]} : vector<20x128xf32> to vector<1x128xf32>
      %425 = vector.broadcast %423 : vector<2x1xf32> to vector<2x128xf32>
      %426 = vector.broadcast %424 : vector<1x128xf32> to vector<2x128xf32>
      %427 = arith.mulf %425, %426 : vector<2x128xf32>
      %428 = arith.addf %422, %427 : vector<2x128xf32>
      %429 = vector.extract_strided_slice %417 {offsets = [0, 2], sizes = [2, 1], strides = [1, 1]} : vector<2x20xf32> to vector<2x1xf32>
      %430 = vector.extract_strided_slice %407 {offsets = [2, 0], sizes = [1, 128], strides = [1, 1]} : vector<20x128xf32> to vector<1x128xf32>
      %431 = vector.broadcast %429 : vector<2x1xf32> to vector<2x128xf32>
      %432 = vector.broadcast %430 : vector<1x128xf32> to vector<2x128xf32>
      %433 = arith.mulf %431, %432 : vector<2x128xf32>
      %434 = arith.addf %428, %433 : vector<2x128xf32>
      %435 = vector.extract_strided_slice %417 {offsets = [0, 3], sizes = [2, 1], strides = [1, 1]} : vector<2x20xf32> to vector<2x1xf32>
      %436 = vector.extract_strided_slice %407 {offsets = [3, 0], sizes = [1, 128], strides = [1, 1]} : vector<20x128xf32> to vector<1x128xf32>
      %437 = vector.broadcast %435 : vector<2x1xf32> to vector<2x128xf32>
      %438 = vector.broadcast %436 : vector<1x128xf32> to vector<2x128xf32>
      %439 = arith.mulf %437, %438 : vector<2x128xf32>
      %440 = arith.addf %434, %439 : vector<2x128xf32>
      %441 = vector.extract_strided_slice %417 {offsets = [0, 4], sizes = [2, 1], strides = [1, 1]} : vector<2x20xf32> to vector<2x1xf32>
      %442 = vector.extract_strided_slice %407 {offsets = [4, 0], sizes = [1, 128], strides = [1, 1]} : vector<20x128xf32> to vector<1x128xf32>
      %443 = vector.broadcast %441 : vector<2x1xf32> to vector<2x128xf32>
      %444 = vector.broadcast %442 : vector<1x128xf32> to vector<2x128xf32>
      %445 = arith.mulf %443, %444 : vector<2x128xf32>
      %446 = arith.addf %440, %445 : vector<2x128xf32>
      %447 = vector.extract_strided_slice %417 {offsets = [0, 5], sizes = [2, 1], strides = [1, 1]} : vector<2x20xf32> to vector<2x1xf32>
      %448 = vector.extract_strided_slice %407 {offsets = [5, 0], sizes = [1, 128], strides = [1, 1]} : vector<20x128xf32> to vector<1x128xf32>
      %449 = vector.broadcast %447 : vector<2x1xf32> to vector<2x128xf32>
      %450 = vector.broadcast %448 : vector<1x128xf32> to vector<2x128xf32>
      %451 = arith.mulf %449, %450 : vector<2x128xf32>
      %452 = arith.addf %446, %451 : vector<2x128xf32>
      %453 = vector.extract_strided_slice %417 {offsets = [0, 6], sizes = [2, 1], strides = [1, 1]} : vector<2x20xf32> to vector<2x1xf32>
      %454 = vector.extract_strided_slice %407 {offsets = [6, 0], sizes = [1, 128], strides = [1, 1]} : vector<20x128xf32> to vector<1x128xf32>
      %455 = vector.broadcast %453 : vector<2x1xf32> to vector<2x128xf32>
      %456 = vector.broadcast %454 : vector<1x128xf32> to vector<2x128xf32>
      %457 = arith.mulf %455, %456 : vector<2x128xf32>
      %458 = arith.addf %452, %457 : vector<2x128xf32>
      %459 = vector.extract_strided_slice %417 {offsets = [0, 7], sizes = [2, 1], strides = [1, 1]} : vector<2x20xf32> to vector<2x1xf32>
      %460 = vector.extract_strided_slice %407 {offsets = [7, 0], sizes = [1, 128], strides = [1, 1]} : vector<20x128xf32> to vector<1x128xf32>
      %461 = vector.broadcast %459 : vector<2x1xf32> to vector<2x128xf32>
      %462 = vector.broadcast %460 : vector<1x128xf32> to vector<2x128xf32>
      %463 = arith.mulf %461, %462 : vector<2x128xf32>
      %464 = arith.addf %458, %463 : vector<2x128xf32>
      %465 = vector.extract_strided_slice %417 {offsets = [0, 8], sizes = [2, 1], strides = [1, 1]} : vector<2x20xf32> to vector<2x1xf32>
      %466 = vector.extract_strided_slice %407 {offsets = [8, 0], sizes = [1, 128], strides = [1, 1]} : vector<20x128xf32> to vector<1x128xf32>
      %467 = vector.broadcast %465 : vector<2x1xf32> to vector<2x128xf32>
      %468 = vector.broadcast %466 : vector<1x128xf32> to vector<2x128xf32>
      %469 = arith.mulf %467, %468 : vector<2x128xf32>
      %470 = arith.addf %464, %469 : vector<2x128xf32>
      %471 = vector.extract_strided_slice %417 {offsets = [0, 9], sizes = [2, 1], strides = [1, 1]} : vector<2x20xf32> to vector<2x1xf32>
      %472 = vector.extract_strided_slice %407 {offsets = [9, 0], sizes = [1, 128], strides = [1, 1]} : vector<20x128xf32> to vector<1x128xf32>
      %473 = vector.broadcast %471 : vector<2x1xf32> to vector<2x128xf32>
      %474 = vector.broadcast %472 : vector<1x128xf32> to vector<2x128xf32>
      %475 = arith.mulf %473, %474 : vector<2x128xf32>
      %476 = arith.addf %470, %475 : vector<2x128xf32>
      %477 = vector.extract_strided_slice %417 {offsets = [0, 10], sizes = [2, 1], strides = [1, 1]} : vector<2x20xf32> to vector<2x1xf32>
      %478 = vector.extract_strided_slice %407 {offsets = [10, 0], sizes = [1, 128], strides = [1, 1]} : vector<20x128xf32> to vector<1x128xf32>
      %479 = vector.broadcast %477 : vector<2x1xf32> to vector<2x128xf32>
      %480 = vector.broadcast %478 : vector<1x128xf32> to vector<2x128xf32>
      %481 = arith.mulf %479, %480 : vector<2x128xf32>
      %482 = arith.addf %476, %481 : vector<2x128xf32>
      %483 = vector.extract_strided_slice %417 {offsets = [0, 11], sizes = [2, 1], strides = [1, 1]} : vector<2x20xf32> to vector<2x1xf32>
      %484 = vector.extract_strided_slice %407 {offsets = [11, 0], sizes = [1, 128], strides = [1, 1]} : vector<20x128xf32> to vector<1x128xf32>
      %485 = vector.broadcast %483 : vector<2x1xf32> to vector<2x128xf32>
      %486 = vector.broadcast %484 : vector<1x128xf32> to vector<2x128xf32>
      %487 = arith.mulf %485, %486 : vector<2x128xf32>
      %488 = arith.addf %482, %487 : vector<2x128xf32>
      %489 = vector.extract_strided_slice %417 {offsets = [0, 12], sizes = [2, 1], strides = [1, 1]} : vector<2x20xf32> to vector<2x1xf32>
      %490 = vector.extract_strided_slice %407 {offsets = [12, 0], sizes = [1, 128], strides = [1, 1]} : vector<20x128xf32> to vector<1x128xf32>
      %491 = vector.broadcast %489 : vector<2x1xf32> to vector<2x128xf32>
      %492 = vector.broadcast %490 : vector<1x128xf32> to vector<2x128xf32>
      %493 = arith.mulf %491, %492 : vector<2x128xf32>
      %494 = arith.addf %488, %493 : vector<2x128xf32>
      %495 = vector.extract_strided_slice %417 {offsets = [0, 13], sizes = [2, 1], strides = [1, 1]} : vector<2x20xf32> to vector<2x1xf32>
      %496 = vector.extract_strided_slice %407 {offsets = [13, 0], sizes = [1, 128], strides = [1, 1]} : vector<20x128xf32> to vector<1x128xf32>
      %497 = vector.broadcast %495 : vector<2x1xf32> to vector<2x128xf32>
      %498 = vector.broadcast %496 : vector<1x128xf32> to vector<2x128xf32>
      %499 = arith.mulf %497, %498 : vector<2x128xf32>
      %500 = arith.addf %494, %499 : vector<2x128xf32>
      %501 = vector.extract_strided_slice %417 {offsets = [0, 14], sizes = [2, 1], strides = [1, 1]} : vector<2x20xf32> to vector<2x1xf32>
      %502 = vector.extract_strided_slice %407 {offsets = [14, 0], sizes = [1, 128], strides = [1, 1]} : vector<20x128xf32> to vector<1x128xf32>
      %503 = vector.broadcast %501 : vector<2x1xf32> to vector<2x128xf32>
      %504 = vector.broadcast %502 : vector<1x128xf32> to vector<2x128xf32>
      %505 = arith.mulf %503, %504 : vector<2x128xf32>
      %506 = arith.addf %500, %505 : vector<2x128xf32>
      %507 = vector.extract_strided_slice %417 {offsets = [0, 15], sizes = [2, 1], strides = [1, 1]} : vector<2x20xf32> to vector<2x1xf32>
      %508 = vector.extract_strided_slice %407 {offsets = [15, 0], sizes = [1, 128], strides = [1, 1]} : vector<20x128xf32> to vector<1x128xf32>
      %509 = vector.broadcast %507 : vector<2x1xf32> to vector<2x128xf32>
      %510 = vector.broadcast %508 : vector<1x128xf32> to vector<2x128xf32>
      %511 = arith.mulf %509, %510 : vector<2x128xf32>
      %512 = arith.addf %506, %511 : vector<2x128xf32>
      %513 = vector.extract_strided_slice %417 {offsets = [0, 16], sizes = [2, 1], strides = [1, 1]} : vector<2x20xf32> to vector<2x1xf32>
      %514 = vector.extract_strided_slice %407 {offsets = [16, 0], sizes = [1, 128], strides = [1, 1]} : vector<20x128xf32> to vector<1x128xf32>
      %515 = vector.broadcast %513 : vector<2x1xf32> to vector<2x128xf32>
      %516 = vector.broadcast %514 : vector<1x128xf32> to vector<2x128xf32>
      %517 = arith.mulf %515, %516 : vector<2x128xf32>
      %518 = arith.addf %512, %517 : vector<2x128xf32>
      %519 = vector.extract_strided_slice %417 {offsets = [0, 17], sizes = [2, 1], strides = [1, 1]} : vector<2x20xf32> to vector<2x1xf32>
      %520 = vector.extract_strided_slice %407 {offsets = [17, 0], sizes = [1, 128], strides = [1, 1]} : vector<20x128xf32> to vector<1x128xf32>
      %521 = vector.broadcast %519 : vector<2x1xf32> to vector<2x128xf32>
      %522 = vector.broadcast %520 : vector<1x128xf32> to vector<2x128xf32>
      %523 = arith.mulf %521, %522 : vector<2x128xf32>
      %524 = arith.addf %518, %523 : vector<2x128xf32>
      %525 = vector.extract_strided_slice %417 {offsets = [0, 18], sizes = [2, 1], strides = [1, 1]} : vector<2x20xf32> to vector<2x1xf32>
      %526 = vector.extract_strided_slice %407 {offsets = [18, 0], sizes = [1, 128], strides = [1, 1]} : vector<20x128xf32> to vector<1x128xf32>
      %527 = vector.broadcast %525 : vector<2x1xf32> to vector<2x128xf32>
      %528 = vector.broadcast %526 : vector<1x128xf32> to vector<2x128xf32>
      %529 = arith.mulf %527, %528 : vector<2x128xf32>
      %530 = arith.addf %524, %529 : vector<2x128xf32>
      %531 = vector.extract_strided_slice %417 {offsets = [0, 19], sizes = [2, 1], strides = [1, 1]} : vector<2x20xf32> to vector<2x1xf32>
      %532 = vector.extract_strided_slice %407 {offsets = [19, 0], sizes = [1, 128], strides = [1, 1]} : vector<20x128xf32> to vector<1x128xf32>
      %533 = vector.broadcast %531 : vector<2x1xf32> to vector<2x128xf32>
      %534 = vector.broadcast %532 : vector<1x128xf32> to vector<2x128xf32>
      %535 = arith.mulf %533, %534 : vector<2x128xf32>
      %536 = arith.addf %530, %535 : vector<2x128xf32>
      %537 = arith.addf %416, %536 : vector<2x128xf32>
      %538 = vector.broadcast %408 : vector<1x128xf32> to vector<2x128xf32>
      %539 = arith.addf %537, %538 : vector<2x128xf32>
      %540 = arith.negf %539 : vector<2x128xf32>
      %541 = math.exp %540 : vector<2x128xf32>
      %cst_136 = arith.constant 1.000000e+00 : f32
      %542 = vector.broadcast %cst_136 : f32 to vector<2x128xf32>
      %543 = arith.addf %542, %541 : vector<2x128xf32>
      %544 = arith.divf %542, %543 : vector<2x128xf32>
      %545 = math.tanh %539 : vector<2x128xf32>
      %546 = vector.extract_strided_slice %544 {offsets = [0, 0], sizes = [2, 32], strides = [1, 1]} : vector<2x128xf32> to vector<2x32xf32>
      %547 = vector.extract_strided_slice %544 {offsets = [0, 32], sizes = [2, 32], strides = [1, 1]} : vector<2x128xf32> to vector<2x32xf32>
      %548 = vector.extract_strided_slice %545 {offsets = [0, 64], sizes = [2, 32], strides = [1, 1]} : vector<2x128xf32> to vector<2x32xf32>
      %549 = vector.extract_strided_slice %544 {offsets = [0, 96], sizes = [2, 32], strides = [1, 1]} : vector<2x128xf32> to vector<2x32xf32>
      %550 = arith.mulf %547, %406 : vector<2x32xf32>
      %551 = arith.mulf %546, %548 : vector<2x32xf32>
      %552 = arith.addf %550, %551 : vector<2x32xf32>
      %553 = math.tanh %552 : vector<2x32xf32>
      %554 = arith.mulf %549, %553 : vector<2x32xf32>
      %555 = vector.extract_strided_slice %554 {offsets = [0, 0], sizes = [2, 10], strides = [1, 1]} : vector<2x32xf32> to vector<2x10xf32>
      %556 = arith.index_cast %c0_i32_130 : i32 to index
      %c0_137 = arith.constant 0 : index
      %c0_138 = arith.constant 0 : index
      %557 = vector.load %arg20[%556, %c0_137, %c0_138] : memref<2x2x10xf32, #tpu.memory_space<vmem>>, vector<1x2x10xf32>
      %558 = vector.shape_cast %557 : vector<1x2x10xf32> to vector<2x10xf32>
      %559 = vector.shape_cast %555 : vector<2x10xf32> to vector<1x2x10xf32>
      tpu.vector_store %arg20[%556, %c0_137, %c0_138], %559 {strides = array<i32>} : memref<2x2x10xf32, #tpu.memory_space<vmem>>, vector<1x2x10xf32>,
      %560 = vector.extract_strided_slice %554 {offsets = [0, 10], sizes = [2, 10], strides = [1, 1]} : vector<2x32xf32> to vector<2x10xf32>
      %561 = arith.index_cast %409 : i32 to index
      %c0_139 = arith.constant 0 : index
      %c0_140 = arith.constant 0 : index
      %562 = vector.load %arg21[%561, %c0_139, %c0_140] : memref<2x2x10xf32, #tpu.memory_space<vmem>>, vector<1x2x10xf32>
      %563 = vector.shape_cast %562 : vector<1x2x10xf32> to vector<2x10xf32>
      %564 = vector.shape_cast %560 : vector<2x10xf32> to vector<1x2x10xf32>
      tpu.vector_store %arg21[%561, %c0_139, %c0_140], %564 {strides = array<i32>} : memref<2x2x10xf32, #tpu.memory_space<vmem>>, vector<1x2x10xf32>,
      %c1_i32_141 = arith.constant 1 : i32
      %c1_i32_142 = arith.constant 1 : i32
      %565 = arith.subi %c1_i32_142, %c1_i32_141 : i32
      %566 = arith.index_cast %c1_i32_141 : i32 to index
      %c0_143 = arith.constant 0 : index
      %c0_144 = arith.constant 0 : index
      %567 = vector.load %arg16[%566, %c0_143, %c0_144] : memref<2x2x128xf32, #tpu.memory_space<vmem>>, vector<1x2x128xf32>
      %568 = vector.shape_cast %567 : vector<1x2x128xf32> to vector<2x128xf32>
      %569 = arith.index_cast %565 : i32 to index
      %c0_145 = arith.constant 0 : index
      %c0_146 = arith.constant 0 : index
      %570 = vector.load %arg17[%569, %c0_145, %c0_146] : memref<2x2x128xf32, #tpu.memory_space<vmem>>, vector<1x2x128xf32>
      %571 = vector.shape_cast %570 : vector<1x2x128xf32> to vector<2x128xf32>
      %572 = arith.addf %568, %571 : vector<2x128xf32>
      %573 = vector.extract_strided_slice %554 {offsets = [0, 0], sizes = [2, 20], strides = [1, 1]} : vector<2x32xf32> to vector<2x20xf32>
      %574 = vector.extract_strided_slice %573 {offsets = [0, 0], sizes = [2, 1], strides = [1, 1]} : vector<2x20xf32> to vector<2x1xf32>
      %575 = vector.extract_strided_slice %407 {offsets = [0, 0], sizes = [1, 128], strides = [1, 1]} : vector<20x128xf32> to vector<1x128xf32>
      %576 = vector.broadcast %574 : vector<2x1xf32> to vector<2x128xf32>
      %577 = vector.broadcast %575 : vector<1x128xf32> to vector<2x128xf32>
      %578 = arith.mulf %576, %577 : vector<2x128xf32>
      %579 = vector.extract_strided_slice %573 {offsets = [0, 1], sizes = [2, 1], strides = [1, 1]} : vector<2x20xf32> to vector<2x1xf32>
      %580 = vector.extract_strided_slice %407 {offsets = [1, 0], sizes = [1, 128], strides = [1, 1]} : vector<20x128xf32> to vector<1x128xf32>
      %581 = vector.broadcast %579 : vector<2x1xf32> to vector<2x128xf32>
      %582 = vector.broadcast %580 : vector<1x128xf32> to vector<2x128xf32>
      %583 = arith.mulf %581, %582 : vector<2x128xf32>
      %584 = arith.addf %578, %583 : vector<2x128xf32>
      %585 = vector.extract_strided_slice %573 {offsets = [0, 2], sizes = [2, 1], strides = [1, 1]} : vector<2x20xf32> to vector<2x1xf32>
      %586 = vector.extract_strided_slice %407 {offsets = [2, 0], sizes = [1, 128], strides = [1, 1]} : vector<20x128xf32> to vector<1x128xf32>
      %587 = vector.broadcast %585 : vector<2x1xf32> to vector<2x128xf32>
      %588 = vector.broadcast %586 : vector<1x128xf32> to vector<2x128xf32>
      %589 = arith.mulf %587, %588 : vector<2x128xf32>
      %590 = arith.addf %584, %589 : vector<2x128xf32>
      %591 = vector.extract_strided_slice %573 {offsets = [0, 3], sizes = [2, 1], strides = [1, 1]} : vector<2x20xf32> to vector<2x1xf32>
      %592 = vector.extract_strided_slice %407 {offsets = [3, 0], sizes = [1, 128], strides = [1, 1]} : vector<20x128xf32> to vector<1x128xf32>
      %593 = vector.broadcast %591 : vector<2x1xf32> to vector<2x128xf32>
      %594 = vector.broadcast %592 : vector<1x128xf32> to vector<2x128xf32>
      %595 = arith.mulf %593, %594 : vector<2x128xf32>
      %596 = arith.addf %590, %595 : vector<2x128xf32>
      %597 = vector.extract_strided_slice %573 {offsets = [0, 4], sizes = [2, 1], strides = [1, 1]} : vector<2x20xf32> to vector<2x1xf32>
      %598 = vector.extract_strided_slice %407 {offsets = [4, 0], sizes = [1, 128], strides = [1, 1]} : vector<20x128xf32> to vector<1x128xf32>
      %599 = vector.broadcast %597 : vector<2x1xf32> to vector<2x128xf32>
      %600 = vector.broadcast %598 : vector<1x128xf32> to vector<2x128xf32>
      %601 = arith.mulf %599, %600 : vector<2x128xf32>
      %602 = arith.addf %596, %601 : vector<2x128xf32>
      %603 = vector.extract_strided_slice %573 {offsets = [0, 5], sizes = [2, 1], strides = [1, 1]} : vector<2x20xf32> to vector<2x1xf32>
      %604 = vector.extract_strided_slice %407 {offsets = [5, 0], sizes = [1, 128], strides = [1, 1]} : vector<20x128xf32> to vector<1x128xf32>
      %605 = vector.broadcast %603 : vector<2x1xf32> to vector<2x128xf32>
      %606 = vector.broadcast %604 : vector<1x128xf32> to vector<2x128xf32>
      %607 = arith.mulf %605, %606 : vector<2x128xf32>
      %608 = arith.addf %602, %607 : vector<2x128xf32>
      %609 = vector.extract_strided_slice %573 {offsets = [0, 6], sizes = [2, 1], strides = [1, 1]} : vector<2x20xf32> to vector<2x1xf32>
      %610 = vector.extract_strided_slice %407 {offsets = [6, 0], sizes = [1, 128], strides = [1, 1]} : vector<20x128xf32> to vector<1x128xf32>
      %611 = vector.broadcast %609 : vector<2x1xf32> to vector<2x128xf32>
      %612 = vector.broadcast %610 : vector<1x128xf32> to vector<2x128xf32>
      %613 = arith.mulf %611, %612 : vector<2x128xf32>
      %614 = arith.addf %608, %613 : vector<2x128xf32>
      %615 = vector.extract_strided_slice %573 {offsets = [0, 7], sizes = [2, 1], strides = [1, 1]} : vector<2x20xf32> to vector<2x1xf32>
      %616 = vector.extract_strided_slice %407 {offsets = [7, 0], sizes = [1, 128], strides = [1, 1]} : vector<20x128xf32> to vector<1x128xf32>
      %617 = vector.broadcast %615 : vector<2x1xf32> to vector<2x128xf32>
      %618 = vector.broadcast %616 : vector<1x128xf32> to vector<2x128xf32>
      %619 = arith.mulf %617, %618 : vector<2x128xf32>
      %620 = arith.addf %614, %619 : vector<2x128xf32>
      %621 = vector.extract_strided_slice %573 {offsets = [0, 8], sizes = [2, 1], strides = [1, 1]} : vector<2x20xf32> to vector<2x1xf32>
      %622 = vector.extract_strided_slice %407 {offsets = [8, 0], sizes = [1, 128], strides = [1, 1]} : vector<20x128xf32> to vector<1x128xf32>
      %623 = vector.broadcast %621 : vector<2x1xf32> to vector<2x128xf32>
      %624 = vector.broadcast %622 : vector<1x128xf32> to vector<2x128xf32>
      %625 = arith.mulf %623, %624 : vector<2x128xf32>
      %626 = arith.addf %620, %625 : vector<2x128xf32>
      %627 = vector.extract_strided_slice %573 {offsets = [0, 9], sizes = [2, 1], strides = [1, 1]} : vector<2x20xf32> to vector<2x1xf32>
      %628 = vector.extract_strided_slice %407 {offsets = [9, 0], sizes = [1, 128], strides = [1, 1]} : vector<20x128xf32> to vector<1x128xf32>
      %629 = vector.broadcast %627 : vector<2x1xf32> to vector<2x128xf32>
      %630 = vector.broadcast %628 : vector<1x128xf32> to vector<2x128xf32>
      %631 = arith.mulf %629, %630 : vector<2x128xf32>
      %632 = arith.addf %626, %631 : vector<2x128xf32>
      %633 = vector.extract_strided_slice %573 {offsets = [0, 10], sizes = [2, 1], strides = [1, 1]} : vector<2x20xf32> to vector<2x1xf32>
      %634 = vector.extract_strided_slice %407 {offsets = [10, 0], sizes = [1, 128], strides = [1, 1]} : vector<20x128xf32> to vector<1x128xf32>
      %635 = vector.broadcast %633 : vector<2x1xf32> to vector<2x128xf32>
      %636 = vector.broadcast %634 : vector<1x128xf32> to vector<2x128xf32>
      %637 = arith.mulf %635, %636 : vector<2x128xf32>
      %638 = arith.addf %632, %637 : vector<2x128xf32>
      %639 = vector.extract_strided_slice %573 {offsets = [0, 11], sizes = [2, 1], strides = [1, 1]} : vector<2x20xf32> to vector<2x1xf32>
      %640 = vector.extract_strided_slice %407 {offsets = [11, 0], sizes = [1, 128], strides = [1, 1]} : vector<20x128xf32> to vector<1x128xf32>
      %641 = vector.broadcast %639 : vector<2x1xf32> to vector<2x128xf32>
      %642 = vector.broadcast %640 : vector<1x128xf32> to vector<2x128xf32>
      %643 = arith.mulf %641, %642 : vector<2x128xf32>
      %644 = arith.addf %638, %643 : vector<2x128xf32>
      %645 = vector.extract_strided_slice %573 {offsets = [0, 12], sizes = [2, 1], strides = [1, 1]} : vector<2x20xf32> to vector<2x1xf32>
      %646 = vector.extract_strided_slice %407 {offsets = [12, 0], sizes = [1, 128], strides = [1, 1]} : vector<20x128xf32> to vector<1x128xf32>
      %647 = vector.broadcast %645 : vector<2x1xf32> to vector<2x128xf32>
      %648 = vector.broadcast %646 : vector<1x128xf32> to vector<2x128xf32>
      %649 = arith.mulf %647, %648 : vector<2x128xf32>
      %650 = arith.addf %644, %649 : vector<2x128xf32>
      %651 = vector.extract_strided_slice %573 {offsets = [0, 13], sizes = [2, 1], strides = [1, 1]} : vector<2x20xf32> to vector<2x1xf32>
      %652 = vector.extract_strided_slice %407 {offsets = [13, 0], sizes = [1, 128], strides = [1, 1]} : vector<20x128xf32> to vector<1x128xf32>
      %653 = vector.broadcast %651 : vector<2x1xf32> to vector<2x128xf32>
      %654 = vector.broadcast %652 : vector<1x128xf32> to vector<2x128xf32>
      %655 = arith.mulf %653, %654 : vector<2x128xf32>
      %656 = arith.addf %650, %655 : vector<2x128xf32>
      %657 = vector.extract_strided_slice %573 {offsets = [0, 14], sizes = [2, 1], strides = [1, 1]} : vector<2x20xf32> to vector<2x1xf32>
      %658 = vector.extract_strided_slice %407 {offsets = [14, 0], sizes = [1, 128], strides = [1, 1]} : vector<20x128xf32> to vector<1x128xf32>
      %659 = vector.broadcast %657 : vector<2x1xf32> to vector<2x128xf32>
      %660 = vector.broadcast %658 : vector<1x128xf32> to vector<2x128xf32>
      %661 = arith.mulf %659, %660 : vector<2x128xf32>
      %662 = arith.addf %656, %661 : vector<2x128xf32>
      %663 = vector.extract_strided_slice %573 {offsets = [0, 15], sizes = [2, 1], strides = [1, 1]} : vector<2x20xf32> to vector<2x1xf32>
      %664 = vector.extract_strided_slice %407 {offsets = [15, 0], sizes = [1, 128], strides = [1, 1]} : vector<20x128xf32> to vector<1x128xf32>
      %665 = vector.broadcast %663 : vector<2x1xf32> to vector<2x128xf32>
      %666 = vector.broadcast %664 : vector<1x128xf32> to vector<2x128xf32>
      %667 = arith.mulf %665, %666 : vector<2x128xf32>
      %668 = arith.addf %662, %667 : vector<2x128xf32>
      %669 = vector.extract_strided_slice %573 {offsets = [0, 16], sizes = [2, 1], strides = [1, 1]} : vector<2x20xf32> to vector<2x1xf32>
      %670 = vector.extract_strided_slice %407 {offsets = [16, 0], sizes = [1, 128], strides = [1, 1]} : vector<20x128xf32> to vector<1x128xf32>
      %671 = vector.broadcast %669 : vector<2x1xf32> to vector<2x128xf32>
      %672 = vector.broadcast %670 : vector<1x128xf32> to vector<2x128xf32>
      %673 = arith.mulf %671, %672 : vector<2x128xf32>
      %674 = arith.addf %668, %673 : vector<2x128xf32>
      %675 = vector.extract_strided_slice %573 {offsets = [0, 17], sizes = [2, 1], strides = [1, 1]} : vector<2x20xf32> to vector<2x1xf32>
      %676 = vector.extract_strided_slice %407 {offsets = [17, 0], sizes = [1, 128], strides = [1, 1]} : vector<20x128xf32> to vector<1x128xf32>
      %677 = vector.broadcast %675 : vector<2x1xf32> to vector<2x128xf32>
      %678 = vector.broadcast %676 : vector<1x128xf32> to vector<2x128xf32>
      %679 = arith.mulf %677, %678 : vector<2x128xf32>
      %680 = arith.addf %674, %679 : vector<2x128xf32>
      %681 = vector.extract_strided_slice %573 {offsets = [0, 18], sizes = [2, 1], strides = [1, 1]} : vector<2x20xf32> to vector<2x1xf32>
      %682 = vector.extract_strided_slice %407 {offsets = [18, 0], sizes = [1, 128], strides = [1, 1]} : vector<20x128xf32> to vector<1x128xf32>
      %683 = vector.broadcast %681 : vector<2x1xf32> to vector<2x128xf32>
      %684 = vector.broadcast %682 : vector<1x128xf32> to vector<2x128xf32>
      %685 = arith.mulf %683, %684 : vector<2x128xf32>
      %686 = arith.addf %680, %685 : vector<2x128xf32>
      %687 = vector.extract_strided_slice %573 {offsets = [0, 19], sizes = [2, 1], strides = [1, 1]} : vector<2x20xf32> to vector<2x1xf32>
      %688 = vector.extract_strided_slice %407 {offsets = [19, 0], sizes = [1, 128], strides = [1, 1]} : vector<20x128xf32> to vector<1x128xf32>
      %689 = vector.broadcast %687 : vector<2x1xf32> to vector<2x128xf32>
      %690 = vector.broadcast %688 : vector<1x128xf32> to vector<2x128xf32>
      %691 = arith.mulf %689, %690 : vector<2x128xf32>
      %692 = arith.addf %686, %691 : vector<2x128xf32>
      %693 = arith.addf %572, %692 : vector<2x128xf32>
      %694 = vector.broadcast %408 : vector<1x128xf32> to vector<2x128xf32>
      %695 = arith.addf %693, %694 : vector<2x128xf32>
      %696 = arith.negf %695 : vector<2x128xf32>
      %697 = math.exp %696 : vector<2x128xf32>
      %cst_147 = arith.constant 1.000000e+00 : f32
      %698 = vector.broadcast %cst_147 : f32 to vector<2x128xf32>
      %699 = arith.addf %698, %697 : vector<2x128xf32>
      %700 = arith.divf %698, %699 : vector<2x128xf32>
      %701 = math.tanh %695 : vector<2x128xf32>
      %702 = vector.extract_strided_slice %700 {offsets = [0, 0], sizes = [2, 32], strides = [1, 1]} : vector<2x128xf32> to vector<2x32xf32>
      %703 = vector.extract_strided_slice %700 {offsets = [0, 32], sizes = [2, 32], strides = [1, 1]} : vector<2x128xf32> to vector<2x32xf32>
      %704 = vector.extract_strided_slice %701 {offsets = [0, 64], sizes = [2, 32], strides = [1, 1]} : vector<2x128xf32> to vector<2x32xf32>
      %705 = vector.extract_strided_slice %700 {offsets = [0, 96], sizes = [2, 32], strides = [1, 1]} : vector<2x128xf32> to vector<2x32xf32>
      %706 = arith.mulf %703, %552 : vector<2x32xf32>
      %707 = arith.mulf %702, %704 : vector<2x32xf32>
      %708 = arith.addf %706, %707 : vector<2x32xf32>
      %709 = math.tanh %708 : vector<2x32xf32>
      %710 = arith.mulf %705, %709 : vector<2x32xf32>
      %711 = vector.extract_strided_slice %710 {offsets = [0, 0], sizes = [2, 10], strides = [1, 1]} : vector<2x32xf32> to vector<2x10xf32>
      %712 = arith.index_cast %c1_i32_141 : i32 to index
      %c0_148 = arith.constant 0 : index
      %c0_149 = arith.constant 0 : index
      %713 = vector.load %arg20[%712, %c0_148, %c0_149] : memref<2x2x10xf32, #tpu.memory_space<vmem>>, vector<1x2x10xf32>
      %714 = vector.shape_cast %713 : vector<1x2x10xf32> to vector<2x10xf32>
      %715 = vector.shape_cast %711 : vector<2x10xf32> to vector<1x2x10xf32>
      tpu.vector_store %arg20[%712, %c0_148, %c0_149], %715 {strides = array<i32>} : memref<2x2x10xf32, #tpu.memory_space<vmem>>, vector<1x2x10xf32>,
      %716 = vector.extract_strided_slice %710 {offsets = [0, 10], sizes = [2, 10], strides = [1, 1]} : vector<2x32xf32> to vector<2x10xf32>
      %717 = arith.index_cast %565 : i32 to index
      %c0_150 = arith.constant 0 : index
      %c0_151 = arith.constant 0 : index
      %718 = vector.load %arg21[%717, %c0_150, %c0_151] : memref<2x2x10xf32, #tpu.memory_space<vmem>>, vector<1x2x10xf32>
      %719 = vector.shape_cast %718 : vector<1x2x10xf32> to vector<2x10xf32>
      %720 = vector.shape_cast %716 : vector<2x10xf32> to vector<1x2x10xf32>
      tpu.vector_store %arg21[%717, %c0_150, %c0_151], %720 {strides = array<i32>} : memref<2x2x10xf32, #tpu.memory_space<vmem>>, vector<1x2x10xf32>,
      %c2_i32_152 = arith.constant 2 : i32
      %c0_153 = arith.constant 0 : index
      %c0_154 = arith.constant 0 : index
      %c0_155 = arith.constant 0 : index
      %721 = vector.load %arg20[%c0_153, %c0_154, %c0_155] : memref<2x2x10xf32, #tpu.memory_space<vmem>>, vector<2x2x10xf32>
      %c0_156 = arith.constant 0 : index
      %c0_157 = arith.constant 0 : index
      %c0_158 = arith.constant 0 : index
      %722 = vector.load %arg21[%c0_156, %c0_157, %c0_158] : memref<2x2x10xf32, #tpu.memory_space<vmem>>, vector<2x2x10xf32>
      %c0_159 = arith.constant 0 : index
      %c0_160 = arith.constant 0 : index
      %723 = vector.load %arg7[%c0_159, %c0_160] : memref<40x128xf32, #tpu.memory_space<vmem>>, vector<10x128xf32>
      %c10_161 = arith.constant 10 : index
      %c0_162 = arith.constant 0 : index
      %724 = vector.load %arg7[%c10_161, %c0_162] : memref<40x128xf32, #tpu.memory_space<vmem>>, vector<10x128xf32>
      %c20 = arith.constant 20 : index
      %c0_163 = arith.constant 0 : index
      %725 = vector.load %arg7[%c20, %c0_163] : memref<40x128xf32, #tpu.memory_space<vmem>>, vector<10x128xf32>
      %c30 = arith.constant 30 : index
      %c0_164 = arith.constant 0 : index
      %726 = vector.load %arg7[%c30, %c0_164] : memref<40x128xf32, #tpu.memory_space<vmem>>, vector<10x128xf32>
      %cst_165 = arith.constant 0.000000e+00 : f32
      %727 = vector.broadcast %cst_165 : f32 to vector<2x2x128xf32>
      %cst_166 = arith.constant 0.000000e+00 : f32
      %728 = vector.broadcast %cst_166 : f32 to vector<2x2x128xf32>
      %729 = vector.extract_strided_slice %721 {offsets = [0, 0, 0], sizes = [2, 2, 1], strides = [1, 1, 1]} : vector<2x2x10xf32> to vector<2x2x1xf32>
      %730 = vector.extract_strided_slice %722 {offsets = [0, 0, 0], sizes = [2, 2, 1], strides = [1, 1, 1]} : vector<2x2x10xf32> to vector<2x2x1xf32>
      %731 = vector.extract_strided_slice %723 {offsets = [0, 0], sizes = [1, 128], strides = [1, 1]} : vector<10x128xf32> to vector<1x128xf32>
      %732 = vector.shape_cast %731 : vector<1x128xf32> to vector<1x1x128xf32>
      %733 = vector.broadcast %729 : vector<2x2x1xf32> to vector<2x2x128xf32>
      %734 = vector.broadcast %732 : vector<1x1x128xf32> to vector<2x2x128xf32>
      %735 = arith.mulf %733, %734 : vector<2x2x128xf32>
      %736 = arith.addf %727, %735 : vector<2x2x128xf32>
      %737 = vector.extract_strided_slice %724 {offsets = [0, 0], sizes = [1, 128], strides = [1, 1]} : vector<10x128xf32> to vector<1x128xf32>
      %738 = vector.shape_cast %737 : vector<1x128xf32> to vector<1x1x128xf32>
      %739 = vector.broadcast %730 : vector<2x2x1xf32> to vector<2x2x128xf32>
      %740 = vector.broadcast %738 : vector<1x1x128xf32> to vector<2x2x128xf32>
      %741 = arith.mulf %739, %740 : vector<2x2x128xf32>
      %742 = arith.addf %736, %741 : vector<2x2x128xf32>
      %743 = vector.extract_strided_slice %725 {offsets = [0, 0], sizes = [1, 128], strides = [1, 1]} : vector<10x128xf32> to vector<1x128xf32>
      %744 = vector.shape_cast %743 : vector<1x128xf32> to vector<1x1x128xf32>
      %745 = vector.broadcast %729 : vector<2x2x1xf32> to vector<2x2x128xf32>
      %746 = vector.broadcast %744 : vector<1x1x128xf32> to vector<2x2x128xf32>
      %747 = arith.mulf %745, %746 : vector<2x2x128xf32>
      %748 = arith.addf %728, %747 : vector<2x2x128xf32>
      %749 = vector.extract_strided_slice %726 {offsets = [0, 0], sizes = [1, 128], strides = [1, 1]} : vector<10x128xf32> to vector<1x128xf32>
      %750 = vector.shape_cast %749 : vector<1x128xf32> to vector<1x1x128xf32>
      %751 = vector.broadcast %730 : vector<2x2x1xf32> to vector<2x2x128xf32>
      %752 = vector.broadcast %750 : vector<1x1x128xf32> to vector<2x2x128xf32>
      %753 = arith.mulf %751, %752 : vector<2x2x128xf32>
      %754 = arith.addf %748, %753 : vector<2x2x128xf32>
      %755 = vector.extract_strided_slice %721 {offsets = [0, 0, 1], sizes = [2, 2, 1], strides = [1, 1, 1]} : vector<2x2x10xf32> to vector<2x2x1xf32>
      %756 = vector.extract_strided_slice %722 {offsets = [0, 0, 1], sizes = [2, 2, 1], strides = [1, 1, 1]} : vector<2x2x10xf32> to vector<2x2x1xf32>
      %757 = vector.extract_strided_slice %723 {offsets = [1, 0], sizes = [1, 128], strides = [1, 1]} : vector<10x128xf32> to vector<1x128xf32>
      %758 = vector.shape_cast %757 : vector<1x128xf32> to vector<1x1x128xf32>
      %759 = vector.broadcast %755 : vector<2x2x1xf32> to vector<2x2x128xf32>
      %760 = vector.broadcast %758 : vector<1x1x128xf32> to vector<2x2x128xf32>
      %761 = arith.mulf %759, %760 : vector<2x2x128xf32>
      %762 = arith.addf %742, %761 : vector<2x2x128xf32>
      %763 = vector.extract_strided_slice %724 {offsets = [1, 0], sizes = [1, 128], strides = [1, 1]} : vector<10x128xf32> to vector<1x128xf32>
      %764 = vector.shape_cast %763 : vector<1x128xf32> to vector<1x1x128xf32>
      %765 = vector.broadcast %756 : vector<2x2x1xf32> to vector<2x2x128xf32>
      %766 = vector.broadcast %764 : vector<1x1x128xf32> to vector<2x2x128xf32>
      %767 = arith.mulf %765, %766 : vector<2x2x128xf32>
      %768 = arith.addf %762, %767 : vector<2x2x128xf32>
      %769 = vector.extract_strided_slice %725 {offsets = [1, 0], sizes = [1, 128], strides = [1, 1]} : vector<10x128xf32> to vector<1x128xf32>
      %770 = vector.shape_cast %769 : vector<1x128xf32> to vector<1x1x128xf32>
      %771 = vector.broadcast %755 : vector<2x2x1xf32> to vector<2x2x128xf32>
      %772 = vector.broadcast %770 : vector<1x1x128xf32> to vector<2x2x128xf32>
      %773 = arith.mulf %771, %772 : vector<2x2x128xf32>
      %774 = arith.addf %754, %773 : vector<2x2x128xf32>
      %775 = vector.extract_strided_slice %726 {offsets = [1, 0], sizes = [1, 128], strides = [1, 1]} : vector<10x128xf32> to vector<1x128xf32>
      %776 = vector.shape_cast %775 : vector<1x128xf32> to vector<1x1x128xf32>
      %777 = vector.broadcast %756 : vector<2x2x1xf32> to vector<2x2x128xf32>
      %778 = vector.broadcast %776 : vector<1x1x128xf32> to vector<2x2x128xf32>
      %779 = arith.mulf %777, %778 : vector<2x2x128xf32>
      %780 = arith.addf %774, %779 : vector<2x2x128xf32>
      %781 = vector.extract_strided_slice %721 {offsets = [0, 0, 2], sizes = [2, 2, 1], strides = [1, 1, 1]} : vector<2x2x10xf32> to vector<2x2x1xf32>
      %782 = vector.extract_strided_slice %722 {offsets = [0, 0, 2], sizes = [2, 2, 1], strides = [1, 1, 1]} : vector<2x2x10xf32> to vector<2x2x1xf32>
      %783 = vector.extract_strided_slice %723 {offsets = [2, 0], sizes = [1, 128], strides = [1, 1]} : vector<10x128xf32> to vector<1x128xf32>
      %784 = vector.shape_cast %783 : vector<1x128xf32> to vector<1x1x128xf32>
      %785 = vector.broadcast %781 : vector<2x2x1xf32> to vector<2x2x128xf32>
      %786 = vector.broadcast %784 : vector<1x1x128xf32> to vector<2x2x128xf32>
      %787 = arith.mulf %785, %786 : vector<2x2x128xf32>
      %788 = arith.addf %768, %787 : vector<2x2x128xf32>
      %789 = vector.extract_strided_slice %724 {offsets = [2, 0], sizes = [1, 128], strides = [1, 1]} : vector<10x128xf32> to vector<1x128xf32>
      %790 = vector.shape_cast %789 : vector<1x128xf32> to vector<1x1x128xf32>
      %791 = vector.broadcast %782 : vector<2x2x1xf32> to vector<2x2x128xf32>
      %792 = vector.broadcast %790 : vector<1x1x128xf32> to vector<2x2x128xf32>
      %793 = arith.mulf %791, %792 : vector<2x2x128xf32>
      %794 = arith.addf %788, %793 : vector<2x2x128xf32>
      %795 = vector.extract_strided_slice %725 {offsets = [2, 0], sizes = [1, 128], strides = [1, 1]} : vector<10x128xf32> to vector<1x128xf32>
      %796 = vector.shape_cast %795 : vector<1x128xf32> to vector<1x1x128xf32>
      %797 = vector.broadcast %781 : vector<2x2x1xf32> to vector<2x2x128xf32>
      %798 = vector.broadcast %796 : vector<1x1x128xf32> to vector<2x2x128xf32>
      %799 = arith.mulf %797, %798 : vector<2x2x128xf32>
      %800 = arith.addf %780, %799 : vector<2x2x128xf32>
      %801 = vector.extract_strided_slice %726 {offsets = [2, 0], sizes = [1, 128], strides = [1, 1]} : vector<10x128xf32> to vector<1x128xf32>
      %802 = vector.shape_cast %801 : vector<1x128xf32> to vector<1x1x128xf32>
      %803 = vector.broadcast %782 : vector<2x2x1xf32> to vector<2x2x128xf32>
      %804 = vector.broadcast %802 : vector<1x1x128xf32> to vector<2x2x128xf32>
      %805 = arith.mulf %803, %804 : vector<2x2x128xf32>
      %806 = arith.addf %800, %805 : vector<2x2x128xf32>
      %807 = vector.extract_strided_slice %721 {offsets = [0, 0, 3], sizes = [2, 2, 1], strides = [1, 1, 1]} : vector<2x2x10xf32> to vector<2x2x1xf32>
      %808 = vector.extract_strided_slice %722 {offsets = [0, 0, 3], sizes = [2, 2, 1], strides = [1, 1, 1]} : vector<2x2x10xf32> to vector<2x2x1xf32>
      %809 = vector.extract_strided_slice %723 {offsets = [3, 0], sizes = [1, 128], strides = [1, 1]} : vector<10x128xf32> to vector<1x128xf32>
      %810 = vector.shape_cast %809 : vector<1x128xf32> to vector<1x1x128xf32>
      %811 = vector.broadcast %807 : vector<2x2x1xf32> to vector<2x2x128xf32>
      %812 = vector.broadcast %810 : vector<1x1x128xf32> to vector<2x2x128xf32>
      %813 = arith.mulf %811, %812 : vector<2x2x128xf32>
      %814 = arith.addf %794, %813 : vector<2x2x128xf32>
      %815 = vector.extract_strided_slice %724 {offsets = [3, 0], sizes = [1, 128], strides = [1, 1]} : vector<10x128xf32> to vector<1x128xf32>
      %816 = vector.shape_cast %815 : vector<1x128xf32> to vector<1x1x128xf32>
      %817 = vector.broadcast %808 : vector<2x2x1xf32> to vector<2x2x128xf32>
      %818 = vector.broadcast %816 : vector<1x1x128xf32> to vector<2x2x128xf32>
      %819 = arith.mulf %817, %818 : vector<2x2x128xf32>
      %820 = arith.addf %814, %819 : vector<2x2x128xf32>
      %821 = vector.extract_strided_slice %725 {offsets = [3, 0], sizes = [1, 128], strides = [1, 1]} : vector<10x128xf32> to vector<1x128xf32>
      %822 = vector.shape_cast %821 : vector<1x128xf32> to vector<1x1x128xf32>
      %823 = vector.broadcast %807 : vector<2x2x1xf32> to vector<2x2x128xf32>
      %824 = vector.broadcast %822 : vector<1x1x128xf32> to vector<2x2x128xf32>
      %825 = arith.mulf %823, %824 : vector<2x2x128xf32>
      %826 = arith.addf %806, %825 : vector<2x2x128xf32>
      %827 = vector.extract_strided_slice %726 {offsets = [3, 0], sizes = [1, 128], strides = [1, 1]} : vector<10x128xf32> to vector<1x128xf32>
      %828 = vector.shape_cast %827 : vector<1x128xf32> to vector<1x1x128xf32>
      %829 = vector.broadcast %808 : vector<2x2x1xf32> to vector<2x2x128xf32>
      %830 = vector.broadcast %828 : vector<1x1x128xf32> to vector<2x2x128xf32>
      %831 = arith.mulf %829, %830 : vector<2x2x128xf32>
      %832 = arith.addf %826, %831 : vector<2x2x128xf32>
      %833 = vector.extract_strided_slice %721 {offsets = [0, 0, 4], sizes = [2, 2, 1], strides = [1, 1, 1]} : vector<2x2x10xf32> to vector<2x2x1xf32>
      %834 = vector.extract_strided_slice %722 {offsets = [0, 0, 4], sizes = [2, 2, 1], strides = [1, 1, 1]} : vector<2x2x10xf32> to vector<2x2x1xf32>
      %835 = vector.extract_strided_slice %723 {offsets = [4, 0], sizes = [1, 128], strides = [1, 1]} : vector<10x128xf32> to vector<1x128xf32>
      %836 = vector.shape_cast %835 : vector<1x128xf32> to vector<1x1x128xf32>
      %837 = vector.broadcast %833 : vector<2x2x1xf32> to vector<2x2x128xf32>
      %838 = vector.broadcast %836 : vector<1x1x128xf32> to vector<2x2x128xf32>
      %839 = arith.mulf %837, %838 : vector<2x2x128xf32>
      %840 = arith.addf %820, %839 : vector<2x2x128xf32>
      %841 = vector.extract_strided_slice %724 {offsets = [4, 0], sizes = [1, 128], strides = [1, 1]} : vector<10x128xf32> to vector<1x128xf32>
      %842 = vector.shape_cast %841 : vector<1x128xf32> to vector<1x1x128xf32>
      %843 = vector.broadcast %834 : vector<2x2x1xf32> to vector<2x2x128xf32>
      %844 = vector.broadcast %842 : vector<1x1x128xf32> to vector<2x2x128xf32>
      %845 = arith.mulf %843, %844 : vector<2x2x128xf32>
      %846 = arith.addf %840, %845 : vector<2x2x128xf32>
      %847 = vector.extract_strided_slice %725 {offsets = [4, 0], sizes = [1, 128], strides = [1, 1]} : vector<10x128xf32> to vector<1x128xf32>
      %848 = vector.shape_cast %847 : vector<1x128xf32> to vector<1x1x128xf32>
      %849 = vector.broadcast %833 : vector<2x2x1xf32> to vector<2x2x128xf32>
      %850 = vector.broadcast %848 : vector<1x1x128xf32> to vector<2x2x128xf32>
      %851 = arith.mulf %849, %850 : vector<2x2x128xf32>
      %852 = arith.addf %832, %851 : vector<2x2x128xf32>
      %853 = vector.extract_strided_slice %726 {offsets = [4, 0], sizes = [1, 128], strides = [1, 1]} : vector<10x128xf32> to vector<1x128xf32>
      %854 = vector.shape_cast %853 : vector<1x128xf32> to vector<1x1x128xf32>
      %855 = vector.broadcast %834 : vector<2x2x1xf32> to vector<2x2x128xf32>
      %856 = vector.broadcast %854 : vector<1x1x128xf32> to vector<2x2x128xf32>
      %857 = arith.mulf %855, %856 : vector<2x2x128xf32>
      %858 = arith.addf %852, %857 : vector<2x2x128xf32>
      %859 = vector.extract_strided_slice %721 {offsets = [0, 0, 5], sizes = [2, 2, 1], strides = [1, 1, 1]} : vector<2x2x10xf32> to vector<2x2x1xf32>
      %860 = vector.extract_strided_slice %722 {offsets = [0, 0, 5], sizes = [2, 2, 1], strides = [1, 1, 1]} : vector<2x2x10xf32> to vector<2x2x1xf32>
      %861 = vector.extract_strided_slice %723 {offsets = [5, 0], sizes = [1, 128], strides = [1, 1]} : vector<10x128xf32> to vector<1x128xf32>
      %862 = vector.shape_cast %861 : vector<1x128xf32> to vector<1x1x128xf32>
      %863 = vector.broadcast %859 : vector<2x2x1xf32> to vector<2x2x128xf32>
      %864 = vector.broadcast %862 : vector<1x1x128xf32> to vector<2x2x128xf32>
      %865 = arith.mulf %863, %864 : vector<2x2x128xf32>
      %866 = arith.addf %846, %865 : vector<2x2x128xf32>
      %867 = vector.extract_strided_slice %724 {offsets = [5, 0], sizes = [1, 128], strides = [1, 1]} : vector<10x128xf32> to vector<1x128xf32>
      %868 = vector.shape_cast %867 : vector<1x128xf32> to vector<1x1x128xf32>
      %869 = vector.broadcast %860 : vector<2x2x1xf32> to vector<2x2x128xf32>
      %870 = vector.broadcast %868 : vector<1x1x128xf32> to vector<2x2x128xf32>
      %871 = arith.mulf %869, %870 : vector<2x2x128xf32>
      %872 = arith.addf %866, %871 : vector<2x2x128xf32>
      %873 = vector.extract_strided_slice %725 {offsets = [5, 0], sizes = [1, 128], strides = [1, 1]} : vector<10x128xf32> to vector<1x128xf32>
      %874 = vector.shape_cast %873 : vector<1x128xf32> to vector<1x1x128xf32>
      %875 = vector.broadcast %859 : vector<2x2x1xf32> to vector<2x2x128xf32>
      %876 = vector.broadcast %874 : vector<1x1x128xf32> to vector<2x2x128xf32>
      %877 = arith.mulf %875, %876 : vector<2x2x128xf32>
      %878 = arith.addf %858, %877 : vector<2x2x128xf32>
      %879 = vector.extract_strided_slice %726 {offsets = [5, 0], sizes = [1, 128], strides = [1, 1]} : vector<10x128xf32> to vector<1x128xf32>
      %880 = vector.shape_cast %879 : vector<1x128xf32> to vector<1x1x128xf32>
      %881 = vector.broadcast %860 : vector<2x2x1xf32> to vector<2x2x128xf32>
      %882 = vector.broadcast %880 : vector<1x1x128xf32> to vector<2x2x128xf32>
      %883 = arith.mulf %881, %882 : vector<2x2x128xf32>
      %884 = arith.addf %878, %883 : vector<2x2x128xf32>
      %885 = vector.extract_strided_slice %721 {offsets = [0, 0, 6], sizes = [2, 2, 1], strides = [1, 1, 1]} : vector<2x2x10xf32> to vector<2x2x1xf32>
      %886 = vector.extract_strided_slice %722 {offsets = [0, 0, 6], sizes = [2, 2, 1], strides = [1, 1, 1]} : vector<2x2x10xf32> to vector<2x2x1xf32>
      %887 = vector.extract_strided_slice %723 {offsets = [6, 0], sizes = [1, 128], strides = [1, 1]} : vector<10x128xf32> to vector<1x128xf32>
      %888 = vector.shape_cast %887 : vector<1x128xf32> to vector<1x1x128xf32>
      %889 = vector.broadcast %885 : vector<2x2x1xf32> to vector<2x2x128xf32>
      %890 = vector.broadcast %888 : vector<1x1x128xf32> to vector<2x2x128xf32>
      %891 = arith.mulf %889, %890 : vector<2x2x128xf32>
      %892 = arith.addf %872, %891 : vector<2x2x128xf32>
      %893 = vector.extract_strided_slice %724 {offsets = [6, 0], sizes = [1, 128], strides = [1, 1]} : vector<10x128xf32> to vector<1x128xf32>
      %894 = vector.shape_cast %893 : vector<1x128xf32> to vector<1x1x128xf32>
      %895 = vector.broadcast %886 : vector<2x2x1xf32> to vector<2x2x128xf32>
      %896 = vector.broadcast %894 : vector<1x1x128xf32> to vector<2x2x128xf32>
      %897 = arith.mulf %895, %896 : vector<2x2x128xf32>
      %898 = arith.addf %892, %897 : vector<2x2x128xf32>
      %899 = vector.extract_strided_slice %725 {offsets = [6, 0], sizes = [1, 128], strides = [1, 1]} : vector<10x128xf32> to vector<1x128xf32>
      %900 = vector.shape_cast %899 : vector<1x128xf32> to vector<1x1x128xf32>
      %901 = vector.broadcast %885 : vector<2x2x1xf32> to vector<2x2x128xf32>
      %902 = vector.broadcast %900 : vector<1x1x128xf32> to vector<2x2x128xf32>
      %903 = arith.mulf %901, %902 : vector<2x2x128xf32>
      %904 = arith.addf %884, %903 : vector<2x2x128xf32>
      %905 = vector.extract_strided_slice %726 {offsets = [6, 0], sizes = [1, 128], strides = [1, 1]} : vector<10x128xf32> to vector<1x128xf32>
      %906 = vector.shape_cast %905 : vector<1x128xf32> to vector<1x1x128xf32>
      %907 = vector.broadcast %886 : vector<2x2x1xf32> to vector<2x2x128xf32>
      %908 = vector.broadcast %906 : vector<1x1x128xf32> to vector<2x2x128xf32>
      %909 = arith.mulf %907, %908 : vector<2x2x128xf32>
      %910 = arith.addf %904, %909 : vector<2x2x128xf32>
      %911 = vector.extract_strided_slice %721 {offsets = [0, 0, 7], sizes = [2, 2, 1], strides = [1, 1, 1]} : vector<2x2x10xf32> to vector<2x2x1xf32>
      %912 = vector.extract_strided_slice %722 {offsets = [0, 0, 7], sizes = [2, 2, 1], strides = [1, 1, 1]} : vector<2x2x10xf32> to vector<2x2x1xf32>
      %913 = vector.extract_strided_slice %723 {offsets = [7, 0], sizes = [1, 128], strides = [1, 1]} : vector<10x128xf32> to vector<1x128xf32>
      %914 = vector.shape_cast %913 : vector<1x128xf32> to vector<1x1x128xf32>
      %915 = vector.broadcast %911 : vector<2x2x1xf32> to vector<2x2x128xf32>
      %916 = vector.broadcast %914 : vector<1x1x128xf32> to vector<2x2x128xf32>
      %917 = arith.mulf %915, %916 : vector<2x2x128xf32>
      %918 = arith.addf %898, %917 : vector<2x2x128xf32>
      %919 = vector.extract_strided_slice %724 {offsets = [7, 0], sizes = [1, 128], strides = [1, 1]} : vector<10x128xf32> to vector<1x128xf32>
      %920 = vector.shape_cast %919 : vector<1x128xf32> to vector<1x1x128xf32>
      %921 = vector.broadcast %912 : vector<2x2x1xf32> to vector<2x2x128xf32>
      %922 = vector.broadcast %920 : vector<1x1x128xf32> to vector<2x2x128xf32>
      %923 = arith.mulf %921, %922 : vector<2x2x128xf32>
      %924 = arith.addf %918, %923 : vector<2x2x128xf32>
      %925 = vector.extract_strided_slice %725 {offsets = [7, 0], sizes = [1, 128], strides = [1, 1]} : vector<10x128xf32> to vector<1x128xf32>
      %926 = vector.shape_cast %925 : vector<1x128xf32> to vector<1x1x128xf32>
      %927 = vector.broadcast %911 : vector<2x2x1xf32> to vector<2x2x128xf32>
      %928 = vector.broadcast %926 : vector<1x1x128xf32> to vector<2x2x128xf32>
      %929 = arith.mulf %927, %928 : vector<2x2x128xf32>
      %930 = arith.addf %910, %929 : vector<2x2x128xf32>
      %931 = vector.extract_strided_slice %726 {offsets = [7, 0], sizes = [1, 128], strides = [1, 1]} : vector<10x128xf32> to vector<1x128xf32>
      %932 = vector.shape_cast %931 : vector<1x128xf32> to vector<1x1x128xf32>
      %933 = vector.broadcast %912 : vector<2x2x1xf32> to vector<2x2x128xf32>
      %934 = vector.broadcast %932 : vector<1x1x128xf32> to vector<2x2x128xf32>
      %935 = arith.mulf %933, %934 : vector<2x2x128xf32>
      %936 = arith.addf %930, %935 : vector<2x2x128xf32>
      %937 = vector.extract_strided_slice %721 {offsets = [0, 0, 8], sizes = [2, 2, 1], strides = [1, 1, 1]} : vector<2x2x10xf32> to vector<2x2x1xf32>
      %938 = vector.extract_strided_slice %722 {offsets = [0, 0, 8], sizes = [2, 2, 1], strides = [1, 1, 1]} : vector<2x2x10xf32> to vector<2x2x1xf32>
      %939 = vector.extract_strided_slice %723 {offsets = [8, 0], sizes = [1, 128], strides = [1, 1]} : vector<10x128xf32> to vector<1x128xf32>
      %940 = vector.shape_cast %939 : vector<1x128xf32> to vector<1x1x128xf32>
      %941 = vector.broadcast %937 : vector<2x2x1xf32> to vector<2x2x128xf32>
      %942 = vector.broadcast %940 : vector<1x1x128xf32> to vector<2x2x128xf32>
      %943 = arith.mulf %941, %942 : vector<2x2x128xf32>
      %944 = arith.addf %924, %943 : vector<2x2x128xf32>
      %945 = vector.extract_strided_slice %724 {offsets = [8, 0], sizes = [1, 128], strides = [1, 1]} : vector<10x128xf32> to vector<1x128xf32>
      %946 = vector.shape_cast %945 : vector<1x128xf32> to vector<1x1x128xf32>
      %947 = vector.broadcast %938 : vector<2x2x1xf32> to vector<2x2x128xf32>
      %948 = vector.broadcast %946 : vector<1x1x128xf32> to vector<2x2x128xf32>
      %949 = arith.mulf %947, %948 : vector<2x2x128xf32>
      %950 = arith.addf %944, %949 : vector<2x2x128xf32>
      %951 = vector.extract_strided_slice %725 {offsets = [8, 0], sizes = [1, 128], strides = [1, 1]} : vector<10x128xf32> to vector<1x128xf32>
      %952 = vector.shape_cast %951 : vector<1x128xf32> to vector<1x1x128xf32>
      %953 = vector.broadcast %937 : vector<2x2x1xf32> to vector<2x2x128xf32>
      %954 = vector.broadcast %952 : vector<1x1x128xf32> to vector<2x2x128xf32>
      %955 = arith.mulf %953, %954 : vector<2x2x128xf32>
      %956 = arith.addf %936, %955 : vector<2x2x128xf32>
      %957 = vector.extract_strided_slice %726 {offsets = [8, 0], sizes = [1, 128], strides = [1, 1]} : vector<10x128xf32> to vector<1x128xf32>
      %958 = vector.shape_cast %957 : vector<1x128xf32> to vector<1x1x128xf32>
      %959 = vector.broadcast %938 : vector<2x2x1xf32> to vector<2x2x128xf32>
      %960 = vector.broadcast %958 : vector<1x1x128xf32> to vector<2x2x128xf32>
      %961 = arith.mulf %959, %960 : vector<2x2x128xf32>
      %962 = arith.addf %956, %961 : vector<2x2x128xf32>
      %963 = vector.extract_strided_slice %721 {offsets = [0, 0, 9], sizes = [2, 2, 1], strides = [1, 1, 1]} : vector<2x2x10xf32> to vector<2x2x1xf32>
      %964 = vector.extract_strided_slice %722 {offsets = [0, 0, 9], sizes = [2, 2, 1], strides = [1, 1, 1]} : vector<2x2x10xf32> to vector<2x2x1xf32>
      %965 = vector.extract_strided_slice %723 {offsets = [9, 0], sizes = [1, 128], strides = [1, 1]} : vector<10x128xf32> to vector<1x128xf32>
      %966 = vector.shape_cast %965 : vector<1x128xf32> to vector<1x1x128xf32>
      %967 = vector.broadcast %963 : vector<2x2x1xf32> to vector<2x2x128xf32>
      %968 = vector.broadcast %966 : vector<1x1x128xf32> to vector<2x2x128xf32>
      %969 = arith.mulf %967, %968 : vector<2x2x128xf32>
      %970 = arith.addf %950, %969 : vector<2x2x128xf32>
      %971 = vector.extract_strided_slice %724 {offsets = [9, 0], sizes = [1, 128], strides = [1, 1]} : vector<10x128xf32> to vector<1x128xf32>
      %972 = vector.shape_cast %971 : vector<1x128xf32> to vector<1x1x128xf32>
      %973 = vector.broadcast %964 : vector<2x2x1xf32> to vector<2x2x128xf32>
      %974 = vector.broadcast %972 : vector<1x1x128xf32> to vector<2x2x128xf32>
      %975 = arith.mulf %973, %974 : vector<2x2x128xf32>
      %976 = arith.addf %970, %975 : vector<2x2x128xf32>
      %977 = vector.extract_strided_slice %725 {offsets = [9, 0], sizes = [1, 128], strides = [1, 1]} : vector<10x128xf32> to vector<1x128xf32>
      %978 = vector.shape_cast %977 : vector<1x128xf32> to vector<1x1x128xf32>
      %979 = vector.broadcast %963 : vector<2x2x1xf32> to vector<2x2x128xf32>
      %980 = vector.broadcast %978 : vector<1x1x128xf32> to vector<2x2x128xf32>
      %981 = arith.mulf %979, %980 : vector<2x2x128xf32>
      %982 = arith.addf %962, %981 : vector<2x2x128xf32>
      %983 = vector.extract_strided_slice %726 {offsets = [9, 0], sizes = [1, 128], strides = [1, 1]} : vector<10x128xf32> to vector<1x128xf32>
      %984 = vector.shape_cast %983 : vector<1x128xf32> to vector<1x1x128xf32>
      %985 = vector.broadcast %964 : vector<2x2x1xf32> to vector<2x2x128xf32>
      %986 = vector.broadcast %984 : vector<1x1x128xf32> to vector<2x2x128xf32>
      %987 = arith.mulf %985, %986 : vector<2x2x128xf32>
      %988 = arith.addf %982, %987 : vector<2x2x128xf32>
      %c0_167 = arith.constant 0 : index
      %c0_168 = arith.constant 0 : index
      %c0_169 = arith.constant 0 : index
      %989 = vector.load %arg18[%c0_167, %c0_168, %c0_169] : memref<2x2x128xf32, #tpu.memory_space<vmem>>, vector<2x2x128xf32>
      tpu.vector_store %arg18[%c0_167, %c0_168, %c0_169], %976 {strides = array<i32>} : memref<2x2x128xf32, #tpu.memory_space<vmem>>, vector<2x2x128xf32>,
      %c0_170 = arith.constant 0 : index
      %c0_171 = arith.constant 0 : index
      %c0_172 = arith.constant 0 : index
      %990 = vector.load %arg19[%c0_170, %c0_171, %c0_172] : memref<2x2x128xf32, #tpu.memory_space<vmem>>, vector<2x2x128xf32>
      tpu.vector_store %arg19[%c0_170, %c0_171, %c0_172], %988 {strides = array<i32>} : memref<2x2x128xf32, #tpu.memory_space<vmem>>, vector<2x2x128xf32>,
      %c0_173 = arith.constant 0 : index
      %c0_174 = arith.constant 0 : index
      %991 = vector.load %arg8[%c0_173, %c0_174] : memref<20x128xf32, #tpu.memory_space<vmem>>, vector<20x128xf32>
      %c0_175 = arith.constant 0 : index
      %c0_176 = arith.constant 0 : index
      %992 = vector.load %arg9[%c0_175, %c0_176] : memref<1x128xf32, #tpu.memory_space<vmem>>, vector<1x128xf32>
      %c0_i32_177 = arith.constant 0 : i32
      %c1_i32_178 = arith.constant 1 : i32
      %993 = arith.subi %c1_i32_178, %c0_i32_177 : i32
      %994 = arith.index_cast %c0_i32_177 : i32 to index
      %c0_179 = arith.constant 0 : index
      %c0_180 = arith.constant 0 : index
      %995 = vector.load %arg18[%994, %c0_179, %c0_180] : memref<2x2x128xf32, #tpu.memory_space<vmem>>, vector<1x2x128xf32>
      %996 = vector.shape_cast %995 : vector<1x2x128xf32> to vector<2x128xf32>
      %997 = arith.index_cast %993 : i32 to index
      %c0_181 = arith.constant 0 : index
      %c0_182 = arith.constant 0 : index
      %998 = vector.load %arg19[%997, %c0_181, %c0_182] : memref<2x2x128xf32, #tpu.memory_space<vmem>>, vector<1x2x128xf32>
      %999 = vector.shape_cast %998 : vector<1x2x128xf32> to vector<2x128xf32>
      %1000 = arith.addf %996, %999 : vector<2x128xf32>
      %1001 = vector.extract_strided_slice %406 {offsets = [0, 0], sizes = [2, 20], strides = [1, 1]} : vector<2x32xf32> to vector<2x20xf32>
      %1002 = vector.extract_strided_slice %1001 {offsets = [0, 0], sizes = [2, 1], strides = [1, 1]} : vector<2x20xf32> to vector<2x1xf32>
      %1003 = vector.extract_strided_slice %991 {offsets = [0, 0], sizes = [1, 128], strides = [1, 1]} : vector<20x128xf32> to vector<1x128xf32>
      %1004 = vector.broadcast %1002 : vector<2x1xf32> to vector<2x128xf32>
      %1005 = vector.broadcast %1003 : vector<1x128xf32> to vector<2x128xf32>
      %1006 = arith.mulf %1004, %1005 : vector<2x128xf32>
      %1007 = vector.extract_strided_slice %1001 {offsets = [0, 1], sizes = [2, 1], strides = [1, 1]} : vector<2x20xf32> to vector<2x1xf32>
      %1008 = vector.extract_strided_slice %991 {offsets = [1, 0], sizes = [1, 128], strides = [1, 1]} : vector<20x128xf32> to vector<1x128xf32>
      %1009 = vector.broadcast %1007 : vector<2x1xf32> to vector<2x128xf32>
      %1010 = vector.broadcast %1008 : vector<1x128xf32> to vector<2x128xf32>
      %1011 = arith.mulf %1009, %1010 : vector<2x128xf32>
      %1012 = arith.addf %1006, %1011 : vector<2x128xf32>
      %1013 = vector.extract_strided_slice %1001 {offsets = [0, 2], sizes = [2, 1], strides = [1, 1]} : vector<2x20xf32> to vector<2x1xf32>
      %1014 = vector.extract_strided_slice %991 {offsets = [2, 0], sizes = [1, 128], strides = [1, 1]} : vector<20x128xf32> to vector<1x128xf32>
      %1015 = vector.broadcast %1013 : vector<2x1xf32> to vector<2x128xf32>
      %1016 = vector.broadcast %1014 : vector<1x128xf32> to vector<2x128xf32>
      %1017 = arith.mulf %1015, %1016 : vector<2x128xf32>
      %1018 = arith.addf %1012, %1017 : vector<2x128xf32>
      %1019 = vector.extract_strided_slice %1001 {offsets = [0, 3], sizes = [2, 1], strides = [1, 1]} : vector<2x20xf32> to vector<2x1xf32>
      %1020 = vector.extract_strided_slice %991 {offsets = [3, 0], sizes = [1, 128], strides = [1, 1]} : vector<20x128xf32> to vector<1x128xf32>
      %1021 = vector.broadcast %1019 : vector<2x1xf32> to vector<2x128xf32>
      %1022 = vector.broadcast %1020 : vector<1x128xf32> to vector<2x128xf32>
      %1023 = arith.mulf %1021, %1022 : vector<2x128xf32>
      %1024 = arith.addf %1018, %1023 : vector<2x128xf32>
      %1025 = vector.extract_strided_slice %1001 {offsets = [0, 4], sizes = [2, 1], strides = [1, 1]} : vector<2x20xf32> to vector<2x1xf32>
      %1026 = vector.extract_strided_slice %991 {offsets = [4, 0], sizes = [1, 128], strides = [1, 1]} : vector<20x128xf32> to vector<1x128xf32>
      %1027 = vector.broadcast %1025 : vector<2x1xf32> to vector<2x128xf32>
      %1028 = vector.broadcast %1026 : vector<1x128xf32> to vector<2x128xf32>
      %1029 = arith.mulf %1027, %1028 : vector<2x128xf32>
      %1030 = arith.addf %1024, %1029 : vector<2x128xf32>
      %1031 = vector.extract_strided_slice %1001 {offsets = [0, 5], sizes = [2, 1], strides = [1, 1]} : vector<2x20xf32> to vector<2x1xf32>
      %1032 = vector.extract_strided_slice %991 {offsets = [5, 0], sizes = [1, 128], strides = [1, 1]} : vector<20x128xf32> to vector<1x128xf32>
      %1033 = vector.broadcast %1031 : vector<2x1xf32> to vector<2x128xf32>
      %1034 = vector.broadcast %1032 : vector<1x128xf32> to vector<2x128xf32>
      %1035 = arith.mulf %1033, %1034 : vector<2x128xf32>
      %1036 = arith.addf %1030, %1035 : vector<2x128xf32>
      %1037 = vector.extract_strided_slice %1001 {offsets = [0, 6], sizes = [2, 1], strides = [1, 1]} : vector<2x20xf32> to vector<2x1xf32>
      %1038 = vector.extract_strided_slice %991 {offsets = [6, 0], sizes = [1, 128], strides = [1, 1]} : vector<20x128xf32> to vector<1x128xf32>
      %1039 = vector.broadcast %1037 : vector<2x1xf32> to vector<2x128xf32>
      %1040 = vector.broadcast %1038 : vector<1x128xf32> to vector<2x128xf32>
      %1041 = arith.mulf %1039, %1040 : vector<2x128xf32>
      %1042 = arith.addf %1036, %1041 : vector<2x128xf32>
      %1043 = vector.extract_strided_slice %1001 {offsets = [0, 7], sizes = [2, 1], strides = [1, 1]} : vector<2x20xf32> to vector<2x1xf32>
      %1044 = vector.extract_strided_slice %991 {offsets = [7, 0], sizes = [1, 128], strides = [1, 1]} : vector<20x128xf32> to vector<1x128xf32>
      %1045 = vector.broadcast %1043 : vector<2x1xf32> to vector<2x128xf32>
      %1046 = vector.broadcast %1044 : vector<1x128xf32> to vector<2x128xf32>
      %1047 = arith.mulf %1045, %1046 : vector<2x128xf32>
      %1048 = arith.addf %1042, %1047 : vector<2x128xf32>
      %1049 = vector.extract_strided_slice %1001 {offsets = [0, 8], sizes = [2, 1], strides = [1, 1]} : vector<2x20xf32> to vector<2x1xf32>
      %1050 = vector.extract_strided_slice %991 {offsets = [8, 0], sizes = [1, 128], strides = [1, 1]} : vector<20x128xf32> to vector<1x128xf32>
      %1051 = vector.broadcast %1049 : vector<2x1xf32> to vector<2x128xf32>
      %1052 = vector.broadcast %1050 : vector<1x128xf32> to vector<2x128xf32>
      %1053 = arith.mulf %1051, %1052 : vector<2x128xf32>
      %1054 = arith.addf %1048, %1053 : vector<2x128xf32>
      %1055 = vector.extract_strided_slice %1001 {offsets = [0, 9], sizes = [2, 1], strides = [1, 1]} : vector<2x20xf32> to vector<2x1xf32>
      %1056 = vector.extract_strided_slice %991 {offsets = [9, 0], sizes = [1, 128], strides = [1, 1]} : vector<20x128xf32> to vector<1x128xf32>
      %1057 = vector.broadcast %1055 : vector<2x1xf32> to vector<2x128xf32>
      %1058 = vector.broadcast %1056 : vector<1x128xf32> to vector<2x128xf32>
      %1059 = arith.mulf %1057, %1058 : vector<2x128xf32>
      %1060 = arith.addf %1054, %1059 : vector<2x128xf32>
      %1061 = vector.extract_strided_slice %1001 {offsets = [0, 10], sizes = [2, 1], strides = [1, 1]} : vector<2x20xf32> to vector<2x1xf32>
      %1062 = vector.extract_strided_slice %991 {offsets = [10, 0], sizes = [1, 128], strides = [1, 1]} : vector<20x128xf32> to vector<1x128xf32>
      %1063 = vector.broadcast %1061 : vector<2x1xf32> to vector<2x128xf32>
      %1064 = vector.broadcast %1062 : vector<1x128xf32> to vector<2x128xf32>
      %1065 = arith.mulf %1063, %1064 : vector<2x128xf32>
      %1066 = arith.addf %1060, %1065 : vector<2x128xf32>
      %1067 = vector.extract_strided_slice %1001 {offsets = [0, 11], sizes = [2, 1], strides = [1, 1]} : vector<2x20xf32> to vector<2x1xf32>
      %1068 = vector.extract_strided_slice %991 {offsets = [11, 0], sizes = [1, 128], strides = [1, 1]} : vector<20x128xf32> to vector<1x128xf32>
      %1069 = vector.broadcast %1067 : vector<2x1xf32> to vector<2x128xf32>
      %1070 = vector.broadcast %1068 : vector<1x128xf32> to vector<2x128xf32>
      %1071 = arith.mulf %1069, %1070 : vector<2x128xf32>
      %1072 = arith.addf %1066, %1071 : vector<2x128xf32>
      %1073 = vector.extract_strided_slice %1001 {offsets = [0, 12], sizes = [2, 1], strides = [1, 1]} : vector<2x20xf32> to vector<2x1xf32>
      %1074 = vector.extract_strided_slice %991 {offsets = [12, 0], sizes = [1, 128], strides = [1, 1]} : vector<20x128xf32> to vector<1x128xf32>
      %1075 = vector.broadcast %1073 : vector<2x1xf32> to vector<2x128xf32>
      %1076 = vector.broadcast %1074 : vector<1x128xf32> to vector<2x128xf32>
      %1077 = arith.mulf %1075, %1076 : vector<2x128xf32>
      %1078 = arith.addf %1072, %1077 : vector<2x128xf32>
      %1079 = vector.extract_strided_slice %1001 {offsets = [0, 13], sizes = [2, 1], strides = [1, 1]} : vector<2x20xf32> to vector<2x1xf32>
      %1080 = vector.extract_strided_slice %991 {offsets = [13, 0], sizes = [1, 128], strides = [1, 1]} : vector<20x128xf32> to vector<1x128xf32>
      %1081 = vector.broadcast %1079 : vector<2x1xf32> to vector<2x128xf32>
      %1082 = vector.broadcast %1080 : vector<1x128xf32> to vector<2x128xf32>
      %1083 = arith.mulf %1081, %1082 : vector<2x128xf32>
      %1084 = arith.addf %1078, %1083 : vector<2x128xf32>
      %1085 = vector.extract_strided_slice %1001 {offsets = [0, 14], sizes = [2, 1], strides = [1, 1]} : vector<2x20xf32> to vector<2x1xf32>
      %1086 = vector.extract_strided_slice %991 {offsets = [14, 0], sizes = [1, 128], strides = [1, 1]} : vector<20x128xf32> to vector<1x128xf32>
      %1087 = vector.broadcast %1085 : vector<2x1xf32> to vector<2x128xf32>
      %1088 = vector.broadcast %1086 : vector<1x128xf32> to vector<2x128xf32>
      %1089 = arith.mulf %1087, %1088 : vector<2x128xf32>
      %1090 = arith.addf %1084, %1089 : vector<2x128xf32>
      %1091 = vector.extract_strided_slice %1001 {offsets = [0, 15], sizes = [2, 1], strides = [1, 1]} : vector<2x20xf32> to vector<2x1xf32>
      %1092 = vector.extract_strided_slice %991 {offsets = [15, 0], sizes = [1, 128], strides = [1, 1]} : vector<20x128xf32> to vector<1x128xf32>
      %1093 = vector.broadcast %1091 : vector<2x1xf32> to vector<2x128xf32>
      %1094 = vector.broadcast %1092 : vector<1x128xf32> to vector<2x128xf32>
      %1095 = arith.mulf %1093, %1094 : vector<2x128xf32>
      %1096 = arith.addf %1090, %1095 : vector<2x128xf32>
      %1097 = vector.extract_strided_slice %1001 {offsets = [0, 16], sizes = [2, 1], strides = [1, 1]} : vector<2x20xf32> to vector<2x1xf32>
      %1098 = vector.extract_strided_slice %991 {offsets = [16, 0], sizes = [1, 128], strides = [1, 1]} : vector<20x128xf32> to vector<1x128xf32>
      %1099 = vector.broadcast %1097 : vector<2x1xf32> to vector<2x128xf32>
      %1100 = vector.broadcast %1098 : vector<1x128xf32> to vector<2x128xf32>
      %1101 = arith.mulf %1099, %1100 : vector<2x128xf32>
      %1102 = arith.addf %1096, %1101 : vector<2x128xf32>
      %1103 = vector.extract_strided_slice %1001 {offsets = [0, 17], sizes = [2, 1], strides = [1, 1]} : vector<2x20xf32> to vector<2x1xf32>
      %1104 = vector.extract_strided_slice %991 {offsets = [17, 0], sizes = [1, 128], strides = [1, 1]} : vector<20x128xf32> to vector<1x128xf32>
      %1105 = vector.broadcast %1103 : vector<2x1xf32> to vector<2x128xf32>
      %1106 = vector.broadcast %1104 : vector<1x128xf32> to vector<2x128xf32>
      %1107 = arith.mulf %1105, %1106 : vector<2x128xf32>
      %1108 = arith.addf %1102, %1107 : vector<2x128xf32>
      %1109 = vector.extract_strided_slice %1001 {offsets = [0, 18], sizes = [2, 1], strides = [1, 1]} : vector<2x20xf32> to vector<2x1xf32>
      %1110 = vector.extract_strided_slice %991 {offsets = [18, 0], sizes = [1, 128], strides = [1, 1]} : vector<20x128xf32> to vector<1x128xf32>
      %1111 = vector.broadcast %1109 : vector<2x1xf32> to vector<2x128xf32>
      %1112 = vector.broadcast %1110 : vector<1x128xf32> to vector<2x128xf32>
      %1113 = arith.mulf %1111, %1112 : vector<2x128xf32>
      %1114 = arith.addf %1108, %1113 : vector<2x128xf32>
      %1115 = vector.extract_strided_slice %1001 {offsets = [0, 19], sizes = [2, 1], strides = [1, 1]} : vector<2x20xf32> to vector<2x1xf32>
      %1116 = vector.extract_strided_slice %991 {offsets = [19, 0], sizes = [1, 128], strides = [1, 1]} : vector<20x128xf32> to vector<1x128xf32>
      %1117 = vector.broadcast %1115 : vector<2x1xf32> to vector<2x128xf32>
      %1118 = vector.broadcast %1116 : vector<1x128xf32> to vector<2x128xf32>
      %1119 = arith.mulf %1117, %1118 : vector<2x128xf32>
      %1120 = arith.addf %1114, %1119 : vector<2x128xf32>
      %1121 = arith.addf %1000, %1120 : vector<2x128xf32>
      %1122 = vector.broadcast %992 : vector<1x128xf32> to vector<2x128xf32>
      %1123 = arith.addf %1121, %1122 : vector<2x128xf32>
      %1124 = arith.negf %1123 : vector<2x128xf32>
      %1125 = math.exp %1124 : vector<2x128xf32>
      %cst_183 = arith.constant 1.000000e+00 : f32
      %1126 = vector.broadcast %cst_183 : f32 to vector<2x128xf32>
      %1127 = arith.addf %1126, %1125 : vector<2x128xf32>
      %1128 = arith.divf %1126, %1127 : vector<2x128xf32>
      %1129 = math.tanh %1123 : vector<2x128xf32>
      %1130 = vector.extract_strided_slice %1128 {offsets = [0, 0], sizes = [2, 32], strides = [1, 1]} : vector<2x128xf32> to vector<2x32xf32>
      %1131 = vector.extract_strided_slice %1128 {offsets = [0, 32], sizes = [2, 32], strides = [1, 1]} : vector<2x128xf32> to vector<2x32xf32>
      %1132 = vector.extract_strided_slice %1129 {offsets = [0, 64], sizes = [2, 32], strides = [1, 1]} : vector<2x128xf32> to vector<2x32xf32>
      %1133 = vector.extract_strided_slice %1128 {offsets = [0, 96], sizes = [2, 32], strides = [1, 1]} : vector<2x128xf32> to vector<2x32xf32>
      %1134 = arith.mulf %1131, %406 : vector<2x32xf32>
      %1135 = arith.mulf %1130, %1132 : vector<2x32xf32>
      %1136 = arith.addf %1134, %1135 : vector<2x32xf32>
      %1137 = math.tanh %1136 : vector<2x32xf32>
      %1138 = arith.mulf %1133, %1137 : vector<2x32xf32>
      %c1_i32_184 = arith.constant 1 : i32
      %c1_i32_185 = arith.constant 1 : i32
      %1139 = arith.subi %c1_i32_185, %c1_i32_184 : i32
      %1140 = arith.index_cast %c1_i32_184 : i32 to index
      %c0_186 = arith.constant 0 : index
      %c0_187 = arith.constant 0 : index
      %1141 = vector.load %arg18[%1140, %c0_186, %c0_187] : memref<2x2x128xf32, #tpu.memory_space<vmem>>, vector<1x2x128xf32>
      %1142 = vector.shape_cast %1141 : vector<1x2x128xf32> to vector<2x128xf32>
      %1143 = arith.index_cast %1139 : i32 to index
      %c0_188 = arith.constant 0 : index
      %c0_189 = arith.constant 0 : index
      %1144 = vector.load %arg19[%1143, %c0_188, %c0_189] : memref<2x2x128xf32, #tpu.memory_space<vmem>>, vector<1x2x128xf32>
      %1145 = vector.shape_cast %1144 : vector<1x2x128xf32> to vector<2x128xf32>
      %1146 = arith.addf %1142, %1145 : vector<2x128xf32>
      %1147 = vector.extract_strided_slice %1138 {offsets = [0, 0], sizes = [2, 20], strides = [1, 1]} : vector<2x32xf32> to vector<2x20xf32>
      %1148 = vector.extract_strided_slice %1147 {offsets = [0, 0], sizes = [2, 1], strides = [1, 1]} : vector<2x20xf32> to vector<2x1xf32>
      %1149 = vector.extract_strided_slice %991 {offsets = [0, 0], sizes = [1, 128], strides = [1, 1]} : vector<20x128xf32> to vector<1x128xf32>
      %1150 = vector.broadcast %1148 : vector<2x1xf32> to vector<2x128xf32>
      %1151 = vector.broadcast %1149 : vector<1x128xf32> to vector<2x128xf32>
      %1152 = arith.mulf %1150, %1151 : vector<2x128xf32>
      %1153 = vector.extract_strided_slice %1147 {offsets = [0, 1], sizes = [2, 1], strides = [1, 1]} : vector<2x20xf32> to vector<2x1xf32>
      %1154 = vector.extract_strided_slice %991 {offsets = [1, 0], sizes = [1, 128], strides = [1, 1]} : vector<20x128xf32> to vector<1x128xf32>
      %1155 = vector.broadcast %1153 : vector<2x1xf32> to vector<2x128xf32>
      %1156 = vector.broadcast %1154 : vector<1x128xf32> to vector<2x128xf32>
      %1157 = arith.mulf %1155, %1156 : vector<2x128xf32>
      %1158 = arith.addf %1152, %1157 : vector<2x128xf32>
      %1159 = vector.extract_strided_slice %1147 {offsets = [0, 2], sizes = [2, 1], strides = [1, 1]} : vector<2x20xf32> to vector<2x1xf32>
      %1160 = vector.extract_strided_slice %991 {offsets = [2, 0], sizes = [1, 128], strides = [1, 1]} : vector<20x128xf32> to vector<1x128xf32>
      %1161 = vector.broadcast %1159 : vector<2x1xf32> to vector<2x128xf32>
      %1162 = vector.broadcast %1160 : vector<1x128xf32> to vector<2x128xf32>
      %1163 = arith.mulf %1161, %1162 : vector<2x128xf32>
      %1164 = arith.addf %1158, %1163 : vector<2x128xf32>
      %1165 = vector.extract_strided_slice %1147 {offsets = [0, 3], sizes = [2, 1], strides = [1, 1]} : vector<2x20xf32> to vector<2x1xf32>
      %1166 = vector.extract_strided_slice %991 {offsets = [3, 0], sizes = [1, 128], strides = [1, 1]} : vector<20x128xf32> to vector<1x128xf32>
      %1167 = vector.broadcast %1165 : vector<2x1xf32> to vector<2x128xf32>
      %1168 = vector.broadcast %1166 : vector<1x128xf32> to vector<2x128xf32>
      %1169 = arith.mulf %1167, %1168 : vector<2x128xf32>
      %1170 = arith.addf %1164, %1169 : vector<2x128xf32>
      %1171 = vector.extract_strided_slice %1147 {offsets = [0, 4], sizes = [2, 1], strides = [1, 1]} : vector<2x20xf32> to vector<2x1xf32>
      %1172 = vector.extract_strided_slice %991 {offsets = [4, 0], sizes = [1, 128], strides = [1, 1]} : vector<20x128xf32> to vector<1x128xf32>
      %1173 = vector.broadcast %1171 : vector<2x1xf32> to vector<2x128xf32>
      %1174 = vector.broadcast %1172 : vector<1x128xf32> to vector<2x128xf32>
      %1175 = arith.mulf %1173, %1174 : vector<2x128xf32>
      %1176 = arith.addf %1170, %1175 : vector<2x128xf32>
      %1177 = vector.extract_strided_slice %1147 {offsets = [0, 5], sizes = [2, 1], strides = [1, 1]} : vector<2x20xf32> to vector<2x1xf32>
      %1178 = vector.extract_strided_slice %991 {offsets = [5, 0], sizes = [1, 128], strides = [1, 1]} : vector<20x128xf32> to vector<1x128xf32>
      %1179 = vector.broadcast %1177 : vector<2x1xf32> to vector<2x128xf32>
      %1180 = vector.broadcast %1178 : vector<1x128xf32> to vector<2x128xf32>
      %1181 = arith.mulf %1179, %1180 : vector<2x128xf32>
      %1182 = arith.addf %1176, %1181 : vector<2x128xf32>
      %1183 = vector.extract_strided_slice %1147 {offsets = [0, 6], sizes = [2, 1], strides = [1, 1]} : vector<2x20xf32> to vector<2x1xf32>
      %1184 = vector.extract_strided_slice %991 {offsets = [6, 0], sizes = [1, 128], strides = [1, 1]} : vector<20x128xf32> to vector<1x128xf32>
      %1185 = vector.broadcast %1183 : vector<2x1xf32> to vector<2x128xf32>
      %1186 = vector.broadcast %1184 : vector<1x128xf32> to vector<2x128xf32>
      %1187 = arith.mulf %1185, %1186 : vector<2x128xf32>
      %1188 = arith.addf %1182, %1187 : vector<2x128xf32>
      %1189 = vector.extract_strided_slice %1147 {offsets = [0, 7], sizes = [2, 1], strides = [1, 1]} : vector<2x20xf32> to vector<2x1xf32>
      %1190 = vector.extract_strided_slice %991 {offsets = [7, 0], sizes = [1, 128], strides = [1, 1]} : vector<20x128xf32> to vector<1x128xf32>
      %1191 = vector.broadcast %1189 : vector<2x1xf32> to vector<2x128xf32>
      %1192 = vector.broadcast %1190 : vector<1x128xf32> to vector<2x128xf32>
      %1193 = arith.mulf %1191, %1192 : vector<2x128xf32>
      %1194 = arith.addf %1188, %1193 : vector<2x128xf32>
      %1195 = vector.extract_strided_slice %1147 {offsets = [0, 8], sizes = [2, 1], strides = [1, 1]} : vector<2x20xf32> to vector<2x1xf32>
      %1196 = vector.extract_strided_slice %991 {offsets = [8, 0], sizes = [1, 128], strides = [1, 1]} : vector<20x128xf32> to vector<1x128xf32>
      %1197 = vector.broadcast %1195 : vector<2x1xf32> to vector<2x128xf32>
      %1198 = vector.broadcast %1196 : vector<1x128xf32> to vector<2x128xf32>
      %1199 = arith.mulf %1197, %1198 : vector<2x128xf32>
      %1200 = arith.addf %1194, %1199 : vector<2x128xf32>
      %1201 = vector.extract_strided_slice %1147 {offsets = [0, 9], sizes = [2, 1], strides = [1, 1]} : vector<2x20xf32> to vector<2x1xf32>
      %1202 = vector.extract_strided_slice %991 {offsets = [9, 0], sizes = [1, 128], strides = [1, 1]} : vector<20x128xf32> to vector<1x128xf32>
      %1203 = vector.broadcast %1201 : vector<2x1xf32> to vector<2x128xf32>
      %1204 = vector.broadcast %1202 : vector<1x128xf32> to vector<2x128xf32>
      %1205 = arith.mulf %1203, %1204 : vector<2x128xf32>
      %1206 = arith.addf %1200, %1205 : vector<2x128xf32>
      %1207 = vector.extract_strided_slice %1147 {offsets = [0, 10], sizes = [2, 1], strides = [1, 1]} : vector<2x20xf32> to vector<2x1xf32>
      %1208 = vector.extract_strided_slice %991 {offsets = [10, 0], sizes = [1, 128], strides = [1, 1]} : vector<20x128xf32> to vector<1x128xf32>
      %1209 = vector.broadcast %1207 : vector<2x1xf32> to vector<2x128xf32>
      %1210 = vector.broadcast %1208 : vector<1x128xf32> to vector<2x128xf32>
      %1211 = arith.mulf %1209, %1210 : vector<2x128xf32>
      %1212 = arith.addf %1206, %1211 : vector<2x128xf32>
      %1213 = vector.extract_strided_slice %1147 {offsets = [0, 11], sizes = [2, 1], strides = [1, 1]} : vector<2x20xf32> to vector<2x1xf32>
      %1214 = vector.extract_strided_slice %991 {offsets = [11, 0], sizes = [1, 128], strides = [1, 1]} : vector<20x128xf32> to vector<1x128xf32>
      %1215 = vector.broadcast %1213 : vector<2x1xf32> to vector<2x128xf32>
      %1216 = vector.broadcast %1214 : vector<1x128xf32> to vector<2x128xf32>
      %1217 = arith.mulf %1215, %1216 : vector<2x128xf32>
      %1218 = arith.addf %1212, %1217 : vector<2x128xf32>
      %1219 = vector.extract_strided_slice %1147 {offsets = [0, 12], sizes = [2, 1], strides = [1, 1]} : vector<2x20xf32> to vector<2x1xf32>
      %1220 = vector.extract_strided_slice %991 {offsets = [12, 0], sizes = [1, 128], strides = [1, 1]} : vector<20x128xf32> to vector<1x128xf32>
      %1221 = vector.broadcast %1219 : vector<2x1xf32> to vector<2x128xf32>
      %1222 = vector.broadcast %1220 : vector<1x128xf32> to vector<2x128xf32>
      %1223 = arith.mulf %1221, %1222 : vector<2x128xf32>
      %1224 = arith.addf %1218, %1223 : vector<2x128xf32>
      %1225 = vector.extract_strided_slice %1147 {offsets = [0, 13], sizes = [2, 1], strides = [1, 1]} : vector<2x20xf32> to vector<2x1xf32>
      %1226 = vector.extract_strided_slice %991 {offsets = [13, 0], sizes = [1, 128], strides = [1, 1]} : vector<20x128xf32> to vector<1x128xf32>
      %1227 = vector.broadcast %1225 : vector<2x1xf32> to vector<2x128xf32>
      %1228 = vector.broadcast %1226 : vector<1x128xf32> to vector<2x128xf32>
      %1229 = arith.mulf %1227, %1228 : vector<2x128xf32>
      %1230 = arith.addf %1224, %1229 : vector<2x128xf32>
      %1231 = vector.extract_strided_slice %1147 {offsets = [0, 14], sizes = [2, 1], strides = [1, 1]} : vector<2x20xf32> to vector<2x1xf32>
      %1232 = vector.extract_strided_slice %991 {offsets = [14, 0], sizes = [1, 128], strides = [1, 1]} : vector<20x128xf32> to vector<1x128xf32>
      %1233 = vector.broadcast %1231 : vector<2x1xf32> to vector<2x128xf32>
      %1234 = vector.broadcast %1232 : vector<1x128xf32> to vector<2x128xf32>
      %1235 = arith.mulf %1233, %1234 : vector<2x128xf32>
      %1236 = arith.addf %1230, %1235 : vector<2x128xf32>
      %1237 = vector.extract_strided_slice %1147 {offsets = [0, 15], sizes = [2, 1], strides = [1, 1]} : vector<2x20xf32> to vector<2x1xf32>
      %1238 = vector.extract_strided_slice %991 {offsets = [15, 0], sizes = [1, 128], strides = [1, 1]} : vector<20x128xf32> to vector<1x128xf32>
      %1239 = vector.broadcast %1237 : vector<2x1xf32> to vector<2x128xf32>
      %1240 = vector.broadcast %1238 : vector<1x128xf32> to vector<2x128xf32>
      %1241 = arith.mulf %1239, %1240 : vector<2x128xf32>
      %1242 = arith.addf %1236, %1241 : vector<2x128xf32>
      %1243 = vector.extract_strided_slice %1147 {offsets = [0, 16], sizes = [2, 1], strides = [1, 1]} : vector<2x20xf32> to vector<2x1xf32>
      %1244 = vector.extract_strided_slice %991 {offsets = [16, 0], sizes = [1, 128], strides = [1, 1]} : vector<20x128xf32> to vector<1x128xf32>
      %1245 = vector.broadcast %1243 : vector<2x1xf32> to vector<2x128xf32>
      %1246 = vector.broadcast %1244 : vector<1x128xf32> to vector<2x128xf32>
      %1247 = arith.mulf %1245, %1246 : vector<2x128xf32>
      %1248 = arith.addf %1242, %1247 : vector<2x128xf32>
      %1249 = vector.extract_strided_slice %1147 {offsets = [0, 17], sizes = [2, 1], strides = [1, 1]} : vector<2x20xf32> to vector<2x1xf32>
      %1250 = vector.extract_strided_slice %991 {offsets = [17, 0], sizes = [1, 128], strides = [1, 1]} : vector<20x128xf32> to vector<1x128xf32>
      %1251 = vector.broadcast %1249 : vector<2x1xf32> to vector<2x128xf32>
      %1252 = vector.broadcast %1250 : vector<1x128xf32> to vector<2x128xf32>
      %1253 = arith.mulf %1251, %1252 : vector<2x128xf32>
      %1254 = arith.addf %1248, %1253 : vector<2x128xf32>
      %1255 = vector.extract_strided_slice %1147 {offsets = [0, 18], sizes = [2, 1], strides = [1, 1]} : vector<2x20xf32> to vector<2x1xf32>
      %1256 = vector.extract_strided_slice %991 {offsets = [18, 0], sizes = [1, 128], strides = [1, 1]} : vector<20x128xf32> to vector<1x128xf32>
      %1257 = vector.broadcast %1255 : vector<2x1xf32> to vector<2x128xf32>
      %1258 = vector.broadcast %1256 : vector<1x128xf32> to vector<2x128xf32>
      %1259 = arith.mulf %1257, %1258 : vector<2x128xf32>
      %1260 = arith.addf %1254, %1259 : vector<2x128xf32>
      %1261 = vector.extract_strided_slice %1147 {offsets = [0, 19], sizes = [2, 1], strides = [1, 1]} : vector<2x20xf32> to vector<2x1xf32>
      %1262 = vector.extract_strided_slice %991 {offsets = [19, 0], sizes = [1, 128], strides = [1, 1]} : vector<20x128xf32> to vector<1x128xf32>
      %1263 = vector.broadcast %1261 : vector<2x1xf32> to vector<2x128xf32>
      %1264 = vector.broadcast %1262 : vector<1x128xf32> to vector<2x128xf32>
      %1265 = arith.mulf %1263, %1264 : vector<2x128xf32>
      %1266 = arith.addf %1260, %1265 : vector<2x128xf32>
      %1267 = arith.addf %1146, %1266 : vector<2x128xf32>
      %1268 = vector.broadcast %992 : vector<1x128xf32> to vector<2x128xf32>
      %1269 = arith.addf %1267, %1268 : vector<2x128xf32>
      %1270 = arith.negf %1269 : vector<2x128xf32>
      %1271 = math.exp %1270 : vector<2x128xf32>
      %cst_190 = arith.constant 1.000000e+00 : f32
      %1272 = vector.broadcast %cst_190 : f32 to vector<2x128xf32>
      %1273 = arith.addf %1272, %1271 : vector<2x128xf32>
      %1274 = arith.divf %1272, %1273 : vector<2x128xf32>
      %1275 = math.tanh %1269 : vector<2x128xf32>
      %1276 = vector.extract_strided_slice %1274 {offsets = [0, 0], sizes = [2, 32], strides = [1, 1]} : vector<2x128xf32> to vector<2x32xf32>
      %1277 = vector.extract_strided_slice %1274 {offsets = [0, 32], sizes = [2, 32], strides = [1, 1]} : vector<2x128xf32> to vector<2x32xf32>
      %1278 = vector.extract_strided_slice %1275 {offsets = [0, 64], sizes = [2, 32], strides = [1, 1]} : vector<2x128xf32> to vector<2x32xf32>
      %1279 = vector.extract_strided_slice %1274 {offsets = [0, 96], sizes = [2, 32], strides = [1, 1]} : vector<2x128xf32> to vector<2x32xf32>
      %1280 = arith.mulf %1277, %1136 : vector<2x32xf32>
      %1281 = arith.mulf %1276, %1278 : vector<2x32xf32>
      %1282 = arith.addf %1280, %1281 : vector<2x32xf32>
      %1283 = math.tanh %1282 : vector<2x32xf32>
      %1284 = arith.mulf %1279, %1283 : vector<2x32xf32>
      %c2_i32_191 = arith.constant 2 : i32
      %1285 = vector.extract_strided_slice %710 {offsets = [0, 0], sizes = [2, 20], strides = [1, 1]} : vector<2x32xf32> to vector<2x20xf32>
      %c0_192 = arith.constant 0 : index
      %c0_193 = arith.constant 0 : index
      %1286 = vector.load %arg10[%c0_192, %c0_193] : memref<20x10xf32, #tpu.memory_space<vmem>>, vector<20x10xf32>
      %1287 = vector.extract_strided_slice %1285 {offsets = [0, 0], sizes = [2, 1], strides = [1, 1]} : vector<2x20xf32> to vector<2x1xf32>
      %1288 = vector.extract_strided_slice %1286 {offsets = [0, 0], sizes = [1, 10], strides = [1, 1]} : vector<20x10xf32> to vector<1x10xf32>
      %1289 = vector.broadcast %1287 : vector<2x1xf32> to vector<2x10xf32>
      %1290 = vector.broadcast %1288 : vector<1x10xf32> to vector<2x10xf32>
      %1291 = arith.mulf %1289, %1290 : vector<2x10xf32>
      %1292 = vector.extract_strided_slice %1285 {offsets = [0, 1], sizes = [2, 1], strides = [1, 1]} : vector<2x20xf32> to vector<2x1xf32>
      %1293 = vector.extract_strided_slice %1286 {offsets = [1, 0], sizes = [1, 10], strides = [1, 1]} : vector<20x10xf32> to vector<1x10xf32>
      %1294 = vector.broadcast %1292 : vector<2x1xf32> to vector<2x10xf32>
      %1295 = vector.broadcast %1293 : vector<1x10xf32> to vector<2x10xf32>
      %1296 = arith.mulf %1294, %1295 : vector<2x10xf32>
      %1297 = arith.addf %1291, %1296 : vector<2x10xf32>
      %1298 = vector.extract_strided_slice %1285 {offsets = [0, 2], sizes = [2, 1], strides = [1, 1]} : vector<2x20xf32> to vector<2x1xf32>
      %1299 = vector.extract_strided_slice %1286 {offsets = [2, 0], sizes = [1, 10], strides = [1, 1]} : vector<20x10xf32> to vector<1x10xf32>
      %1300 = vector.broadcast %1298 : vector<2x1xf32> to vector<2x10xf32>
      %1301 = vector.broadcast %1299 : vector<1x10xf32> to vector<2x10xf32>
      %1302 = arith.mulf %1300, %1301 : vector<2x10xf32>
      %1303 = arith.addf %1297, %1302 : vector<2x10xf32>
      %1304 = vector.extract_strided_slice %1285 {offsets = [0, 3], sizes = [2, 1], strides = [1, 1]} : vector<2x20xf32> to vector<2x1xf32>
      %1305 = vector.extract_strided_slice %1286 {offsets = [3, 0], sizes = [1, 10], strides = [1, 1]} : vector<20x10xf32> to vector<1x10xf32>
      %1306 = vector.broadcast %1304 : vector<2x1xf32> to vector<2x10xf32>
      %1307 = vector.broadcast %1305 : vector<1x10xf32> to vector<2x10xf32>
      %1308 = arith.mulf %1306, %1307 : vector<2x10xf32>
      %1309 = arith.addf %1303, %1308 : vector<2x10xf32>
      %1310 = vector.extract_strided_slice %1285 {offsets = [0, 4], sizes = [2, 1], strides = [1, 1]} : vector<2x20xf32> to vector<2x1xf32>
      %1311 = vector.extract_strided_slice %1286 {offsets = [4, 0], sizes = [1, 10], strides = [1, 1]} : vector<20x10xf32> to vector<1x10xf32>
      %1312 = vector.broadcast %1310 : vector<2x1xf32> to vector<2x10xf32>
      %1313 = vector.broadcast %1311 : vector<1x10xf32> to vector<2x10xf32>
      %1314 = arith.mulf %1312, %1313 : vector<2x10xf32>
      %1315 = arith.addf %1309, %1314 : vector<2x10xf32>
      %1316 = vector.extract_strided_slice %1285 {offsets = [0, 5], sizes = [2, 1], strides = [1, 1]} : vector<2x20xf32> to vector<2x1xf32>
      %1317 = vector.extract_strided_slice %1286 {offsets = [5, 0], sizes = [1, 10], strides = [1, 1]} : vector<20x10xf32> to vector<1x10xf32>
      %1318 = vector.broadcast %1316 : vector<2x1xf32> to vector<2x10xf32>
      %1319 = vector.broadcast %1317 : vector<1x10xf32> to vector<2x10xf32>
      %1320 = arith.mulf %1318, %1319 : vector<2x10xf32>
      %1321 = arith.addf %1315, %1320 : vector<2x10xf32>
      %1322 = vector.extract_strided_slice %1285 {offsets = [0, 6], sizes = [2, 1], strides = [1, 1]} : vector<2x20xf32> to vector<2x1xf32>
      %1323 = vector.extract_strided_slice %1286 {offsets = [6, 0], sizes = [1, 10], strides = [1, 1]} : vector<20x10xf32> to vector<1x10xf32>
      %1324 = vector.broadcast %1322 : vector<2x1xf32> to vector<2x10xf32>
      %1325 = vector.broadcast %1323 : vector<1x10xf32> to vector<2x10xf32>
      %1326 = arith.mulf %1324, %1325 : vector<2x10xf32>
      %1327 = arith.addf %1321, %1326 : vector<2x10xf32>
      %1328 = vector.extract_strided_slice %1285 {offsets = [0, 7], sizes = [2, 1], strides = [1, 1]} : vector<2x20xf32> to vector<2x1xf32>
      %1329 = vector.extract_strided_slice %1286 {offsets = [7, 0], sizes = [1, 10], strides = [1, 1]} : vector<20x10xf32> to vector<1x10xf32>
      %1330 = vector.broadcast %1328 : vector<2x1xf32> to vector<2x10xf32>
      %1331 = vector.broadcast %1329 : vector<1x10xf32> to vector<2x10xf32>
      %1332 = arith.mulf %1330, %1331 : vector<2x10xf32>
      %1333 = arith.addf %1327, %1332 : vector<2x10xf32>
      %1334 = vector.extract_strided_slice %1285 {offsets = [0, 8], sizes = [2, 1], strides = [1, 1]} : vector<2x20xf32> to vector<2x1xf32>
      %1335 = vector.extract_strided_slice %1286 {offsets = [8, 0], sizes = [1, 10], strides = [1, 1]} : vector<20x10xf32> to vector<1x10xf32>
      %1336 = vector.broadcast %1334 : vector<2x1xf32> to vector<2x10xf32>
      %1337 = vector.broadcast %1335 : vector<1x10xf32> to vector<2x10xf32>
      %1338 = arith.mulf %1336, %1337 : vector<2x10xf32>
      %1339 = arith.addf %1333, %1338 : vector<2x10xf32>
      %1340 = vector.extract_strided_slice %1285 {offsets = [0, 9], sizes = [2, 1], strides = [1, 1]} : vector<2x20xf32> to vector<2x1xf32>
      %1341 = vector.extract_strided_slice %1286 {offsets = [9, 0], sizes = [1, 10], strides = [1, 1]} : vector<20x10xf32> to vector<1x10xf32>
      %1342 = vector.broadcast %1340 : vector<2x1xf32> to vector<2x10xf32>
      %1343 = vector.broadcast %1341 : vector<1x10xf32> to vector<2x10xf32>
      %1344 = arith.mulf %1342, %1343 : vector<2x10xf32>
      %1345 = arith.addf %1339, %1344 : vector<2x10xf32>
      %1346 = vector.extract_strided_slice %1285 {offsets = [0, 10], sizes = [2, 1], strides = [1, 1]} : vector<2x20xf32> to vector<2x1xf32>
      %1347 = vector.extract_strided_slice %1286 {offsets = [10, 0], sizes = [1, 10], strides = [1, 1]} : vector<20x10xf32> to vector<1x10xf32>
      %1348 = vector.broadcast %1346 : vector<2x1xf32> to vector<2x10xf32>
      %1349 = vector.broadcast %1347 : vector<1x10xf32> to vector<2x10xf32>
      %1350 = arith.mulf %1348, %1349 : vector<2x10xf32>
      %1351 = arith.addf %1345, %1350 : vector<2x10xf32>
      %1352 = vector.extract_strided_slice %1285 {offsets = [0, 11], sizes = [2, 1], strides = [1, 1]} : vector<2x20xf32> to vector<2x1xf32>
      %1353 = vector.extract_strided_slice %1286 {offsets = [11, 0], sizes = [1, 10], strides = [1, 1]} : vector<20x10xf32> to vector<1x10xf32>
      %1354 = vector.broadcast %1352 : vector<2x1xf32> to vector<2x10xf32>
      %1355 = vector.broadcast %1353 : vector<1x10xf32> to vector<2x10xf32>
      %1356 = arith.mulf %1354, %1355 : vector<2x10xf32>
      %1357 = arith.addf %1351, %1356 : vector<2x10xf32>
      %1358 = vector.extract_strided_slice %1285 {offsets = [0, 12], sizes = [2, 1], strides = [1, 1]} : vector<2x20xf32> to vector<2x1xf32>
      %1359 = vector.extract_strided_slice %1286 {offsets = [12, 0], sizes = [1, 10], strides = [1, 1]} : vector<20x10xf32> to vector<1x10xf32>
      %1360 = vector.broadcast %1358 : vector<2x1xf32> to vector<2x10xf32>
      %1361 = vector.broadcast %1359 : vector<1x10xf32> to vector<2x10xf32>
      %1362 = arith.mulf %1360, %1361 : vector<2x10xf32>
      %1363 = arith.addf %1357, %1362 : vector<2x10xf32>
      %1364 = vector.extract_strided_slice %1285 {offsets = [0, 13], sizes = [2, 1], strides = [1, 1]} : vector<2x20xf32> to vector<2x1xf32>
      %1365 = vector.extract_strided_slice %1286 {offsets = [13, 0], sizes = [1, 10], strides = [1, 1]} : vector<20x10xf32> to vector<1x10xf32>
      %1366 = vector.broadcast %1364 : vector<2x1xf32> to vector<2x10xf32>
      %1367 = vector.broadcast %1365 : vector<1x10xf32> to vector<2x10xf32>
      %1368 = arith.mulf %1366, %1367 : vector<2x10xf32>
      %1369 = arith.addf %1363, %1368 : vector<2x10xf32>
      %1370 = vector.extract_strided_slice %1285 {offsets = [0, 14], sizes = [2, 1], strides = [1, 1]} : vector<2x20xf32> to vector<2x1xf32>
      %1371 = vector.extract_strided_slice %1286 {offsets = [14, 0], sizes = [1, 10], strides = [1, 1]} : vector<20x10xf32> to vector<1x10xf32>
      %1372 = vector.broadcast %1370 : vector<2x1xf32> to vector<2x10xf32>
      %1373 = vector.broadcast %1371 : vector<1x10xf32> to vector<2x10xf32>
      %1374 = arith.mulf %1372, %1373 : vector<2x10xf32>
      %1375 = arith.addf %1369, %1374 : vector<2x10xf32>
      %1376 = vector.extract_strided_slice %1285 {offsets = [0, 15], sizes = [2, 1], strides = [1, 1]} : vector<2x20xf32> to vector<2x1xf32>
      %1377 = vector.extract_strided_slice %1286 {offsets = [15, 0], sizes = [1, 10], strides = [1, 1]} : vector<20x10xf32> to vector<1x10xf32>
      %1378 = vector.broadcast %1376 : vector<2x1xf32> to vector<2x10xf32>
      %1379 = vector.broadcast %1377 : vector<1x10xf32> to vector<2x10xf32>
      %1380 = arith.mulf %1378, %1379 : vector<2x10xf32>
      %1381 = arith.addf %1375, %1380 : vector<2x10xf32>
      %1382 = vector.extract_strided_slice %1285 {offsets = [0, 16], sizes = [2, 1], strides = [1, 1]} : vector<2x20xf32> to vector<2x1xf32>
      %1383 = vector.extract_strided_slice %1286 {offsets = [16, 0], sizes = [1, 10], strides = [1, 1]} : vector<20x10xf32> to vector<1x10xf32>
      %1384 = vector.broadcast %1382 : vector<2x1xf32> to vector<2x10xf32>
      %1385 = vector.broadcast %1383 : vector<1x10xf32> to vector<2x10xf32>
      %1386 = arith.mulf %1384, %1385 : vector<2x10xf32>
      %1387 = arith.addf %1381, %1386 : vector<2x10xf32>
      %1388 = vector.extract_strided_slice %1285 {offsets = [0, 17], sizes = [2, 1], strides = [1, 1]} : vector<2x20xf32> to vector<2x1xf32>
      %1389 = vector.extract_strided_slice %1286 {offsets = [17, 0], sizes = [1, 10], strides = [1, 1]} : vector<20x10xf32> to vector<1x10xf32>
      %1390 = vector.broadcast %1388 : vector<2x1xf32> to vector<2x10xf32>
      %1391 = vector.broadcast %1389 : vector<1x10xf32> to vector<2x10xf32>
      %1392 = arith.mulf %1390, %1391 : vector<2x10xf32>
      %1393 = arith.addf %1387, %1392 : vector<2x10xf32>
      %1394 = vector.extract_strided_slice %1285 {offsets = [0, 18], sizes = [2, 1], strides = [1, 1]} : vector<2x20xf32> to vector<2x1xf32>
      %1395 = vector.extract_strided_slice %1286 {offsets = [18, 0], sizes = [1, 10], strides = [1, 1]} : vector<20x10xf32> to vector<1x10xf32>
      %1396 = vector.broadcast %1394 : vector<2x1xf32> to vector<2x10xf32>
      %1397 = vector.broadcast %1395 : vector<1x10xf32> to vector<2x10xf32>
      %1398 = arith.mulf %1396, %1397 : vector<2x10xf32>
      %1399 = arith.addf %1393, %1398 : vector<2x10xf32>
      %1400 = vector.extract_strided_slice %1285 {offsets = [0, 19], sizes = [2, 1], strides = [1, 1]} : vector<2x20xf32> to vector<2x1xf32>
      %1401 = vector.extract_strided_slice %1286 {offsets = [19, 0], sizes = [1, 10], strides = [1, 1]} : vector<20x10xf32> to vector<1x10xf32>
      %1402 = vector.broadcast %1400 : vector<2x1xf32> to vector<2x10xf32>
      %1403 = vector.broadcast %1401 : vector<1x10xf32> to vector<2x10xf32>
      %1404 = arith.mulf %1402, %1403 : vector<2x10xf32>
      %1405 = arith.addf %1399, %1404 : vector<2x10xf32>
      %1406 = vector.extract_strided_slice %1284 {offsets = [0, 0], sizes = [2, 20], strides = [1, 1]} : vector<2x32xf32> to vector<2x20xf32>
      %c0_194 = arith.constant 0 : index
      %c0_195 = arith.constant 0 : index
      %1407 = vector.load %arg11[%c0_194, %c0_195] : memref<20x10xf32, #tpu.memory_space<vmem>>, vector<20x10xf32>
      %1408 = vector.extract_strided_slice %1406 {offsets = [0, 0], sizes = [2, 1], strides = [1, 1]} : vector<2x20xf32> to vector<2x1xf32>
      %1409 = vector.extract_strided_slice %1407 {offsets = [0, 0], sizes = [1, 10], strides = [1, 1]} : vector<20x10xf32> to vector<1x10xf32>
      %1410 = vector.broadcast %1408 : vector<2x1xf32> to vector<2x10xf32>
      %1411 = vector.broadcast %1409 : vector<1x10xf32> to vector<2x10xf32>
      %1412 = arith.mulf %1410, %1411 : vector<2x10xf32>
      %1413 = vector.extract_strided_slice %1406 {offsets = [0, 1], sizes = [2, 1], strides = [1, 1]} : vector<2x20xf32> to vector<2x1xf32>
      %1414 = vector.extract_strided_slice %1407 {offsets = [1, 0], sizes = [1, 10], strides = [1, 1]} : vector<20x10xf32> to vector<1x10xf32>
      %1415 = vector.broadcast %1413 : vector<2x1xf32> to vector<2x10xf32>
      %1416 = vector.broadcast %1414 : vector<1x10xf32> to vector<2x10xf32>
      %1417 = arith.mulf %1415, %1416 : vector<2x10xf32>
      %1418 = arith.addf %1412, %1417 : vector<2x10xf32>
      %1419 = vector.extract_strided_slice %1406 {offsets = [0, 2], sizes = [2, 1], strides = [1, 1]} : vector<2x20xf32> to vector<2x1xf32>
      %1420 = vector.extract_strided_slice %1407 {offsets = [2, 0], sizes = [1, 10], strides = [1, 1]} : vector<20x10xf32> to vector<1x10xf32>
      %1421 = vector.broadcast %1419 : vector<2x1xf32> to vector<2x10xf32>
      %1422 = vector.broadcast %1420 : vector<1x10xf32> to vector<2x10xf32>
      %1423 = arith.mulf %1421, %1422 : vector<2x10xf32>
      %1424 = arith.addf %1418, %1423 : vector<2x10xf32>
      %1425 = vector.extract_strided_slice %1406 {offsets = [0, 3], sizes = [2, 1], strides = [1, 1]} : vector<2x20xf32> to vector<2x1xf32>
      %1426 = vector.extract_strided_slice %1407 {offsets = [3, 0], sizes = [1, 10], strides = [1, 1]} : vector<20x10xf32> to vector<1x10xf32>
      %1427 = vector.broadcast %1425 : vector<2x1xf32> to vector<2x10xf32>
      %1428 = vector.broadcast %1426 : vector<1x10xf32> to vector<2x10xf32>
      %1429 = arith.mulf %1427, %1428 : vector<2x10xf32>
      %1430 = arith.addf %1424, %1429 : vector<2x10xf32>
      %1431 = vector.extract_strided_slice %1406 {offsets = [0, 4], sizes = [2, 1], strides = [1, 1]} : vector<2x20xf32> to vector<2x1xf32>
      %1432 = vector.extract_strided_slice %1407 {offsets = [4, 0], sizes = [1, 10], strides = [1, 1]} : vector<20x10xf32> to vector<1x10xf32>
      %1433 = vector.broadcast %1431 : vector<2x1xf32> to vector<2x10xf32>
      %1434 = vector.broadcast %1432 : vector<1x10xf32> to vector<2x10xf32>
      %1435 = arith.mulf %1433, %1434 : vector<2x10xf32>
      %1436 = arith.addf %1430, %1435 : vector<2x10xf32>
      %1437 = vector.extract_strided_slice %1406 {offsets = [0, 5], sizes = [2, 1], strides = [1, 1]} : vector<2x20xf32> to vector<2x1xf32>
      %1438 = vector.extract_strided_slice %1407 {offsets = [5, 0], sizes = [1, 10], strides = [1, 1]} : vector<20x10xf32> to vector<1x10xf32>
      %1439 = vector.broadcast %1437 : vector<2x1xf32> to vector<2x10xf32>
      %1440 = vector.broadcast %1438 : vector<1x10xf32> to vector<2x10xf32>
      %1441 = arith.mulf %1439, %1440 : vector<2x10xf32>
      %1442 = arith.addf %1436, %1441 : vector<2x10xf32>
      %1443 = vector.extract_strided_slice %1406 {offsets = [0, 6], sizes = [2, 1], strides = [1, 1]} : vector<2x20xf32> to vector<2x1xf32>
      %1444 = vector.extract_strided_slice %1407 {offsets = [6, 0], sizes = [1, 10], strides = [1, 1]} : vector<20x10xf32> to vector<1x10xf32>
      %1445 = vector.broadcast %1443 : vector<2x1xf32> to vector<2x10xf32>
      %1446 = vector.broadcast %1444 : vector<1x10xf32> to vector<2x10xf32>
      %1447 = arith.mulf %1445, %1446 : vector<2x10xf32>
      %1448 = arith.addf %1442, %1447 : vector<2x10xf32>
      %1449 = vector.extract_strided_slice %1406 {offsets = [0, 7], sizes = [2, 1], strides = [1, 1]} : vector<2x20xf32> to vector<2x1xf32>
      %1450 = vector.extract_strided_slice %1407 {offsets = [7, 0], sizes = [1, 10], strides = [1, 1]} : vector<20x10xf32> to vector<1x10xf32>
      %1451 = vector.broadcast %1449 : vector<2x1xf32> to vector<2x10xf32>
      %1452 = vector.broadcast %1450 : vector<1x10xf32> to vector<2x10xf32>
      %1453 = arith.mulf %1451, %1452 : vector<2x10xf32>
      %1454 = arith.addf %1448, %1453 : vector<2x10xf32>
      %1455 = vector.extract_strided_slice %1406 {offsets = [0, 8], sizes = [2, 1], strides = [1, 1]} : vector<2x20xf32> to vector<2x1xf32>
      %1456 = vector.extract_strided_slice %1407 {offsets = [8, 0], sizes = [1, 10], strides = [1, 1]} : vector<20x10xf32> to vector<1x10xf32>
      %1457 = vector.broadcast %1455 : vector<2x1xf32> to vector<2x10xf32>
      %1458 = vector.broadcast %1456 : vector<1x10xf32> to vector<2x10xf32>
      %1459 = arith.mulf %1457, %1458 : vector<2x10xf32>
      %1460 = arith.addf %1454, %1459 : vector<2x10xf32>
      %1461 = vector.extract_strided_slice %1406 {offsets = [0, 9], sizes = [2, 1], strides = [1, 1]} : vector<2x20xf32> to vector<2x1xf32>
      %1462 = vector.extract_strided_slice %1407 {offsets = [9, 0], sizes = [1, 10], strides = [1, 1]} : vector<20x10xf32> to vector<1x10xf32>
      %1463 = vector.broadcast %1461 : vector<2x1xf32> to vector<2x10xf32>
      %1464 = vector.broadcast %1462 : vector<1x10xf32> to vector<2x10xf32>
      %1465 = arith.mulf %1463, %1464 : vector<2x10xf32>
      %1466 = arith.addf %1460, %1465 : vector<2x10xf32>
      %1467 = vector.extract_strided_slice %1406 {offsets = [0, 10], sizes = [2, 1], strides = [1, 1]} : vector<2x20xf32> to vector<2x1xf32>
      %1468 = vector.extract_strided_slice %1407 {offsets = [10, 0], sizes = [1, 10], strides = [1, 1]} : vector<20x10xf32> to vector<1x10xf32>
      %1469 = vector.broadcast %1467 : vector<2x1xf32> to vector<2x10xf32>
      %1470 = vector.broadcast %1468 : vector<1x10xf32> to vector<2x10xf32>
      %1471 = arith.mulf %1469, %1470 : vector<2x10xf32>
      %1472 = arith.addf %1466, %1471 : vector<2x10xf32>
      %1473 = vector.extract_strided_slice %1406 {offsets = [0, 11], sizes = [2, 1], strides = [1, 1]} : vector<2x20xf32> to vector<2x1xf32>
      %1474 = vector.extract_strided_slice %1407 {offsets = [11, 0], sizes = [1, 10], strides = [1, 1]} : vector<20x10xf32> to vector<1x10xf32>
      %1475 = vector.broadcast %1473 : vector<2x1xf32> to vector<2x10xf32>
      %1476 = vector.broadcast %1474 : vector<1x10xf32> to vector<2x10xf32>
      %1477 = arith.mulf %1475, %1476 : vector<2x10xf32>
      %1478 = arith.addf %1472, %1477 : vector<2x10xf32>
      %1479 = vector.extract_strided_slice %1406 {offsets = [0, 12], sizes = [2, 1], strides = [1, 1]} : vector<2x20xf32> to vector<2x1xf32>
      %1480 = vector.extract_strided_slice %1407 {offsets = [12, 0], sizes = [1, 10], strides = [1, 1]} : vector<20x10xf32> to vector<1x10xf32>
      %1481 = vector.broadcast %1479 : vector<2x1xf32> to vector<2x10xf32>
      %1482 = vector.broadcast %1480 : vector<1x10xf32> to vector<2x10xf32>
      %1483 = arith.mulf %1481, %1482 : vector<2x10xf32>
      %1484 = arith.addf %1478, %1483 : vector<2x10xf32>
      %1485 = vector.extract_strided_slice %1406 {offsets = [0, 13], sizes = [2, 1], strides = [1, 1]} : vector<2x20xf32> to vector<2x1xf32>
      %1486 = vector.extract_strided_slice %1407 {offsets = [13, 0], sizes = [1, 10], strides = [1, 1]} : vector<20x10xf32> to vector<1x10xf32>
      %1487 = vector.broadcast %1485 : vector<2x1xf32> to vector<2x10xf32>
      %1488 = vector.broadcast %1486 : vector<1x10xf32> to vector<2x10xf32>
      %1489 = arith.mulf %1487, %1488 : vector<2x10xf32>
      %1490 = arith.addf %1484, %1489 : vector<2x10xf32>
      %1491 = vector.extract_strided_slice %1406 {offsets = [0, 14], sizes = [2, 1], strides = [1, 1]} : vector<2x20xf32> to vector<2x1xf32>
      %1492 = vector.extract_strided_slice %1407 {offsets = [14, 0], sizes = [1, 10], strides = [1, 1]} : vector<20x10xf32> to vector<1x10xf32>
      %1493 = vector.broadcast %1491 : vector<2x1xf32> to vector<2x10xf32>
      %1494 = vector.broadcast %1492 : vector<1x10xf32> to vector<2x10xf32>
      %1495 = arith.mulf %1493, %1494 : vector<2x10xf32>
      %1496 = arith.addf %1490, %1495 : vector<2x10xf32>
      %1497 = vector.extract_strided_slice %1406 {offsets = [0, 15], sizes = [2, 1], strides = [1, 1]} : vector<2x20xf32> to vector<2x1xf32>
      %1498 = vector.extract_strided_slice %1407 {offsets = [15, 0], sizes = [1, 10], strides = [1, 1]} : vector<20x10xf32> to vector<1x10xf32>
      %1499 = vector.broadcast %1497 : vector<2x1xf32> to vector<2x10xf32>
      %1500 = vector.broadcast %1498 : vector<1x10xf32> to vector<2x10xf32>
      %1501 = arith.mulf %1499, %1500 : vector<2x10xf32>
      %1502 = arith.addf %1496, %1501 : vector<2x10xf32>
      %1503 = vector.extract_strided_slice %1406 {offsets = [0, 16], sizes = [2, 1], strides = [1, 1]} : vector<2x20xf32> to vector<2x1xf32>
      %1504 = vector.extract_strided_slice %1407 {offsets = [16, 0], sizes = [1, 10], strides = [1, 1]} : vector<20x10xf32> to vector<1x10xf32>
      %1505 = vector.broadcast %1503 : vector<2x1xf32> to vector<2x10xf32>
      %1506 = vector.broadcast %1504 : vector<1x10xf32> to vector<2x10xf32>
      %1507 = arith.mulf %1505, %1506 : vector<2x10xf32>
      %1508 = arith.addf %1502, %1507 : vector<2x10xf32>
      %1509 = vector.extract_strided_slice %1406 {offsets = [0, 17], sizes = [2, 1], strides = [1, 1]} : vector<2x20xf32> to vector<2x1xf32>
      %1510 = vector.extract_strided_slice %1407 {offsets = [17, 0], sizes = [1, 10], strides = [1, 1]} : vector<20x10xf32> to vector<1x10xf32>
      %1511 = vector.broadcast %1509 : vector<2x1xf32> to vector<2x10xf32>
      %1512 = vector.broadcast %1510 : vector<1x10xf32> to vector<2x10xf32>
      %1513 = arith.mulf %1511, %1512 : vector<2x10xf32>
      %1514 = arith.addf %1508, %1513 : vector<2x10xf32>
      %1515 = vector.extract_strided_slice %1406 {offsets = [0, 18], sizes = [2, 1], strides = [1, 1]} : vector<2x20xf32> to vector<2x1xf32>
      %1516 = vector.extract_strided_slice %1407 {offsets = [18, 0], sizes = [1, 10], strides = [1, 1]} : vector<20x10xf32> to vector<1x10xf32>
      %1517 = vector.broadcast %1515 : vector<2x1xf32> to vector<2x10xf32>
      %1518 = vector.broadcast %1516 : vector<1x10xf32> to vector<2x10xf32>
      %1519 = arith.mulf %1517, %1518 : vector<2x10xf32>
      %1520 = arith.addf %1514, %1519 : vector<2x10xf32>
      %1521 = vector.extract_strided_slice %1406 {offsets = [0, 19], sizes = [2, 1], strides = [1, 1]} : vector<2x20xf32> to vector<2x1xf32>
      %1522 = vector.extract_strided_slice %1407 {offsets = [19, 0], sizes = [1, 10], strides = [1, 1]} : vector<20x10xf32> to vector<1x10xf32>
      %1523 = vector.broadcast %1521 : vector<2x1xf32> to vector<2x10xf32>
      %1524 = vector.broadcast %1522 : vector<1x10xf32> to vector<2x10xf32>
      %1525 = arith.mulf %1523, %1524 : vector<2x10xf32>
      %1526 = arith.addf %1520, %1525 : vector<2x10xf32>
      %1527 = arith.addf %1405, %1526 : vector<2x10xf32>
      %c0_196 = arith.constant 0 : index
      %c0_197 = arith.constant 0 : index
      %1528 = vector.load %arg13[%c0_196, %c0_197] : memref<1x10xf32, #tpu.memory_space<vmem>>, vector<1x10xf32>
      %1529 = vector.broadcast %1528 : vector<1x10xf32> to vector<2x10xf32>
      %1530 = arith.addf %1527, %1529 : vector<2x10xf32>
      %1531 = tpu.iota {dimensions = array<i32: 1>} : vector<2x10xi32>
      %c0_198 = arith.constant 0 : index
      %c0_199 = arith.constant 0 : index
      %1532 = vector.load %arg12[%c0_198, %c0_199] : memref<10x128xf32, #tpu.memory_space<vmem>>, vector<1x128xf32>
      %1533 = vector.broadcast %1532 : vector<1x128xf32> to vector<2x128xf32>
      %1534 = arith.mulf %405, %1533 : vector<2x128xf32>
      %cst_200 = arith.constant dense<0.000000e+00> : vector<2xf32>
      %1535 = vector.multi_reduction <add>, %1534, %cst_200 [1] : vector<2x128xf32> to vector<2xf32>
      %1536 = vector.shape_cast %1535 : vector<2xf32> to vector<2x1xf32>
      %c0_i32_201 = arith.constant 0 : i32
      %1537 = vector.broadcast %c0_i32_201 : i32 to vector<2x10xi32>
      %1538 = arith.cmpi eq, %1531, %1537 : vector<2x10xi32>
      %cst_202 = arith.constant 0.000000e+00 : f32
      %1539 = vector.shape_cast %1536 : vector<2x1xf32> to vector<2x1xf32>
      %1540 = vector.broadcast %1539 : vector<2x1xf32> to vector<2x10xf32>
      %1541 = vector.broadcast %cst_202 : f32 to vector<2x10xf32>
      %1542 = arith.select %1538, %1540, %1541 : vector<2x10xi1>, vector<2x10xf32>
      %1543 = arith.addf %1530, %1542 : vector<2x10xf32>
      %c1_203 = arith.constant 1 : index
      %c0_204 = arith.constant 0 : index
      %1544 = vector.load %arg12[%c1_203, %c0_204] : memref<10x128xf32, #tpu.memory_space<vmem>>, vector<1x128xf32>
      %1545 = vector.broadcast %1544 : vector<1x128xf32> to vector<2x128xf32>
      %1546 = arith.mulf %405, %1545 : vector<2x128xf32>
      %cst_205 = arith.constant dense<0.000000e+00> : vector<2xf32>
      %1547 = vector.multi_reduction <add>, %1546, %cst_205 [1] : vector<2x128xf32> to vector<2xf32>
      %1548 = vector.shape_cast %1547 : vector<2xf32> to vector<2x1xf32>
      %c1_i32_206 = arith.constant 1 : i32
      %1549 = vector.broadcast %c1_i32_206 : i32 to vector<2x10xi32>
      %1550 = arith.cmpi eq, %1531, %1549 : vector<2x10xi32>
      %cst_207 = arith.constant 0.000000e+00 : f32
      %1551 = vector.shape_cast %1548 : vector<2x1xf32> to vector<2x1xf32>
      %1552 = vector.broadcast %1551 : vector<2x1xf32> to vector<2x10xf32>
      %1553 = vector.broadcast %cst_207 : f32 to vector<2x10xf32>
      %1554 = arith.select %1550, %1552, %1553 : vector<2x10xi1>, vector<2x10xf32>
      %1555 = arith.addf %1543, %1554 : vector<2x10xf32>
      %c2_208 = arith.constant 2 : index
      %c0_209 = arith.constant 0 : index
      %1556 = vector.load %arg12[%c2_208, %c0_209] : memref<10x128xf32, #tpu.memory_space<vmem>>, vector<1x128xf32>
      %1557 = vector.broadcast %1556 : vector<1x128xf32> to vector<2x128xf32>
      %1558 = arith.mulf %405, %1557 : vector<2x128xf32>
      %cst_210 = arith.constant dense<0.000000e+00> : vector<2xf32>
      %1559 = vector.multi_reduction <add>, %1558, %cst_210 [1] : vector<2x128xf32> to vector<2xf32>
      %1560 = vector.shape_cast %1559 : vector<2xf32> to vector<2x1xf32>
      %c2_i32_211 = arith.constant 2 : i32
      %1561 = vector.broadcast %c2_i32_211 : i32 to vector<2x10xi32>
      %1562 = arith.cmpi eq, %1531, %1561 : vector<2x10xi32>
      %cst_212 = arith.constant 0.000000e+00 : f32
      %1563 = vector.shape_cast %1560 : vector<2x1xf32> to vector<2x1xf32>
      %1564 = vector.broadcast %1563 : vector<2x1xf32> to vector<2x10xf32>
      %1565 = vector.broadcast %cst_212 : f32 to vector<2x10xf32>
      %1566 = arith.select %1562, %1564, %1565 : vector<2x10xi1>, vector<2x10xf32>
      %1567 = arith.addf %1555, %1566 : vector<2x10xf32>
      %c3_213 = arith.constant 3 : index
      %c0_214 = arith.constant 0 : index
      %1568 = vector.load %arg12[%c3_213, %c0_214] : memref<10x128xf32, #tpu.memory_space<vmem>>, vector<1x128xf32>
      %1569 = vector.broadcast %1568 : vector<1x128xf32> to vector<2x128xf32>
      %1570 = arith.mulf %405, %1569 : vector<2x128xf32>
      %cst_215 = arith.constant dense<0.000000e+00> : vector<2xf32>
      %1571 = vector.multi_reduction <add>, %1570, %cst_215 [1] : vector<2x128xf32> to vector<2xf32>
      %1572 = vector.shape_cast %1571 : vector<2xf32> to vector<2x1xf32>
      %c3_i32 = arith.constant 3 : i32
      %1573 = vector.broadcast %c3_i32 : i32 to vector<2x10xi32>
      %1574 = arith.cmpi eq, %1531, %1573 : vector<2x10xi32>
      %cst_216 = arith.constant 0.000000e+00 : f32
      %1575 = vector.shape_cast %1572 : vector<2x1xf32> to vector<2x1xf32>
      %1576 = vector.broadcast %1575 : vector<2x1xf32> to vector<2x10xf32>
      %1577 = vector.broadcast %cst_216 : f32 to vector<2x10xf32>
      %1578 = arith.select %1574, %1576, %1577 : vector<2x10xi1>, vector<2x10xf32>
      %1579 = arith.addf %1567, %1578 : vector<2x10xf32>
      %c4_217 = arith.constant 4 : index
      %c0_218 = arith.constant 0 : index
      %1580 = vector.load %arg12[%c4_217, %c0_218] : memref<10x128xf32, #tpu.memory_space<vmem>>, vector<1x128xf32>
      %1581 = vector.broadcast %1580 : vector<1x128xf32> to vector<2x128xf32>
      %1582 = arith.mulf %405, %1581 : vector<2x128xf32>
      %cst_219 = arith.constant dense<0.000000e+00> : vector<2xf32>
      %1583 = vector.multi_reduction <add>, %1582, %cst_219 [1] : vector<2x128xf32> to vector<2xf32>
      %1584 = vector.shape_cast %1583 : vector<2xf32> to vector<2x1xf32>
      %c4_i32 = arith.constant 4 : i32
      %1585 = vector.broadcast %c4_i32 : i32 to vector<2x10xi32>
      %1586 = arith.cmpi eq, %1531, %1585 : vector<2x10xi32>
      %cst_220 = arith.constant 0.000000e+00 : f32
      %1587 = vector.shape_cast %1584 : vector<2x1xf32> to vector<2x1xf32>
      %1588 = vector.broadcast %1587 : vector<2x1xf32> to vector<2x10xf32>
      %1589 = vector.broadcast %cst_220 : f32 to vector<2x10xf32>
      %1590 = arith.select %1586, %1588, %1589 : vector<2x10xi1>, vector<2x10xf32>
      %1591 = arith.addf %1579, %1590 : vector<2x10xf32>
      %c5_221 = arith.constant 5 : index
      %c0_222 = arith.constant 0 : index
      %1592 = vector.load %arg12[%c5_221, %c0_222] : memref<10x128xf32, #tpu.memory_space<vmem>>, vector<1x128xf32>
      %1593 = vector.broadcast %1592 : vector<1x128xf32> to vector<2x128xf32>
      %1594 = arith.mulf %405, %1593 : vector<2x128xf32>
      %cst_223 = arith.constant dense<0.000000e+00> : vector<2xf32>
      %1595 = vector.multi_reduction <add>, %1594, %cst_223 [1] : vector<2x128xf32> to vector<2xf32>
      %1596 = vector.shape_cast %1595 : vector<2xf32> to vector<2x1xf32>
      %c5_i32 = arith.constant 5 : i32
      %1597 = vector.broadcast %c5_i32 : i32 to vector<2x10xi32>
      %1598 = arith.cmpi eq, %1531, %1597 : vector<2x10xi32>
      %cst_224 = arith.constant 0.000000e+00 : f32
      %1599 = vector.shape_cast %1596 : vector<2x1xf32> to vector<2x1xf32>
      %1600 = vector.broadcast %1599 : vector<2x1xf32> to vector<2x10xf32>
      %1601 = vector.broadcast %cst_224 : f32 to vector<2x10xf32>
      %1602 = arith.select %1598, %1600, %1601 : vector<2x10xi1>, vector<2x10xf32>
      %1603 = arith.addf %1591, %1602 : vector<2x10xf32>
      %c6_225 = arith.constant 6 : index
      %c0_226 = arith.constant 0 : index
      %1604 = vector.load %arg12[%c6_225, %c0_226] : memref<10x128xf32, #tpu.memory_space<vmem>>, vector<1x128xf32>
      %1605 = vector.broadcast %1604 : vector<1x128xf32> to vector<2x128xf32>
      %1606 = arith.mulf %405, %1605 : vector<2x128xf32>
      %cst_227 = arith.constant dense<0.000000e+00> : vector<2xf32>
      %1607 = vector.multi_reduction <add>, %1606, %cst_227 [1] : vector<2x128xf32> to vector<2xf32>
      %1608 = vector.shape_cast %1607 : vector<2xf32> to vector<2x1xf32>
      %c6_i32 = arith.constant 6 : i32
      %1609 = vector.broadcast %c6_i32 : i32 to vector<2x10xi32>
      %1610 = arith.cmpi eq, %1531, %1609 : vector<2x10xi32>
      %cst_228 = arith.constant 0.000000e+00 : f32
      %1611 = vector.shape_cast %1608 : vector<2x1xf32> to vector<2x1xf32>
      %1612 = vector.broadcast %1611 : vector<2x1xf32> to vector<2x10xf32>
      %1613 = vector.broadcast %cst_228 : f32 to vector<2x10xf32>
      %1614 = arith.select %1610, %1612, %1613 : vector<2x10xi1>, vector<2x10xf32>
      %1615 = arith.addf %1603, %1614 : vector<2x10xf32>
      %c7_229 = arith.constant 7 : index
      %c0_230 = arith.constant 0 : index
      %1616 = vector.load %arg12[%c7_229, %c0_230] : memref<10x128xf32, #tpu.memory_space<vmem>>, vector<1x128xf32>
      %1617 = vector.broadcast %1616 : vector<1x128xf32> to vector<2x128xf32>
      %1618 = arith.mulf %405, %1617 : vector<2x128xf32>
      %cst_231 = arith.constant dense<0.000000e+00> : vector<2xf32>
      %1619 = vector.multi_reduction <add>, %1618, %cst_231 [1] : vector<2x128xf32> to vector<2xf32>
      %1620 = vector.shape_cast %1619 : vector<2xf32> to vector<2x1xf32>
      %c7_i32 = arith.constant 7 : i32
      %1621 = vector.broadcast %c7_i32 : i32 to vector<2x10xi32>
      %1622 = arith.cmpi eq, %1531, %1621 : vector<2x10xi32>
      %cst_232 = arith.constant 0.000000e+00 : f32
      %1623 = vector.shape_cast %1620 : vector<2x1xf32> to vector<2x1xf32>
      %1624 = vector.broadcast %1623 : vector<2x1xf32> to vector<2x10xf32>
      %1625 = vector.broadcast %cst_232 : f32 to vector<2x10xf32>
      %1626 = arith.select %1622, %1624, %1625 : vector<2x10xi1>, vector<2x10xf32>
      %1627 = arith.addf %1615, %1626 : vector<2x10xf32>
      %c8_233 = arith.constant 8 : index
      %c0_234 = arith.constant 0 : index
      %1628 = vector.load %arg12[%c8_233, %c0_234] : memref<10x128xf32, #tpu.memory_space<vmem>>, vector<1x128xf32>
      %1629 = vector.broadcast %1628 : vector<1x128xf32> to vector<2x128xf32>
      %1630 = arith.mulf %405, %1629 : vector<2x128xf32>
      %cst_235 = arith.constant dense<0.000000e+00> : vector<2xf32>
      %1631 = vector.multi_reduction <add>, %1630, %cst_235 [1] : vector<2x128xf32> to vector<2xf32>
      %1632 = vector.shape_cast %1631 : vector<2xf32> to vector<2x1xf32>
      %c8_i32 = arith.constant 8 : i32
      %1633 = vector.broadcast %c8_i32 : i32 to vector<2x10xi32>
      %1634 = arith.cmpi eq, %1531, %1633 : vector<2x10xi32>
      %cst_236 = arith.constant 0.000000e+00 : f32
      %1635 = vector.shape_cast %1632 : vector<2x1xf32> to vector<2x1xf32>
      %1636 = vector.broadcast %1635 : vector<2x1xf32> to vector<2x10xf32>
      %1637 = vector.broadcast %cst_236 : f32 to vector<2x10xf32>
      %1638 = arith.select %1634, %1636, %1637 : vector<2x10xi1>, vector<2x10xf32>
      %1639 = arith.addf %1627, %1638 : vector<2x10xf32>
      %c9_237 = arith.constant 9 : index
      %c0_238 = arith.constant 0 : index
      %1640 = vector.load %arg12[%c9_237, %c0_238] : memref<10x128xf32, #tpu.memory_space<vmem>>, vector<1x128xf32>
      %1641 = vector.broadcast %1640 : vector<1x128xf32> to vector<2x128xf32>
      %1642 = arith.mulf %405, %1641 : vector<2x128xf32>
      %cst_239 = arith.constant dense<0.000000e+00> : vector<2xf32>
      %1643 = vector.multi_reduction <add>, %1642, %cst_239 [1] : vector<2x128xf32> to vector<2xf32>
      %1644 = vector.shape_cast %1643 : vector<2xf32> to vector<2x1xf32>
      %c9_i32 = arith.constant 9 : i32
      %1645 = vector.broadcast %c9_i32 : i32 to vector<2x10xi32>
      %1646 = arith.cmpi eq, %1531, %1645 : vector<2x10xi32>
      %cst_240 = arith.constant 0.000000e+00 : f32
      %1647 = vector.shape_cast %1644 : vector<2x1xf32> to vector<2x1xf32>
      %1648 = vector.broadcast %1647 : vector<2x1xf32> to vector<2x10xf32>
      %1649 = vector.broadcast %cst_240 : f32 to vector<2x10xf32>
      %1650 = arith.select %1646, %1648, %1649 : vector<2x10xi1>, vector<2x10xf32>
      %1651 = arith.addf %1639, %1650 : vector<2x10xf32>
      %c0_241 = arith.constant 0 : index
      %c0_242 = arith.constant 0 : index
      %c0_243 = arith.constant 0 : index
      %1652 = vector.load %arg14[%c0_241, %c0_242, %c0_243] : memref<1x2x10xf32, #tpu.memory_space<vmem>>, vector<1x2x10xf32>
      %1653 = vector.shape_cast %1652 : vector<1x2x10xf32> to vector<2x10xf32>
      %1654 = vector.shape_cast %1651 : vector<2x10xf32> to vector<1x2x10xf32>
      tpu.vector_store %arg14[%c0_241, %c0_242, %c0_243], %1654 {strides = array<i32>} : memref<1x2x10xf32, #tpu.memory_space<vmem>>, vector<1x2x10xf32>,
    } else {
    }
    return
  }
  func.func @transform_0(%arg0: i32, %arg1: i32) -> (i32, i32, i32) {
    %c0_i32 = arith.constant 0 : i32
    %c0_i32_0 = arith.constant 0 : i32
    return %arg0, %c0_i32, %arg1 : i32, i32, i32
  }
  func.func @transform_1(%arg0: i32, %arg1: i32) -> (i32, i32, i32) {
    %c0_i32 = arith.constant 0 : i32
    %c0_i32_0 = arith.constant 0 : i32
    %c0_i32_1 = arith.constant 0 : i32
    %c0_i32_2 = arith.constant 0 : i32
    return %c0_i32, %c0_i32_0, %c0_i32_1 : i32, i32, i32
  }
  func.func @transform_2(%arg0: i32, %arg1: i32) -> (i32, i32) {
    %c0_i32 = arith.constant 0 : i32
    %c0_i32_0 = arith.constant 0 : i32
    %c0_i32_1 = arith.constant 0 : i32
    return %c0_i32, %c0_i32_0 : i32, i32
  }
  func.func @transform_3(%arg0: i32, %arg1: i32) -> (i32, i32) {
    %c0_i32 = arith.constant 0 : i32
    %c0_i32_0 = arith.constant 0 : i32
    %c0_i32_1 = arith.constant 0 : i32
    return %c0_i32, %c0_i32_0 : i32, i32
  }
  func.func @transform_4(%arg0: i32, %arg1: i32) -> (i32, i32) {
    %c0_i32 = arith.constant 0 : i32
    %c0_i32_0 = arith.constant 0 : i32
    %c0_i32_1 = arith.constant 0 : i32
    return %c0_i32, %c0_i32_0 : i32, i32
  }
  func.func @transform_5(%arg0: i32, %arg1: i32) -> (i32, i32) {
    %c0_i32 = arith.constant 0 : i32
    %c0_i32_0 = arith.constant 0 : i32
    %c0_i32_1 = arith.constant 0 : i32
    return %c0_i32, %c0_i32_0 : i32, i32
  }
  func.func @transform_6(%arg0: i32, %arg1: i32) -> (i32, i32) {
    %c0_i32 = arith.constant 0 : i32
    %c0_i32_0 = arith.constant 0 : i32
    %c0_i32_1 = arith.constant 0 : i32
    return %c0_i32, %c0_i32_0 : i32, i32
  }
  func.func @transform_7(%arg0: i32, %arg1: i32) -> (i32, i32) {
    %c0_i32 = arith.constant 0 : i32
    %c0_i32_0 = arith.constant 0 : i32
    %c0_i32_1 = arith.constant 0 : i32
    return %c0_i32, %c0_i32_0 : i32, i32
  }
  func.func @transform_8(%arg0: i32, %arg1: i32) -> (i32, i32) {
    %c0_i32 = arith.constant 0 : i32
    %c0_i32_0 = arith.constant 0 : i32
    %c0_i32_1 = arith.constant 0 : i32
    return %c0_i32, %c0_i32_0 : i32, i32
  }
  func.func @transform_9(%arg0: i32, %arg1: i32) -> (i32, i32) {
    %c0_i32 = arith.constant 0 : i32
    %c0_i32_0 = arith.constant 0 : i32
    %c0_i32_1 = arith.constant 0 : i32
    return %c0_i32, %c0_i32_0 : i32, i32
  }
  func.func @transform_10(%arg0: i32, %arg1: i32) -> (i32, i32) {
    %c0_i32 = arith.constant 0 : i32
    %c0_i32_0 = arith.constant 0 : i32
    %c0_i32_1 = arith.constant 0 : i32
    return %c0_i32, %c0_i32_0 : i32, i32
  }
  func.func @transform_11(%arg0: i32, %arg1: i32) -> (i32, i32) {
    %c0_i32 = arith.constant 0 : i32
    %c0_i32_0 = arith.constant 0 : i32
    %c0_i32_1 = arith.constant 0 : i32
    return %c0_i32, %c0_i32_0 : i32, i32
  }
  func.func @transform_12(%arg0: i32, %arg1: i32) -> (i32, i32, i32) {
    %c0_i32 = arith.constant 0 : i32
    %c0_i32_0 = arith.constant 0 : i32
    %c0_i32_1 = arith.constant 0 : i32
    return %arg0, %c0_i32, %c0_i32_0 : i32, i32, i32
  }
}

</mosaic_0001>

<bundles_post_ra>
// kernel: bird_model_forward.1
= control target key start
LH: loop header
LB: loop body
LE: loop exit
PB: predicated region body
PF: predicated region fallthrough
CT: control target
= control target key end

     0   :  { %s9286_s0 = inlined_call_operand.vmem [shape: f32[2,128,256], index: 0, kind: input, shape index: {}]   ;;  %s9287_s1 = inlined_call_operand.vmem [shape: f32[10,128,128], index: 1, kind: input, shape index: {}]   ;;  %s9288_s2 = inlined_call_operand.vmem [shape: f32[20,128], index: 2, kind: input, shape index: {}]   ;;  %s9289_s3 = inlined_call_operand.vmem [shape: f32[20,128], index: 3, kind: input, shape index: {}]   ;;  %s9290_s4 = inlined_call_operand.vmem [shape: f32[1,128], index: 4, kind: input, shape index: {}]   ;;  %s9291_s5 = inlined_call_operand.vmem [shape: f32[40,128], index: 5, kind: input, shape index: {}]   ;;  %s9292_s6 = inlined_call_operand.vmem [shape: f32[20,128], index: 6, kind: input, shape index: {}]   ;;  %s9293_s7 = inlined_call_operand.vmem [shape: f32[1,128], index: 7, kind: input, shape index: {}]   ;;  %s9294_s8 = inlined_call_operand.vmem [shape: f32[20,10], index: 8, kind: input, shape index: {}]   ;;  %s9295_s9 = inlined_call_operand.vmem [shape: f32[20,10], index: 9, kind: input, shape index: {}]   ;;  %s9296_s10 = inlined_call_operand.vmem [shape: f32[10,128], index: 10, kind: input, shape index: {}]   ;;  %s9297_s11 = inlined_call_operand.vmem [shape: f32[1,10], index: 11, kind: input, shape index: {}]   ;;  %s9298_s12 = inlined_call_operand.hbm [shape: f32[1,2,10], index: 12, kind: output, shape index: {}]  }
   0x1   :  { %v4623_v0 = vld [vmem:[%s9286_s0 + $0x20] sm:$0xff]  ;;  %v4641_v3 = vld [vmem:[%s9286_s0 + $0x30] sm:$0xff]  ;;  %v4669_v8 = vld [vmem:[%s9286_s0 + $0x8] sm:$0xff] }
   0x2   :  { %9776 = vst [vmem:[#allocation12_spill] sm:$0xff] %v4623_v0  ;;  %v4628_v1 = vld [vmem:[%s9286_s0] sm:$0xff]  ;;  %88 = vadd.xlane.f32.xlu1 %v4623_v0  ;;  %v4646_v4 = vld [vmem:[%s9286_s0 + $0x10] sm:$0xff]  ;;  %v4674_v9 = vld [vmem:[%s9286_s0 + $0x18] sm:$0xff] }
   0x3   :  { %9777 = vst [vmem:[#allocation13_spill] sm:$0xff] %v4628_v1  ;;  %84 = vadd.xlane.f32.xlu0 %v4628_v1  ;;  %v4635_v2 = vld [vmem:[%s9286_s0 + $0x40] sm:$0xff]  ;;  %v4653_v5 = vld [vmem:[%s9286_s0 + $0x50] sm:$0xff]  ;;  %v4679_v10 = vld [vmem:[%s9286_s0 + $0x108] sm:$0xff] }
   0x4   :  { %9778 = vst [vmem:[#allocation14_spill] sm:$0xff] %v4635_v2  ;;  %92 = vadd.xlane.f32.xlu2 %v4635_v2  ;;  %v4659_v6 = vld [vmem:[%s9286_s0 + $0x70] sm:$0xff]  ;;  %v4664_v7 = vld [vmem:[%s9286_s0 + $0x60] sm:$0xff]  ;;  %v4684_v11 = vld [vmem:[%s9286_s0 + $0x118] sm:$0xff] }
   0x5   :  { %9779 = vst [vmem:[#allocation15_spill] sm:$0xff] %v4641_v3  ;;  %v4689_v12 = vld [vmem:[%s9287_s1] sm:$0xff]  ;;  %v4694_v13 = vld [vmem:[%s9287_s1 + $0x8] sm:$0xff]  ;;  %v4711_v16 = vld [vmem:[%s9286_s0 + $0x38] sm:$0xff] }
   0x6   :  { %9780 = vst [vmem:[#allocation16_spill] sm:$0xff] %v4646_v4  ;;  %v4701_v14 = vld [vmem:[%s9286_s0 + $0x80] sm:$0xff]  ;;  %v4706_v15 = vld [vmem:[%s9286_s0 + $0x28] sm:$0xff]  ;;  %v4727_v19 = vld [vmem:[%s9287_s1 + $0x10] sm:$0xff]  ;;  %v1370_v25 = vmul.f32 %v4689_v12, %v4669_v8  ;;  %v1371_v26 = vmul.f32 %v4694_v13, %v4674_v9  ;;  %v1386_v27 = vmul.f32 %v4689_v12, %v4679_v10  ;;  %v1387_v28 = vmul.f32 %v4694_v13, %v4684_v11 }
   0x7   :  { %9781 = vst [vmem:[#allocation17_spill] sm:$0xff] %v4653_v5  ;;  %v4717_v17 = vld [vmem:[%s9286_s0 + $0x48] sm:$0xff]  ;;  %v4732_v20 = vld [vmem:[%s9286_s0 + $0x58] sm:$0xff]  ;;  %v4770_v30 = vld [vmem:[%s9287_s1 + $0x20] sm:$0xff]  ;;  %v1372_v39 = vmul.f32 %v4727_v19, %v4706_v15 }
   0x8   :  { %9782 = vst [vmem:[#allocation18_spill] sm:$0xff] %v4659_v6  ;;  %v4722_v18 = vld [vmem:[%s9286_s0 + $0x128] sm:$0xff]  ;;  %v4742_v22 = vld [vmem:[%s9286_s0 + $0x78] sm:$0xff]  ;;  %v4800_v36 = vld [vmem:[%s9287_s1 + $0x30] sm:$0xff]  ;;  %v1374_v52 = vmul.f32 %v4770_v30, %v4717_v17  ;;  %v1402_v54 = vadd.f32 %v1371_v26, %v1370_v25  ;;  %v1423_v55 = vadd.f32 %v1387_v28, %v1386_v27 }
   0x9   :  { %9783 = vst [vmem:[#allocation19_spill] sm:$0xff] %v4664_v7  ;;  %v4737_v21 = vld [vmem:[%s9286_s0 + $0x68] sm:$0xff]  ;;  %v4752_v24 = vld [vmem:[%s9287_s1 + $0x18] sm:$0xff]  ;;  %v4810_v38 = vld [vmem:[%s9287_s1 + $0x40] sm:$0xff]  ;;  %v1388_v40 = vmul.f32 %v4727_v19, %v4722_v18 }
   0xa   :  { %90 = vadd.xlane.f32.xlu1 %v4641_v3  ;;  %9784 = vst [vmem:[#allocation20_spill] sm:$0xff] %v4669_v8  ;;  %v4747_v23 = vld [vmem:[%s9286_s0 + $0x88] sm:$0xff]  ;;  %v4765_v29 = vld [vmem:[%s9286_s0 + $0x138] sm:$0xff]  ;;  %v4819_v41 = vld [vmem:[%s9286_s0 + $0xa0] sm:$0xff]  ;;  %v1373_v46 = vmul.f32 %v4752_v24, %v4711_v16  ;;  %v1376_v60 = vmul.f32 %v4800_v36, %v4737_v21  ;;  %v1403_v28 = vadd.f32 %v1402_v54, %v1372_v39 }
   0xb   :  { %86 = vadd.xlane.f32.xlu0 %v4646_v4  ;;  %9785 = vst [vmem:[#allocation21_spill] sm:$0xff] %v4674_v9  ;;  %v4775_v31 = vld [vmem:[%s9287_s1 + $0x28] sm:$0xff]  ;;  %v4780_v32 = vld [vmem:[%s9286_s0 + $0x98] sm:$0xff]  ;;  %v4824_v42 = vld [vmem:[%s9286_s0 + $0x90] sm:$0xff]  ;;  %v1389_v53 = vmul.f32 %v4752_v24, %v4765_v29  ;;  %v4897_v62 = vmul.f32 %v4810_v38, %v4747_v23 }
   0xc   :  { %94 = vadd.xlane.f32.xlu2 %v4653_v5  ;;  %9786 = vst [vmem:[#allocation22_spill] sm:$0xff] %v4679_v10  ;;  %v4785_v33 = vld [vmem:[%s9286_s0 + $0xa8] sm:$0xff]  ;;  %v4790_v34 = vld [vmem:[%s9286_s0 + $0xb8] sm:$0xff]  ;;  %v4856_v49 = vld [vmem:[%s9287_s1 + $0x50] sm:$0xff]  ;;  %v1375_v59 = vmul.f32 %v4775_v31, %v4732_v20 }
   0xd   :  { %9787 = vst [vmem:[#allocation23_spill] sm:$0xff] %v4684_v11  ;;  %v4795_v35 = vld [vmem:[%s9286_s0 + $0xc8] sm:$0xff]  ;;  %v4805_v37 = vld [vmem:[%s9287_s1 + $0x38] sm:$0xff]  ;;  %v4866_v51 = vld [vmem:[%s9287_s1 + $0x60] sm:$0xff]  ;;  %v4939_v39 = vmul.f32 %v4856_v49, %v4785_v33 }
   0xe   :  { %9788 = vst [vmem:[#allocation24_spill] sm:$0xff] %v4701_v14  ;;  %v4829_v43 = vld [vmem:[%s9286_s0 + $0xd8] sm:$0xff]  ;;  %v4834_v44 = vld [vmem:[%s9286_s0 + $0x148] sm:$0xff]  ;;  %v4893_v61 = vmul.f32 %v4805_v37, %v4742_v22  ;;  %v4909_v25 = vld [vmem:[%s9287_s1 + $0x70] sm:$0xff]  ;;  %v4947_v54 = vmul.f32 %v4866_v51, %v4795_v35 }
   0xf   :  { %9789 = vst [vmem:[#allocation25_spill] sm:$0xff] %v4706_v15  ;;  %v4839_v45 = vld [vmem:[%s9287_s1 + $0x48] sm:$0xff]  ;;  %v4851_v48 = vld [vmem:[%s9286_s0 + $0xf8] sm:$0xff]  ;;  %v1390_v27 = vmul.f32 %v4770_v30, %v4834_v44  ;;  %v5069_v10 = vld [vmem:[%s9286_s0 + $0x130] sm:$0xff] }
  0x10   :  { %9790 = vst [vmem:[#allocation26_spill] sm:$0xff] %v4711_v16  ;;  %v4846_v47 = vld [vmem:[%s9286_s0 + $0xe8] sm:$0xff]  ;;  %v4861_v50 = vld [vmem:[%s9287_s1 + $0x58] sm:$0xff]  ;;  %v5079_v8 = vld [vmem:[%s9287_s1 + $0xa0] sm:$0xff] }
  0x11   :  { %9791 = vst [vmem:[#allocation27_spill] sm:$0xff] %v4717_v17  ;;  %v4875_v56 = vld [vmem:[%s9286_s0 + $0x158] sm:$0xff]  ;;  %v4880_v57 = vld [vmem:[%s9286_s0 + $0x168] sm:$0xff]  ;;  %v1404_v17 = vadd.f32 %v1403_v28, %v1373_v46  ;;  %v4982_v15 = vmul.f32 %v4909_v25, %v4846_v47 }
  0x12   :  { %98 = vadd.xlane.f32.xlu1 %v4659_v6  ;;  %9792 = vst [vmem:[#allocation28_spill] sm:$0xff] %v4722_v18  ;;  %v4885_v58 = vld [vmem:[%s9287_s1 + $0x68] sm:$0xff]  ;;  %v4904_v63 = vld [vmem:[%s9286_s0 + $0x178] sm:$0xff] }
  0x13   :  { %96 = vadd.xlane.f32.xlu0 %v4664_v7  ;;  %9793 = vst [vmem:[#allocation29_spill] sm:$0xff] %v4732_v20  ;;  %v4914_v26 = vld [vmem:[%s9287_s1 + $0x78] sm:$0xff]  ;;  %v4931_v20 = vld [vmem:[%s9286_s0 + $0x1a8] sm:$0xff]  ;;  %v1393_v46 = vmul.f32 %v4805_v37, %v4904_v63 }
  0x14   :  { %100 = vadd.xlane.f32.xlu2 %v4701_v14  ;;  %9794 = vst [vmem:[#allocation30_spill] sm:$0xff] %v4737_v21  ;;  %v4926_v21 = vld [vmem:[%s9286_s0 + $0x198] sm:$0xff]  ;;  %v4973_v16 = vld [vmem:[%s9286_s0 + $0x1e8] sm:$0xff] }
  0x15   :  { %9795 = vst [vmem:[#allocation31_spill] sm:$0xff] %v4742_v22  ;;  %v4921_v22 = vld [vmem:[%s9286_s0 + $0x188] sm:$0xff]  ;;  %v4978_v18 = vld [vmem:[%s9286_s0 + $0x1f8] sm:$0xff]  ;;  %v1395_v28 = vmul.f32 %v4839_v45, %v4926_v21 }
  0x16   :  { %9796 = vst [vmem:[#allocation32_spill] sm:$0xff] %v4747_v23  ;;  %v1424_v23 = vadd.f32 %v1423_v55, %v1388_v40  ;;  %v4943_v40 = vmul.f32 %v4861_v50, %v4790_v34  ;;  %v4952_v55 = vld [vmem:[%s9286_s0 + $0x1b8] sm:$0xff] }
  0x17   :  { %9797 = vst [vmem:[#allocation33_spill] sm:$0xff] %v4765_v29  ;;  %v5074_v9 = vld [vmem:[%s9287_s1 + $0x98] sm:$0xff] }
  0x18   :  { %9798 = vst [vmem:[#allocation34_spill] sm:$0xff] %v4775_v31  ;;  %v1425_v29 = vadd.f32 %v1424_v23, %v1389_v53  ;;  %v1392_v23 = vmul.f32 %v4800_v36, %v4880_v57  ;;  %v1394_v53 = vmul.f32 %v4810_v38, %v4921_v22 }
  0x19   :  { %9799 = vst [vmem:[#allocation35_spill] sm:$0xff] %v4780_v32 }
  0x1a   :  { %9800 = vst [vmem:[#allocation36_spill] sm:$0xff] %v4785_v33  ;;  %104 = vadd.xlane.f32.xlu1 %v4819_v41  ;;  %v4962_v33 = vld [vmem:[%s9286_s0 + $0x1d8] sm:$0xff]  ;;  %v1426_v11 = vadd.f32 %v1425_v29, %v1390_v27  ;;  %v5019_v29 = vmul.f32 %v4909_v25, %v4973_v16 }
  0x1b   :  { %9801 = vst [vmem:[#allocation37_spill] sm:$0xff] %v4790_v34  ;;  %102 = vadd.xlane.f32.xlu0 %v4824_v42  ;;  %v4966_v34 = vmul.f32 %v4885_v58, %v4829_v43 }
  0x1c   :  { %9802 = vst [vmem:[#allocation38_spill] sm:$0xff] %v4795_v35  ;;  %v1391_v35 = vmul.f32 %v4775_v31, %v4875_v56 }
  0x1d   :  { %9803 = vst [vmem:[#allocation39_spill] sm:$0xff] %v4800_v36 }
  0x1e   :  { %9804 = vst [vmem:[#allocation40_spill] sm:$0xff] %v4805_v37 }
  0x1f   :  { %9805 = vst [vmem:[#allocation41_spill] sm:$0xff] %v4810_v38 }
  0x20   :  { %9806 = vst [vmem:[#allocation42_spill] sm:$0xff] %v4824_v42 }
  0x21   :  { %9807 = vst [vmem:[#allocation43_spill] sm:$0xff] %v4829_v43  ;;  %v4986_v43 = vmul.f32 %v4914_v26, %v4851_v48 }
  0x22   :  { %9808 = vst [vmem:[#allocation44_spill] sm:$0xff] %v4834_v44  ;;  %v4935_v44 = vmul.f32 %v4839_v45, %v4780_v32  ;;  %v4957_v32 = vld [vmem:[%s9286_s0 + $0x1c8] sm:$0xff] }
  0x23   :  { %9809 = vst [vmem:[#allocation45_spill] sm:$0xff] %v4839_v45 }
  0x24   :  { %9810 = vst [vmem:[#allocation46_spill] sm:$0xff] %v4846_v47  ;;  %v4998_v47 = vmul.f32 %v4856_v49, %v4931_v20 }
  0x25   :  { %9811 = vst [vmem:[#allocation47_spill] sm:$0xff] %v4851_v48  ;;  %v5002_v48 = vmul.f32 %v4861_v50, %v4952_v55 }
  0x26   :  { %9812 = vst [vmem:[#allocation48_spill] sm:$0xff] %v4856_v49 }
  0x27   :  { %9813 = vst [vmem:[#allocation49_spill] sm:$0xff] %v4861_v50 }
  0x28   :  { %9814 = vst [vmem:[#allocation50_spill] sm:$0xff] %v4866_v51 }
  0x29   :  { %9815 = vst [vmem:[#allocation51_spill] sm:$0xff] %v4875_v56  ;;  %v1405_v56 = vadd.f32 %v1404_v17, %v1374_v52  ;;  %v5015_v17 = vld [vmem:[%s9286_s0 + $0x100] sm:$0xff]  ;;  %v5023_v52 = vmul.f32 %v4914_v26, %v4978_v18 }
  0x2a   :  { %9816 = vst [vmem:[#allocation52_spill] sm:$0xff] %v4880_v57  ;;  %v5006_v57 = vmul.f32 %v4866_v51, %v4957_v32 }
  0x2b   :  { %9817 = vst [vmem:[#allocation53_spill] sm:$0xff] %v4885_v58  ;;  %v1406_v27 = vadd.f32 %v1405_v56, %v1375_v59  ;;  %v5043_v56 = vld [vmem:[%s9286_s0 + $0x120] sm:$0xff]  ;;  %v5056_v59 = vmul.f32 %v4694_v13, %v4646_v4 }
  0x2c   :  { %9818 = vst [vmem:[#allocation54_spill] sm:$0xff] %v4904_v63 }
  0x2d   :  { %9819 = vst [vmem:[#allocation55_spill] sm:$0xff] %v4909_v25 }
  0x2e   :  { %9820 = vst [vmem:[#allocation56_spill] sm:$0xff] %v4914_v26  ;;  %v5102_v26 = vld [vmem:[%s9287_s1 + $0xb8] sm:$0xff] }
  0x2f   :  { %9821 = vst [vmem:[#allocation57_spill] sm:$0xff] %v4921_v22  ;;  %v5010_v22 = vmul.f32 %v4885_v58, %v4962_v33 }
  0x30   :  { %9822 = vst [vmem:[#allocation58_spill] sm:$0xff] %v4926_v21  ;;  %v1407_v21 = vadd.f32 %v1406_v27, %v1376_v60  ;;  %v5084_v60 = vld [vmem:[%s9287_s1 + $0xa8] sm:$0xff]  ;;  %v5097_v27 = vld [vmem:[%s9287_s1 + $0xb0] sm:$0xff] }
  0x31   :  { %9823 = vst [vmem:[#allocation59_spill] sm:$0xff] %v4931_v20  ;;  %v5064_v20 = vmul.f32 %v4752_v24, %v4641_v3 }
  0x32   :  { %9824 = vst [vmem:[#allocation60_spill] sm:$0xff] %v4952_v55  ;;  %v5033_v55 = vld [vmem:[%s9287_s1 + $0x80] sm:$0xff]  ;;  %v1408_v49 = vadd.f32 %v1407_v21, %v4893_v61  ;;  %v5134_v21 = vld [vmem:[%s9287_s1 + $0xc8] sm:$0xff]  ;;  %v5139_v61 = vld [vmem:[%s9287_s1 + $0xd0] sm:$0xff] }
  0x33   :  { %9825 = vst [vmem:[#allocation61_spill] sm:$0xff] %v4957_v32  ;;  %v1427_v32 = vadd.f32 %v1426_v11, %v1391_v35  ;;  %v5048_v11 = vld [vmem:[%s9287_s1 + $0x90] sm:$0xff]  ;;  %v5052_v35 = vmul.f32 %v4689_v12, %v4628_v1  ;;  %v302_v25 = vmul.f32 %v5033_v55, %v4628_v1  ;;  %v318_v51 = vmul.f32 %v5033_v55, %v5015_v17  ;;  %v5121_v1 = vld [vmem:[%s9287_s1 + $0xc0] sm:$0xff] }
  0x34   :  { %9826 = vst [vmem:[#allocation62_spill] sm:$0xff] %v4962_v33  ;;  %v5028_v33 = vld [vmem:[%s9286_s0 + $0x110] sm:$0xff] }
  0x35   :  { %9827 = vst [vmem:[#allocation63_spill] sm:$0xff] %v4973_v16  ;;  %v5038_v16 = vld [vmem:[%s9287_s1 + $0x88] sm:$0xff]  ;;  %v1428_v63 = vadd.f32 %v1427_v32, %v1392_v23  ;;  %v5088_v32 = vmul.f32 %v4770_v30, %v4635_v2  ;;  %v5092_v23 = vmul.f32 %v4775_v31, %v4653_v5 }
  0x36   :  { %9828 = vst [vmem:[#allocation64_spill] sm:$0xff] %v4978_v18  ;;  %v5060_v18 = vmul.f32 %v4727_v19, %v4623_v0  ;;  %v303_v58 = vmul.f32 %v5038_v16, %v4646_v4  ;;  %v319_v50 = vmul.f32 %v5038_v16, %v5028_v33  ;;  %v5125_v4 = vmul.f32 %v4800_v36, %v4664_v7  ;;  %v5157_v36 = vld [vmem:[%s9286_s0 + $0xb0] sm:$0xff] }
  0x37   :  { %9829 = vst [vmem:[#allocation65_spill] sm:$0xff] %v5015_v17 }
  0x38   :  { %9830 = vst [vmem:[#allocation66_spill] sm:$0xff] %v5028_v33 }
  0x39   :  { %9831 = vst [vmem:[#allocation67_spill] sm:$0xff] %v5033_v55  ;;  %v5147_v55 = vmul.f32 %v4810_v38, %v4701_v14  ;;  %v308_v38 = vmul.f32 %v5097_v27, %v4664_v7 }
  0x3a   :  { %9832 = vst [vmem:[#allocation68_spill] sm:$0xff] %v5038_v16  ;;  %v5129_v16 = vmul.f32 %v4805_v37, %v4659_v6 }
  0x3b   :  { %9833 = vst [vmem:[#allocation69_spill] sm:$0xff] %v5043_v56 }
  0x3c   :  { %9834 = vst [vmem:[#allocation70_spill] sm:$0xff] %v5048_v11 }
  0x3d   :  { %9835 = vst [vmem:[#allocation71_spill] sm:$0xff] %v5064_v20  ;;  %v309_v20 = vmul.f32 %v5102_v26, %v4659_v6 }
  0x3e   :  { %9836 = vst [vmem:[#allocation72_spill] sm:$0xff] %v5074_v9 }
  0x3f   :  { %9837 = vst [vmem:[#allocation73_spill] sm:$0xff] %v5079_v8 }
  0x40   :  { %9838 = vst [vmem:[#allocation74_spill] sm:$0xff] %v5084_v60 }
  0x41   :  { %9839 = vst [vmem:[#allocation75_spill] sm:$0xff] %v5088_v32  ;;  %v5116_v32 = vld [vmem:[%s9286_s0 + $0x140] sm:$0xff] }
  0x42   :  { %9840 = vst [vmem:[#allocation76_spill] sm:$0xff] %v5092_v23  ;;  %v1429_v23 = vadd.f32 %v1428_v63, %v1393_v46  ;;  %v304_v63 = vmul.f32 %v5048_v11, %v4623_v0  ;;  %v320_v46 = vmul.f32 %v5048_v11, %v5043_v56  ;;  %v5162_v11 = vld [vmem:[%s9286_s0 + $0x150] sm:$0xff]  ;;  %v305_v0 = vmul.f32 %v5074_v9, %v4641_v3 }
  0x43   :  { %9841 = vst [vmem:[#allocation77_spill] sm:$0xff] %v5097_v27  ;;  %v334_v3 = vadd.f32 %v303_v58, %v302_v25 }
  0x44   :  { %9842 = vst [vmem:[#allocation78_spill] sm:$0xff] %v5102_v26  ;;  %v1430_v37 = vadd.f32 %v1429_v23, %v1394_v53  ;;  %v307_v53 = vmul.f32 %v5084_v60, %v4653_v5  ;;  %v321_v23 = vmul.f32 %v5074_v9, %v5069_v10 }
  0x45   :  { %9843 = vst [vmem:[#allocation79_spill] sm:$0xff] %v5121_v1 }
  0x46   :  { %9844 = vst [vmem:[#allocation80_spill] sm:$0xff] %v5125_v4  ;;  %v1409_v4 = vadd.f32 %v1408_v49, %v4897_v62  ;;  %v5171_v49 = vld [vmem:[%s9286_s0 + $0xc0] sm:$0xff]  ;;  %v5176_v62 = vld [vmem:[%s9287_s1 + $0xd8] sm:$0xff] }
  0x47   :  { %9845 = vst [vmem:[#allocation81_spill] sm:$0xff] %v5129_v16  ;;  %v5151_v16 = vmul.f32 %v4839_v45, %v4824_v42  ;;  %v1431_v45 = vadd.f32 %v1430_v37, %v1395_v28 }
  0x48   :  { %9846 = vst [vmem:[#allocation82_spill] sm:$0xff] %v5134_v21 }
  0x49   :  { %9847 = vst [vmem:[#allocation83_spill] sm:$0xff] %v5139_v61 }
  0x4a   :  { %9848 = vst [vmem:[#allocation84_spill] sm:$0xff] %v5147_v55  ;;  %v306_v55 = vmul.f32 %v5079_v8, %v4635_v2  ;;  %v1410_v2 = vadd.f32 %v1409_v4, %v4935_v44 }
  0x4b   :  { %9849 = vst [vmem:[#allocation85_spill] sm:$0xff] %v5151_v16  ;;  %v355_v16 = vadd.f32 %v319_v50, %v318_v51 }
  0x4c   :  { %9850 = vst [vmem:[#allocation86_spill] sm:$0xff] %v5176_v62 }
  0x4d   :  { %17 = vsyncpa [#allocation10], 0  ;;  %v5190_v31 = vld [vmem:[%s9286_s0 + $0xd0] sm:$0xff]  ;;  %v5195_v58 = vld [vmem:[%s9287_s1 + $0xe0] sm:$0xff]  ;;  %v310_v37 = vmul.f32 %v5121_v1, %v4701_v14  ;;  %v322_v44 = vmul.f32 %v5079_v8, %v5116_v32  ;;  %v335_v50 = vadd.f32 %v334_v3, %v304_v63  ;;  %v356_v51 = vadd.f32 %v355_v16, %v320_v46  ;;  %s4520_s17 = smov 64   ;;  %s4521_s26 = smov 32  }
  0x4e   :  { %9851 = vst [vmem:[#allocation87_spill] sm:$0xff] %v5190_v31  ;;  %v5200_v4 = vld [vmem:[%s9287_s1 + $0xe8] sm:$0xff]  ;;  %v1411_v25 = vadd.f32 %v1410_v2, %v4939_v39  ;;  %v1432_v28 = vadd.f32 %v1431_v45, %v4998_v47  ;;  %v5211_v9 = vld [vmem:[%s9286_s0 + $0xe0] sm:$0xff]  ;;  %v5221_v8 = vld [vmem:[%s9287_s1 + $0xf0] sm:$0xff]  ;;  %v311_v2 = vmul.f32 %v5134_v21, %v4824_v42  ;;  %v5227_v3 = vmul.f32 %v5139_v61, %v4819_v41 }
  0x4f   :  { %9852 = vst [vmem:[#allocation88_spill] sm:$0xff] %v5195_v58  ;;  %v5216_v6 = vld [vmem:[%s9286_s0 + $0x160] sm:$0xff]  ;;  %v5231_v16 = vmul.f32 %v5176_v62, %v5157_v36  ;;  %v323_v45 = vmul.f32 %v5084_v60, %v5162_v11  ;;  %v336_v47 = vadd.f32 %v335_v50, %v305_v0  ;;  %v357_v39 = vadd.f32 %v356_v51, %v321_v23  ;;  %v5240_v42 = vld [vmem:[%s9286_s0 + $0xf0] sm:$0xff]  ;;  %v5250_v60 = vld [vmem:[%s9287_s1 + $0xf8] sm:$0xff] }
  0x50   :  { %9853 = vst [vmem:[#allocation89_spill] sm:$0xff] %v5200_v4  ;;  %v1412_v63 = vadd.f32 %v1411_v25, %v4943_v40  ;;  %v1433_v46 = vadd.f32 %v1432_v28, %v5002_v48  ;;  %v5245_v14 = vld [vmem:[%s9286_s0 + $0x170] sm:$0xff]  ;;  %v5254_v0 = vmul.f32 %v5195_v58, %v5171_v49  ;;  %v5258_v48 = vmul.f32 %v5200_v4, %v5190_v31  ;;  %v5263_v40 = vld [vmem:[%s9286_s0 + $0x180] sm:$0xff] }
  0x51   :  { %9854 = vst [vmem:[#allocation90_spill] sm:$0xff] %v5211_v9  ;;  %v5267_v23 = vmul.f32 %v5221_v8, %v5211_v9  ;;  %v324_v50 = vmul.f32 %v5097_v27, %v5216_v6  ;;  %v337_v51 = vadd.f32 %v336_v47, %v306_v55  ;;  %v358_v25 = vadd.f32 %v357_v39, %v322_v44  ;;  %v5276_v5 = vld [vmem:[%s9286_s0 + $0x190] sm:$0xff] }
  0x52   :  { %9855 = vst [vmem:[#allocation91_spill] sm:$0xff] %v5221_v8  ;;  %v1413_v28 = vadd.f32 %v1412_v63, %v4947_v54  ;;  %v1434_v7 = vadd.f32 %v1433_v46, %v5006_v57  ;;  %v212_v31 = vmul.f32 %v4689_v12, %v5015_v17  ;;  %v213_v9 = vmul.f32 %v4694_v13, %v5028_v33  ;;  %v5293_v12 = vld [vmem:[%s9286_s0 + $0x1a0] sm:$0xff]  ;;  %v5308_v46 = vld [vmem:[%s9286_s0 + $0x1b0] sm:$0xff] }
  0x53   :  { %9856 = vst [vmem:[#allocation92_spill] sm:$0xff] %v5240_v42  ;;  %v5284_v27 = vmul.f32 %v5250_v60, %v5240_v42  ;;  %v325_v54 = vmul.f32 %v5102_v26, %v5245_v14  ;;  %v338_v55 = vadd.f32 %v337_v51, %v307_v53  ;;  %v359_v57 = vadd.f32 %v358_v25, %v323_v45 }
  0x54   :  { %9857 = vst [vmem:[#allocation93_spill] sm:$0xff] %v5250_v60  ;;  %v1414_v44 = vadd.f32 %v1413_v28, %v4966_v34  ;;  %v1435_v47 = vadd.f32 %v1434_v7, %v5010_v22  ;;  %v326_v13 = vmul.f32 %v5121_v1, %v5263_v40  ;;  %v214_v39 = vmul.f32 %v4727_v19, %v5043_v56  ;;  %v5321_v28 = vld [vmem:[%s9286_s0 + $0x1c0] sm:$0xff] }
  0x55   :  { %v327_v63 = vmul.f32 %v5134_v21, %v5276_v5  ;;  %v339_v53 = vadd.f32 %v338_v55, %v308_v38  ;;  %v360_v45 = vadd.f32 %v359_v57, %v324_v50  ;;  %v215_v34 = vmul.f32 %v4752_v24, %v5069_v10  ;;  %9858 = vst [vmem:[#allocation94_spill] sm:$0xff] %v5308_v46  ;;  %v9862_v57 = vld [vmem:[#allocation71_spill] sm:$0xff] }
  0x56   :  { %v1415_v7 = vadd.f32 %v1414_v44, %v4982_v15  ;;  %v1436_v22 = vadd.f32 %v1435_v47, %v5019_v29  ;;  %v228_v19 = vadd.f32 %v5056_v59, %v5052_v35  ;;  %v249_v51 = vadd.f32 %v213_v9, %v212_v31  ;;  %9859 = vst [vmem:[#allocation95_spill] sm:$0xff] %v5321_v28 }
  0x57   :  { %v328_v38 = vmul.f32 %v5139_v61, %v5293_v12  ;;  %v340_v50 = vadd.f32 %v339_v53, %v309_v20  ;;  %v361_v25 = vadd.f32 %v360_v45, %v325_v54  ;;  %v216_v24 = vmul.f32 %v4770_v30, %v5116_v32  ;;  %v9860_v54 = vld [vmem:[#allocation34_spill] sm:$0xff] }
  0x58   :  { %v1416_v15 = vadd.f32 %v1415_v7, %v4986_v43  ;;  %v1437_v29 = vadd.f32 %v1436_v22, %v5023_v52  ;;  %v229_v35 = vadd.f32 %v228_v19, %v5060_v18  ;;  %v250_v9 = vadd.f32 %v249_v51, %v214_v39  ;;  %v5331_v52 = vld [vmem:[%s9286_s0 + $0x1d0] sm:$0xff]  ;;  %v5341_v22 = vld [vmem:[%s9286_s0 + $0x1e0] sm:$0xff] }
  0x59   :  { %v329_v31 = vmul.f32 %v5176_v62, %v5308_v46  ;;  %v341_v20 = vadd.f32 %v340_v50, %v310_v37  ;;  %v362_v59 = vadd.f32 %v361_v25, %v326_v13  ;;  %v217_v30 = vmul.f32 %v9860_v54, %v5162_v11  ;;  %9861 = vst [vmem:[#allocation34_spill] sm:$0xff] %v5331_v52  ;;  %v9863_v13 = vld [vmem:[#allocation39_spill] sm:$0xff]  ;;  %v9866_v25 = vld [vmem:[#allocation40_spill] sm:$0xff]  ;;  %v5442_v62 = vld [vmem:[%s9287_s1 + $0x128] sm:$0xff] }
  0x5a   :  { %v1417_v55 = vrot.slane %v1416_v15, 4  ;;  %v1438_v43 = vrot.slane %v1437_v29, 4  ;;  %v230_v44 = vadd.f32 %v229_v35, %v9862_v57  ;;  %v251_v47 = vadd.f32 %v250_v9, %v215_v34  ;;  %9864 = vst [vmem:[#allocation71_spill] sm:$0xff] %v5341_v22  ;;  %v9865_v19 = vld [vmem:[#allocation75_spill] sm:$0xff] }
  0x5b   :  { %vm272_vm0 = vcmask 1041409   ;;  %v330_v18 = vmul.f32 %v5195_v58, %v5321_v28  ;;  %v342_v39 = vadd.f32 %v341_v20, %v311_v2  ;;  %v363_v37 = vadd.f32 %v362_v59, %v327_v63  ;;  %v9868_v20 = vld [vmem:[#allocation76_spill] sm:$0xff]  ;;  %v9889_v58 = vld [vmem:[#allocation26_spill] sm:$0xff] }
  0x5c   :  { %v218_v53 = vmul.f32 %v9863_v13, %v5216_v6  ;;  %vm275_vm1 = vcmask 1041408   ;;  %v1418_v45 = vadd.f32 %v1417_v55, %v1416_v15  ;;  %v1439_v7 = vadd.f32 %v1438_v43, %v1437_v29  ;;  %v5352_v29 = vld [vmem:[%s9286_s0 + $0x1f0] sm:$0xff] }
  0x5d   :  { %v231_v51 = vadd.f32 %v230_v44, %v9865_v19  ;;  %v252_v34 = vadd.f32 %v251_v47, %v216_v24  ;;  %v331_v50 = vmul.f32 %v5200_v4, %v5331_v52  ;;  %v343_v2 = vadd.f32 %v342_v39, %v5227_v3  ;;  %9867 = vst [vmem:[#allocation39_spill] sm:$0xff] %v5352_v29  ;;  %v9870_v47 = vld [vmem:[#allocation80_spill] sm:$0xff] }
  0x5e   :  { %v364_v63 = vadd.f32 %v363_v37, %v328_v38  ;;  %v219_v35 = vmul.f32 %v9866_v25, %v5245_v14  ;;  %v1419_v9 = vrot.slane %v1418_v45, 2  ;;  %v1440_v15 = vrot.slane %v1439_v7, 2  ;;  %v9869_v38 = vld [vmem:[#allocation41_spill] sm:$0xff] }
  0x5f   :  { %v232_v59 = vadd.f32 %v231_v51, %v9868_v20  ;;  %v253_v54 = vadd.f32 %v252_v34, %v217_v30  ;;  %v332_v24 = vmul.f32 %v5221_v8, %v5341_v22  ;;  %v344_v55 = vadd.f32 %v343_v2, %v5231_v16  ;;  %v9871_v51 = vld [vmem:[#allocation45_spill] sm:$0xff] }
  0x60   :  { %v365_v3 = vadd.f32 %v364_v63, %v329_v31  ;;  %v220_v43 = vmul.f32 %v9869_v38, %v5263_v40  ;;  %v1420_v57 = vadd.f32 %v1419_v9, %v1418_v45  ;;  %v1441_v44 = vadd.f32 %v1440_v15, %v1439_v7  ;;  %v9872_v31 = vld [vmem:[#allocation81_spill] sm:$0xff]  ;;  %v9873_v9 = vld [vmem:[#allocation48_spill] sm:$0xff] }
  0x61   :  { %v233_v39 = vadd.f32 %v232_v59, %v9870_v47  ;;  %v254_v37 = vadd.f32 %v253_v54, %v218_v53  ;;  %v333_v13 = vmul.f32 %v5250_v60, %v5352_v29  ;;  %v345_v19 = vadd.f32 %v344_v55, %v5254_v0  ;;  %v9875_v38 = vld [vmem:[#allocation49_spill] sm:$0xff]  ;;  %v9888_v60 = vld [vmem:[#allocation28_spill] sm:$0xff] }
  0x62   :  { %v366_v30 = vadd.f32 %v365_v3, %v330_v18  ;;  %v221_v34 = vmul.f32 %v9871_v51, %v5276_v5  ;;  %v1421_v25 = vrot.slane %v1420_v57, 1  ;;  %v1442_v16 = vrot.slane %v1441_v44, 1  ;;  %v9874_v18 = vld [vmem:[#allocation84_spill] sm:$0xff] }
  0x63   :  { %v234_v2 = vadd.f32 %v233_v39, %v9872_v31  ;;  %v255_v63 = vadd.f32 %v254_v37, %v219_v35  ;;  %v346_v45 = vadd.f32 %v345_v19, %v5258_v48  ;;  %v206_v53 = vmul.f32 %v9873_v9, %v4819_v41  ;;  %v9876_v48 = vld [vmem:[#allocation50_spill] sm:$0xff]  ;;  %v9877_v37 = vld [vmem:[#allocation85_spill] sm:$0xff]  ;;  %v9881_v31 = vld [vmem:[#allocation55_spill] sm:$0xff] }
  0x64   :  { %v367_v7 = vadd.f32 %v366_v30, %v331_v50  ;;  %v222_v15 = vmul.f32 %v9873_v9, %v5293_v12  ;;  %v1422_v20 = vadd.f32 %v1421_v25, %v1420_v57  ;;  %v1443_v0 = vadd.f32 %v1442_v16, %v1441_v44  ;;  %v9879_v30 = vld [vmem:[#allocation53_spill] sm:$0xff]  ;;  %v9882_v9 = vld [vmem:[#allocation56_spill] sm:$0xff] }
  0x65   :  { %v235_v59 = vadd.f32 %v234_v2, %v9874_v18  ;;  %v256_v54 = vadd.f32 %v255_v63, %v220_v43  ;;  %v347_v55 = vadd.f32 %v346_v45, %v5267_v23  ;;  %v207_v35 = vmul.f32 %v9875_v38, %v5157_v36  ;;  %v5389_v25 = vld [vmem:[%s9287_s1 + $0x100] sm:$0xff]  ;;  %v5394_v16 = vld [vmem:[%s9287_s1 + $0x108] sm:$0xff] }
  0x66   :  { %v368_v3 = vadd.f32 %v367_v7, %v332_v24  ;;  %v208_v50 = vmul.f32 %v9876_v48, %v5171_v49  ;;  %v1446_v47 = vsel %vm272_vm0, %v1443_v0, %v1422_v20  ;;  %v223_v39 = vmul.f32 %v9875_v38, %v5308_v46  ;;  %v9878_v24 = vld [vmem:[#allocation87_spill] sm:$0xff] }
  0x67   :  { %v236_v57 = vadd.f32 %v235_v59, %v9877_v37  ;;  %v257_v44 = vadd.f32 %v256_v54, %v221_v34  ;;  %v1448_v19 = vsel %vm275_vm1, %v1446_v47, 0.0  ;;  %v348_v43 = vadd.f32 %v347_v55, %v5284_v27  ;;  %v9880_v34 = vld [vmem:[#allocation90_spill] sm:$0xff]  ;;  %v9883_v55 = vld [vmem:[#allocation20_spill] sm:$0xff]  ;;  %v9886_v37 = vld [vmem:[#allocation23_spill] sm:$0xff] }
  0x68   :  { %v369_v23 = vadd.f32 %v368_v3, %v333_v13  ;;  %v209_v51 = vmul.f32 %v9879_v30, %v9878_v24  ;;  %1449 = vadd.xlane.f32.xlu1 %v1448_v19  ;;  %v210_v2 = vmul.f32 %v9881_v31, %v9880_v34  ;;  %v224_v27 = vmul.f32 %v9876_v48, %v5321_v28  ;;  %v5407_v54 = vld [vmem:[%s9287_s1 + $0x110] sm:$0xff]  ;;  %v5416_v47 = vld [vmem:[%s9287_s1 + $0x118] sm:$0xff] }
  0x69   :  { %v237_v13 = vadd.f32 %v236_v57, %v206_v53  ;;  %v258_v63 = vadd.f32 %v257_v44, %v222_v15  ;;  %v349_v45 = vrot.slane %v348_v43, 4  ;;  %v211_v20 = vmul.f32 %v9882_v9, %v5240_v42  ;;  %v9884_v53 = vld [vmem:[#allocation21_spill] sm:$0xff] }
  0x6a   :  { %v370_v7 = vrot.slane %v369_v23, 4  ;;  %v225_v0 = vmul.f32 %v9879_v30, %v5331_v52  ;;  %v1572_v3 = vmul.f32 %v5389_v25, %v9883_v55  ;;  %v1573_v15 = vmul.f32 %v5394_v16, %v9884_v53  ;;  %v9905_v52 = vld [vmem:[#allocation43_spill] sm:$0xff]  ;;  %v9907_v53 = vld [vmem:[#allocation58_spill] sm:$0xff] }
  0x6b   :  { %v238_v18 = vadd.f32 %v237_v13, %v207_v35  ;;  %v259_v59 = vadd.f32 %v258_v63, %v223_v39  ;;  %v350_v38 = vadd.f32 %v349_v45, %v348_v43  ;;  %v9885_v35 = vld [vmem:[#allocation22_spill] sm:$0xff]  ;;  %v1589_v57 = vmul.f32 %v5394_v16, %v9886_v37  ;;  %v5429_v63 = vld [vmem:[%s9287_s1 + $0x120] sm:$0xff] }
  0x6c   :  { %v371_v48 = vadd.f32 %v370_v7, %v369_v23  ;;  %v1588_v39 = vmul.f32 %v5389_v25, %v9885_v35  ;;  %v226_v44 = vmul.f32 %v9881_v31, %v5341_v22  ;;  %v227_v19 = vmul.f32 %v9882_v9, %v5352_v29  ;;  %v9887_v45 = vld [vmem:[#allocation25_spill] sm:$0xff]  ;;  %v9891_v29 = vld [vmem:[#allocation27_spill] sm:$0xff]  ;;  %v9904_v22 = vld [vmem:[#allocation38_spill] sm:$0xff] }
  0x6d   :  { %v239_v30 = vadd.f32 %v238_v18, %v208_v50  ;;  %v260_v43 = vadd.f32 %v259_v59, %v224_v27  ;;  %v351_v23 = vrot.slane %v350_v38, 2  ;;  %v1574_v7 = vmul.f32 %v5407_v54, %v9887_v45  ;;  %v9890_v50 = vld [vmem:[#allocation33_spill] sm:$0xff]  ;;  %v9906_v37 = vld [vmem:[#allocation46_spill] sm:$0xff] }
  0x6e   :  { %v372_v13 = vrot.slane %v371_v48, 2  ;;  %v1590_v8 = vmul.f32 %v5407_v54, %v9888_v60  ;;  %v1575_v9 = vmul.f32 %v5416_v47, %v9889_v58  ;;  %v1591_v27 = vmul.f32 %v5416_v47, %v9890_v50 }
  0x6f   :  { %v240_v4 = vadd.f32 %v239_v30, %v209_v51  ;;  %v261_v31 = vadd.f32 %v260_v43, %v225_v0  ;;  %v352_v18 = vadd.f32 %v351_v23, %v350_v38  ;;  %v1604_v61 = vadd.f32 %v1573_v15, %v1572_v3  ;;  %v9892_v0 = vld [vmem:[#allocation44_spill] sm:$0xff]  ;;  %v5451_v38 = vld [vmem:[%s9287_s1 + $0x130] sm:$0xff]  ;;  %v9893_v15 = vld [vmem:[#allocation29_spill] sm:$0xff] }
  0x70   :  { %v373_v59 = vadd.f32 %v372_v13, %v371_v48  ;;  %v1625_v21 = vadd.f32 %v1589_v57, %v1588_v39  ;;  %v1576_v51 = vmul.f32 %v5429_v63, %v9891_v29  ;;  %v1592_v30 = vmul.f32 %v5429_v63, %v9892_v0 }
  0x71   :  { %v241_v1 = vadd.f32 %v240_v4, %v210_v2  ;;  %v262_v26 = vadd.f32 %v261_v31, %v226_v44  ;;  %v353_v43 = vrot.slane %v352_v18, 1  ;;  %v1605_v48 = vadd.f32 %v1604_v61, %v1574_v7  ;;  %v9894_v2 = vld [vmem:[#allocation51_spill] sm:$0xff] }
  0x72   :  { %v374_v58 = vrot.slane %v373_v59, 1  ;;  %v1626_v23 = vadd.f32 %v1625_v21, %v1590_v8  ;;  %v1577_v4 = vmul.f32 %v5442_v62, %v9893_v15  ;;  %v1593_v39 = vmul.f32 %v5442_v62, %v9894_v2  ;;  %v5460_v31 = vld [vmem:[%s9287_s1 + $0x138] sm:$0xff]  ;;  %v9895_v8 = vld [vmem:[#allocation30_spill] sm:$0xff] }
  0x73   :  { %v242_v13 = vadd.f32 %v241_v1, %v211_v20  ;;  %v263_v3 = vadd.f32 %v262_v26, %v227_v19  ;;  %v354_v57 = vadd.f32 %v353_v43, %v352_v18  ;;  %v1606_v0 = vadd.f32 %v1605_v48, %v1575_v9  ;;  %v5465_v1 = vld [vmem:[%s9287_s1 + $0x140] sm:$0xff]  ;;  %v5478_v20 = vld [vmem:[%s9287_s1 + $0x150] sm:$0xff]  ;;  %v5486_v48 = vld [vmem:[%s9287_s1 + $0x158] sm:$0xff] }
  0x74   :  { %v375_v44 = vadd.f32 %v374_v58, %v373_v59  ;;  %v1627_v29 = vadd.f32 %v1626_v23, %v1591_v27  ;;  %v1578_v26 = vmul.f32 %v5451_v38, %v9895_v8  ;;  %v5473_v58 = vld [vmem:[%s9287_s1 + $0x148] sm:$0xff]  ;;  %v9896_v19 = vld [vmem:[#allocation52_spill] sm:$0xff]  ;;  %v9897_v23 = vld [vmem:[#allocation31_spill] sm:$0xff]  ;;  %vm2408_vm2 = vcmask 130112  }
  0x75   :  { %v243_v50 = vrot.slane %v242_v13, 4  ;;  %v264_v61 = vrot.slane %v263_v3, 4  ;;  %v1594_v7 = vmul.f32 %v5451_v38, %v9896_v19  ;;  %v1607_v9 = vadd.f32 %v1606_v0, %v1576_v51  ;;  %v9899_v0 = vld [vmem:[#allocation54_spill] sm:$0xff]  ;;  %v9901_v8 = vld [vmem:[#allocation36_spill] sm:$0xff] }
  0x76   :  { %v378_v21 = vsel %vm272_vm0, %v375_v44, %v354_v57  ;;  %v1628_v27 = vadd.f32 %v1627_v29, %v1592_v30  ;;  %v1579_v57 = vmul.f32 %v5460_v31, %v9897_v23  ;;  %v5493_v44 = vld [vmem:[%s9287_s1 + $0x160] sm:$0xff]  ;;  %v5498_v29 = vld [vmem:[%s9287_s1 + $0x168] sm:$0xff]  ;;  %v1595_v30 = vmul.f32 %v5460_v31, %v9899_v0  ;;  %v9900_v23 = vld [vmem:[#allocation35_spill] sm:$0xff] }
  0x77   :  { %v380_v18 = vsel %vm275_vm1, %v378_v21, 0.0  ;;  %v244_v59 = vadd.f32 %v243_v50, %v242_v13  ;;  %v265_v43 = vadd.f32 %v264_v61, %v263_v3  ;;  %v9898_v50 = vld [vmem:[#allocation32_spill] sm:$0xff]  ;;  %v1608_v13 = vadd.f32 %v1607_v9, %v1577_v4  ;;  %v9902_v4 = vld [vmem:[#allocation37_spill] sm:$0xff] }
  0x78   :  { %381 = vadd.xlane.f32.xlu0 %v380_v18  ;;  %v1580_v51 = vmul.f32 %v5465_v1, %v9898_v50  ;;  %v1629_v3 = vadd.f32 %v1628_v27, %v1593_v39  ;;  %v5507_v18 = vld [vmem:[%s9287_s1 + $0x170] sm:$0xff]  ;;  %v1581_v19 = vmul.f32 %v5473_v58, %v9900_v23  ;;  %v1582_v2 = vmul.f32 %v5478_v20, %v9901_v8  ;;  %v5516_v50 = vld [vmem:[%s9287_s1 + $0x178] sm:$0xff]  ;;  %v9903_v9 = vld [vmem:[#allocation57_spill] sm:$0xff] }
  0x79   :  { %v245_v61 = vrot.slane %v244_v59, 2  ;;  %v266_v21 = vrot.slane %v265_v43, 2  ;;  %v1583_v39 = vmul.f32 %v5486_v48, %v9902_v4  ;;  %v1596_v27 = vmul.f32 %v5465_v1, %v9903_v9 }
  0x7a   :  { %v1609_v0 = vadd.f32 %v1608_v13, %v1578_v26  ;;  %v1630_v15 = vadd.f32 %v1629_v3, %v1594_v7  ;;  %v1584_v23 = vmul.f32 %v5493_v44, %v9904_v22  ;;  %v1585_v8 = vmul.f32 %v5498_v29, %v9905_v52  ;;  %v9908_v26 = vld [vmem:[#allocation47_spill] sm:$0xff]  ;;  %v9911_v52 = vld [vmem:[#allocation16_spill] sm:$0xff] }
  0x7b   :  { %v246_v60 = vadd.f32 %v245_v61, %v244_v59  ;;  %v267_v45 = vadd.f32 %v266_v21, %v265_v43  ;;  %v1586_v35 = vmul.f32 %v5507_v18, %v9906_v37  ;;  %v1597_v55 = vmul.f32 %v5473_v58, %v9907_v53  ;;  %v9909_v59 = vld [vmem:[#allocation59_spill] sm:$0xff]  ;;  %v9910_v61 = vld [vmem:[#allocation13_spill] sm:$0xff] }
  0x7c   :  { %v1610_v4 = vadd.f32 %v1609_v0, %v1579_v57  ;;  %v1631_v28 = vadd.f32 %v1630_v15, %v1595_v30  ;;  %v1587_v7 = vmul.f32 %v5516_v50, %v9908_v26  ;;  %v1598_v43 = vmul.f32 %v5478_v20, %v9909_v59  ;;  %v9912_v0 = vld [vmem:[#allocation60_spill] sm:$0xff]  ;;  %v9913_v59 = vld [vmem:[#allocation61_spill] sm:$0xff] }
  0x7d   :  { %v247_v46 = vrot.slane %v246_v60, 1  ;;  %v268_v9 = vrot.slane %v267_v45, 1  ;;  %v406_v21 = vmul.f32 %v5389_v25, %v9910_v61  ;;  %v407_v37 = vmul.f32 %v5394_v16, %v9911_v52  ;;  %v9914_v61 = vld [vmem:[#allocation62_spill] sm:$0xff] }
  0x7e   :  { %v1611_v13 = vadd.f32 %v1610_v4, %v1580_v51  ;;  %v1632_v3 = vadd.f32 %v1631_v28, %v1596_v27  ;;  %v422_v15 = vmul.f32 %v5389_v25, %v5015_v17  ;;  %v423_v57 = vmul.f32 %v5394_v16, %v5028_v33 }
  0x7f   :  { %v248_v22 = vadd.f32 %v247_v46, %v246_v60  ;;  %v269_v53 = vadd.f32 %v268_v9, %v267_v45  ;;  %v1599_v30 = vmul.f32 %v5486_v48, %v9912_v0  ;;  %v1600_v28 = vmul.f32 %v5493_v44, %v9913_v59  ;;  %v9915_v46 = vld [vmem:[#allocation12_spill] sm:$0xff]  ;;  %v9916_v45 = vld [vmem:[#allocation63_spill] sm:$0xff] }
  0x80   :  { %v1612_v51 = vadd.f32 %v1611_v13, %v1581_v19  ;;  %v1633_v4 = vadd.f32 %v1632_v3, %v1597_v55  ;;  %v1601_v60 = vmul.f32 %v5498_v29, %v9914_v61  ;;  %v408_v52 = vmul.f32 %v5407_v54, %v9915_v46  ;;  %v9917_v55 = vld [vmem:[#allocation15_spill] sm:$0xff]  ;;  %v9918_v3 = vld [vmem:[#allocation64_spill] sm:$0xff] }
  0x81   :  { %v273_v27 = vsel %vm272_vm0, %v269_v53, %v248_v22  ;;  %v424_v25 = vmul.f32 %v5407_v54, %v5043_v56  ;;  %v1602_v9 = vmul.f32 %v5507_v18, %v9916_v45  ;;  %v409_v22 = vmul.f32 %v5416_v47, %v9917_v55  ;;  %v9920_v45 = vld [vmem:[#allocation17_spill] sm:$0xff] }
  0x82   :  { %v276_v16 = vsel %vm275_vm1, %v273_v27, 0.0  ;;  %v1613_v33 = vadd.f32 %v1612_v51, %v1582_v2  ;;  %v1634_v17 = vadd.f32 %v1633_v4, %v1598_v43  ;;  %v425_v53 = vmul.f32 %v5416_v47, %v5069_v10  ;;  %v9919_v27 = vld [vmem:[#allocation14_spill] sm:$0xff] }
  0x83   :  { %277 = vadd.xlane.f32.xlu2 %v276_v16  ;;  %v438_v19 = vadd.f32 %v407_v37, %v406_v21  ;;  %v459_v13 = vadd.f32 %v423_v57, %v422_v15  ;;  %v1603_v46 = vmul.f32 %v5516_v50, %v9918_v3  ;;  %v410_v61 = vmul.f32 %v5429_v63, %v9919_v27  ;;  %v9921_v37 = vld [vmem:[#allocation19_spill] sm:$0xff]  ;;  %v9922_v15 = vld [vmem:[#allocation18_spill] sm:$0xff] }
  0x84   :  { %v1614_v54 = vadd.f32 %v1613_v33, %v1583_v39  ;;  %v1635_v56 = vadd.f32 %v1634_v17, %v1599_v30  ;;  %v411_v2 = vmul.f32 %v5442_v62, %v9920_v45  ;;  %v426_v43 = vmul.f32 %v5429_v63, %v5116_v32  ;;  %v9923_v17 = vld [vmem:[#allocation24_spill] sm:$0xff] }
  0x85   :  { %v439_v51 = vadd.f32 %v438_v19, %v408_v52  ;;  %v460_v4 = vadd.f32 %v459_v13, %v424_v25  ;;  %v412_v21 = vmul.f32 %v5451_v38, %v9921_v37  ;;  %v413_v33 = vmul.f32 %v5460_v31, %v9922_v15  ;;  %v9924_v52 = vld [vmem:[#allocation42_spill] sm:$0xff] }
  0x86   :  { %v1615_v16 = vadd.f32 %v1614_v54, %v1584_v23  ;;  %v1636_v47 = vadd.f32 %v1635_v56, %v1600_v28  ;;  %v414_v39 = vmul.f32 %v5465_v1, %v9923_v17  ;;  %v427_v57 = vmul.f32 %v5442_v62, %v5162_v11 }
  0x87   :  { %v440_v30 = vadd.f32 %v439_v51, %v409_v22  ;;  %v461_v45 = vadd.f32 %v460_v4, %v425_v53  ;;  %v415_v23 = vmul.f32 %v5473_v58, %v9924_v52  ;;  %v416_v56 = vmul.f32 %v5478_v20, %v4819_v41 }
  0x88   :  { %v1616_v55 = vadd.f32 %v1615_v16, %v1585_v8  ;;  %v1637_v63 = vadd.f32 %v1636_v47, %v1601_v60  ;;  %v417_v28 = vmul.f32 %v5486_v48, %v5157_v36  ;;  %v428_v25 = vmul.f32 %v5451_v38, %v5216_v6  ;;  %v9925_v47 = vld [vmem:[#allocation94_spill] sm:$0xff] }
  0x89   :  { %v441_v19 = vadd.f32 %v440_v30, %v410_v61  ;;  %v462_v13 = vadd.f32 %v461_v45, %v426_v43  ;;  %v418_v8 = vmul.f32 %v5493_v44, %v5171_v49  ;;  %v5588_v60 = vmul.f32 %v5498_v29, %v9878_v24  ;;  %v9929_v45 = vld [vmem:[#allocation21_spill] sm:$0xff] }
  0x8a   :  { %v1617_v54 = vadd.f32 %v1616_v55, %v1586_v35  ;;  %v1638_v62 = vadd.f32 %v1637_v63, %v1602_v9  ;;  %v5592_v41 = vmul.f32 %v5507_v18, %v9880_v34  ;;  %v429_v22 = vmul.f32 %v5460_v31, %v5245_v14 }
  0x8b   :  { %v442_v53 = vadd.f32 %v441_v19, %v411_v2  ;;  %v463_v38 = vadd.f32 %v462_v13, %v427_v57  ;;  %v5598_v35 = vmul.f32 %v5516_v50, %v5240_v42  ;;  %v430_v9 = vmul.f32 %v5465_v1, %v5263_v40  ;;  %v9927_v57 = vld [vmem:[#allocation20_spill] sm:$0xff]  ;;  %v9928_v1 = vld [vmem:[#allocation67_spill] sm:$0xff]  ;;  %v9942_v42 = vld [vmem:[#allocation73_spill] sm:$0xff] }
  0x8c   :  { %v1618_v61 = vadd.f32 %v1617_v54, %v1587_v7  ;;  %v1639_v27 = vadd.f32 %v1638_v62, %v1603_v46  ;;  %v431_v43 = vmul.f32 %v5473_v58, %v5276_v5  ;;  %v432_v51 = vmul.f32 %v5478_v20, %v5293_v12  ;;  %v9926_v46 = vld [vmem:[#allocation95_spill] sm:$0xff]  ;;  %v9930_v58 = vld [vmem:[#allocation68_spill] sm:$0xff] }
  0x8d   :  { %v443_v4 = vadd.f32 %v442_v53, %v412_v21  ;;  %v464_v16 = vadd.f32 %v463_v38, %v428_v25  ;;  %v433_v7 = vmul.f32 %v5486_v48, %v9925_v47  ;;  %v434_v37 = vmul.f32 %v5493_v44, %v9926_v46  ;;  %v9931_v21 = vld [vmem:[#allocation22_spill] sm:$0xff]  ;;  %v9932_v25 = vld [vmem:[#allocation23_spill] sm:$0xff]  ;;  %v9935_v38 = vld [vmem:[#allocation25_spill] sm:$0xff] }
  0x8e   :  { %v1619_v31 = vrot.slane %v1618_v61, 4  ;;  %v1640_v2 = vrot.slane %v1639_v27, 4  ;;  %v1471_v30 = vmul.f32 %v9928_v1, %v9927_v57  ;;  %v1472_v55 = vmul.f32 %v9930_v58, %v9929_v45  ;;  %v9933_v48 = vld [vmem:[#allocation34_spill] sm:$0xff]  ;;  %v9934_v44 = vld [vmem:[#allocation71_spill] sm:$0xff] }
  0x8f   :  { %v444_v15 = vadd.f32 %v443_v4, %v413_v33  ;;  %v465_v17 = vadd.f32 %v464_v16, %v429_v22  ;;  %v1487_v52 = vmul.f32 %v9928_v1, %v9931_v21  ;;  %v1488_v19 = vmul.f32 %v9930_v58, %v9932_v25  ;;  %v9936_v4 = vld [vmem:[#allocation70_spill] sm:$0xff]  ;;  %v9939_v1 = vld [vmem:[#allocation72_spill] sm:$0xff]  ;;  %v9940_v58 = vld [vmem:[#allocation33_spill] sm:$0xff] }
  0x90   :  { %v1620_v63 = vadd.f32 %v1619_v31, %v1618_v61  ;;  %v1641_v20 = vadd.f32 %v1640_v2, %v1639_v27  ;;  %v435_v13 = vmul.f32 %v5498_v29, %v9933_v48  ;;  %v436_v33 = vmul.f32 %v5507_v18, %v9934_v44  ;;  %v9937_v27 = vld [vmem:[#allocation28_spill] sm:$0xff]  ;;  %v9938_v57 = vld [vmem:[#allocation26_spill] sm:$0xff]  ;;  %v9941_v25 = vld [vmem:[#allocation27_spill] sm:$0xff] }
  0x91   :  { %v445_v54 = vadd.f32 %v444_v15, %v414_v39  ;;  %v466_v62 = vadd.f32 %v465_v17, %v430_v9  ;;  %v1473_v61 = vmul.f32 %v9936_v4, %v9935_v38  ;;  %v1489_v16 = vmul.f32 %v9936_v4, %v9937_v27  ;;  %v9943_v44 = vld [vmem:[#allocation44_spill] sm:$0xff]  ;;  %v9944_v48 = vld [vmem:[#allocation29_spill] sm:$0xff] }
  0x92   :  { %v1621_v22 = vrot.slane %v1620_v63, 2  ;;  %v1642_v53 = vrot.slane %v1641_v20, 2  ;;  %v1474_v45 = vmul.f32 %v9939_v1, %v9938_v57  ;;  %v1490_v29 = vmul.f32 %v9939_v1, %v9940_v58  ;;  %v9945_v1 = vld [vmem:[#allocation74_spill] sm:$0xff] }
  0x93   :  { %v446_v31 = vadd.f32 %v445_v54, %v415_v23  ;;  %v467_v2 = vadd.f32 %v466_v62, %v431_v43  ;;  %v1503_v39 = vadd.f32 %v1472_v55, %v1471_v30  ;;  %v1524_v9 = vadd.f32 %v1488_v19, %v1487_v52  ;;  %v9947_v19 = vld [vmem:[#allocation39_spill] sm:$0xff] }
  0x94   :  { %v1622_v21 = vadd.f32 %v1621_v22, %v1620_v63  ;;  %v1643_v18 = vadd.f32 %v1642_v53, %v1641_v20  ;;  %v1475_v38 = vmul.f32 %v9942_v42, %v9941_v25  ;;  %v1491_v4 = vmul.f32 %v9942_v42, %v9943_v44  ;;  %v9946_v20 = vld [vmem:[#allocation51_spill] sm:$0xff]  ;;  %v9948_v53 = vld [vmem:[#allocation30_spill] sm:$0xff] }
  0x95   :  { %v447_v15 = vadd.f32 %v446_v31, %v416_v56  ;;  %v468_v17 = vadd.f32 %v467_v2, %v432_v51  ;;  %v1504_v54 = vadd.f32 %v1503_v39, %v1473_v61  ;;  %v1525_v62 = vadd.f32 %v1524_v9, %v1489_v16  ;;  %v9949_v61 = vld [vmem:[#allocation77_spill] sm:$0xff]  ;;  %v9955_v9 = vld [vmem:[#allocation54_spill] sm:$0xff] }
  0x96   :  { %v1623_v23 = vrot.slane %v1622_v21, 1  ;;  %v1644_v43 = vrot.slane %v1643_v18, 1  ;;  %v1476_v63 = vmul.f32 %v9945_v1, %v9944_v48  ;;  %v1492_v30 = vmul.f32 %v9945_v1, %v9946_v20  ;;  %v9962_v20 = vld [vmem:[#allocation57_spill] sm:$0xff] }
  0x97   :  { %v448_v27 = vadd.f32 %v447_v15, %v417_v28  ;;  %v469_v57 = vadd.f32 %v468_v17, %v433_v7  ;;  %v1505_v55 = vadd.f32 %v1504_v54, %v1474_v45  ;;  %v1526_v52 = vadd.f32 %v1525_v62, %v1490_v29  ;;  %v9950_v7 = vld [vmem:[#allocation52_spill] sm:$0xff] }
  0x98   :  { %v1624_v56 = vadd.f32 %v1623_v23, %v1622_v21  ;;  %v1645_v51 = vadd.f32 %v1644_v43, %v1643_v18  ;;  %v437_v22 = vmul.f32 %v5516_v50, %v9947_v19  ;;  %v1477_v16 = vmul.f32 %v9949_v61, %v9948_v53  ;;  %v9951_v21 = vld [vmem:[#allocation31_spill] sm:$0xff]  ;;  %v9952_v18 = vld [vmem:[#allocation78_spill] sm:$0xff] }
  0x99   :  { %v449_v42 = vadd.f32 %v448_v27, %v418_v8  ;;  %v470_v44 = vadd.f32 %v469_v57, %v434_v37  ;;  %v1493_v48 = vmul.f32 %v9949_v61, %v9950_v7  ;;  %v1506_v31 = vadd.f32 %v1505_v55, %v1475_v38  ;;  %v9953_v8 = vld [vmem:[#allocation32_spill] sm:$0xff]  ;;  %v9954_v37 = vld [vmem:[#allocation79_spill] sm:$0xff]  ;;  %v9957_v43 = vld [vmem:[#allocation82_spill] sm:$0xff] }
  0x9a   :  { %v1648_v28 = vsel %vm272_vm0, %v1645_v51, %v1624_v56  ;;  %v1527_v2 = vadd.f32 %v1526_v52, %v1491_v4  ;;  %v1478_v50 = vmul.f32 %v9952_v18, %v9951_v21  ;;  %v1479_v39 = vmul.f32 %v9954_v37, %v9953_v8  ;;  %v9956_v23 = vld [vmem:[#allocation35_spill] sm:$0xff]  ;;  %v9960_v27 = vld [vmem:[#allocation37_spill] sm:$0xff]  ;;  %v9961_v57 = vld [vmem:[#allocation86_spill] sm:$0xff] }
  0x9b   :  { %v1650_v58 = vsel %vm275_vm1, %v1648_v28, 0.0  ;;  %v450_v45 = vadd.f32 %v449_v42, %v5588_v60  ;;  %v471_v29 = vadd.f32 %v470_v44, %v435_v13  ;;  %v1494_v15 = vmul.f32 %v9952_v18, %v9955_v9  ;;  %v9958_v60 = vld [vmem:[#allocation36_spill] sm:$0xff]  ;;  %v9959_v13 = vld [vmem:[#allocation83_spill] sm:$0xff]  ;;  %v9963_v52 = vld [vmem:[#allocation38_spill] sm:$0xff] }
  0x9c   :  { %1651 = vadd.xlane.f32.xlu1 %v1650_v58  ;;  %v1507_v17 = vadd.f32 %v1506_v31, %v1476_v63  ;;  %v1528_v25 = vadd.f32 %v1527_v2, %v1492_v30  ;;  %v1480_v54 = vmul.f32 %v9957_v43, %v9956_v23  ;;  %v1481_v62 = vmul.f32 %v9959_v13, %v9958_v60  ;;  %v9965_v42 = vld [vmem:[#allocation43_spill] sm:$0xff]  ;;  %v9966_v44 = vld [vmem:[#allocation89_spill] sm:$0xff]  ;;  %v9967_v61 = vld [vmem:[#allocation46_spill] sm:$0xff] }
  0x9d   :  { %v451_v38 = vadd.f32 %v450_v45, %v5592_v41  ;;  %v472_v4 = vadd.f32 %v471_v29, %v436_v33  ;;  %v1482_v1 = vmul.f32 %v9961_v57, %v9960_v27  ;;  %v1495_v56 = vmul.f32 %v9954_v37, %v9962_v20  ;;  %v9964_v41 = vld [vmem:[#allocation88_spill] sm:$0xff]  ;;  %v9968_v28 = vld [vmem:[#allocation91_spill] sm:$0xff]  ;;  %v9969_v31 = vld [vmem:[#allocation58_spill] sm:$0xff] }
  0x9e   :  { %v1508_v51 = vadd.f32 %v1507_v17, %v1477_v16  ;;  %v1529_v55 = vadd.f32 %v1528_v25, %v1493_v48  ;;  %v1483_v33 = vmul.f32 %v9964_v41, %v9963_v52  ;;  %v1484_v53 = vmul.f32 %v9966_v44, %v9965_v42  ;;  %v9972_v29 = vld [vmem:[#allocation93_spill] sm:$0xff]  ;;  %v9973_v18 = vld [vmem:[#allocation59_spill] sm:$0xff]  ;;  %v9979_v27 = vld [vmem:[#allocation66_spill] sm:$0xff] }
  0x9f   :  { %v452_v63 = vadd.f32 %v451_v38, %v5598_v35  ;;  %v473_v30 = vadd.f32 %v472_v4, %v437_v22  ;;  %v5669_v7 = vmul.f32 %v9968_v28, %v9967_v61  ;;  %v1496_v2 = vmul.f32 %v9957_v43, %v9969_v31  ;;  %v5676_v35 = vld [vmem:[%s9287_s1 + $0x200] sm:$0xff]  ;;  %v5681_v22 = vld [vmem:[%s9287_s1 + $0x208] sm:$0xff]  ;;  %v5696_v38 = vld [vmem:[%s9287_s1 + $0x210] sm:$0xff] }
  0xa0   :  { %v1509_v58 = vadd.f32 %v1508_v51, %v1478_v50  ;;  %v1530_v45 = vadd.f32 %v1529_v55, %v1494_v15  ;;  %9970 = vst [vmem:[#allocation75_spill] sm:$0xff] %v5676_v35  ;;  %v5685_v21 = vmul.f32 %v9972_v29, %v9908_v26  ;;  %v1497_v50 = vmul.f32 %v9959_v13, %v9973_v18  ;;  %v5701_v26 = vld [vmem:[%s9286_s0] sm:$0xff]  ;;  %v5715_v43 = vld [vmem:[%s9287_s1 + $0x218] sm:$0xff]  ;;  %v9980_v51 = vld [vmem:[#allocation62_spill] sm:$0xff] }
  0xa1   :  { %9971 = vst [vmem:[#allocation40_spill] sm:$0xff] %v5681_v22  ;;  %v453_v16 = vrot.slane %v452_v63, 4  ;;  %v474_v48 = vrot.slane %v473_v30, 4  ;;  %v1498_v8 = vmul.f32 %v9961_v57, %v9912_v0  ;;  %v1499_v37 = vmul.f32 %v9964_v41, %v9913_v59  ;;  %v5708_v59 = vld [vmem:[%s9286_s0 + $0x10] sm:$0xff]  ;;  %v9978_v60 = vld [vmem:[#allocation65_spill] sm:$0xff] }
  0xa2   :  { %v1510_v9 = vadd.f32 %v1509_v58, %v1479_v39  ;;  %v1531_v15 = vadd.f32 %v1530_v45, %v1495_v56  ;;  %9974 = vst [vmem:[#allocation76_spill] sm:$0xff] %v5696_v38  ;;  %v614_v0 = vmul.f32 %v5701_v26, %v5676_v35  ;;  %v615_v39 = vmul.f32 %v5708_v59, %v5681_v22  ;;  %v5728_v41 = vld [vmem:[%s9287_s1 + $0x220] sm:$0xff]  ;;  %v5751_v18 = vld [vmem:[%s9287_s1 + $0x228] sm:$0xff] }
  0xa3   :  { %v454_v17 = vadd.f32 %v453_v16, %v452_v63  ;;  %v475_v25 = vadd.f32 %v474_v48, %v473_v30  ;;  %9975 = vst [vmem:[#allocation41_spill] sm:$0xff] %v5701_v26  ;;  %v630_v13 = vmul.f32 %v5676_v35, %v9978_v60  ;;  %v631_v57 = vmul.f32 %v5681_v22, %v9979_v27  ;;  %v9981_v63 = vld [vmem:[#allocation63_spill] sm:$0xff]  ;;  %v5733_v42 = vld [vmem:[%s9286_s0 + $0x20] sm:$0xff]  ;;  %v6115_v22 = vld [vmem:[%s9286_s0 + $0xa8] sm:$0xff] }
  0xa4   :  { %9976 = vst [vmem:[#allocation80_spill] sm:$0xff] %v5708_v59  ;;  %v1511_v4 = vadd.f32 %v1510_v9, %v1480_v54  ;;  %v1532_v23 = vadd.f32 %v1531_v15, %v1496_v2  ;;  %v1500_v55 = vmul.f32 %v9966_v44, %v9980_v51  ;;  %v1501_v54 = vmul.f32 %v9968_v28, %v9981_v63  ;;  %v9984_v31 = vld [vmem:[#allocation69_spill] sm:$0xff] }
  0xa5   :  { %9977 = vst [vmem:[#allocation45_spill] sm:$0xff] %v5715_v43  ;;  %v455_v20 = vrot.slane %v454_v17, 2  ;;  %v476_v56 = vrot.slane %v475_v25, 2  ;;  %v616_v61 = vmul.f32 %v5733_v42, %v5696_v38  ;;  %v632_v44 = vmul.f32 %v5696_v38, %v9984_v31 }
  0xa6   :  { %v1512_v30 = vadd.f32 %v1511_v4, %v1481_v62  ;;  %v1533_v52 = vadd.f32 %v1532_v23, %v1497_v50  ;;  %9982 = vst [vmem:[#allocation81_spill] sm:$0xff] %v5728_v41  ;;  %v5742_v62 = vld [vmem:[%s9286_s0 + $0x30] sm:$0xff]  ;;  %v633_v45 = vmul.f32 %v5715_v43, %v5069_v10  ;;  %v646_v50 = vadd.f32 %v615_v39, %v614_v0  ;;  %v5758_v4 = vld [vmem:[%s9286_s0 + $0x40] sm:$0xff] }
  0xa7   :  { %9983 = vst [vmem:[#allocation48_spill] sm:$0xff] %v5733_v42  ;;  %v456_v2 = vadd.f32 %v455_v20, %v454_v17  ;;  %v477_v28 = vadd.f32 %v476_v56, %v475_v25  ;;  %v617_v58 = vmul.f32 %v5742_v62, %v5715_v43  ;;  %v667_v9 = vadd.f32 %v631_v57, %v630_v13  ;;  %v5765_v0 = vld [vmem:[%s9287_s1 + $0x230] sm:$0xff]  ;;  %v5779_v57 = vld [vmem:[%s9287_s1 + $0x238] sm:$0xff]  ;;  %v5784_v20 = vld [vmem:[%s9287_s1 + $0x240] sm:$0xff] }
  0xa8   :  { %v1513_v16 = vadd.f32 %v1512_v30, %v1482_v1  ;;  %v1534_v48 = vadd.f32 %v1533_v52, %v1498_v8  ;;  %9985 = vst [vmem:[#allocation84_spill] sm:$0xff] %v5751_v18  ;;  %v1502_v25 = vmul.f32 %v9972_v29, %v9918_v3  ;;  %v618_v10 = vmul.f32 %v5758_v4, %v5728_v41  ;;  %v5770_v3 = vld [vmem:[%s9286_s0 + $0x50] sm:$0xff] }
  0xa9   :  { %v457_v15 = vrot.slane %v456_v2, 1  ;;  %v478_v17 = vrot.slane %v477_v28, 1  ;;  %9986 = vst [vmem:[#allocation49_spill] sm:$0xff] %v5765_v0  ;;  %v647_v39 = vadd.f32 %v646_v50, %v616_v61  ;;  %v668_v23 = vadd.f32 %v667_v9, %v632_v44  ;;  %v5806_v44 = vld [vmem:[%s9287_s1 + $0x250] sm:$0xff] }
  0xaa   :  { %v1514_v1 = vadd.f32 %v1513_v16, %v1483_v33  ;;  %v1535_v8 = vadd.f32 %v1534_v48, %v1499_v37  ;;  %v619_v29 = vmul.f32 %v5770_v3, %v5751_v18  ;;  %v634_v33 = vmul.f32 %v5728_v41, %v5116_v32  ;;  %9987 = vst [vmem:[#allocation50_spill] sm:$0xff] %v5779_v57  ;;  %v5790_v32 = vld [vmem:[%s9287_s1 + $0x248] sm:$0xff]  ;;  %v6108_v41 = vld [vmem:[%s9286_s0 + $0x178] sm:$0xff] }
  0xab   :  { %v458_v60 = vadd.f32 %v457_v15, %v456_v2  ;;  %v479_v13 = vadd.f32 %v478_v17, %v477_v28  ;;  %9988 = vst [vmem:[#allocation85_spill] sm:$0xff] %v5784_v20  ;;  %v648_v56 = vadd.f32 %v647_v39, %v617_v58  ;;  %v669_v51 = vadd.f32 %v668_v23, %v633_v45  ;;  %v5811_v2 = vld [vmem:[%s9287_s1 + $0x258] sm:$0xff]  ;;  %v5828_v58 = vld [vmem:[%s9286_s0 + $0x80] sm:$0xff]  ;;  %v5838_v15 = vld [vmem:[%s9287_s1 + $0x268] sm:$0xff] }
  0xac   :  { %v1515_v37 = vadd.f32 %v1514_v1, %v1484_v53  ;;  %v1536_v27 = vadd.f32 %v1535_v8, %v1500_v55  ;;  %9989 = vst [vmem:[#allocation87_spill] sm:$0xff] %v5790_v32  ;;  %v5795_v53 = vld [vmem:[%s9286_s0 + $0x60] sm:$0xff]  ;;  %v635_v30 = vmul.f32 %v5751_v18, %v5162_v11  ;;  %v622_v45 = vmul.f32 %v5828_v58, %v5784_v20  ;;  %v5843_v17 = vld [vmem:[%s9287_s1 + $0x270] sm:$0xff] }
  0xad   :  { %v482_v63 = vsel %vm272_vm0, %v479_v13, %v458_v60  ;;  %v620_v55 = vmul.f32 %v5795_v53, %v5765_v0  ;;  %9990 = vst [vmem:[#allocation53_spill] sm:$0xff] %v5806_v44  ;;  %v649_v28 = vadd.f32 %v648_v56, %v618_v10  ;;  %v5816_v11 = vld [vmem:[%s9287_s1 + $0x260] sm:$0xff]  ;;  %v636_v16 = vmul.f32 %v5765_v0, %v5216_v6  ;;  %v5848_v10 = vld [vmem:[%s9286_s0 + $0x90] sm:$0xff] }
  0xae   :  { %v484_v52 = vsel %vm275_vm1, %v482_v63, 0.0  ;;  %v1516_v61 = vadd.f32 %v1515_v37, %v5669_v7  ;;  %v1537_v31 = vadd.f32 %v1536_v27, %v1501_v54  ;;  %9991 = vst [vmem:[#allocation90_spill] sm:$0xff] %v5811_v2  ;;  %v5821_v7 = vld [vmem:[%s9286_s0 + $0x70] sm:$0xff]  ;;  %v670_v48 = vadd.f32 %v669_v51, %v634_v33  ;;  %v5880_v56 = vld [vmem:[%s9287_s1 + $0x180] sm:$0xff] }
  0xaf   :  { %485 = vadd.xlane.f32.xlu0 %v484_v52  ;;  %9992 = vst [vmem:[#allocation55_spill] sm:$0xff] %v5816_v11  ;;  %v621_v54 = vmul.f32 %v5821_v7, %v5779_v57  ;;  %v623_v6 = vmul.f32 %v5848_v10, %v5790_v32  ;;  %v625_v8 = vmul.f32 %v5811_v2, %v5157_v36  ;;  %vm2412_vm3 = vcmask 195712  }
  0xb0   :  { %v1517_v50 = vadd.f32 %v1516_v61, %v5685_v21  ;;  %v1538_v9 = vadd.f32 %v1537_v31, %v1502_v25  ;;  %9993 = vst [vmem:[#allocation56_spill] sm:$0xff] %v5838_v15  ;;  %v650_v21 = vadd.f32 %v649_v28, %v619_v29  ;;  %v5855_v25 = vld [vmem:[%s9286_s0 + $0xa0] sm:$0xff]  ;;  %v637_v39 = vmul.f32 %v5779_v57, %v5245_v14 }
  0xb1   :  { %9994 = vst [vmem:[#allocation47_spill] sm:$0xff] %v5843_v17  ;;  %v624_v1 = vmul.f32 %v5855_v25, %v5806_v44  ;;  %v671_v23 = vadd.f32 %v670_v48, %v635_v30  ;;  %v5865_v29 = vmul.f32 %v5816_v11, %v5171_v49  ;;  %v5869_v37 = vmul.f32 %v5838_v15, %v9878_v24  ;;  %v5922_v48 = vld [vmem:[%s9286_s0 + $0x108] sm:$0xff] }
  0xb2   :  { %9995 = vst [vmem:[#allocation13_spill] sm:$0xff] %v5855_v25  ;;  %v1518_v60 = vrot.slane %v1517_v50, 4  ;;  %v1539_v13 = vrot.slane %v1538_v9, 4  ;;  %v651_v33 = vadd.f32 %v650_v21, %v620_v55  ;;  %v5873_v27 = vmul.f32 %v5843_v17, %v9880_v34  ;;  %v5887_v34 = vld [vmem:[%s9287_s1 + $0x188] sm:$0xff] }
  0xb3   :  { %v638_v36 = vmul.f32 %v5784_v20, %v5263_v40  ;;  %v672_v14 = vadd.f32 %v671_v23, %v636_v16  ;;  %v639_v63 = vmul.f32 %v5790_v32, %v5276_v5  ;;  %v640_v40 = vmul.f32 %v5806_v44, %v5293_v12  ;;  %v5898_v5 = vld [vmem:[%s9287_s1 + $0x190] sm:$0xff]  ;;  %9998 = vst [vmem:[#allocation61_spill] sm:$0xff] %v5922_v48  ;;  %v5987_v20 = vld [vmem:[%s9287_s1 + $0x278] sm:$0xff] }
  0xb4   :  { %v1519_v49 = vadd.f32 %v1518_v60, %v1517_v50  ;;  %v1540_v51 = vadd.f32 %v1539_v13, %v1538_v9  ;;  %v652_v24 = vadd.f32 %v651_v33, %v621_v54  ;;  %v641_v55 = vmul.f32 %v5811_v2, %v9925_v47  ;;  %v5903_v54 = vld [vmem:[%s9286_s0 + $0x8] sm:$0xff]  ;;  %v5929_v9 = vld [vmem:[%s9286_s0 + $0x118] sm:$0xff]  ;;  %10007 = vst [vmem:[#allocation18_spill] sm:$0xff] %v5987_v20 }
  0xb5   :  { %v642_v30 = vmul.f32 %v5816_v11, %v9926_v46  ;;  %v673_v52 = vadd.f32 %v672_v14, %v637_v39  ;;  %9996 = vst [vmem:[#allocation16_spill] sm:$0xff] %v5903_v54  ;;  %v1673_v12 = vmul.f32 %v5903_v54, %v5880_v56  ;;  %v5910_v46 = vld [vmem:[%s9287_s1 + $0x198] sm:$0xff]  ;;  %v1689_v50 = vmul.f32 %v5922_v48, %v5880_v56  ;;  %v10000_v60 = vld [vmem:[#allocation34_spill] sm:$0xff] }
  0xb6   :  { %v1520_v61 = vrot.slane %v1519_v49, 2  ;;  %v1541_v31 = vrot.slane %v1540_v51, 2  ;;  %v653_v28 = vadd.f32 %v652_v24, %v622_v45  ;;  %v5915_v45 = vld [vmem:[%s9286_s0 + $0x18] sm:$0xff]  ;;  %9999 = vst [vmem:[#allocation12_spill] sm:$0xff] %v5929_v9  ;;  %v1690_v21 = vmul.f32 %v5929_v9, %v5887_v34  ;;  %v5947_v11 = vld [vmem:[%s9286_s0 + $0x28] sm:$0xff] }
  0xb7   :  { %v674_v47 = vadd.f32 %v673_v52, %v638_v36  ;;  %9997 = vst [vmem:[#allocation60_spill] sm:$0xff] %v5915_v45  ;;  %v1674_v16 = vmul.f32 %v5915_v45, %v5887_v34  ;;  %v643_v13 = vmul.f32 %v5838_v15, %v10000_v60  ;;  %v10001_v36 = vld [vmem:[#allocation71_spill] sm:$0xff]  ;;  %v5942_v52 = vld [vmem:[%s9287_s1 + $0x1a0] sm:$0xff]  ;;  %vm2416_vm8 = vcmask 261312  }
  0xb8   :  { %v1521_v39 = vadd.f32 %v1520_v61, %v1519_v49  ;;  %v1542_v23 = vadd.f32 %v1541_v31, %v1540_v51  ;;  %v654_v33 = vadd.f32 %v653_v28, %v623_v6  ;;  %v5937_v14 = vmul.f32 %v5843_v17, %v10001_v36  ;;  %10002 = vst [vmem:[#allocation15_spill] sm:$0xff] %v5947_v11  ;;  %v5954_v6 = vld [vmem:[%s9286_s0 + $0x128] sm:$0xff]  ;;  %v5961_v28 = vld [vmem:[%s9286_s0 + $0x38] sm:$0xff] }
  0xb9   :  { %v675_v24 = vadd.f32 %v674_v47, %v639_v63  ;;  %v1675_v49 = vmul.f32 %v5947_v11, %v5898_v5  ;;  %10003 = vst [vmem:[#allocation64_spill] sm:$0xff] %v5954_v6  ;;  %v1691_v51 = vmul.f32 %v5954_v6, %v5898_v5  ;;  %v1676_v47 = vmul.f32 %v5961_v28, %v5910_v46  ;;  %v5968_v36 = vld [vmem:[%s9287_s1 + $0x1a8] sm:$0xff]  ;;  %v5973_v17 = vld [vmem:[%s9286_s0 + $0x138] sm:$0xff] }
  0xba   :  { %v1522_v63 = vrot.slane %v1521_v39, 1  ;;  %v1543_v61 = vrot.slane %v1542_v23, 1  ;;  %v655_v31 = vadd.f32 %v654_v33, %v624_v1  ;;  %10004 = vst [vmem:[#allocation14_spill] sm:$0xff] %v5961_v28  ;;  %v1692_v1 = vmul.f32 %v5973_v17, %v5910_v46 }
  0xbb   :  { %v676_v60 = vadd.f32 %v675_v24, %v640_v40  ;;  %10005 = vst [vmem:[#allocation17_spill] sm:$0xff] %v5973_v17  ;;  %v1705_v33 = vadd.f32 %v1674_v16, %v1673_v12  ;;  %v1726_v15 = vadd.f32 %v1690_v21, %v1689_v50  ;;  %v5980_v40 = vld [vmem:[%s9286_s0 + $0x48] sm:$0xff]  ;;  %v5992_v12 = vld [vmem:[%s9287_s1 + $0x1b0] sm:$0xff]  ;;  %vm2420_vm9 = vcmask 326912  }
  0xbc   :  { %v1523_v2 = vadd.f32 %v1522_v63, %v1521_v39  ;;  %v1544_v44 = vadd.f32 %v1543_v61, %v1542_v23  ;;  %v656_v32 = vadd.f32 %v655_v31, %v625_v8  ;;  %10006 = vst [vmem:[#allocation19_spill] sm:$0xff] %v5980_v40  ;;  %v1677_v24 = vmul.f32 %v5980_v40, %v5942_v52  ;;  %v5997_v8 = vld [vmem:[%s9286_s0 + $0x148] sm:$0xff]  ;;  %v6013_v61 = vld [vmem:[%s9286_s0 + $0x158] sm:$0xff] }
  0xbd   :  { %v677_v57 = vadd.f32 %v676_v60, %v641_v55  ;;  %10008 = vst [vmem:[#allocation24_spill] sm:$0xff] %v5997_v8  ;;  %v1693_v16 = vmul.f32 %v5997_v8, %v5942_v52  ;;  %v1706_v50 = vadd.f32 %v1705_v33, %v1675_v49  ;;  %v1727_v21 = vadd.f32 %v1726_v15, %v1691_v51  ;;  %v6006_v55 = vld [vmem:[%s9286_s0 + $0x58] sm:$0xff]  ;;  %v6031_v49 = vld [vmem:[%s9287_s1 + $0x1c8] sm:$0xff] }
  0xbe   :  { %v1547_v39 = vsel %vm272_vm0, %v1544_v44, %v1523_v2  ;;  %v657_v23 = vadd.f32 %v656_v32, %v5865_v29  ;;  %10009 = vst [vmem:[#allocation42_spill] sm:$0xff] %v6006_v55  ;;  %v1678_v63 = vmul.f32 %v6006_v55, %v5968_v36  ;;  %v1694_v15 = vmul.f32 %v6013_v61, %v5968_v36  ;;  %v6021_v32 = vld [vmem:[%s9287_s1 + $0x1b8] sm:$0xff]  ;;  %v6026_v29 = vld [vmem:[%s9287_s1 + $0x1c0] sm:$0xff] }
  0xbf   :  { %10010 = vst [vmem:[#allocation94_spill] sm:$0xff] %v6013_v61  ;;  %v1549_v44 = vsel %vm275_vm1, %v1547_v39, 0.0  ;;  %v678_v2 = vadd.f32 %v677_v57, %v642_v30  ;;  %v1707_v51 = vadd.f32 %v1706_v50, %v1676_v47  ;;  %v1728_v31 = vadd.f32 %v1727_v21, %v1692_v1  ;;  %v10011_v60 = vld [vmem:[#allocation92_spill] sm:$0xff]  ;;  %v6041_v39 = vld [vmem:[%s9286_s0 + $0x68] sm:$0xff]  ;;  %v6048_v47 = vld [vmem:[%s9287_s1 + $0x1d0] sm:$0xff] }
  0xc0   :  { %1550 = vadd.xlane.f32.xlu2 %v1549_v44  ;;  %v629_v57 = vmul.f32 %v5987_v20, %v10011_v60  ;;  %v645_v30 = vmul.f32 %v5987_v20, %v9947_v19  ;;  %v658_v33 = vadd.f32 %v657_v23, %v5869_v37  ;;  %10012 = vst [vmem:[#allocation95_spill] sm:$0xff] %v6041_v39  ;;  %v6053_v19 = vld [vmem:[%s9287_s1 + $0x1d8] sm:$0xff]  ;;  %v6058_v37 = vld [vmem:[%s9287_s1 + $0x1e0] sm:$0xff]  ;;  %v6063_v1 = vld [vmem:[%s9286_s0 + $0x168] sm:$0xff]  ;;  %vm2424_vm10 = vcmask 392512  }
  0xc1   :  { %v1679_v0 = vmul.f32 %v6041_v39, %v5992_v12  ;;  %v679_v18 = vadd.f32 %v678_v2, %v643_v13  ;;  %10013 = vst [vmem:[#allocation20_spill] sm:$0xff] %v6063_v1  ;;  %v1695_v13 = vmul.f32 %v6063_v1, %v5992_v12  ;;  %v1708_v50 = vadd.f32 %v1707_v51, %v1677_v24  ;;  %v6071_v44 = vld [vmem:[%s9286_s0 + $0x78] sm:$0xff]  ;;  %v6078_v60 = vld [vmem:[%s9286_s0 + $0x88] sm:$0xff] }
  0xc2   :  { %v1729_v21 = vadd.f32 %v1728_v31, %v1693_v16  ;;  %v659_v23 = vadd.f32 %v658_v33, %v5873_v27  ;;  %10014 = vst [vmem:[#allocation67_spill] sm:$0xff] %v6071_v44  ;;  %v1680_v2 = vmul.f32 %v6071_v44, %v6021_v32  ;;  %v1681_v20 = vmul.f32 %v6078_v60, %v6026_v29  ;;  %v6085_v27 = vld [vmem:[%s9286_s0 + $0x98] sm:$0xff]  ;;  %v6093_v51 = vld [vmem:[%s9287_s1 + $0x1e8] sm:$0xff]  ;;  %v6098_v31 = vld [vmem:[%s9287_s1 + $0x1f0] sm:$0xff] }
  0xc3   :  { %10015 = vst [vmem:[#allocation21_spill] sm:$0xff] %v6078_v60  ;;  %v1682_v24 = vmul.f32 %v6085_v27, %v6031_v49  ;;  %v680_v16 = vadd.f32 %v679_v18, %v5937_v14  ;;  %v6103_v33 = vld [vmem:[%s9287_s1 + $0x1f8] sm:$0xff]  ;;  %v1696_v18 = vmul.f32 %v6108_v41, %v6021_v32  ;;  %v1709_v14 = vadd.f32 %v1708_v50, %v1678_v63  ;;  %v6129_v63 = vld [vmem:[%s9286_s0 + $0xc8] sm:$0xff] }
  0xc4   :  { %10016 = vst [vmem:[#allocation68_spill] sm:$0xff] %v6085_v27  ;;  %v1730_v43 = vadd.f32 %v1729_v21, %v1694_v15  ;;  %v660_v38 = vadd.f32 %v659_v23, %v629_v57  ;;  %v1683_v35 = vmul.f32 %v6115_v22, %v6048_v47  ;;  %v6122_v27 = vld [vmem:[%s9286_s0 + $0xb8] sm:$0xff]  ;;  %v6133_v15 = vmul.f32 %v6129_v63, %v6058_v37  ;;  %v6138_v50 = vld [vmem:[%s9286_s0 + $0x188] sm:$0xff] }
  0xc5   :  { %10017 = vst [vmem:[#allocation22_spill] sm:$0xff] %v6108_v41  ;;  %v1684_v60 = vmul.f32 %v6122_v27, %v6053_v19  ;;  %v681_v57 = vadd.f32 %v680_v16, %v645_v30  ;;  %v1697_v21 = vmul.f32 %v6138_v50, %v6026_v29  ;;  %v1710_v23 = vadd.f32 %v1709_v14, %v1679_v0  ;;  %v6145_v41 = vld [vmem:[%s9286_s0 + $0xd8] sm:$0xff]  ;;  %v6154_v30 = vld [vmem:[%s9286_s0 + $0xe8] sm:$0xff] }
  0xc6   :  { %10018 = vst [vmem:[#allocation23_spill] sm:$0xff] %v6115_v22  ;;  %v661_v22 = vrot.slane %v660_v38, 4  ;;  %v6158_v16 = vmul.f32 %v6154_v30, %v6098_v31  ;;  %v6172_v14 = vld [vmem:[%s9286_s0 + $0x198] sm:$0xff]  ;;  %v6179_v1 = vld [vmem:[%s9286_s0 + $0x1a8] sm:$0xff]  ;;  %vm2428_vm11 = vcmask 458112   ;;  %vm2432_vm12 = vcmask 523712  }
  0xc7   :  { %10019 = vst [vmem:[#allocation25_spill] sm:$0xff] %v6122_v27  ;;  %v1731_v27 = vadd.f32 %v1730_v43, %v1695_v13  ;;  %v6163_v43 = vld [vmem:[%s9286_s0 + $0xf8] sm:$0xff]  ;;  %v682_v13 = vrot.slane %v681_v57, 4  ;;  %vm2436_vm13 = vcmask 589312   ;;  %vm2440_vm14 = vcmask 654912  }
  0xc8   :  { %10020 = vst [vmem:[#allocation70_spill] sm:$0xff] %v6129_v63  ;;  %v6149_v63 = vmul.f32 %v6145_v41, %v6093_v51  ;;  %v6167_v0 = vmul.f32 %v6163_v43, %v6103_v33  ;;  %v662_v44 = vadd.f32 %v661_v22, %v660_v38  ;;  %v6186_v39 = vld [vmem:[%s9286_s0 + $0x1b8] sm:$0xff]  ;;  %v6193_v22 = vld [vmem:[%s9286_s0 + $0x1c8] sm:$0xff]  ;;  %vm2444_vm15 = vcmask 720512  }
  0xc9   :  { %10021 = vst [vmem:[#allocation28_spill] sm:$0xff] %v6138_v50  ;;  %v1732_v50 = vadd.f32 %v1731_v27, %v1696_v18  ;;  %v1700_v61 = vmul.f32 %v6186_v39, %v6053_v19  ;;  %v1701_v38 = vmul.f32 %v6193_v22, %v6058_v37 }
  0xca   :  { %10022 = vst [vmem:[#allocation26_spill] sm:$0xff] %v6145_v41  ;;  %v1698_v41 = vmul.f32 %v6172_v14, %v6031_v49 }
  0xcb   :  { %10023 = vst [vmem:[#allocation72_spill] sm:$0xff] %v6154_v30  ;;  %v1711_v30 = vadd.f32 %v1710_v23, %v1680_v2  ;;  %v683_v2 = vadd.f32 %v682_v13, %v681_v57  ;;  %v1733_v18 = vadd.f32 %v1732_v50, %v1697_v21  ;;  %v510_v23 = vmul.f32 %v5701_v26, %v5880_v56  ;;  %v6218_v21 = vld [vmem:[%s9286_s0 + $0x1d8] sm:$0xff] }
  0xcc   :  { %10024 = vst [vmem:[#allocation33_spill] sm:$0xff] %v6163_v43  ;;  %v1699_v43 = vmul.f32 %v6179_v1, %v6048_v47 }
  0xcd   :  { %10025 = vst [vmem:[#allocation27_spill] sm:$0xff] %v6172_v14  ;;  %v1712_v27 = vadd.f32 %v1711_v30, %v1681_v20  ;;  %v511_v14 = vmul.f32 %v5708_v59, %v5887_v34  ;;  %v6211_v20 = vld [vmem:[%s9286_s0 + $0x110] sm:$0xff]  ;;  %v684_v50 = vrot.slane %v683_v2, 2  ;;  %v1702_v30 = vmul.f32 %v6218_v21, %v6093_v51  ;;  %v6234_v59 = vld [vmem:[%s9286_s0 + $0x120] sm:$0xff] }
  0xce   :  { %10026 = vst [vmem:[#allocation73_spill] sm:$0xff] %v6179_v1  ;;  %v663_v1 = vrot.slane %v662_v44, 2  ;;  %v527_v57 = vmul.f32 %v6211_v20, %v5887_v34 }
  0xcf   :  { %10027 = vst [vmem:[#allocation44_spill] sm:$0xff] %v6186_v39  ;;  %v6204_v39 = vld [vmem:[%s9286_s0 + $0x100] sm:$0xff]  ;;  %v1713_v13 = vadd.f32 %v1712_v27, %v1682_v24  ;;  %v513_v27 = vmul.f32 %v5742_v62, %v5910_v46 }
  0xd0   :  { %10028 = vst [vmem:[#allocation29_spill] sm:$0xff] %v6193_v22  ;;  %v526_v55 = vmul.f32 %v6204_v39, %v5880_v56  ;;  %v1734_v22 = vadd.f32 %v1733_v18, %v1698_v41  ;;  %v664_v56 = vadd.f32 %v663_v1, %v662_v44  ;;  %v528_v41 = vmul.f32 %v6234_v59, %v5898_v5 }
  0xd1   :  { %10029 = vst [vmem:[#allocation74_spill] sm:$0xff] %v6204_v39  ;;  %v6225_v39 = vld [vmem:[%s9286_s0 + $0x1e8] sm:$0xff]  ;;  %v685_v1 = vadd.f32 %v684_v50, %v683_v2  ;;  %v1714_v44 = vadd.f32 %v1713_v13, %v1683_v35  ;;  %v514_v35 = vmul.f32 %v5758_v4, %v5942_v52 }
  0xd2   :  { %10030 = vst [vmem:[#allocation51_spill] sm:$0xff] %v6211_v20  ;;  %v1703_v34 = vmul.f32 %v6225_v39, %v6098_v31  ;;  %v512_v20 = vmul.f32 %v5733_v42, %v5898_v5  ;;  %v1735_v24 = vadd.f32 %v1734_v22, %v1699_v43  ;;  %v665_v18 = vrot.slane %v664_v56, 1  ;;  %v6252_v22 = vld [vmem:[%s9286_s0 + $0x140] sm:$0xff] }
  0xd3   :  { %10031 = vst [vmem:[#allocation39_spill] sm:$0xff] %v6218_v21  ;;  %v542_v21 = vadd.f32 %v511_v14, %v510_v23  ;;  %v563_v26 = vadd.f32 %v527_v57, %v526_v55  ;;  %v686_v8 = vrot.slane %v685_v1, 1  ;;  %v1715_v40 = vadd.f32 %v1714_v44, %v1684_v60  ;;  %v6259_v55 = vld [vmem:[%s9286_s0 + $0x1f8] sm:$0xff] }
  0xd4   :  { %10032 = vst [vmem:[#allocation30_spill] sm:$0xff] %v6225_v39  ;;  %v6243_v39 = vld [vmem:[%s9286_s0 + $0x130] sm:$0xff]  ;;  %v1736_v5 = vadd.f32 %v1735_v24, %v1700_v61  ;;  %v666_v43 = vadd.f32 %v665_v18, %v664_v56  ;;  %v530_v2 = vmul.f32 %v6252_v22, %v5942_v52  ;;  %v1704_v61 = vmul.f32 %v6259_v55, %v6103_v33 }
  0xd5   :  { %v529_v42 = vmul.f32 %v6243_v39, %v5910_v46  ;;  %v543_v50 = vadd.f32 %v542_v21, %v512_v20  ;;  %v564_v13 = vadd.f32 %v563_v26, %v528_v41  ;;  %v687_v46 = vadd.f32 %v686_v8, %v685_v1  ;;  %v6269_v52 = vld [vmem:[%s9286_s0 + $0x150] sm:$0xff] }
  0xd6   :  { %v1716_v60 = vadd.f32 %v1715_v40, %v6133_v15  ;;  %v1737_v14 = vadd.f32 %v1736_v5, %v1701_v38  ;;  %v515_v23 = vmul.f32 %v5770_v3, %v5968_v36  ;;  %v531_v26 = vmul.f32 %v6269_v52, %v5968_v36  ;;  %v6281_v38 = vld [vmem:[%s9286_s0 + $0x160] sm:$0xff] }
  0xd7   :  { %v544_v8 = vadd.f32 %v543_v50, %v513_v27  ;;  %v565_v20 = vadd.f32 %v564_v13, %v529_v42  ;;  %v690_v57 = vsel %vm272_vm0, %v687_v46, %v666_v43  ;;  %v516_v40 = vmul.f32 %v5795_v53, %v5992_v12  ;;  %v6295_v27 = vld [vmem:[%s9286_s0 + $0x170] sm:$0xff]  ;;  %v6321_v50 = vld [vmem:[%s9286_s0 + $0x180] sm:$0xff] }
  0xd8   :  { %v1717_v21 = vadd.f32 %v1716_v60, %v6149_v63  ;;  %v1738_v56 = vadd.f32 %v1737_v14, %v1702_v30  ;;  %v692_v15 = vsel %vm275_vm1, %v690_v57, 0.0  ;;  %v532_v36 = vmul.f32 %v6281_v38, %v5992_v12  ;;  %v6305_v43 = vld [vmem:[%s9286_s0 + $0xb0] sm:$0xff]  ;;  %10035 = vst [vmem:[#allocation31_spill] sm:$0xff] %v6321_v50  ;;  %v6351_v57 = vld [vmem:[%s9287_s1 + $0x288] sm:$0xff] }
  0xd9   :  { %v545_v41 = vadd.f32 %v544_v8, %v514_v35  ;;  %v566_v42 = vadd.f32 %v565_v20, %v530_v2  ;;  %693 = vadd.xlane.f32.xlu1 %v692_v15  ;;  %v517_v30 = vmul.f32 %v5821_v7, %v6021_v32  ;;  %v518_v44 = vmul.f32 %v5828_v58, %v6026_v29  ;;  %v6337_v8 = vld [vmem:[%s9286_s0 + $0xe0] sm:$0xff] }
  0xda   :  { %v1718_v1 = vadd.f32 %v1717_v21, %v6158_v16  ;;  %v1739_v63 = vadd.f32 %v1738_v56, %v1703_v34  ;;  %v519_v24 = vmul.f32 %v5848_v10, %v6031_v49  ;;  %v533_v12 = vmul.f32 %v6295_v27, %v6021_v32  ;;  %10033 = vst [vmem:[#allocation77_spill] sm:$0xff] %v6305_v43  ;;  %v6312_v32 = vld [vmem:[%s9286_s0 + $0xc0] sm:$0xff]  ;;  %v6356_v21 = vld [vmem:[%s9286_s0 + $0xf0] sm:$0xff] }
  0xdb   :  { %v546_v18 = vadd.f32 %v545_v41, %v515_v23  ;;  %v567_v16 = vadd.f32 %v566_v42, %v531_v26  ;;  %v520_v35 = vmul.f32 %v5855_v25, %v6048_v47  ;;  %v521_v2 = vmul.f32 %v6305_v43, %v6053_v19  ;;  %10034 = vst [vmem:[#allocation52_spill] sm:$0xff] %v6312_v32  ;;  %v6328_v23 = vld [vmem:[%s9286_s0 + $0xd0] sm:$0xff]  ;;  %v6346_v20 = vld [vmem:[%s9287_s1 + $0x280] sm:$0xff] }
  0xdc   :  { %v1719_v34 = vadd.f32 %v1718_v1, %v6167_v0  ;;  %v1740_v5 = vadd.f32 %v1739_v63, %v1704_v61  ;;  %v6316_v0 = vmul.f32 %v6312_v32, %v6058_v37  ;;  %v534_v13 = vmul.f32 %v6321_v50, %v6026_v29  ;;  %10036 = vst [vmem:[#allocation78_spill] sm:$0xff] %v6328_v23  ;;  %v6372_v63 = vld [vmem:[%s9286_s0 + $0x1a0] sm:$0xff] }
  0xdd   :  { %v547_v46 = vadd.f32 %v546_v18, %v516_v40  ;;  %v568_v61 = vadd.f32 %v567_v16, %v532_v36  ;;  %v6332_v26 = vmul.f32 %v6328_v23, %v6093_v51  ;;  %10037 = vst [vmem:[#allocation32_spill] sm:$0xff] %v6337_v8  ;;  %v6341_v29 = vmul.f32 %v6337_v8, %v6098_v31  ;;  %v6365_v40 = vld [vmem:[%s9286_s0 + $0x190] sm:$0xff] }
  0xde   :  { %v1720_v60 = vrot.slane %v1719_v34, 4  ;;  %v1741_v14 = vrot.slane %v1740_v5, 4  ;;  %10038 = vst [vmem:[#allocation79_spill] sm:$0xff] %v6356_v21  ;;  %v6360_v56 = vmul.f32 %v6356_v21, %v6103_v33  ;;  %v535_v15 = vmul.f32 %v6365_v40, %v6031_v49  ;;  %v6379_v16 = vld [vmem:[%s9286_s0 + $0x1b0] sm:$0xff] }
  0xdf   :  { %10039 = vst [vmem:[#allocation54_spill] sm:$0xff] %v6365_v40  ;;  %v548_v36 = vadd.f32 %v547_v46, %v517_v30  ;;  %v569_v41 = vadd.f32 %v568_v61, %v533_v12  ;;  %v536_v18 = vmul.f32 %v6372_v63, %v6048_v47  ;;  %v537_v49 = vmul.f32 %v6379_v16, %v6053_v19 }
  0xe0   :  { %v1721_v42 = vadd.f32 %v1720_v60, %v1719_v34  ;;  %v1742_v1 = vadd.f32 %v1741_v14, %v1740_v5  ;;  %10040 = vst [vmem:[#allocation35_spill] sm:$0xff] %v6372_v63  ;;  %v6386_v34 = vld [vmem:[%s9287_s1 + $0x290] sm:$0xff]  ;;  %v1875_v5 = vmul.f32 %v5903_v54, %v6346_v20  ;;  %v1876_v47 = vmul.f32 %v5915_v45, %v6351_v57  ;;  %v6395_v60 = vld [vmem:[%s9287_s1 + $0x298] sm:$0xff] }
  0xe1   :  { %10041 = vst [vmem:[#allocation82_spill] sm:$0xff] %v6379_v16  ;;  %v549_v30 = vadd.f32 %v548_v36, %v518_v44  ;;  %v570_v12 = vadd.f32 %v569_v41, %v534_v13  ;;  %v1891_v19 = vmul.f32 %v5922_v48, %v6346_v20  ;;  %v1892_v44 = vmul.f32 %v5929_v9, %v6351_v57  ;;  %v6404_v13 = vld [vmem:[%s9286_s0 + $0x1c0] sm:$0xff]  ;;  %v6411_v36 = vld [vmem:[%s9286_s0 + $0x1d0] sm:$0xff] }
  0xe2   :  { %v1722_v46 = vrot.slane %v1721_v42, 2  ;;  %v1743_v61 = vrot.slane %v1742_v1, 2  ;;  %10042 = vst [vmem:[#allocation36_spill] sm:$0xff] %v6404_v13  ;;  %v538_v14 = vmul.f32 %v6404_v13, %v6058_v37  ;;  %v539_v41 = vmul.f32 %v6411_v36, %v6093_v51  ;;  %v6418_v16 = vld [vmem:[%s9287_s1 + $0x2a0] sm:$0xff] }
  0xe3   :  { %10043 = vst [vmem:[#allocation83_spill] sm:$0xff] %v6411_v36  ;;  %v550_v48 = vadd.f32 %v549_v30, %v519_v24  ;;  %v571_v45 = vadd.f32 %v570_v12, %v535_v15  ;;  %v1877_v37 = vmul.f32 %v5947_v11, %v6386_v34  ;;  %v1893_v13 = vmul.f32 %v5954_v6, %v6386_v34  ;;  %v6440_v36 = vld [vmem:[%s9286_s0 + $0x1e0] sm:$0xff] }
  0xe4   :  { %v1723_v54 = vadd.f32 %v1722_v46, %v1721_v42  ;;  %v1744_v9 = vadd.f32 %v1743_v61, %v1742_v1  ;;  %v1878_v51 = vmul.f32 %v5961_v28, %v6395_v60  ;;  %v1894_v24 = vmul.f32 %v5973_v17, %v6395_v60  ;;  %v6431_v1 = vld [vmem:[%s9287_s1 + $0x2a8] sm:$0xff]  ;;  %10046 = vst [vmem:[#allocation37_spill] sm:$0xff] %v6440_v36 }
  0xe5   :  { %v551_v63 = vadd.f32 %v550_v48, %v520_v35  ;;  %v572_v40 = vadd.f32 %v571_v45, %v536_v18  ;;  %v1907_v30 = vadd.f32 %v1876_v47, %v1875_v5  ;;  %v1928_v12 = vadd.f32 %v1892_v44, %v1891_v19  ;;  %v10044_v48 = vld [vmem:[#allocation19_spill] sm:$0xff]  ;;  %v10045_v35 = vld [vmem:[#allocation24_spill] sm:$0xff] }
  0xe6   :  { %v1724_v15 = vrot.slane %v1723_v54, 1  ;;  %v1745_v42 = vrot.slane %v1744_v9, 1  ;;  %v1879_v45 = vmul.f32 %v10044_v48, %v6418_v16  ;;  %v1895_v18 = vmul.f32 %v10045_v35, %v6418_v16  ;;  %v6456_v47 = vld [vmem:[%s9287_s1 + $0x2b8] sm:$0xff] }
  0xe7   :  { %v552_v46 = vadd.f32 %v551_v63, %v521_v2  ;;  %v573_v61 = vadd.f32 %v572_v40, %v537_v49  ;;  %v1908_v17 = vadd.f32 %v1907_v30, %v1877_v37  ;;  %v1929_v11 = vadd.f32 %v1928_v12, %v1893_v13  ;;  %v6448_v63 = vld [vmem:[%s9287_s1 + $0x2b0] sm:$0xff] }
  0xe8   :  { %v1725_v28 = vadd.f32 %v1724_v15, %v1723_v54  ;;  %v1746_v6 = vadd.f32 %v1745_v42, %v1744_v9  ;;  %v540_v5 = vmul.f32 %v6440_v36, %v6098_v31  ;;  %v10047_v54 = vld [vmem:[#allocation42_spill] sm:$0xff]  ;;  %v6461_v31 = vld [vmem:[%s9287_s1 + $0x2c0] sm:$0xff] }
  0xe9   :  { %v553_v2 = vadd.f32 %v552_v46, %v6316_v0  ;;  %v574_v40 = vadd.f32 %v573_v61, %v538_v14  ;;  %v1880_v9 = vmul.f32 %v10047_v54, %v6431_v1  ;;  %v10048_v0 = vld [vmem:[#allocation94_spill] sm:$0xff]  ;;  %v1909_v44 = vadd.f32 %v1908_v17, %v1878_v51  ;;  %v6487_v17 = vld [vmem:[%s9287_s1 + $0x2d8] sm:$0xff]  ;;  %v6497_v61 = vld [vmem:[%s9287_s1 + $0x2e0] sm:$0xff] }
  0xea   :  { %v1749_v49 = vsel %vm272_vm0, %v1746_v6, %v1725_v28  ;;  %v1896_v19 = vmul.f32 %v10048_v0, %v6431_v1  ;;  %v1930_v13 = vadd.f32 %v1929_v11, %v1894_v24  ;;  %v6469_v6 = vld [vmem:[%s9286_s0 + $0x1f0] sm:$0xff]  ;;  %v6477_v42 = vld [vmem:[%s9287_s1 + $0x2c8] sm:$0xff] }
  0xeb   :  { %v1751_v14 = vsel %vm275_vm1, %v1749_v49, 0.0  ;;  %10049 = vst [vmem:[#allocation86_spill] sm:$0xff] %v6469_v6  ;;  %v541_v28 = vmul.f32 %v6469_v6, %v6103_v33  ;;  %v554_v37 = vadd.f32 %v553_v2, %v6332_v26  ;;  %v575_v15 = vadd.f32 %v574_v40, %v539_v41  ;;  %v6482_v11 = vld [vmem:[%s9287_s1 + $0x2d0] sm:$0xff]  ;;  %v10051_v41 = vld [vmem:[#allocation20_spill] sm:$0xff]  ;;  %v10053_v49 = vld [vmem:[#allocation21_spill] sm:$0xff] }
  0xec   :  { %1752 = vadd.xlane.f32.xlu0 %v1751_v14  ;;  %v10050_v33 = vld [vmem:[#allocation95_spill] sm:$0xff]  ;;  %v1897_v51 = vmul.f32 %v10051_v41, %v6448_v63  ;;  %v1910_v24 = vadd.f32 %v1909_v44, %v1879_v45  ;;  %v1931_v30 = vadd.f32 %v1930_v13, %v1895_v18  ;;  %v1883_v14 = vmul.f32 %v10053_v49, %v6461_v31  ;;  %v6506_v41 = vld [vmem:[%s9287_s1 + $0x2e8] sm:$0xff]  ;;  %v10054_v45 = vld [vmem:[#allocation68_spill] sm:$0xff] }
  0xed   :  { %v1881_v26 = vmul.f32 %v10050_v33, %v6448_v63  ;;  %v555_v12 = vadd.f32 %v554_v37, %v6341_v29  ;;  %v576_v46 = vadd.f32 %v575_v15, %v540_v5  ;;  %v10052_v2 = vld [vmem:[#allocation67_spill] sm:$0xff]  ;;  %v1884_v18 = vmul.f32 %v10054_v45, %v6477_v42  ;;  %v10055_v5 = vld [vmem:[#allocation22_spill] sm:$0xff]  ;;  %v10057_v0 = vld [vmem:[#allocation25_spill] sm:$0xff] }
  0xee   :  { %v1882_v40 = vmul.f32 %v10052_v2, %v6456_v47  ;;  %v6511_v29 = vld [vmem:[%s9287_s1 + $0x2f0] sm:$0xff]  ;;  %v1898_v44 = vmul.f32 %v10055_v5, %v6456_v47  ;;  %v1911_v13 = vadd.f32 %v1910_v24, %v1880_v9  ;;  %v1932_v37 = vadd.f32 %v1931_v30, %v1896_v19  ;;  %v6521_v2 = vld [vmem:[%s9287_s1 + $0x2f8] sm:$0xff] }
  0xef   :  { %v556_v15 = vadd.f32 %v555_v12, %v6360_v56  ;;  %v577_v49 = vadd.f32 %v576_v46, %v541_v28  ;;  %v10056_v33 = vld [vmem:[#allocation23_spill] sm:$0xff]  ;;  %v1886_v54 = vmul.f32 %v10057_v0, %v6487_v17  ;;  %v10058_v45 = vld [vmem:[#allocation70_spill] sm:$0xff]  ;;  %v10059_v9 = vld [vmem:[#allocation28_spill] sm:$0xff] }
  0xf0   :  { %v1885_v6 = vmul.f32 %v10056_v33, %v6482_v11  ;;  %v1887_v36 = vmul.f32 %v10058_v45, %v6497_v61  ;;  %v1899_v19 = vmul.f32 %v10059_v9, %v6461_v31  ;;  %v1912_v24 = vadd.f32 %v1911_v13, %v1881_v26  ;;  %v10060_v12 = vld [vmem:[#allocation26_spill] sm:$0xff]  ;;  %v10061_v5 = vld [vmem:[#allocation72_spill] sm:$0xff]  ;;  %v10062_v33 = vld [vmem:[#allocation33_spill] sm:$0xff] }
  0xf1   :  { %v1933_v56 = vadd.f32 %v1932_v37, %v1897_v51  ;;  %v557_v28 = vrot.slane %v556_v15, 4  ;;  %v578_v30 = vrot.slane %v577_v49, 4  ;;  %v1888_v46 = vmul.f32 %v10060_v12, %v6506_v41  ;;  %v10063_v0 = vld [vmem:[#allocation27_spill] sm:$0xff]  ;;  %v10064_v51 = vld [vmem:[#allocation73_spill] sm:$0xff]  ;;  %v10065_v37 = vld [vmem:[#allocation44_spill] sm:$0xff] }
  0xf2   :  { %v1889_v35 = vmul.f32 %v10061_v5, %v6511_v29  ;;  %v6537_v48 = vmul.f32 %v10062_v33, %v6521_v2  ;;  %v1900_v45 = vmul.f32 %v10063_v0, %v6477_v42  ;;  %v1913_v21 = vadd.f32 %v1912_v24, %v1882_v40  ;;  %v10066_v5 = vld [vmem:[#allocation41_spill] sm:$0xff]  ;;  %v10067_v33 = vld [vmem:[#allocation80_spill] sm:$0xff]  ;;  %v10068_v40 = vld [vmem:[#allocation74_spill] sm:$0xff] }
  0xf3   :  { %v1934_v8 = vadd.f32 %v1933_v56, %v1898_v44  ;;  %v558_v9 = vadd.f32 %v557_v28, %v556_v15  ;;  %v579_v26 = vadd.f32 %v578_v30, %v577_v49  ;;  %v1901_v13 = vmul.f32 %v10064_v51, %v6482_v11  ;;  %v10069_v49 = vld [vmem:[#allocation51_spill] sm:$0xff]  ;;  %v10070_v24 = vld [vmem:[#allocation29_spill] sm:$0xff] }
  0xf4   :  { %v1902_v12 = vmul.f32 %v10065_v37, %v6487_v17  ;;  %v1914_v23 = vadd.f32 %v1913_v21, %v1883_v14  ;;  %v718_v32 = vmul.f32 %v10066_v5, %v6346_v20  ;;  %v719_v43 = vmul.f32 %v10067_v33, %v6351_v57  ;;  %v10071_v21 = vld [vmem:[#allocation39_spill] sm:$0xff]  ;;  %v10072_v33 = vld [vmem:[#allocation48_spill] sm:$0xff] }
  0xf5   :  { %v1935_v50 = vadd.f32 %v1934_v8, %v1899_v19  ;;  %v559_v25 = vrot.slane %v558_v9, 2  ;;  %v580_v0 = vrot.slane %v579_v26, 2  ;;  %v734_v44 = vmul.f32 %v10068_v40, %v6346_v20 }
  0xf6   :  { %v735_v15 = vmul.f32 %v10069_v49, %v6351_v57  ;;  %v1903_v56 = vmul.f32 %v10070_v24, %v6497_v61  ;;  %v1904_v8 = vmul.f32 %v10071_v21, %v6506_v41  ;;  %v1915_v14 = vadd.f32 %v1914_v23, %v1884_v18 }
  0xf7   :  { %v1936_v19 = vadd.f32 %v1935_v50, %v1900_v45  ;;  %v560_v28 = vadd.f32 %v559_v25, %v558_v9  ;;  %v581_v30 = vadd.f32 %v580_v0, %v579_v26  ;;  %v720_v5 = vmul.f32 %v10072_v33, %v6386_v34 }
  0xf8   :  { %v736_v37 = vmul.f32 %v6234_v59, %v6386_v34  ;;  %v1916_v20 = vadd.f32 %v1915_v14, %v1885_v6  ;;  %v721_v57 = vmul.f32 %v5742_v62, %v6395_v60  ;;  %v737_v24 = vmul.f32 %v6243_v39, %v6395_v60 }
  0xf9   :  { %v1937_v40 = vadd.f32 %v1936_v19, %v1901_v13  ;;  %v561_v49 = vrot.slane %v560_v28, 1  ;;  %v582_v21 = vrot.slane %v581_v30, 1  ;;  %v750_v23 = vadd.f32 %v719_v43, %v718_v32  ;;  %v10073_v13 = vld [vmem:[#allocation30_spill] sm:$0xff] }
  0xfa   :  { %v771_v50 = vadd.f32 %v735_v15, %v734_v44  ;;  %v1917_v25 = vadd.f32 %v1916_v20, %v1886_v54  ;;  %v722_v45 = vmul.f32 %v5758_v4, %v6418_v16  ;;  %v738_v34 = vmul.f32 %v6252_v22, %v6418_v16 }
  0xfb   :  { %v1938_v0 = vadd.f32 %v1937_v40, %v1902_v12  ;;  %v562_v6 = vadd.f32 %v561_v49, %v560_v28  ;;  %v583_v18 = vadd.f32 %v582_v21, %v581_v30  ;;  %v751_v9 = vadd.f32 %v750_v23, %v720_v5  ;;  %v10075_v23 = vld [vmem:[#allocation77_spill] sm:$0xff] }
  0xfc   :  { %v772_v26 = vadd.f32 %v771_v50, %v736_v37  ;;  %v1905_v14 = vmul.f32 %v10073_v13, %v6511_v29  ;;  %v1918_v60 = vadd.f32 %v1917_v25, %v1887_v36  ;;  %v723_v43 = vmul.f32 %v5770_v3, %v6431_v1  ;;  %v10076_v50 = vld [vmem:[#allocation52_spill] sm:$0xff]  ;;  %v10077_v25 = vld [vmem:[#allocation31_spill] sm:$0xff] }
  0xfd   :  { %v1939_v19 = vadd.f32 %v1938_v0, %v1903_v56  ;;  %v586_v32 = vsel %vm272_vm0, %v583_v18, %v562_v6  ;;  %v739_v54 = vmul.f32 %v6269_v52, %v6431_v1  ;;  %v752_v12 = vadd.f32 %v751_v9, %v721_v57  ;;  %v10078_v18 = vld [vmem:[#allocation78_spill] sm:$0xff]  ;;  %v10079_v9 = vld [vmem:[#allocation32_spill] sm:$0xff] }
  0xfe   :  { %v773_v40 = vadd.f32 %v772_v26, %v737_v24  ;;  %v588_v16 = vsel %vm275_vm1, %v586_v32, 0.0  ;;  %v1906_v5 = vmul.f32 %v6259_v55, %v6521_v2  ;;  %v1919_v37 = vadd.f32 %v1918_v60, %v1888_v46 }
  0xff   :  { %v1940_v44 = vadd.f32 %v1939_v19, %v1904_v8  ;;  %589 = vadd.xlane.f32.xlu2 %v588_v16  ;;  %v724_v36 = vmul.f32 %v5795_v53, %v6448_v63  ;;  %v740_v49 = vmul.f32 %v6281_v38, %v6448_v63  ;;  %v753_v15 = vadd.f32 %v752_v12, %v722_v45  ;;  %v10081_v19 = vld [vmem:[#allocation54_spill] sm:$0xff] }
 0x100   :  { %v774_v56 = vadd.f32 %v773_v40, %v738_v34  ;;  %v1920_v21 = vadd.f32 %v1919_v37, %v1889_v35  ;;  %v725_v24 = vmul.f32 %v5821_v7, %v6456_v47  ;;  %v726_v28 = vmul.f32 %v5828_v58, %v6461_v31  ;;  %v10074_v35 = vld [vmem:[#allocation13_spill] sm:$0xff]  ;;  %v10082_v40 = vld [vmem:[#allocation35_spill] sm:$0xff] }
 0x101   :  { %v1941_v1 = vadd.f32 %v1940_v44, %v1905_v14  ;;  %v727_v46 = vmul.f32 %v5848_v10, %v6477_v42  ;;  %v741_v8 = vmul.f32 %v6295_v27, %v6456_v47  ;;  %v754_v53 = vadd.f32 %v753_v15, %v723_v43  ;;  %v10080_v14 = vld [vmem:[#allocation79_spill] sm:$0xff]  ;;  %v10085_v15 = vld [vmem:[#allocation16_spill] sm:$0xff] }
 0x102   :  { %v775_v30 = vadd.f32 %v774_v56, %v739_v54  ;;  %v1921_v63 = vadd.f32 %v1920_v21, %v6537_v48  ;;  %v728_v57 = vmul.f32 %v10074_v35, %v6482_v11  ;;  %v729_v7 = vmul.f32 %v10075_v23, %v6487_v17  ;;  %v10086_v21 = vld [vmem:[#allocation40_spill] sm:$0xff] }
 0x103   :  { %v1942_v20 = vadd.f32 %v1941_v1, %v1906_v5  ;;  %v730_v58 = vmul.f32 %v10076_v50, %v6497_v61  ;;  %v742_v0 = vmul.f32 %v10077_v25, %v6461_v31  ;;  %v755_v45 = vadd.f32 %v754_v53, %v724_v36  ;;  %v10083_v5 = vld [vmem:[#allocation82_spill] sm:$0xff]  ;;  %v10087_v1 = vld [vmem:[#allocation60_spill] sm:$0xff] }
 0x104   :  { %v776_v34 = vadd.f32 %v775_v30, %v740_v49  ;;  %v1922_v47 = vrot.slane %v1921_v63, 4  ;;  %v731_v48 = vmul.f32 %v10078_v18, %v6506_v41  ;;  %v732_v26 = vmul.f32 %v10079_v9, %v6511_v29  ;;  %v10084_v49 = vld [vmem:[#allocation75_spill] sm:$0xff] }
 0x105   :  { %v1943_v6 = vrot.slane %v1942_v20, 4  ;;  %v6606_v60 = vmul.f32 %v10080_v14, %v6521_v2  ;;  %v743_v43 = vmul.f32 %v10081_v19, %v6477_v42  ;;  %v756_v32 = vadd.f32 %v755_v45, %v725_v24  ;;  %v10088_v24 = vld [vmem:[#allocation61_spill] sm:$0xff] }
 0x106   :  { %v777_v54 = vadd.f32 %v776_v34, %v741_v8  ;;  %v1923_v31 = vadd.f32 %v1922_v47, %v1921_v63  ;;  %v744_v16 = vmul.f32 %v10082_v40, %v6482_v11  ;;  %v745_v37 = vmul.f32 %v10083_v5, %v6487_v17  ;;  %v10089_v63 = vld [vmem:[#allocation12_spill] sm:$0xff]  ;;  %v10091_v17 = vld [vmem:[#allocation83_spill] sm:$0xff]  ;;  %v10095_v5 = vld [vmem:[#allocation45_spill] sm:$0xff] }
 0x107   :  { %v1944_v12 = vadd.f32 %v1943_v6, %v1942_v20  ;;  %v757_v44 = vadd.f32 %v756_v32, %v726_v28  ;;  %v1774_v56 = vmul.f32 %v10085_v15, %v10084_v49  ;;  %v1775_v53 = vmul.f32 %v10087_v1, %v10086_v21  ;;  %v10090_v11 = vld [vmem:[#allocation36_spill] sm:$0xff]  ;;  %v10093_v32 = vld [vmem:[#allocation15_spill] sm:$0xff] }
 0x108   :  { %v778_v36 = vadd.f32 %v777_v54, %v742_v0  ;;  %v1924_v30 = vrot.slane %v1923_v31, 2  ;;  %v1790_v8 = vmul.f32 %v10088_v24, %v10084_v49  ;;  %v1791_v20 = vmul.f32 %v10089_v63, %v10086_v21  ;;  %v10092_v6 = vld [vmem:[#allocation76_spill] sm:$0xff]  ;;  %v10096_v21 = vld [vmem:[#allocation14_spill] sm:$0xff] }
 0x109   :  { %v1945_v42 = vrot.slane %v1944_v12, 2  ;;  %v746_v35 = vmul.f32 %v10090_v11, %v6497_v61  ;;  %v747_v28 = vmul.f32 %v10091_v17, %v6506_v41  ;;  %v758_v0 = vadd.f32 %v757_v44, %v727_v46  ;;  %v10094_v1 = vld [vmem:[#allocation64_spill] sm:$0xff]  ;;  %v10097_v61 = vld [vmem:[#allocation17_spill] sm:$0xff] }
 0x10a   :  { %v779_v45 = vadd.f32 %v778_v36, %v743_v43  ;;  %v1925_v34 = vadd.f32 %v1924_v30, %v1923_v31  ;;  %v1776_v54 = vmul.f32 %v10093_v32, %v10092_v6  ;;  %v1792_v15 = vmul.f32 %v10094_v1, %v10092_v6  ;;  %v10098_v44 = vld [vmem:[#allocation81_spill] sm:$0xff]  ;;  %v10099_v36 = vld [vmem:[#allocation19_spill] sm:$0xff]  ;;  %v10102_v32 = vld [vmem:[#allocation84_spill] sm:$0xff] }
 0x10b   :  { %v1946_v47 = vadd.f32 %v1945_v42, %v1944_v12  ;;  %v759_v49 = vadd.f32 %v758_v0, %v728_v57  ;;  %v1777_v63 = vmul.f32 %v10096_v21, %v10095_v5  ;;  %v1793_v11 = vmul.f32 %v10097_v61, %v10095_v5  ;;  %v10100_v42 = vld [vmem:[#allocation24_spill] sm:$0xff]  ;;  %v10101_v21 = vld [vmem:[#allocation37_spill] sm:$0xff] }
 0x10c   :  { %v780_v24 = vadd.f32 %v779_v45, %v744_v16  ;;  %v1926_v40 = vrot.slane %v1925_v34, 1  ;;  %v1806_v46 = vadd.f32 %v1775_v53, %v1774_v56  ;;  %v1827_v43 = vadd.f32 %v1791_v20, %v1790_v8  ;;  %v10103_v56 = vld [vmem:[#allocation42_spill] sm:$0xff] }
 0x10d   :  { %v1947_v41 = vrot.slane %v1946_v47, 1  ;;  %v760_v31 = vadd.f32 %v759_v49, %v729_v7  ;;  %v1778_v30 = vmul.f32 %v10099_v36, %v10098_v44  ;;  %v1794_v6 = vmul.f32 %v10100_v42, %v10098_v44  ;;  %v10108_v49 = vld [vmem:[#allocation20_spill] sm:$0xff]  ;;  %v10111_v44 = vld [vmem:[#allocation85_spill] sm:$0xff] }
 0x10e   :  { %v781_v12 = vadd.f32 %v780_v24, %v745_v37  ;;  %v1927_v57 = vadd.f32 %v1926_v40, %v1925_v34  ;;  %v1807_v0 = vadd.f32 %v1806_v46, %v1776_v54  ;;  %v1828_v45 = vadd.f32 %v1827_v43, %v1792_v15  ;;  %v10104_v37 = vld [vmem:[#allocation94_spill] sm:$0xff] }
 0x10f   :  { %v1948_v16 = vadd.f32 %v1947_v41, %v1946_v47  ;;  %v748_v1 = vmul.f32 %v10101_v21, %v6511_v29  ;;  %v761_v5 = vadd.f32 %v760_v31, %v730_v58  ;;  %v1779_v53 = vmul.f32 %v10103_v56, %v10102_v32  ;;  %v10105_v34 = vld [vmem:[#allocation86_spill] sm:$0xff]  ;;  %v10106_v29 = vld [vmem:[#allocation49_spill] sm:$0xff]  ;;  %v10107_v58 = vld [vmem:[#allocation95_spill] sm:$0xff] }
 0x110   :  { %v782_v61 = vadd.f32 %v781_v12, %v746_v35  ;;  %v1795_v24 = vmul.f32 %v10104_v37, %v10102_v32  ;;  %v1808_v8 = vadd.f32 %v1807_v0, %v1777_v63  ;;  %v1829_v20 = vadd.f32 %v1828_v45, %v1793_v11  ;;  %v10109_v63 = vld [vmem:[#allocation50_spill] sm:$0xff]  ;;  %v10110_v11 = vld [vmem:[#allocation67_spill] sm:$0xff]  ;;  %v10134_v56 = vld [vmem:[#allocation41_spill] sm:$0xff] }
 0x111   :  { %v1951_v7 = vsel %vm272_vm0, %v1948_v16, %v1927_v57  ;;  %v749_v15 = vmul.f32 %v10105_v34, %v6521_v2  ;;  %v762_v47 = vadd.f32 %v761_v5, %v731_v48  ;;  %v1780_v35 = vmul.f32 %v10107_v58, %v10106_v29  ;;  %v10112_v57 = vld [vmem:[#allocation21_spill] sm:$0xff]  ;;  %v10113_v2 = vld [vmem:[#allocation87_spill] sm:$0xff]  ;;  %v10114_v48 = vld [vmem:[#allocation68_spill] sm:$0xff] }
 0x112   :  { %v1953_v40 = vsel %vm275_vm1, %v1951_v7, 0.0  ;;  %v783_v54 = vadd.f32 %v782_v61, %v747_v28  ;;  %v1796_v41 = vmul.f32 %v10108_v49, %v10106_v29  ;;  %v1809_v46 = vadd.f32 %v1808_v8, %v1778_v30  ;;  %v10115_v61 = vld [vmem:[#allocation22_spill] sm:$0xff]  ;;  %v10119_v8 = vld [vmem:[#allocation25_spill] sm:$0xff]  ;;  %v10122_v29 = vld [vmem:[#allocation28_spill] sm:$0xff] }
 0x113   :  { %1954 = vadd.xlane.f32.xlu1 %v1953_v40  ;;  %v1830_v43 = vadd.f32 %v1829_v20, %v1794_v6  ;;  %v763_v31 = vadd.f32 %v762_v47, %v732_v26  ;;  %v1781_v12 = vmul.f32 %v10110_v11, %v10109_v63  ;;  %v1782_v16 = vmul.f32 %v10112_v57, %v10111_v44  ;;  %v10116_v6 = vld [vmem:[#allocation53_spill] sm:$0xff]  ;;  %v10117_v26 = vld [vmem:[#allocation23_spill] sm:$0xff]  ;;  %v10118_v37 = vld [vmem:[#allocation90_spill] sm:$0xff] }
 0x114   :  { %v784_v32 = vadd.f32 %v783_v54, %v748_v1  ;;  %v1783_v28 = vmul.f32 %v10114_v48, %v10113_v2  ;;  %v1797_v0 = vmul.f32 %v10115_v61, %v10109_v63  ;;  %v1810_v45 = vadd.f32 %v1809_v46, %v1779_v53  ;;  %v10120_v40 = vld [vmem:[#allocation55_spill] sm:$0xff]  ;;  %v10121_v47 = vld [vmem:[#allocation70_spill] sm:$0xff]  ;;  %v10132_v61 = vld [vmem:[#allocation44_spill] sm:$0xff] }
 0x115   :  { %v1831_v5 = vadd.f32 %v1830_v43, %v1795_v24  ;;  %v764_v7 = vadd.f32 %v763_v31, %v6606_v60  ;;  %v1784_v1 = vmul.f32 %v10117_v26, %v10116_v6  ;;  %v1785_v20 = vmul.f32 %v10119_v8, %v10118_v37  ;;  %v10123_v24 = vld [vmem:[#allocation56_spill] sm:$0xff]  ;;  %v10124_v46 = vld [vmem:[#allocation26_spill] sm:$0xff] }
 0x116   :  { %v785_v30 = vadd.f32 %v784_v32, %v749_v15  ;;  %v1786_v54 = vmul.f32 %v10121_v47, %v10120_v40  ;;  %v1798_v58 = vmul.f32 %v10122_v29, %v10111_v44  ;;  %v1811_v48 = vadd.f32 %v1810_v45, %v1780_v35  ;;  %v10125_v15 = vld [vmem:[#allocation47_spill] sm:$0xff]  ;;  %v10126_v43 = vld [vmem:[#allocation72_spill] sm:$0xff]  ;;  %v6683_v44 = vld [vmem:[%s9287_s1 + $0x388] sm:$0xff] }
 0x117   :  { %v1832_v57 = vadd.f32 %v1831_v5, %v1796_v41  ;;  %v765_v63 = vrot.slane %v764_v7, 4  ;;  %v1787_v60 = vmul.f32 %v10124_v46, %v10123_v24  ;;  %v6673_v31 = vmul.f32 %v10126_v43, %v10125_v15  ;;  %v6678_v32 = vld [vmem:[%s9287_s1 + $0x380] sm:$0xff]  ;;  %10128 = vst [vmem:[#allocation38_spill] sm:$0xff] %v6683_v44  ;;  %v10129_v35 = vld [vmem:[#allocation18_spill] sm:$0xff]  ;;  %v10131_v5 = vld [vmem:[#allocation27_spill] sm:$0xff] }
 0x118   :  { %v786_v53 = vrot.slane %v785_v30, 4  ;;  %10127 = vst [vmem:[#allocation57_spill] sm:$0xff] %v6678_v32  ;;  %v10130_v41 = vld [vmem:[#allocation33_spill] sm:$0xff]  ;;  %v1799_v46 = vmul.f32 %v10131_v5, %v10113_v2  ;;  %v1812_v29 = vadd.f32 %v1811_v48, %v1781_v12  ;;  %v1800_v26 = vmul.f32 %v10064_v51, %v10116_v6  ;;  %v10135_v12 = vld [vmem:[#allocation80_spill] sm:$0xff] }
 0x119   :  { %v6687_v45 = vmul.f32 %v10130_v41, %v10129_v35  ;;  %v1833_v43 = vadd.f32 %v1832_v57, %v1797_v0  ;;  %v766_v47 = vadd.f32 %v765_v63, %v764_v7  ;;  %v1801_v11 = vmul.f32 %v10132_v61, %v10118_v37  ;;  %v6698_v41 = vld [vmem:[%s9287_s1 + $0x390] sm:$0xff]  ;;  %v6720_v51 = vld [vmem:[%s9287_s1 + $0x3a0] sm:$0xff] }
 0x11a   :  { %v787_v8 = vadd.f32 %v786_v53, %v785_v30  ;;  %v1813_v49 = vadd.f32 %v1812_v29, %v1782_v16  ;;  %10133 = vst [vmem:[#allocation88_spill] sm:$0xff] %v6698_v41  ;;  %v926_v2 = vmul.f32 %v10134_v56, %v6678_v32  ;;  %v927_v57 = vmul.f32 %v10135_v12, %v6683_v44  ;;  %v6707_v30 = vld [vmem:[%s9287_s1 + $0x398] sm:$0xff]  ;;  %v10137_v16 = vld [vmem:[#allocation74_spill] sm:$0xff] }
 0x11b   :  { %v1834_v34 = vadd.f32 %v1833_v43, %v1798_v58  ;;  %v767_v0 = vrot.slane %v766_v47, 2  ;;  %10136 = vst [vmem:[#allocation43_spill] sm:$0xff] %v6707_v30  ;;  %v942_v6 = vmul.f32 %v10137_v16, %v6678_v32  ;;  %v10138_v37 = vld [vmem:[#allocation51_spill] sm:$0xff]  ;;  %v10139_v58 = vld [vmem:[#allocation29_spill] sm:$0xff]  ;;  %v928_v32 = vmul.f32 %v10072_v33, %v6698_v41 }
 0x11c   :  { %v788_v7 = vrot.slane %v787_v8, 2  ;;  %v943_v29 = vmul.f32 %v10138_v37, %v6683_v44  ;;  %v1802_v48 = vmul.f32 %v10139_v58, %v10120_v40  ;;  %v10140_v56 = vld [vmem:[#allocation39_spill] sm:$0xff]  ;;  %v1814_v53 = vadd.f32 %v1813_v49, %v1783_v28  ;;  %10141 = vst [vmem:[#allocation89_spill] sm:$0xff] %v6720_v51 }
 0x11d   :  { %v1803_v63 = vmul.f32 %v10140_v56, %v10123_v24  ;;  %v1835_v43 = vadd.f32 %v1834_v34, %v1799_v46  ;;  %v768_v12 = vadd.f32 %v767_v0, %v766_v47  ;;  %v944_v44 = vmul.f32 %v6234_v59, %v6698_v41 }
 0x11e   :  { %v789_v61 = vadd.f32 %v788_v7, %v787_v8  ;;  %v1815_v37 = vadd.f32 %v1814_v53, %v1784_v1  ;;  %v929_v24 = vmul.f32 %v5742_v62, %v6707_v30  ;;  %v945_v34 = vmul.f32 %v6243_v39, %v6707_v30  ;;  %v6733_v8 = vld [vmem:[%s9287_s1 + $0x3a8] sm:$0xff] }
 0x11f   :  { %v1836_v40 = vadd.f32 %v1835_v43, %v1800_v26  ;;  %v769_v49 = vrot.slane %v768_v12, 1  ;;  %10142 = vst [vmem:[#allocation46_spill] sm:$0xff] %v6733_v8  ;;  %v958_v47 = vadd.f32 %v927_v57, %v926_v2  ;;  %v979_v33 = vadd.f32 %v943_v29, %v942_v6  ;;  %v6767_v6 = vld [vmem:[%s9287_s1 + $0x3c8] sm:$0xff]  ;;  %v6777_v29 = vld [vmem:[%s9287_s1 + $0x3d8] sm:$0xff] }
 0x120   :  { %v790_v28 = vrot.slane %v789_v61, 1  ;;  %v1816_v46 = vadd.f32 %v1815_v37, %v1785_v20  ;;  %v930_v26 = vmul.f32 %v5758_v4, %v6720_v51  ;;  %v946_v62 = vmul.f32 %v6252_v22, %v6720_v51  ;;  %v6744_v20 = vld [vmem:[%s9287_s1 + $0x3b0] sm:$0xff]  ;;  %10146 = vst [vmem:[#allocation59_spill] sm:$0xff] %v6767_v6  ;;  %v6892_v51 = vld [vmem:[%s9287_s1 + $0x320] sm:$0xff] }
 0x121   :  { %v1837_v0 = vadd.f32 %v1836_v40, %v1801_v11  ;;  %v770_v1 = vadd.f32 %v769_v49, %v768_v12  ;;  %v959_v58 = vadd.f32 %v958_v47, %v928_v32  ;;  %v980_v53 = vadd.f32 %v979_v33, %v944_v44  ;;  %10143 = vst [vmem:[#allocation91_spill] sm:$0xff] %v6744_v20  ;;  %v6772_v37 = vld [vmem:[%s9287_s1 + $0x3d0] sm:$0xff]  ;;  %v6792_v12 = vld [vmem:[%s9287_s1 + $0x3e0] sm:$0xff]  ;;  %v6811_v49 = vld [vmem:[%s9287_s1 + $0x3e8] sm:$0xff] }
 0x122   :  { %v791_v7 = vadd.f32 %v790_v28, %v789_v61  ;;  %v1804_v43 = vmul.f32 %v10073_v13, %v10125_v15  ;;  %v1817_v30 = vadd.f32 %v1816_v46, %v1786_v54  ;;  %v931_v4 = vmul.f32 %v5770_v3, %v6733_v8  ;;  %v6752_v61 = vld [vmem:[%s9287_s1 + $0x3b8] sm:$0xff]  ;;  %v6757_v13 = vld [vmem:[%s9287_s1 + $0x3c0] sm:$0xff]  ;;  %10147 = vst [vmem:[#allocation65_spill] sm:$0xff] %v6772_v37  ;;  %v6797_v40 = vld [vmem:[%s9286_s0 + $0x70] sm:$0xff] }
 0x123   :  { %v1838_v41 = vadd.f32 %v1837_v0, %v1802_v48  ;;  %10144 = vst [vmem:[#allocation58_spill] sm:$0xff] %v6752_v61  ;;  %v947_v54 = vmul.f32 %v6269_v52, %v6733_v8  ;;  %v960_v15 = vadd.f32 %v959_v58, %v929_v24  ;;  %v981_v32 = vadd.f32 %v980_v53, %v945_v34  ;;  %v6804_v34 = vld [vmem:[%s9286_s0 + $0x80] sm:$0xff]  ;;  %v6816_v28 = vld [vmem:[%s9287_s1 + $0x3f0] sm:$0xff] }
 0x124   :  { %v794_v11 = vsel %vm272_vm0, %v791_v7, %v770_v1  ;;  %10145 = vst [vmem:[#allocation93_spill] sm:$0xff] %v6757_v13  ;;  %v1805_v3 = vmul.f32 %v6259_v55, %v10129_v35  ;;  %v1818_v2 = vadd.f32 %v1817_v30, %v1787_v60  ;;  %v6782_v55 = vld [vmem:[%s9286_s0 + $0x60] sm:$0xff]  ;;  %v948_v35 = vmul.f32 %v6281_v38, %v6744_v20  ;;  %v6826_v1 = vld [vmem:[%s9287_s1 + $0x3f8] sm:$0xff] }
 0x125   :  { %v796_v44 = vsel %vm275_vm1, %v794_v11, 0.0  ;;  %v1839_v57 = vadd.f32 %v1838_v41, %v1803_v63  ;;  %10148 = vst [vmem:[#allocation66_spill] sm:$0xff] %v6777_v29  ;;  %v932_v60 = vmul.f32 %v6782_v55, %v6744_v20  ;;  %v961_v41 = vadd.f32 %v960_v15, %v930_v26  ;;  %v6831_v7 = vld [vmem:[%s9286_s0 + $0xa0] sm:$0xff]  ;;  %v6870_v20 = vld [vmem:[%s9287_s1 + $0x310] sm:$0xff] }
 0x126   :  { %797 = vadd.xlane.f32.xlu0 %v796_v44  ;;  %v982_v30 = vadd.f32 %v981_v32, %v946_v62  ;;  %v1819_v48 = vadd.f32 %v1818_v2, %v6673_v31  ;;  %10149 = vst [vmem:[#allocation62_spill] sm:$0xff] %v6792_v12  ;;  %v933_v24 = vmul.f32 %v6797_v40, %v6752_v61  ;;  %v6850_v44 = vld [vmem:[%s9287_s1 + $0x300] sm:$0xff] }
 0x127   :  { %v1840_v63 = vadd.f32 %v1839_v57, %v1804_v43  ;;  %v934_v31 = vmul.f32 %v6804_v34, %v6757_v13  ;;  %10150 = vst [vmem:[#allocation63_spill] sm:$0xff] %v6811_v49  ;;  %v935_v47 = vmul.f32 %v5848_v10, %v6767_v6  ;;  %v949_v33 = vmul.f32 %v6295_v27, %v6752_v61  ;;  %v10155_v8 = vld [vmem:[#allocation16_spill] sm:$0xff] }
 0x128   :  { %10151 = vst [vmem:[#allocation69_spill] sm:$0xff] %v6816_v28  ;;  %v962_v46 = vadd.f32 %v961_v41, %v931_v4  ;;  %v983_v0 = vadd.f32 %v982_v30, %v947_v54  ;;  %v1820_v26 = vadd.f32 %v1819_v48, %v6687_v45  ;;  %v936_v10 = vmul.f32 %v6831_v7, %v6772_v37  ;;  %v10153_v48 = vld [vmem:[#allocation35_spill] sm:$0xff] }
 0x129   :  { %v1841_v62 = vadd.f32 %v1840_v63, %v1805_v3  ;;  %10152 = vst [vmem:[#allocation34_spill] sm:$0xff] %v6826_v1  ;;  %v937_v58 = vmul.f32 %v10075_v23, %v6777_v29  ;;  %v938_v45 = vmul.f32 %v10076_v50, %v6792_v12  ;;  %v950_v53 = vmul.f32 %v10077_v25, %v6757_v13  ;;  %v6855_v3 = vld [vmem:[%s9287_s1 + $0x308] sm:$0xff] }
 0x12a   :  { %v963_v43 = vadd.f32 %v962_v46, %v932_v60  ;;  %v984_v4 = vadd.f32 %v983_v0, %v948_v35  ;;  %v1821_v11 = vrot.slane %v1820_v26, 4  ;;  %v939_v15 = vmul.f32 %v10078_v18, %v6811_v49  ;;  %v10154_v46 = vld [vmem:[#allocation82_spill] sm:$0xff] }
 0x12b   :  { %v1842_v54 = vrot.slane %v1841_v62, 4  ;;  %v6845_v32 = vmul.f32 %v10079_v9, %v6816_v28  ;;  %v6859_v2 = vmul.f32 %v10080_v14, %v6826_v1  ;;  %v951_v57 = vmul.f32 %v10081_v19, %v6767_v6 }
 0x12c   :  { %v964_v60 = vadd.f32 %v963_v43, %v933_v24  ;;  %v985_v35 = vadd.f32 %v984_v4, %v949_v33  ;;  %v1822_v41 = vadd.f32 %v1821_v11, %v1820_v26  ;;  %v952_v63 = vmul.f32 %v10153_v48, %v6772_v37  ;;  %v10156_v24 = vld [vmem:[#allocation60_spill] sm:$0xff] }
 0x12d   :  { %v1843_v30 = vadd.f32 %v1842_v54, %v1841_v62  ;;  %v953_v0 = vmul.f32 %v10154_v46, %v6777_v29  ;;  %v1976_v6 = vmul.f32 %v10155_v8, %v6850_v44  ;;  %v1977_v33 = vmul.f32 %v10156_v24, %v6855_v3  ;;  %v6879_v43 = vld [vmem:[%s9287_s1 + $0x318] sm:$0xff] }
 0x12e   :  { %v965_v13 = vadd.f32 %v964_v60, %v934_v31  ;;  %v986_v61 = vadd.f32 %v985_v35, %v950_v53  ;;  %v1823_v26 = vrot.slane %v1822_v41, 2  ;;  %v10157_v31 = vld [vmem:[#allocation61_spill] sm:$0xff]  ;;  %v10158_v4 = vld [vmem:[#allocation12_spill] sm:$0xff]  ;;  %v955_v8 = vmul.f32 %v10091_v17, %v6811_v49 }
 0x12f   :  { %v1844_v62 = vrot.slane %v1843_v30, 2  ;;  %v1992_v53 = vmul.f32 %v10157_v31, %v6850_v44  ;;  %v1993_v11 = vmul.f32 %v10158_v4, %v6855_v3  ;;  %v10159_v54 = vld [vmem:[#allocation36_spill] sm:$0xff]  ;;  %v10160_v31 = vld [vmem:[#allocation15_spill] sm:$0xff] }
 0x130   :  { %v954_v60 = vmul.f32 %v10159_v54, %v6792_v12  ;;  %v966_v35 = vadd.f32 %v965_v13, %v935_v47  ;;  %v987_v24 = vadd.f32 %v986_v61, %v951_v57  ;;  %v1824_v29 = vadd.f32 %v1823_v26, %v1822_v41  ;;  %v10161_v4 = vld [vmem:[#allocation64_spill] sm:$0xff]  ;;  %v10162_v54 = vld [vmem:[#allocation14_spill] sm:$0xff]  ;;  %v10163_v61 = vld [vmem:[#allocation17_spill] sm:$0xff] }
 0x131   :  { %v1845_v37 = vadd.f32 %v1844_v62, %v1843_v30  ;;  %v1978_v46 = vmul.f32 %v10160_v31, %v6870_v20  ;;  %v1994_v48 = vmul.f32 %v10161_v4, %v6870_v20  ;;  %v1979_v49 = vmul.f32 %v10162_v54, %v6879_v43  ;;  %v6905_v41 = vld [vmem:[%s9287_s1 + $0x328] sm:$0xff] }
 0x132   :  { %v967_v19 = vadd.f32 %v966_v35, %v936_v10  ;;  %v988_v12 = vadd.f32 %v987_v24, %v952_v63  ;;  %v1995_v13 = vmul.f32 %v10163_v61, %v6879_v43  ;;  %v1825_v47 = vrot.slane %v1824_v29, 1 }
 0x133   :  { %v1846_v57 = vrot.slane %v1845_v37, 1  ;;  %v2008_v30 = vadd.f32 %v1977_v33, %v1976_v6  ;;  %v2029_v26 = vadd.f32 %v1993_v11, %v1992_v53  ;;  %v1980_v10 = vmul.f32 %v10099_v36, %v6892_v51  ;;  %v10164_v6 = vld [vmem:[#allocation42_spill] sm:$0xff] }
 0x134   :  { %v968_v62 = vadd.f32 %v967_v19, %v937_v58  ;;  %v989_v31 = vadd.f32 %v988_v12, %v953_v0  ;;  %v1996_v63 = vmul.f32 %v10100_v42, %v6892_v51  ;;  %v1826_v54 = vadd.f32 %v1825_v47, %v1824_v29  ;;  %v6916_v19 = vld [vmem:[%s9287_s1 + $0x330] sm:$0xff]  ;;  %v6924_v42 = vld [vmem:[%s9287_s1 + $0x338] sm:$0xff] }
 0x135   :  { %v1847_v35 = vadd.f32 %v1846_v57, %v1845_v37  ;;  %v2009_v24 = vadd.f32 %v2008_v30, %v1978_v46  ;;  %v2030_v4 = vadd.f32 %v2029_v26, %v1994_v48  ;;  %v956_v61 = vmul.f32 %v10101_v21, %v6816_v28  ;;  %v6929_v37 = vld [vmem:[%s9287_s1 + $0x340] sm:$0xff]  ;;  %v6934_v29 = vld [vmem:[%s9286_s0 + $0x158] sm:$0xff]  ;;  %v10166_v0 = vld [vmem:[#allocation86_spill] sm:$0xff] }
 0x136   :  { %v969_v17 = vadd.f32 %v968_v62, %v938_v45  ;;  %v990_v14 = vadd.f32 %v989_v31, %v954_v60  ;;  %v1981_v36 = vmul.f32 %v10164_v6, %v6905_v41  ;;  %10165 = vst [vmem:[#allocation71_spill] sm:$0xff] %v6934_v29  ;;  %v1997_v58 = vmul.f32 %v6934_v29, %v6905_v41  ;;  %v6944_v60 = vld [vmem:[%s9287_s1 + $0x348] sm:$0xff]  ;;  %v6949_v47 = vld [vmem:[%s9287_s1 + $0x350] sm:$0xff]  ;;  %v6969_v62 = vld [vmem:[%s9287_s1 + $0x360] sm:$0xff] }
 0x137   :  { %v1850_v12 = vsel %vm272_vm0, %v1847_v35, %v1826_v54  ;;  %v2010_v45 = vadd.f32 %v2009_v24, %v1979_v49  ;;  %v2031_v48 = vadd.f32 %v2030_v4, %v1995_v13  ;;  %v957_v33 = vmul.f32 %v10166_v0, %v6826_v1  ;;  %v6954_v49 = vld [vmem:[%s9287_s1 + $0x358] sm:$0xff]  ;;  %v10170_v35 = vld [vmem:[#allocation21_spill] sm:$0xff]  ;;  %v10175_v1 = vld [vmem:[#allocation70_spill] sm:$0xff] }
 0x138   :  { %v1852_v46 = vsel %vm275_vm1, %v1850_v12, 0.0  ;;  %v970_v53 = vadd.f32 %v969_v17, %v939_v15  ;;  %v991_v11 = vadd.f32 %v990_v14, %v955_v8  ;;  %v6959_v14 = vld [vmem:[%s9286_s0 + $0x68] sm:$0xff]  ;;  %v10168_v15 = vld [vmem:[#allocation20_spill] sm:$0xff]  ;;  %v10169_v31 = vld [vmem:[#allocation67_spill] sm:$0xff]  ;;  %v1984_v24 = vmul.f32 %v10170_v35, %v6929_v37 }
 0x139   :  { %1853 = vadd.xlane.f32.xlu2 %v1852_v46  ;;  %10167 = vst [vmem:[#allocation92_spill] sm:$0xff] %v6959_v14  ;;  %v1982_v17 = vmul.f32 %v6959_v14, %v6916_v19  ;;  %v1998_v8 = vmul.f32 %v10168_v15, %v6916_v19  ;;  %v2011_v13 = vadd.f32 %v2010_v45, %v1980_v10  ;;  %v6978_v4 = vld [vmem:[%s9287_s1 + $0x368] sm:$0xff]  ;;  %v6988_v10 = vld [vmem:[%s9286_s0 + $0x98] sm:$0xff] }
 0x13a   :  { %v2032_v57 = vadd.f32 %v2031_v48, %v1996_v63  ;;  %v971_v30 = vadd.f32 %v970_v53, %v6845_v32  ;;  %v992_v26 = vadd.f32 %v991_v11, %v956_v61  ;;  %v1983_v54 = vmul.f32 %v10169_v31, %v6924_v42  ;;  %v6983_v32 = vld [vmem:[%s9287_s1 + $0x370] sm:$0xff]  ;;  %10171 = vst [vmem:[#allocation48_spill] sm:$0xff] %v6988_v10  ;;  %v6998_v53 = vld [vmem:[%s9287_s1 + $0x378] sm:$0xff]  ;;  %v10174_v31 = vld [vmem:[#allocation25_spill] sm:$0xff] }
 0x13b   :  { %v1985_v63 = vmul.f32 %v6988_v10, %v6944_v60  ;;  %v10172_v61 = vld [vmem:[#allocation22_spill] sm:$0xff]  ;;  %v2012_v12 = vadd.f32 %v2011_v13, %v1981_v36  ;;  %v10173_v11 = vld [vmem:[#allocation23_spill] sm:$0xff]  ;;  %v1987_v35 = vmul.f32 %v10174_v31, %v6954_v49  ;;  %v1988_v28 = vmul.f32 %v10175_v1, %v6969_v62  ;;  %v10176_v36 = vld [vmem:[#allocation28_spill] sm:$0xff] }
 0x13c   :  { %v1999_v6 = vmul.f32 %v10172_v61, %v6924_v42  ;;  %v2033_v45 = vadd.f32 %v2032_v57, %v1997_v58  ;;  %v972_v48 = vadd.f32 %v971_v30, %v6859_v2  ;;  %v993_v46 = vadd.f32 %v992_v26, %v957_v33  ;;  %v10177_v30 = vld [vmem:[#allocation26_spill] sm:$0xff]  ;;  %v10178_v61 = vld [vmem:[#allocation72_spill] sm:$0xff] }
 0x13d   :  { %v1986_v15 = vmul.f32 %v10173_v11, %v6949_v47  ;;  %v2000_v58 = vmul.f32 %v10176_v36, %v6929_v37  ;;  %v2013_v13 = vadd.f32 %v2012_v12, %v1982_v17  ;;  %v1989_v26 = vmul.f32 %v10177_v30, %v6978_v4  ;;  %v10179_v11 = vld [vmem:[#allocation33_spill] sm:$0xff]  ;;  %v10181_v30 = vld [vmem:[#allocation44_spill] sm:$0xff] }
 0x13e   :  { %v2034_v2 = vadd.f32 %v2033_v45, %v1998_v8  ;;  %v973_v33 = vrot.slane %v972_v48, 4  ;;  %v994_v57 = vrot.slane %v993_v46, 4  ;;  %v7012_v10 = vmul.f32 %v10178_v61, %v6983_v32  ;;  %v10180_v12 = vld [vmem:[#allocation73_spill] sm:$0xff] }
 0x13f   :  { %v7016_v31 = vmul.f32 %v10179_v11, %v6998_v53  ;;  %v2001_v1 = vmul.f32 %v10131_v5, %v6944_v60  ;;  %v2014_v14 = vadd.f32 %v2013_v13, %v1983_v54  ;;  %v2002_v45 = vmul.f32 %v10180_v12, %v6949_v47  ;;  %v7027_v11 = vld [vmem:[%s9286_s0] sm:$0xff]  ;;  %v7034_v54 = vld [vmem:[%s9286_s0 + $0x10] sm:$0xff]  ;;  %v7045_v13 = vld [vmem:[%s9286_s0 + $0x1c8] sm:$0xff] }
 0x140   :  { %v2035_v36 = vadd.f32 %v2034_v2, %v1999_v6  ;;  %v974_v17 = vadd.f32 %v973_v33, %v972_v48  ;;  %v995_v8 = vadd.f32 %v994_v57, %v993_v46  ;;  %v2003_v0 = vmul.f32 %v10181_v30, %v6954_v49  ;;  %10182 = vst [vmem:[#allocation30_spill] sm:$0xff] %v7027_v11 }
 0x141   :  { %v2015_v29 = vadd.f32 %v2014_v14, %v1984_v24  ;;  %v822_v5 = vmul.f32 %v7027_v11, %v6850_v44  ;;  %10183 = vst [vmem:[#allocation13_spill] sm:$0xff] %v7034_v54  ;;  %v823_v6 = vmul.f32 %v7034_v54, %v6855_v3  ;;  %v838_v14 = vmul.f32 %v10137_v16, %v6850_v44  ;;  %v10184_v24 = vld [vmem:[#allocation51_spill] sm:$0xff]  ;;  %v7054_v16 = vld [vmem:[%s9286_s0 + $0x20] sm:$0xff] }
 0x142   :  { %v2036_v61 = vadd.f32 %v2035_v36, %v2000_v58  ;;  %v975_v48 = vrot.slane %v974_v17, 2  ;;  %v996_v46 = vrot.slane %v995_v8, 2  ;;  %v839_v58 = vmul.f32 %v10184_v24, %v6855_v3  ;;  %10185 = vst [vmem:[#allocation77_spill] sm:$0xff] %v7045_v13 }
 0x143   :  { %v2004_v2 = vmul.f32 %v7045_v13, %v6969_v62  ;;  %v2005_v33 = vmul.f32 %v10140_v56, %v6978_v4  ;;  %v2016_v57 = vadd.f32 %v2015_v29, %v1985_v63  ;;  %10186 = vst [vmem:[#allocation52_spill] sm:$0xff] %v7054_v16  ;;  %v824_v44 = vmul.f32 %v7054_v16, %v6870_v20  ;;  %v7063_v56 = vld [vmem:[%s9286_s0 + $0x30] sm:$0xff] }
 0x144   :  { %v2037_v36 = vadd.f32 %v2036_v61, %v2001_v1  ;;  %v976_v12 = vadd.f32 %v975_v48, %v974_v17  ;;  %v997_v30 = vadd.f32 %v996_v46, %v995_v8  ;;  %v840_v3 = vmul.f32 %v6234_v59, %v6870_v20  ;;  %10187 = vst [vmem:[#allocation31_spill] sm:$0xff] %v7063_v56  ;;  %v7072_v59 = vld [vmem:[%s9286_s0 + $0x40] sm:$0xff] }
 0x145   :  { %v2017_v24 = vadd.f32 %v2016_v57, %v1986_v15  ;;  %v825_v29 = vmul.f32 %v7063_v56, %v6879_v43  ;;  %v841_v63 = vmul.f32 %v6243_v39, %v6879_v43  ;;  %v854_v8 = vadd.f32 %v823_v6, %v822_v5  ;;  %10188 = vst [vmem:[#allocation78_spill] sm:$0xff] %v7072_v59 }
 0x146   :  { %v2038_v13 = vadd.f32 %v2037_v36, %v2002_v45  ;;  %v977_v1 = vrot.slane %v976_v12, 1  ;;  %v998_v17 = vrot.slane %v997_v30, 1  ;;  %v875_v61 = vadd.f32 %v839_v58, %v838_v14  ;;  %v7088_v14 = vld [vmem:[%s9286_s0 + $0x50] sm:$0xff] }
 0x147   :  { %v2018_v48 = vadd.f32 %v2017_v24, %v1987_v35  ;;  %v826_v20 = vmul.f32 %v7072_v59, %v6892_v51  ;;  %v842_v15 = vmul.f32 %v6252_v22, %v6892_v51  ;;  %v855_v39 = vadd.f32 %v854_v8, %v824_v44  ;;  %v7081_v35 = vld [vmem:[%s9286_s0 + $0x1e8] sm:$0xff]  ;;  %10189 = vst [vmem:[#allocation32_spill] sm:$0xff] %v7088_v14 }
 0x148   :  { %v2039_v46 = vadd.f32 %v2038_v13, %v2003_v0  ;;  %v978_v45 = vadd.f32 %v977_v1, %v976_v12  ;;  %v999_v57 = vadd.f32 %v998_v17, %v997_v30  ;;  %v876_v43 = vadd.f32 %v875_v61, %v840_v3 }
 0x149   :  { %v2006_v0 = vmul.f32 %v7081_v35, %v6983_v32  ;;  %v2019_v5 = vadd.f32 %v2018_v48, %v1988_v28  ;;  %v827_v22 = vmul.f32 %v7088_v14, %v6905_v41  ;;  %v843_v58 = vmul.f32 %v6269_v52, %v6905_v41  ;;  %v7099_v28 = vld [vmem:[%s9286_s0 + $0x1f8] sm:$0xff] }
 0x14a   :  { %v2040_v6 = vadd.f32 %v2039_v46, %v2004_v2  ;;  %v1002_v51 = vsel %vm272_vm0, %v999_v57, %v978_v45  ;;  %v856_v13 = vadd.f32 %v855_v39, %v825_v29  ;;  %v877_v36 = vadd.f32 %v876_v43, %v841_v63 }
 0x14b   :  { %v1004_v12 = vsel %vm275_vm1, %v1002_v51, 0.0  ;;  %v2007_v2 = vmul.f32 %v7099_v28, %v6998_v53  ;;  %v2020_v30 = vadd.f32 %v2019_v5, %v1989_v26  ;;  %v828_v3 = vmul.f32 %v6782_v55, %v6916_v19  ;;  %v7115_v26 = vld [vmem:[%s9286_s0 + $0x90] sm:$0xff] }
 0x14c   :  { %v2041_v44 = vadd.f32 %v2040_v6, %v2005_v33  ;;  %1005 = vadd.xlane.f32.xlu1 %v1004_v12  ;;  %v844_v52 = vmul.f32 %v6281_v38, %v6916_v19  ;;  %v857_v41 = vadd.f32 %v856_v13, %v826_v20  ;;  %v878_v24 = vadd.f32 %v877_v36, %v842_v15 }
 0x14d   :  { %v2021_v29 = vadd.f32 %v2020_v30, %v7012_v10  ;;  %v829_v1 = vmul.f32 %v6797_v40, %v6924_v42  ;;  %v830_v17 = vmul.f32 %v6804_v34, %v6929_v37  ;;  %10190 = vst [vmem:[#allocation75_spill] sm:$0xff] %v7115_v26  ;;  %v831_v33 = vmul.f32 %v7115_v26, %v6944_v60 }
 0x14e   :  { %v2042_v63 = vadd.f32 %v2041_v44, %v2006_v0  ;;  %v845_v38 = vmul.f32 %v6295_v27, %v6924_v42  ;;  %v858_v19 = vadd.f32 %v857_v41, %v827_v22  ;;  %v879_v10 = vadd.f32 %v878_v24, %v843_v58  ;;  %v10193_v22 = vld [vmem:[#allocation35_spill] sm:$0xff]  ;;  %v10194_v58 = vld [vmem:[#allocation82_spill] sm:$0xff] }
 0x14f   :  { %v2022_v8 = vadd.f32 %v2021_v29, %v7016_v31  ;;  %v832_v48 = vmul.f32 %v6831_v7, %v6949_v47  ;;  %v833_v46 = vmul.f32 %v10075_v23, %v6954_v49  ;;  %v7128_v20 = vmul.f32 %v10076_v50, %v6969_v62  ;;  %v7143_v23 = vld [vmem:[%s9287_s1 + $0x400] sm:$0xff]  ;;  %v7148_v50 = vld [vmem:[%s9287_s1 + $0x408] sm:$0xff]  ;;  %v7194_v29 = vld [vmem:[%s9286_s0 + $0x118] sm:$0xff] }
 0x150   :  { %v2043_v61 = vadd.f32 %v2042_v63, %v2007_v2  ;;  %v846_v15 = vmul.f32 %v10077_v25, %v6929_v37  ;;  %v859_v45 = vadd.f32 %v858_v19, %v828_v3  ;;  %v880_v27 = vadd.f32 %v879_v10, %v844_v52  ;;  %v10191_v25 = vld [vmem:[#allocation79_spill] sm:$0xff]  ;;  %v7187_v41 = vld [vmem:[%s9286_s0 + $0x108] sm:$0xff] }
 0x151   :  { %v2023_v42 = vrot.slane %v2022_v8, 4  ;;  %v7134_v31 = vmul.f32 %v10078_v18, %v6978_v4  ;;  %v7138_v39 = vmul.f32 %v10079_v9, %v6983_v32  ;;  %v7152_v37 = vmul.f32 %v10191_v25, %v6998_v53  ;;  %v10192_v18 = vld [vmem:[#allocation54_spill] sm:$0xff]  ;;  %v7182_v52 = vld [vmem:[%s9287_s1 + $0x418] sm:$0xff] }
 0x152   :  { %v2044_v57 = vrot.slane %v2043_v61, 4  ;;  %v847_v43 = vmul.f32 %v10192_v18, %v6944_v60  ;;  %v860_v0 = vadd.f32 %v859_v45, %v829_v1  ;;  %v881_v9 = vadd.f32 %v880_v27, %v845_v38  ;;  %v7163_v2 = vld [vmem:[%s9287_s1 + $0x410] sm:$0xff]  ;;  %v7168_v60 = vld [vmem:[%s9286_s0 + $0x8] sm:$0xff]  ;;  %v10196_v1 = vld [vmem:[#allocation36_spill] sm:$0xff] }
 0x153   :  { %v2024_v5 = vadd.f32 %v2023_v42, %v2022_v8  ;;  %v848_v51 = vmul.f32 %v10193_v22, %v6949_v47  ;;  %v849_v13 = vmul.f32 %v10194_v58, %v6954_v49  ;;  %v2178_v30 = vmul.f32 %v7168_v60, %v7143_v23  ;;  %v7175_v47 = vld [vmem:[%s9286_s0 + $0x18] sm:$0xff]  ;;  %v7205_v45 = vld [vmem:[%s9287_s1 + $0x420] sm:$0xff]  ;;  %v7210_v27 = vld [vmem:[%s9286_s0 + $0x28] sm:$0xff] }
 0x154   :  { %v2045_v6 = vadd.f32 %v2044_v57, %v2043_v61  ;;  %v861_v36 = vadd.f32 %v860_v0, %v830_v17  ;;  %v882_v12 = vadd.f32 %v881_v9, %v846_v15  ;;  %10195 = vst [vmem:[#allocation40_spill] sm:$0xff] %v7175_v47  ;;  %v2179_v49 = vmul.f32 %v7175_v47, %v7148_v50  ;;  %v10197_v38 = vld [vmem:[#allocation83_spill] sm:$0xff] }
 0x155   :  { %v2025_v44 = vrot.slane %v2024_v5, 2  ;;  %v2194_v24 = vmul.f32 %v7187_v41, %v7143_v23  ;;  %v2195_v63 = vmul.f32 %v7194_v29, %v7148_v50  ;;  %v850_v17 = vmul.f32 %v10196_v1, %v6969_v62  ;;  %v7224_v25 = vld [vmem:[%s9286_s0 + $0x38] sm:$0xff] }
 0x156   :  { %v2046_v3 = vrot.slane %v2045_v6, 2  ;;  %v851_v19 = vmul.f32 %v10197_v38, %v6978_v4  ;;  %v862_v10 = vadd.f32 %v861_v36, %v831_v33  ;;  %v883_v8 = vadd.f32 %v882_v12, %v847_v43  ;;  %v7217_v4 = vld [vmem:[%s9286_s0 + $0x128] sm:$0xff]  ;;  %10198 = vst [vmem:[#allocation76_spill] sm:$0xff] %v7224_v25  ;;  %v7231_v43 = vld [vmem:[%s9286_s0 + $0x138] sm:$0xff]  ;;  %v7260_v38 = vld [vmem:[%s9287_s1 + $0x430] sm:$0xff] }
 0x157   :  { %v2026_v61 = vadd.f32 %v2025_v44, %v2024_v5  ;;  %v2180_v62 = vmul.f32 %v7210_v27, %v7163_v2  ;;  %v2196_v33 = vmul.f32 %v7217_v4, %v7163_v2  ;;  %v2181_v18 = vmul.f32 %v7224_v25, %v7182_v52  ;;  %10199 = vst [vmem:[#allocation45_spill] sm:$0xff] %v7231_v43  ;;  %v7243_v36 = vld [vmem:[%s9286_s0 + $0x48] sm:$0xff] }
 0x158   :  { %v2047_v15 = vadd.f32 %v2046_v3, %v2045_v6  ;;  %v863_v42 = vadd.f32 %v862_v10, %v832_v48  ;;  %v884_v57 = vadd.f32 %v883_v8, %v848_v51  ;;  %v2197_v0 = vmul.f32 %v7231_v43, %v7182_v52  ;;  %v7238_v48 = vld [vmem:[%s9287_s1 + $0x428] sm:$0xff]  ;;  %10200 = vst [vmem:[#allocation81_spill] sm:$0xff] %v7243_v36  ;;  %v7265_v10 = vld [vmem:[%s9286_s0 + $0x58] sm:$0xff] }
 0x159   :  { %v2027_v9 = vrot.slane %v2026_v61, 1  ;;  %v2210_v6 = vadd.f32 %v2179_v49, %v2178_v30  ;;  %v2231_v22 = vadd.f32 %v2195_v63, %v2194_v24  ;;  %v2182_v12 = vmul.f32 %v7243_v36, %v7205_v45  ;;  %v7250_v44 = vld [vmem:[%s9286_s0 + $0x148] sm:$0xff]  ;;  %10202 = vst [vmem:[#allocation24_spill] sm:$0xff] %v7265_v10 }
 0x15a   :  { %v2048_v5 = vrot.slane %v2047_v15, 1  ;;  %v864_v51 = vadd.f32 %v863_v42, %v833_v46  ;;  %v885_v58 = vadd.f32 %v884_v57, %v849_v13  ;;  %10201 = vst [vmem:[#allocation19_spill] sm:$0xff] %v7250_v44  ;;  %v2198_v3 = vmul.f32 %v7250_v44, %v7205_v45  ;;  %v10204_v42 = vld [vmem:[#allocation86_spill] sm:$0xff]  ;;  %v7427_v44 = vld [vmem:[%s9286_s0 + $0x1b8] sm:$0xff] }
 0x15b   :  { %v2028_v30 = vadd.f32 %v2027_v9, %v2026_v61  ;;  %v2211_v46 = vadd.f32 %v2210_v6, %v2180_v62  ;;  %v2232_v13 = vadd.f32 %v2231_v22, %v2196_v33  ;;  %v852_v24 = vmul.f32 %v10101_v21, %v6983_v32  ;;  %v7273_v21 = vld [vmem:[%s9287_s1 + $0x438] sm:$0xff]  ;;  %v7278_v32 = vld [vmem:[%s9287_s1 + $0x440] sm:$0xff]  ;;  %v7289_v6 = vld [vmem:[%s9287_s1 + $0x448] sm:$0xff]  ;;  %10220 = vst [vmem:[#allocation47_spill] sm:$0xff] %v7427_v44 }
 0x15c   :  { %v2049_v49 = vadd.f32 %v2048_v5, %v2047_v15  ;;  %v865_v63 = vadd.f32 %v864_v51, %v7128_v20  ;;  %v886_v1 = vadd.f32 %v885_v58, %v850_v17  ;;  %v2183_v8 = vmul.f32 %v7265_v10, %v7238_v48  ;;  %v10203_v20 = vld [vmem:[#allocation71_spill] sm:$0xff]  ;;  %v7420_v10 = vld [vmem:[%s9286_s0 + $0x1a8] sm:$0xff] }
 0x15d   :  { %v2199_v17 = vmul.f32 %v10203_v20, %v7238_v48  ;;  %v2212_v15 = vadd.f32 %v2211_v46, %v2181_v18  ;;  %v2233_v62 = vadd.f32 %v2232_v13, %v2197_v0  ;;  %v853_v57 = vmul.f32 %v10204_v42, %v6998_v53  ;;  %v7294_v22 = vld [vmem:[%s9287_s1 + $0x450] sm:$0xff]  ;;  %v7299_v18 = vld [vmem:[%s9287_s1 + $0x458] sm:$0xff]  ;;  %v7314_v46 = vld [vmem:[%s9287_s1 + $0x460] sm:$0xff]  ;;  %10219 = vst [vmem:[#allocation56_spill] sm:$0xff] %v7420_v10 }
 0x15e   :  { %v2052_v61 = vsel %vm272_vm0, %v2049_v49, %v2028_v30  ;;  %v866_v9 = vadd.f32 %v865_v63, %v7134_v31  ;;  %v887_v5 = vadd.f32 %v886_v1, %v851_v19  ;;  %v10205_v53 = vld [vmem:[#allocation92_spill] sm:$0xff]  ;;  %v7306_v19 = vld [vmem:[%s9286_s0 + $0x168] sm:$0xff]  ;;  %v1032_v36 = vmul.f32 %v7054_v16, %v7163_v2 }
 0x15f   :  { %v2054_v33 = vsel %vm275_vm1, %v2052_v61, 0.0  ;;  %v2184_v31 = vmul.f32 %v10205_v53, %v7260_v38  ;;  %10206 = vst [vmem:[#allocation37_spill] sm:$0xff] %v7306_v19  ;;  %v2200_v0 = vmul.f32 %v7306_v19, %v7260_v38  ;;  %v2213_v51 = vadd.f32 %v2212_v15, %v2182_v12  ;;  %v7319_v13 = vld [vmem:[%s9286_s0 + $0x78] sm:$0xff]  ;;  %v7326_v12 = vld [vmem:[%s9286_s0 + $0x88] sm:$0xff] }
 0x160   :  { %2055 = vadd.xlane.f32.xlu0 %v2054_v33  ;;  %v2234_v58 = vadd.f32 %v2233_v62, %v2198_v3  ;;  %v867_v30 = vadd.f32 %v866_v9, %v7138_v39  ;;  %v888_v49 = vadd.f32 %v887_v5, %v852_v24  ;;  %10207 = vst [vmem:[#allocation84_spill] sm:$0xff] %v7319_v13  ;;  %v7333_v3 = vld [vmem:[%s9287_s1 + $0x468] sm:$0xff]  ;;  %v7338_v24 = vld [vmem:[%s9287_s1 + $0x470] sm:$0xff]  ;;  %v10209_v1 = vld [vmem:[#allocation48_spill] sm:$0xff] }
 0x161   :  { %v2185_v63 = vmul.f32 %v7319_v13, %v7273_v21  ;;  %10208 = vst [vmem:[#allocation94_spill] sm:$0xff] %v7326_v12  ;;  %v2186_v39 = vmul.f32 %v7326_v12, %v7278_v32  ;;  %v2187_v61 = vmul.f32 %v10209_v1, %v7289_v6  ;;  %v7345_v15 = vld [vmem:[%s9286_s0 + $0x178] sm:$0xff]  ;;  %v2214_v33 = vadd.f32 %v2213_v51, %v2183_v8  ;;  %v7358_v1 = vld [vmem:[%s9286_s0 + $0xa8] sm:$0xff] }
 0x162   :  { %10210 = vst [vmem:[#allocation49_spill] sm:$0xff] %v7345_v15  ;;  %v2201_v62 = vmul.f32 %v7345_v15, %v7273_v21  ;;  %v2235_v42 = vadd.f32 %v2234_v58, %v2199_v17  ;;  %v868_v9 = vadd.f32 %v867_v30, %v7152_v37  ;;  %v889_v5 = vadd.f32 %v888_v49, %v853_v57  ;;  %v7353_v12 = vld [vmem:[%s9287_s1 + $0x478] sm:$0xff]  ;;  %v7372_v17 = vld [vmem:[%s9286_s0 + $0xc8] sm:$0xff] }
 0x163   :  { %10211 = vst [vmem:[#allocation95_spill] sm:$0xff] %v7358_v1  ;;  %v2188_v13 = vmul.f32 %v7358_v1, %v7294_v22  ;;  %v7365_v8 = vld [vmem:[%s9286_s0 + $0xb8] sm:$0xff]  ;;  %v2190_v57 = vmul.f32 %v7372_v17, %v7314_v46  ;;  %v7379_v51 = vld [vmem:[%s9286_s0 + $0x188] sm:$0xff]  ;;  %v2215_v30 = vadd.f32 %v2214_v33, %v2184_v31 }
 0x164   :  { %10212 = vst [vmem:[#allocation50_spill] sm:$0xff] %v7365_v8  ;;  %v2189_v37 = vmul.f32 %v7365_v8, %v7299_v18  ;;  %v2202_v58 = vmul.f32 %v7379_v51, %v7278_v32  ;;  %v2236_v49 = vadd.f32 %v2235_v42, %v2200_v0  ;;  %v869_v1 = vrot.slane %v868_v9, 4  ;;  %v7386_v15 = vld [vmem:[%s9286_s0 + $0xd8] sm:$0xff]  ;;  %v7395_v19 = vld [vmem:[%s9286_s0 + $0xe8] sm:$0xff] }
 0x165   :  { %10213 = vst [vmem:[#allocation85_spill] sm:$0xff] %v7372_v17  ;;  %v890_v8 = vrot.slane %v889_v5, 4  ;;  %v7390_v17 = vmul.f32 %v7386_v15, %v7333_v3  ;;  %v7399_v31 = vmul.f32 %v7395_v19, %v7338_v24  ;;  %v7404_v0 = vld [vmem:[%s9286_s0 + $0xf8] sm:$0xff] }
 0x166   :  { %10214 = vst [vmem:[#allocation87_spill] sm:$0xff] %v7379_v51  ;;  %v7408_v33 = vmul.f32 %v7404_v0, %v7353_v12  ;;  %v7413_v42 = vld [vmem:[%s9286_s0 + $0x198] sm:$0xff]  ;;  %v2216_v51 = vadd.f32 %v2215_v30, %v2185_v63  ;;  %v870_v53 = vadd.f32 %v869_v1, %v868_v9  ;;  %v1030_v1 = vmul.f32 %v7027_v11, %v7143_v23  ;;  %v7438_v30 = vld [vmem:[%s9286_s0 + $0x100] sm:$0xff] }
 0x167   :  { %10215 = vst [vmem:[#allocation68_spill] sm:$0xff] %v7386_v15  ;;  %v2203_v15 = vmul.f32 %v7413_v42, %v7289_v6  ;;  %v891_v20 = vadd.f32 %v890_v8, %v889_v5  ;;  %v1031_v9 = vmul.f32 %v7034_v54, %v7148_v50  ;;  %v7454_v54 = vld [vmem:[%s9286_s0 + $0x1d8] sm:$0xff] }
 0x168   :  { %10216 = vst [vmem:[#allocation53_spill] sm:$0xff] %v7395_v19  ;;  %v2237_v19 = vadd.f32 %v2236_v49, %v2201_v62  ;;  %v2217_v63 = vadd.f32 %v2216_v51, %v2186_v39  ;;  %v871_v5 = vrot.slane %v870_v53, 2  ;;  %v1046_v49 = vmul.f32 %v7438_v30, %v7143_v23  ;;  %v10223_v51 = vld [vmem:[#allocation77_spill] sm:$0xff]  ;;  %v10279_v16 = vld [vmem:[#allocation47_spill] sm:$0xff] }
 0x169   :  { %10217 = vst [vmem:[#allocation90_spill] sm:$0xff] %v7404_v0  ;;  %v2204_v0 = vmul.f32 %v7420_v10, %v7294_v22  ;;  %v892_v8 = vrot.slane %v891_v20, 2  ;;  %v2207_v11 = vmul.f32 %v7454_v54, %v7333_v3 }
 0x16a   :  { %10218 = vst [vmem:[#allocation55_spill] sm:$0xff] %v7413_v42  ;;  %v2205_v42 = vmul.f32 %v7427_v44, %v7299_v18  ;;  %v2238_v62 = vadd.f32 %v2237_v19, %v2202_v58  ;;  %v7445_v19 = vld [vmem:[%s9286_s0 + $0x110] sm:$0xff]  ;;  %v2206_v58 = vmul.f32 %v10223_v51, %v7314_v46  ;;  %v2218_v23 = vadd.f32 %v2217_v63, %v2187_v61 }
 0x16b   :  { %10221 = vst [vmem:[#allocation18_spill] sm:$0xff] %v7438_v30  ;;  %v1047_v39 = vmul.f32 %v7445_v19, %v7148_v50  ;;  %v872_v44 = vadd.f32 %v871_v5, %v870_v53  ;;  %v893_v10 = vadd.f32 %v892_v8, %v891_v20  ;;  %v7463_v50 = vld [vmem:[%s9286_s0 + $0x120] sm:$0xff]  ;;  %v7472_v20 = vld [vmem:[%s9286_s0 + $0x130] sm:$0xff]  ;;  %v1062_v63 = vadd.f32 %v1031_v9, %v1030_v1 }
 0x16c   :  { %10222 = vst [vmem:[#allocation27_spill] sm:$0xff] %v7445_v19  ;;  %v2239_v30 = vadd.f32 %v2238_v62, %v2203_v15  ;;  %v1048_v19 = vmul.f32 %v7463_v50, %v7163_v2  ;;  %v2219_v51 = vadd.f32 %v2218_v23, %v2188_v13  ;;  %v1049_v53 = vmul.f32 %v7472_v20, %v7182_v52  ;;  %v7481_v13 = vld [vmem:[%s9286_s0 + $0x140] sm:$0xff] }
 0x16d   :  { %10224 = vst [vmem:[#allocation41_spill] sm:$0xff] %v7454_v54  ;;  %v1033_v54 = vmul.f32 %v7063_v56, %v7182_v52  ;;  %v873_v61 = vrot.slane %v872_v44, 1  ;;  %v894_v15 = vrot.slane %v893_v10, 1  ;;  %v1083_v62 = vadd.f32 %v1047_v39, %v1046_v49  ;;  %v7493_v49 = vld [vmem:[%s9286_s0 + $0x150] sm:$0xff]  ;;  %v10278_v56 = vld [vmem:[#allocation56_spill] sm:$0xff] }
 0x16e   :  { %10225 = vst [vmem:[#allocation80_spill] sm:$0xff] %v7463_v50  ;;  %v2240_v43 = vadd.f32 %v2239_v30, %v2204_v0  ;;  %v2220_v5 = vadd.f32 %v2219_v51, %v2189_v37  ;;  %v1034_v2 = vmul.f32 %v7072_v59, %v7205_v45  ;;  %v1050_v0 = vmul.f32 %v7481_v13, %v7205_v45 }
 0x16f   :  { %10226 = vst [vmem:[#allocation74_spill] sm:$0xff] %v7472_v20  ;;  %v874_v30 = vadd.f32 %v873_v61, %v872_v44  ;;  %v895_v23 = vadd.f32 %v894_v15, %v893_v10  ;;  %v1063_v52 = vadd.f32 %v1062_v63, %v1032_v36  ;;  %v1084_v20 = vadd.f32 %v1083_v62, %v1048_v19  ;;  %v7520_v15 = vld [vmem:[%s9286_s0 + $0x170] sm:$0xff] }
 0x170   :  { %v2241_v8 = vadd.f32 %v2240_v43, %v2205_v42  ;;  %10227 = vst [vmem:[#allocation29_spill] sm:$0xff] %v7481_v13  ;;  %v2208_v1 = vmul.f32 %v7081_v35, %v7338_v24  ;;  %v2221_v37 = vadd.f32 %v2220_v5, %v2190_v57  ;;  %v1035_v42 = vmul.f32 %v7088_v14, %v7238_v48 }
 0x171   :  { %v898_v9 = vsel %vm272_vm0, %v895_v23, %v874_v30  ;;  %10228 = vst [vmem:[#allocation39_spill] sm:$0xff] %v7493_v49  ;;  %v1051_v45 = vmul.f32 %v7493_v49, %v7238_v48  ;;  %v1064_v36 = vadd.f32 %v1063_v52, %v1033_v54  ;;  %v1085_v44 = vadd.f32 %v1084_v20, %v1049_v53 }
 0x172   :  { %v2242_v43 = vadd.f32 %v2241_v8, %v2206_v58  ;;  %v900_v10 = vsel %vm275_vm1, %v898_v9, 0.0  ;;  %v2209_v57 = vmul.f32 %v7099_v28, %v7353_v12  ;;  %v2222_v19 = vadd.f32 %v2221_v37, %v7390_v17  ;;  %v7506_v58 = vld [vmem:[%s9286_s0 + $0x160] sm:$0xff]  ;;  %10230 = vst [vmem:[#allocation60_spill] sm:$0xff] %v7520_v15 }
 0x173   :  { %901 = vadd.xlane.f32.xlu2 %v900_v10  ;;  %v1036_v51 = vmul.f32 %v6782_v55, %v7260_v38  ;;  %10229 = vst [vmem:[#allocation16_spill] sm:$0xff] %v7506_v58  ;;  %v1052_v54 = vmul.f32 %v7506_v58, %v7260_v38  ;;  %v1065_v48 = vadd.f32 %v1064_v36, %v1034_v2 }
 0x174   :  { %v2243_v39 = vadd.f32 %v2242_v43, %v2207_v11  ;;  %v1086_v20 = vadd.f32 %v1085_v44, %v1050_v0  ;;  %v2223_v53 = vadd.f32 %v2222_v19, %v7399_v31  ;;  %v1037_v11 = vmul.f32 %v6797_v40, %v7273_v21  ;;  %v7558_v43 = vld [vmem:[%s9286_s0 + $0xe0] sm:$0xff] }
 0x175   :  { %v1038_v17 = vmul.f32 %v6804_v34, %v7278_v32  ;;  %v1039_v55 = vmul.f32 %v7115_v26, %v7289_v6  ;;  %v1053_v38 = vmul.f32 %v7520_v15, %v7273_v21  ;;  %v1066_v63 = vadd.f32 %v1065_v48, %v1035_v42  ;;  %v7530_v34 = vld [vmem:[%s9286_s0 + $0xb0] sm:$0xff]  ;;  %v7537_v21 = vld [vmem:[%s9286_s0 + $0xc0] sm:$0xff] }
 0x176   :  { %v2244_v61 = vadd.f32 %v2243_v39, %v2208_v1  ;;  %v1087_v31 = vadd.f32 %v1086_v20, %v1051_v45  ;;  %v2224_v62 = vadd.f32 %v2223_v53, %v7408_v33  ;;  %v1040_v40 = vmul.f32 %v6831_v7, %v7294_v22  ;;  %10231 = vst [vmem:[#allocation61_spill] sm:$0xff] %v7530_v34  ;;  %v7544_v7 = vld [vmem:[%s9286_s0 + $0x180] sm:$0xff]  ;;  %v7551_v1 = vld [vmem:[%s9286_s0 + $0xd0] sm:$0xff] }
 0x177   :  { %v1041_v8 = vmul.f32 %v7530_v34, %v7299_v18  ;;  %10232 = vst [vmem:[#allocation12_spill] sm:$0xff] %v7537_v21  ;;  %v1042_v33 = vmul.f32 %v7537_v21, %v7314_v46  ;;  %v1054_v2 = vmul.f32 %v7544_v7, %v7278_v32  ;;  %v1067_v0 = vadd.f32 %v1066_v63, %v1036_v51  ;;  %v7567_v42 = vld [vmem:[%s9286_s0 + $0xf0] sm:$0xff]  ;;  %v7583_v39 = vld [vmem:[%s9286_s0 + $0x1a0] sm:$0xff] }
 0x178   :  { %v2245_v5 = vadd.f32 %v2244_v61, %v2209_v57  ;;  %10233 = vst [vmem:[#allocation15_spill] sm:$0xff] %v7544_v7  ;;  %v1088_v30 = vadd.f32 %v1087_v31, %v1052_v54  ;;  %v2225_v23 = vrot.slane %v2224_v62, 4  ;;  %v1043_v37 = vmul.f32 %v7551_v1, %v7333_v3  ;;  %v7576_v45 = vld [vmem:[%s9286_s0 + $0x190] sm:$0xff]  ;;  %v10239_v53 = vld [vmem:[#allocation57_spill] sm:$0xff] }
 0x179   :  { %10234 = vst [vmem:[#allocation64_spill] sm:$0xff] %v7551_v1  ;;  %v7562_v32 = vmul.f32 %v7558_v43, %v7338_v24  ;;  %v7571_v9 = vmul.f32 %v7567_v42, %v7353_v12  ;;  %v1055_v36 = vmul.f32 %v7576_v45, %v7289_v6  ;;  %v1068_v44 = vadd.f32 %v1067_v0, %v1037_v11  ;;  %v7590_v54 = vld [vmem:[%s9286_s0 + $0x1b0] sm:$0xff] }
 0x17a   :  { %v2246_v52 = vrot.slane %v2245_v5, 4  ;;  %10235 = vst [vmem:[#allocation14_spill] sm:$0xff] %v7567_v42  ;;  %v1089_v10 = vadd.f32 %v1088_v30, %v1053_v38  ;;  %v2226_v57 = vadd.f32 %v2225_v23, %v2224_v62  ;;  %v1056_v51 = vmul.f32 %v7583_v39, %v7294_v22  ;;  %v10240_v11 = vld [vmem:[#allocation38_spill] sm:$0xff]  ;;  %v10244_v42 = vld [vmem:[#allocation43_spill] sm:$0xff] }
 0x17b   :  { %10236 = vst [vmem:[#allocation17_spill] sm:$0xff] %v7576_v45  ;;  %v1057_v6 = vmul.f32 %v7590_v54, %v7299_v18  ;;  %v1069_v48 = vadd.f32 %v1068_v44, %v1038_v17  ;;  %v2077_v61 = vmul.f32 %v7168_v60, %v10239_v53  ;;  %v2078_v38 = vmul.f32 %v7175_v47, %v10240_v11  ;;  %v7605_v18 = vld [vmem:[%s9286_s0 + $0x1c0] sm:$0xff]  ;;  %v10270_v45 = vld [vmem:[#allocation87_spill] sm:$0xff] }
 0x17c   :  { %v2247_v19 = vadd.f32 %v2246_v52, %v2245_v5  ;;  %10237 = vst [vmem:[#allocation42_spill] sm:$0xff] %v7583_v39  ;;  %v1090_v20 = vadd.f32 %v1089_v10, %v1054_v2  ;;  %v2227_v63 = vrot.slane %v2226_v57, 2  ;;  %v2093_v22 = vmul.f32 %v7187_v41, %v10239_v53  ;;  %v7612_v5 = vld [vmem:[%s9286_s0 + $0x1d0] sm:$0xff]  ;;  %v10243_v44 = vld [vmem:[#allocation88_spill] sm:$0xff] }
 0x17d   :  { %10238 = vst [vmem:[#allocation20_spill] sm:$0xff] %v7590_v54  ;;  %v2094_v62 = vmul.f32 %v7194_v29, %v10240_v11  ;;  %v1058_v17 = vmul.f32 %v7605_v18, %v7314_v46  ;;  %v1059_v2 = vmul.f32 %v7612_v5, %v7333_v3  ;;  %v1070_v0 = vadd.f32 %v1069_v48, %v1039_v55  ;;  %v10246_v48 = vld [vmem:[#allocation89_spill] sm:$0xff] }
 0x17e   :  { %v2248_v31 = vrot.slane %v2247_v19, 2  ;;  %10241 = vst [vmem:[#allocation67_spill] sm:$0xff] %v7605_v18  ;;  %v1091_v30 = vadd.f32 %v1090_v20, %v1055_v36  ;;  %v2228_v23 = vadd.f32 %v2227_v63, %v2226_v57  ;;  %v2079_v10 = vmul.f32 %v7210_v27, %v10243_v44  ;;  %v10245_v18 = vld [vmem:[#allocation45_spill] sm:$0xff] }
 0x17f   :  { %10242 = vst [vmem:[#allocation21_spill] sm:$0xff] %v7612_v5  ;;  %v2095_v53 = vmul.f32 %v7217_v4, %v10243_v44  ;;  %v1071_v11 = vadd.f32 %v1070_v0, %v1040_v40  ;;  %v2080_v1 = vmul.f32 %v7224_v25, %v10244_v42  ;;  %v2096_v21 = vmul.f32 %v10245_v18, %v10244_v42  ;;  %v10247_v20 = vld [vmem:[#allocation81_spill] sm:$0xff] }
 0x180   :  { %v2249_v52 = vadd.f32 %v2248_v31, %v2247_v19  ;;  %v1092_v46 = vadd.f32 %v1091_v30, %v1056_v51  ;;  %v2229_v54 = vrot.slane %v2228_v23, 1  ;;  %v2109_v55 = vadd.f32 %v2078_v38, %v2077_v61  ;;  %v10248_v31 = vld [vmem:[#allocation19_spill] sm:$0xff]  ;;  %v7631_v42 = vld [vmem:[%s9286_s0 + $0x1e0] sm:$0xff]  ;;  %v10250_v38 = vld [vmem:[#allocation46_spill] sm:$0xff] }
 0x181   :  { %v2130_v36 = vadd.f32 %v2094_v62, %v2093_v22  ;;  %v1072_v57 = vadd.f32 %v1071_v11, %v1041_v8  ;;  %v2081_v63 = vmul.f32 %v10247_v20, %v10246_v48  ;;  %v2097_v44 = vmul.f32 %v10248_v31, %v10246_v48  ;;  %10249 = vst [vmem:[#allocation22_spill] sm:$0xff] %v7631_v42  ;;  %v10251_v22 = vld [vmem:[#allocation24_spill] sm:$0xff]  ;;  %v10269_v5 = vld [vmem:[#allocation85_spill] sm:$0xff] }
 0x182   :  { %v2250_v3 = vrot.slane %v2249_v52, 1  ;;  %v1093_v19 = vadd.f32 %v1092_v46, %v1057_v6  ;;  %v2230_v40 = vadd.f32 %v2229_v54, %v2228_v23  ;;  %v2110_v0 = vadd.f32 %v2109_v55, %v2079_v10  ;;  %v10252_v54 = vld [vmem:[#allocation71_spill] sm:$0xff]  ;;  %v10255_v55 = vld [vmem:[#allocation92_spill] sm:$0xff] }
 0x183   :  { %v2131_v30 = vadd.f32 %v2130_v36, %v2095_v53  ;;  %v1060_v61 = vmul.f32 %v7631_v42, %v7338_v24  ;;  %v1073_v8 = vadd.f32 %v1072_v57, %v1042_v33  ;;  %v2082_v62 = vmul.f32 %v10251_v22, %v10250_v38  ;;  %v7644_v46 = vld [vmem:[%s9286_s0 + $0x1f0] sm:$0xff]  ;;  %v10256_v57 = vld [vmem:[#allocation37_spill] sm:$0xff] }
 0x184   :  { %v2251_v51 = vadd.f32 %v2250_v3, %v2249_v52  ;;  %v1094_v6 = vadd.f32 %v1093_v19, %v1058_v17  ;;  %v2098_v23 = vmul.f32 %v10252_v54, %v10250_v38  ;;  %v2111_v52 = vadd.f32 %v2110_v0, %v2080_v1  ;;  %10253 = vst [vmem:[#allocation23_spill] sm:$0xff] %v7644_v46  ;;  %v10254_v3 = vld [vmem:[#allocation91_spill] sm:$0xff]  ;;  %v10258_v0 = vld [vmem:[#allocation84_spill] sm:$0xff]  ;;  %v10259_v38 = vld [vmem:[#allocation93_spill] sm:$0xff] }
 0x185   :  { %v2132_v10 = vadd.f32 %v2131_v30, %v2096_v21  ;;  %v1061_v24 = vmul.f32 %v7644_v46, %v7353_v12  ;;  %v1074_v33 = vadd.f32 %v1073_v8, %v1043_v37  ;;  %v2083_v36 = vmul.f32 %v10255_v55, %v10254_v3  ;;  %v10261_v37 = vld [vmem:[#allocation59_spill] sm:$0xff] }
 0x186   :  { %v2254_v11 = vsel %vm272_vm0, %v2251_v51, %v2230_v40  ;;  %v1095_v17 = vadd.f32 %v1094_v6, %v1059_v2  ;;  %v2099_v1 = vmul.f32 %v10256_v57, %v10254_v3  ;;  %v2112_v21 = vadd.f32 %v2111_v52, %v2081_v63  ;;  %v10257_v51 = vld [vmem:[#allocation58_spill] sm:$0xff]  ;;  %v10262_v2 = vld [vmem:[#allocation48_spill] sm:$0xff]  ;;  %v10263_v6 = vld [vmem:[#allocation49_spill] sm:$0xff] }
 0x187   :  { %v2256_v53 = vsel %vm275_vm1, %v2254_v11, 0.0  ;;  %v2133_v19 = vadd.f32 %v2132_v10, %v2097_v44  ;;  %v1075_v48 = vadd.f32 %v1074_v33, %v7562_v32  ;;  %v2084_v30 = vmul.f32 %v10258_v0, %v10257_v51  ;;  %v10260_v11 = vld [vmem:[#allocation94_spill] sm:$0xff]  ;;  %v10264_v52 = vld [vmem:[#allocation65_spill] sm:$0xff]  ;;  %v10265_v32 = vld [vmem:[#allocation95_spill] sm:$0xff] }
 0x188   :  { %2257 = vadd.xlane.f32.xlu1 %v2256_v53  ;;  %v1096_v40 = vadd.f32 %v1095_v17, %v1060_v61  ;;  %v2085_v12 = vmul.f32 %v10260_v11, %v10259_v38  ;;  %v2086_v8 = vmul.f32 %v10262_v2, %v10261_v37  ;;  %v2100_v53 = vmul.f32 %v10263_v6, %v10257_v51  ;;  %v10266_v10 = vld [vmem:[#allocation66_spill] sm:$0xff] }
 0x189   :  { %v2113_v46 = vadd.f32 %v2112_v21, %v2082_v62  ;;  %v2134_v42 = vadd.f32 %v2133_v19, %v2098_v23  ;;  %v1076_v63 = vadd.f32 %v1075_v48, %v7571_v9  ;;  %v2087_v61 = vmul.f32 %v10265_v32, %v10264_v52  ;;  %v10267_v33 = vld [vmem:[#allocation50_spill] sm:$0xff]  ;;  %v10271_v23 = vld [vmem:[#allocation63_spill] sm:$0xff]  ;;  %v10272_v21 = vld [vmem:[#allocation68_spill] sm:$0xff] }
 0x18a   :  { %v1097_v44 = vadd.f32 %v1096_v40, %v1061_v24  ;;  %v2088_v17 = vmul.f32 %v10267_v33, %v10266_v10  ;;  %v10268_v3 = vld [vmem:[#allocation62_spill] sm:$0xff]  ;;  %v2101_v26 = vmul.f32 %v10270_v45, %v10259_v38  ;;  %v7672_v9 = vmul.f32 %v10272_v21, %v10271_v23  ;;  %v10273_v24 = vld [vmem:[#allocation69_spill] sm:$0xff]  ;;  %v10277_v38 = vld [vmem:[#allocation55_spill] sm:$0xff] }
 0x18b   :  { %v2089_v39 = vmul.f32 %v10269_v5, %v10268_v3  ;;  %v2114_v7 = vadd.f32 %v2113_v46, %v2083_v36  ;;  %v2135_v15 = vadd.f32 %v2134_v42, %v2099_v1  ;;  %v1077_v51 = vrot.slane %v1076_v63, 4  ;;  %v10274_v19 = vld [vmem:[#allocation53_spill] sm:$0xff]  ;;  %v10275_v42 = vld [vmem:[#allocation34_spill] sm:$0xff] }
 0x18c   :  { %v1098_v62 = vrot.slane %v1097_v44, 4  ;;  %v7676_v48 = vmul.f32 %v10274_v19, %v10273_v24  ;;  %v7681_v40 = vld [vmem:[%s9287_s1 + $0x480] sm:$0xff]  ;;  %v7686_v46 = vld [vmem:[%s9287_s1 + $0x488] sm:$0xff]  ;;  %v2102_v58 = vmul.f32 %v10277_v38, %v10261_v37  ;;  %v2103_v50 = vmul.f32 %v10278_v56, %v10264_v52 }
 0x18d   :  { %v10276_v36 = vld [vmem:[#allocation90_spill] sm:$0xff]  ;;  %v2115_v49 = vadd.f32 %v2114_v7, %v2084_v30  ;;  %v2136_v14 = vadd.f32 %v2135_v15, %v2100_v53  ;;  %v1078_v13 = vadd.f32 %v1077_v51, %v1076_v63  ;;  %v2104_v19 = vmul.f32 %v10279_v16, %v10266_v10 }
 0x18e   :  { %v7690_v1 = vmul.f32 %v10276_v36, %v10275_v42  ;;  %v1099_v59 = vadd.f32 %v1098_v62, %v1097_v44  ;;  %v7702_v36 = vld [vmem:[%s9287_s1 + $0x490] sm:$0xff]  ;;  %v2279_v15 = vmul.f32 %v7168_v60, %v7681_v40  ;;  %v2280_v7 = vmul.f32 %v7175_v47, %v7686_v46  ;;  %v10281_v60 = vld [vmem:[#allocation41_spill] sm:$0xff] }
 0x18f   :  { %v2116_v21 = vadd.f32 %v2115_v49, %v2085_v12  ;;  %v2137_v45 = vadd.f32 %v2136_v14, %v2101_v26  ;;  %v1079_v30 = vrot.slane %v1078_v13, 2  ;;  %v7711_v49 = vld [vmem:[%s9287_s1 + $0x498] sm:$0xff]  ;;  %v2295_v14 = vmul.f32 %v7187_v41, %v7681_v40  ;;  %v10280_v12 = vld [vmem:[#allocation77_spill] sm:$0xff] }
 0x190   :  { %106 = vadd.xlane.f32.xlu1 %v7530_v34  ;;  %v1100_v37 = vrot.slane %v1099_v59, 2  ;;  %v2296_v26 = vmul.f32 %v7194_v29, %v7686_v46  ;;  %v2105_v53 = vmul.f32 %v10280_v12, %v10268_v3  ;;  %v2106_v63 = vmul.f32 %v10281_v60, %v10271_v23  ;;  %v7724_v62 = vld [vmem:[%s9287_s1 + $0x4a0] sm:$0xff] }
 0x191   :  { %v2117_v44 = vadd.f32 %v2116_v21, %v2086_v8  ;;  %v2138_v52 = vadd.f32 %v2137_v45, %v2102_v58  ;;  %v1080_v10 = vadd.f32 %v1079_v30, %v1078_v13  ;;  %v2281_v41 = vmul.f32 %v7210_v27, %v7702_v36  ;;  %v7737_v45 = vld [vmem:[%s9287_s1 + $0x4a8] sm:$0xff] }
 0x192   :  { %v1101_v51 = vadd.f32 %v1100_v37, %v1099_v59  ;;  %v2297_v29 = vmul.f32 %v7217_v4, %v7702_v36  ;;  %v2282_v23 = vmul.f32 %v7224_v25, %v7711_v49  ;;  %v2298_v13 = vmul.f32 %v10245_v18, %v7711_v49 }
 0x193   :  { %v2118_v47 = vadd.f32 %v2117_v44, %v2087_v61  ;;  %v2139_v3 = vadd.f32 %v2138_v52, %v2103_v50  ;;  %v1081_v59 = vrot.slane %v1080_v10, 1  ;;  %v2311_v8 = vadd.f32 %v2280_v7, %v2279_v15 }
 0x194   :  { %v1102_v58 = vrot.slane %v1101_v51, 1  ;;  %v2332_v27 = vadd.f32 %v2296_v26, %v2295_v14  ;;  %v2283_v4 = vmul.f32 %v10247_v20, %v7724_v62  ;;  %v2299_v50 = vmul.f32 %v10248_v31, %v7724_v62 }
 0x195   :  { %v2119_v21 = vadd.f32 %v2118_v47, %v2088_v17  ;;  %v2140_v30 = vadd.f32 %v2139_v3, %v2104_v19  ;;  %v1082_v61 = vadd.f32 %v1081_v59, %v1080_v10  ;;  %v2312_v18 = vadd.f32 %v2311_v8, %v2281_v41  ;;  %v7748_v47 = vld [vmem:[%s9287_s1 + $0x4b0] sm:$0xff]  ;;  %v7757_v17 = vld [vmem:[%s9287_s1 + $0x4b8] sm:$0xff]  ;;  %v7793_v41 = vld [vmem:[%s9287_s1 + $0x4e0] sm:$0xff] }
 0x196   :  { %v1103_v37 = vadd.f32 %v1102_v58, %v1101_v51  ;;  %v2333_v44 = vadd.f32 %v2332_v27, %v2297_v29  ;;  %v2107_v52 = vmul.f32 %v7081_v35, %v10273_v24  ;;  %v2284_v20 = vmul.f32 %v10251_v22, %v7737_v45  ;;  %v7783_v10 = vld [vmem:[%s9287_s1 + $0x4d8] sm:$0xff] }
 0x197   :  { %v2120_v25 = vadd.f32 %v2119_v21, %v2089_v39  ;;  %v2141_v34 = vadd.f32 %v2140_v30, %v2105_v53  ;;  %v7762_v39 = vld [vmem:[%s9287_s1 + $0x4c0] sm:$0xff]  ;;  %v2300_v24 = vmul.f32 %v10252_v54, %v7737_v45  ;;  %v2313_v19 = vadd.f32 %v2312_v18, %v2282_v23  ;;  %v7773_v53 = vld [vmem:[%s9287_s1 + $0x4c8] sm:$0xff]  ;;  %v7778_v54 = vld [vmem:[%s9287_s1 + $0x4d0] sm:$0xff] }
 0x198   :  { %112 = vadd.xlane.f32.xlu1 %v7558_v43  ;;  %v1106_v31 = vsel %vm272_vm0, %v1103_v37, %v1082_v61  ;;  %v2334_v15 = vadd.f32 %v2333_v44, %v2298_v13  ;;  %v2108_v7 = vmul.f32 %v7099_v28, %v10275_v42  ;;  %v2286_v29 = vmul.f32 %v10258_v0, %v7757_v17  ;;  %v7817_v8 = vld [vmem:[%s9287_s1 + $0x4f8] sm:$0xff]  ;;  %v10284_v44 = vld [vmem:[#allocation53_spill] sm:$0xff] }
 0x199   :  { %v1108_v22 = vsel %vm275_vm1, %v1106_v31, 0.0  ;;  %v2121_v14 = vadd.f32 %v2120_v25, %v7672_v9  ;;  %v2142_v26 = vadd.f32 %v2141_v34, %v2106_v63  ;;  %v2285_v25 = vmul.f32 %v10255_v55, %v7748_v47  ;;  %v7802_v55 = vld [vmem:[%s9287_s1 + $0x4e8] sm:$0xff]  ;;  %v10283_v37 = vld [vmem:[#allocation68_spill] sm:$0xff] }
 0x19a   :  { %1109 = vadd.xlane.f32.xlu0 %v1108_v22  ;;  %v2301_v34 = vmul.f32 %v10256_v57, %v7748_v47  ;;  %v2314_v9 = vadd.f32 %v2313_v19, %v2283_v4  ;;  %v2335_v42 = vadd.f32 %v2334_v15, %v2299_v50  ;;  %v2287_v3 = vmul.f32 %v10260_v11, %v7762_v39  ;;  %v7807_v57 = vld [vmem:[%s9287_s1 + $0x4f0] sm:$0xff] }
 0x19b   :  { %v2122_v63 = vadd.f32 %v2121_v14, %v7676_v48  ;;  %v2143_v51 = vadd.f32 %v2142_v26, %v2107_v52  ;;  %v2288_v48 = vmul.f32 %v10262_v2, %v7773_v53  ;;  %v2302_v23 = vmul.f32 %v10263_v6, %v7757_v17  ;;  %v10282_v6 = vld [vmem:[#allocation87_spill] sm:$0xff] }
 0x19c   :  { %v2315_v0 = vadd.f32 %v2314_v9, %v2284_v20  ;;  %v2336_v13 = vadd.f32 %v2335_v42, %v2300_v24  ;;  %v2289_v27 = vmul.f32 %v10265_v32, %v7778_v54  ;;  %v2290_v21 = vmul.f32 %v10267_v33, %v7783_v10  ;;  %v10285_v32 = vld [vmem:[#allocation27_spill] sm:$0xff]  ;;  %v10286_v20 = vld [vmem:[#allocation90_spill] sm:$0xff]  ;;  %v10288_v42 = vld [vmem:[#allocation13_spill] sm:$0xff] }
 0x19d   :  { %v2123_v59 = vadd.f32 %v2122_v63, %v7690_v1  ;;  %v2144_v58 = vadd.f32 %v2143_v51, %v2108_v7  ;;  %v2291_v2 = vmul.f32 %v10269_v5, %v7793_v41  ;;  %v2303_v30 = vmul.f32 %v10282_v6, %v7762_v39  ;;  %v10290_v6 = vld [vmem:[#allocation52_spill] sm:$0xff] }
 0x19e   :  { %v2316_v4 = vadd.f32 %v2315_v0, %v2285_v25  ;;  %v2337_v1 = vadd.f32 %v2336_v13, %v2301_v34  ;;  %v2292_v18 = vmul.f32 %v10283_v37, %v7802_v55  ;;  %v2293_v52 = vmul.f32 %v10284_v44, %v7807_v57  ;;  %v10287_v34 = vld [vmem:[#allocation30_spill] sm:$0xff] }
 0x19f   :  { %v2124_v50 = vrot.slane %v2123_v59, 4  ;;  %v2145_v61 = vrot.slane %v2144_v58, 4  ;;  %v7834_v31 = vmul.f32 %v10286_v20, %v7817_v8  ;;  %v2304_v5 = vmul.f32 %v10277_v38, %v7773_v53 }
 0x1a0   :  { %118 = vadd.xlane.f32.xlu1 %v10285_v32  ;;  %v2317_v24 = vadd.f32 %v2316_v4, %v2286_v29  ;;  %v2338_v19 = vadd.f32 %v2337_v1, %v2302_v23  ;;  %v2305_v7 = vmul.f32 %v10278_v56, %v7778_v54  ;;  %v2306_v14 = vmul.f32 %v10279_v16, %v7783_v10  ;;  %v10289_v29 = vld [vmem:[#allocation18_spill] sm:$0xff]  ;;  %v10291_v4 = vld [vmem:[#allocation80_spill] sm:$0xff] }
 0x1a1   :  { %v2125_v15 = vadd.f32 %v2124_v50, %v2123_v59  ;;  %v2146_v22 = vadd.f32 %v2145_v61, %v2144_v58  ;;  %v1134_v9 = vmul.f32 %v10287_v34, %v7681_v40  ;;  %v1135_v63 = vmul.f32 %v10288_v42, %v7686_v46 }
 0x1a2   :  { %v2318_v26 = vadd.f32 %v2317_v24, %v2287_v3  ;;  %v2339_v25 = vadd.f32 %v2338_v19, %v2303_v30  ;;  %v1150_v23 = vmul.f32 %v10289_v29, %v7681_v40  ;;  %v1151_v0 = vmul.f32 %v10285_v32, %v7686_v46  ;;  %v10292_v46 = vld [vmem:[#allocation31_spill] sm:$0xff]  ;;  %v10294_v24 = vld [vmem:[#allocation78_spill] sm:$0xff] }
 0x1a3   :  { %v2126_v51 = vrot.slane %v2125_v15, 2  ;;  %v2147_v38 = vrot.slane %v2146_v22, 2  ;;  %v2307_v56 = vmul.f32 %v10280_v12, %v7793_v41  ;;  %v2308_v16 = vmul.f32 %v10281_v60, %v7802_v55  ;;  %v10293_v12 = vld [vmem:[#allocation74_spill] sm:$0xff] }
 0x1a4   :  { %v2319_v3 = vadd.f32 %v2318_v26, %v2288_v48  ;;  %v2340_v13 = vadd.f32 %v2339_v25, %v2304_v5  ;;  %v1136_v30 = vmul.f32 %v10290_v6, %v7702_v36  ;;  %v1152_v1 = vmul.f32 %v10291_v4, %v7702_v36  ;;  %v10295_v36 = vld [vmem:[#allocation29_spill] sm:$0xff] }
 0x1a5   :  { %v2127_v59 = vadd.f32 %v2126_v51, %v2125_v15  ;;  %v2148_v58 = vadd.f32 %v2147_v38, %v2146_v22  ;;  %v1137_v61 = vmul.f32 %v10292_v46, %v7711_v49  ;;  %v1153_v37 = vmul.f32 %v10293_v12, %v7711_v49 }
 0x1a6   :  { %v2320_v40 = vadd.f32 %v2319_v3, %v2289_v27  ;;  %v2341_v50 = vadd.f32 %v2340_v13, %v2305_v7  ;;  %v1166_v48 = vadd.f32 %v1135_v63, %v1134_v9  ;;  %v1187_v32 = vadd.f32 %v1151_v0, %v1150_v23  ;;  %v10296_v9 = vld [vmem:[#allocation32_spill] sm:$0xff] }
 0x1a7   :  { %v2128_v44 = vrot.slane %v2127_v59, 1  ;;  %v2149_v60 = vrot.slane %v2148_v58, 1  ;;  %v1138_v19 = vmul.f32 %v10294_v24, %v7724_v62  ;;  %v1154_v27 = vmul.f32 %v10295_v36, %v7724_v62 }
 0x1a8   :  { %122 = vadd.xlane.f32.xlu1 %v10293_v12  ;;  %v2321_v20 = vadd.f32 %v2320_v40, %v2290_v21  ;;  %v2342_v5 = vadd.f32 %v2341_v50, %v2306_v14  ;;  %v1167_v7 = vadd.f32 %v1166_v48, %v1136_v30  ;;  %v1188_v26 = vadd.f32 %v1187_v32, %v1152_v1  ;;  %v10297_v14 = vld [vmem:[#allocation39_spill] sm:$0xff] }
 0x1a9   :  { %v2129_v15 = vadd.f32 %v2128_v44, %v2127_v59  ;;  %v2150_v22 = vadd.f32 %v2149_v60, %v2148_v58  ;;  %v2309_v49 = vmul.f32 %v7081_v35, %v7807_v57  ;;  %v1139_v42 = vmul.f32 %v10296_v9, %v7737_v45  ;;  %v4462_v35 = vld [vmem:[%s9286_s0 + $0x60] sm:$0xff]  ;;  %v10301_v48 = vld [vmem:[#allocation75_spill] sm:$0xff] }
 0x1aa   :  { %v2322_v25 = vadd.f32 %v2321_v20, %v2291_v2  ;;  %v2343_v34 = vadd.f32 %v2342_v5, %v2307_v56  ;;  %v1155_v63 = vmul.f32 %v10297_v14, %v7737_v45  ;;  %v1168_v51 = vadd.f32 %v1167_v7, %v1137_v61  ;;  %v10298_v56 = vld [vmem:[#allocation16_spill] sm:$0xff]  ;;  %v10300_v61 = vld [vmem:[#allocation15_spill] sm:$0xff]  ;;  %v10302_v20 = vld [vmem:[#allocation17_spill] sm:$0xff] }
 0x1ab   :  { %v2153_v21 = vsel %vm272_vm0, %v2150_v22, %v2129_v15  ;;  %v1189_v38 = vadd.f32 %v1188_v26, %v1153_v37  ;;  %v2310_v23 = vmul.f32 %v7099_v28, %v7817_v8  ;;  %v1140_v2 = vmul.f32 %v4462_v35, %v7748_v47  ;;  %v4463_v28 = vld [vmem:[%s9286_s0 + $0x70] sm:$0xff]  ;;  %v4465_v15 = vld [vmem:[%s9286_s0 + $0xa0] sm:$0xff] }
 0x1ac   :  { %v2155_v62 = vsel %vm275_vm1, %v2153_v21, 0.0  ;;  %v2323_v0 = vadd.f32 %v2322_v25, %v2292_v18  ;;  %v2344_v3 = vadd.f32 %v2343_v34, %v2308_v16  ;;  %v1156_v13 = vmul.f32 %v10298_v56, %v7748_v47  ;;  %v10299_v16 = vld [vmem:[#allocation60_spill] sm:$0xff]  ;;  %v10303_v22 = vld [vmem:[#allocation42_spill] sm:$0xff]  ;;  %v10304_v9 = vld [vmem:[#allocation61_spill] sm:$0xff] }
 0x1ad   :  { %2156 = vadd.xlane.f32.xlu2 %v2155_v62  ;;  %v1169_v45 = vadd.f32 %v1168_v51, %v1138_v19  ;;  %v1190_v59 = vadd.f32 %v1189_v38, %v1154_v27  ;;  %v1141_v18 = vmul.f32 %v4463_v28, %v7757_v17  ;;  %v1157_v30 = vmul.f32 %v10299_v16, %v7757_v17  ;;  %v10306_v62 = vld [vmem:[#allocation12_spill] sm:$0xff] }
 0x1ae   :  { %v2324_v58 = vadd.f32 %v2323_v0, %v2293_v52  ;;  %v2345_v6 = vadd.f32 %v2344_v3, %v2309_v49  ;;  %v4464_v52 = vld [vmem:[%s9286_s0 + $0x80] sm:$0xff]  ;;  %v1158_v12 = vmul.f32 %v10300_v61, %v7762_v39  ;;  %v1143_v32 = vmul.f32 %v10301_v48, %v7773_v53 }
 0x1af   :  { %v1170_v1 = vadd.f32 %v1169_v45, %v1139_v42  ;;  %v1191_v40 = vadd.f32 %v1190_v59, %v1155_v63  ;;  %v1142_v46 = vmul.f32 %v4464_v52, %v7762_v39  ;;  %v1144_v39 = vmul.f32 %v4465_v15, %v7778_v54  ;;  %v10305_v42 = vld [vmem:[#allocation20_spill] sm:$0xff]  ;;  %v10311_v52 = vld [vmem:[#allocation14_spill] sm:$0xff] }
 0x1b0   :  { %126 = vadd.xlane.f32.xlu1 %v10297_v14  ;;  %v2325_v50 = vadd.f32 %v2324_v58, %v7834_v31  ;;  %v2346_v47 = vadd.f32 %v2345_v6, %v2310_v23  ;;  %v1159_v31 = vmul.f32 %v10302_v20, %v7773_v53  ;;  %v1160_v7 = vmul.f32 %v10303_v22, %v7778_v54  ;;  %v10307_v54 = vld [vmem:[#allocation67_spill] sm:$0xff]  ;;  %v10308_v45 = vld [vmem:[#allocation64_spill] sm:$0xff] }
 0x1b1   :  { %v1171_v37 = vadd.f32 %v1170_v1, %v1140_v2  ;;  %v1192_v44 = vadd.f32 %v1191_v40, %v1156_v13  ;;  %v1145_v53 = vmul.f32 %v10304_v9, %v7783_v10  ;;  %v1161_v21 = vmul.f32 %v10305_v42, %v7783_v10  ;;  %v10309_v10 = vld [vmem:[#allocation21_spill] sm:$0xff]  ;;  %v10310_v1 = vld [vmem:[#allocation22_spill] sm:$0xff] }
 0x1b2   :  { %v2326_v60 = vrot.slane %v2325_v50, 4  ;;  %v2347_v17 = vrot.slane %v2346_v47, 4  ;;  %v1146_v23 = vmul.f32 %v10306_v62, %v7793_v41  ;;  %v1162_v0 = vmul.f32 %v10307_v54, %v7793_v41 }
 0x1b3   :  { %v1172_v5 = vadd.f32 %v1171_v37, %v1141_v18  ;;  %v1193_v24 = vadd.f32 %v1192_v44, %v1157_v30  ;;  %v1147_v59 = vmul.f32 %v10308_v45, %v7802_v55  ;;  %v1163_v58 = vmul.f32 %v10309_v10, %v7802_v55  ;;  %v10312_v55 = vld [vmem:[#allocation23_spill] sm:$0xff] }
 0x1b4   :  { %v2327_v19 = vadd.f32 %v2326_v60, %v2325_v50  ;;  %v2348_v27 = vadd.f32 %v2347_v17, %v2346_v47  ;;  %v1148_v30 = vmul.f32 %v7558_v43, %v7807_v57  ;;  %v1164_v41 = vmul.f32 %v10310_v1, %v7807_v57 }
 0x1b5   :  { %v1173_v26 = vadd.f32 %v1172_v5, %v1142_v46  ;;  %v1194_v49 = vadd.f32 %v1193_v24, %v1158_v12  ;;  %v1149_v46 = vmul.f32 %v10311_v52, %v7817_v8  ;;  %v1165_v37 = vmul.f32 %v10312_v55, %v7817_v8 }
 0x1b6   :  { %v2328_v25 = vrot.slane %v2327_v19, 2  ;;  %v2349_v34 = vrot.slane %v2348_v27, 2 }
 0x1b7   :  { %v1174_v14 = vadd.f32 %v1173_v26, %v1143_v32  ;;  %v1195_v63 = vadd.f32 %v1194_v49, %v1159_v31 }
 0x1b8   :  { %130 = vadd.xlane.f32.xlu1 %v10299_v16  ;;  %v2329_v51 = vadd.f32 %v2328_v25, %v2327_v19  ;;  %v2350_v38 = vadd.f32 %v2349_v34, %v2348_v27  ;;  %v4466_v19 = vld [vmem:[%s9286_s0 + $0x68] sm:$0xff] }
 0x1b9   :  { %v1175_v3 = vadd.f32 %v1174_v14, %v1144_v39  ;;  %v1196_v35 = vadd.f32 %v1195_v63, %v1160_v7  ;;  %v7946_v14 = vpop.xlane.xlu2 %92 }
 0x1ba   :  { %v2330_v2 = vrot.slane %v2329_v51, 1  ;;  %v2351_v13 = vrot.slane %v2350_v38, 1 }
 0x1bb   :  { %v1176_v6 = vadd.f32 %v1175_v3, %v1145_v53  ;;  %v1197_v28 = vadd.f32 %v1196_v35, %v1161_v21  ;;  %v7939_v53 = vpop.xlane.xlu0 %84  ;;  %v7941_v21 = vpop.xlane.xlu1 %88  ;;  %v10314_v35 = vld [vmem:[#allocation76_spill] sm:$0xff] }
 0x1bc   :  { %v2331_v18 = vadd.f32 %v2330_v2, %v2329_v51  ;;  %v2352_v16 = vadd.f32 %v2351_v13, %v2350_v38 }
 0x1bd   :  { %v1177_v40 = vadd.f32 %v1176_v6, %v1146_v23  ;;  %v1198_v50 = vadd.f32 %v1197_v28, %v1162_v0 }
 0x1be   :  { %v2355_v47 = vsel %vm272_vm0, %v2352_v16, %v2331_v18 }
 0x1bf   :  { %v2357_v12 = vsel %vm275_vm1, %v2355_v47, 0.0  ;;  %v1178_v44 = vadd.f32 %v1177_v40, %v1147_v59  ;;  %v1199_v60 = vadd.f32 %v1198_v50, %v1163_v58 }
 0x1c0   :  { %142 = vadd.xlane.f32.xlu1 %v10309_v10  ;;  %2358 = vadd.xlane.f32.xlu0 %v2357_v12  ;;  %v8013_v12 = vld [vmem:[%s9288_s2] sm:$0xff] }
 0x1c1   :  { %v1179_v43 = vadd.f32 %v1178_v44, %v1148_v30  ;;  %v1200_v17 = vadd.f32 %v1199_v60, %v1164_v41  ;;  %v7954_v63 = vpop.xlane.xlu2 %94  ;;  %v4467_v44 = vld [vmem:[%s9286_s0 + $0x8] sm:$0xff] }
 0x1c3   :  { %v1180_v57 = vadd.f32 %v1179_v43, %v1149_v46  ;;  %v1201_v48 = vadd.f32 %v1200_v17, %v1165_v37 }
 0x1c5   :  { %v1181_v32 = vrot.slane %v1180_v57, 4  ;;  %v1202_v31 = vrot.slane %v1201_v48, 4 }
 0x1c7   :  { %v1182_v5 = vadd.f32 %v1181_v32, %v1180_v57  ;;  %v1203_v24 = vadd.f32 %v1202_v31, %v1201_v48  ;;  %v383_v57 = vperm.slane %v8013_v12, 1  ;;  %v8033_v32 = vld [vmem:[%s9289_s3 + $0x8] sm:$0xff] }
 0x1c8   :  { %1270 = vadd.xlane.f32.xlu1 %v4466_v19  ;;  %110 = vadd.xlane.f32.xlu0 %v10308_v45 }
 0x1c9   :  { %v1183_v8 = vrot.slane %v1182_v5, 2  ;;  %v1204_v27 = vrot.slane %v1203_v24, 2 }
 0x1cb   :  { %v1184_v15 = vadd.f32 %v1183_v8, %v1182_v5  ;;  %v1205_v39 = vadd.f32 %v1204_v27, %v1203_v24  ;;  %v279_v5 = vperm.slane %v8013_v12, 0  ;;  %v487_v8 = vperm.slane %v8013_v12, 2 }
 0x1cd   :  { %v1185_v7 = vrot.slane %v1184_v15, 1  ;;  %v1206_v26 = vrot.slane %v1205_v39, 1 }
 0x1cf   :  { %v1186_v49 = vadd.f32 %v1185_v7, %v1184_v15  ;;  %v1207_v25 = vadd.f32 %v1206_v26, %v1205_v39 }
 0x1d0   :  { %1274 = vadd.xlane.f32.xlu1 %v10260_v11  ;;  %116 = vadd.xlane.f32.xlu0 %v10289_v29  ;;  %v7948_v11 = vpop.xlane.xlu0 %86  ;;  %v7950_v29 = vpop.xlane.xlu1 %90 }
 0x1d1   :  { %v1210_v34 = vsel %vm272_vm0, %v1207_v25, %v1186_v49  ;;  %v9701_v49 = vperm.slane %v8033_v32, 0 }
 0x1d2   :  { %v1212_v9 = vsel %vm275_vm1, %v1210_v34, 0.0 }
 0x1d3   :  { %1213 = vadd.xlane.f32.xlu2 %v1212_v9  ;;  %v591_v9 = vperm.slane %v8013_v12, 3 }
 0x1d8   :  { %1280 = vadd.xlane.f32.xlu1 %v10267_v33  ;;  %120 = vadd.xlane.f32.xlu0 %v10291_v4  ;;  %v7956_v51 = vpop.xlane.xlu0 %96  ;;  %v7959_v33 = vpop.xlane.xlu1 %98 }
 0x1d9   :  { %v7962_v4 = vpop.xlane.xlu2 %100 }
 0x1db   :  { %108 = vadd.xlane.f32.xlu2 %v10306_v62 }
 0x1e0   :  { %124 = vadd.xlane.f32.xlu0 %v10295_v36  ;;  %v7964_v38 = vpop.xlane.xlu0 %102  ;;  %v7968_v36 = vpop.xlane.xlu1 %104 }
 0x1e1   :  { %v7972_v23 = vpop.xlane.xlu2 %277 }
 0x1e3   :  { %114 = vadd.xlane.f32.xlu2 %v10311_v52 }
 0x1e8   :  { %128 = vadd.xlane.f32.xlu0 %v10298_v56  ;;  %v7970_v62 = vpop.xlane.xlu0 %381  ;;  %v10313_v56 = vld [vmem:[#allocation40_spill] sm:$0xff]  ;;  %v1450_v0 = vpop.xlane.xlu1 %1449 }
 0x1e9   :  { %v1551_v3 = vpop.xlane.xlu2 %1550  ;;  %v1451_v25 = vmul.f32 %v1450_v0, %v279_v5 }
 0x1ea   :  { %v1552_v27 = vmul.f32 %v1551_v3, %v383_v57 }
 0x1eb   :  { %132 = vadd.xlane.f32.xlu2 %v10300_v61 }
 0x1f0   :  { %134 = vadd.xlane.f32.xlu0 %v10302_v20  ;;  %v7977_v61 = vpop.xlane.xlu0 %485  ;;  %v1652_v20 = vpop.xlane.xlu1 %1651 }
 0x1f1   :  { %v7981_v13 = vpop.xlane.xlu2 %589 }
 0x1f3   :  { %146 = vadd.xlane.f32.xlu2 %v10312_v55  ;;  %v8018_v55 = vld [vmem:[%s9288_s2 + $0xa] sm:$0xff] }
 0x1f4   :  { %v386_v48 = vperm.slane %v8018_v55, 1  ;;  %v282_v19 = vperm.slane %v8018_v55, 0  ;;  %v490_v39 = vperm.slane %v8018_v55, 2 }
 0x1f6   :  { %v1554_v15 = vmul.f32 %v1551_v3, %v386_v48  ;;  %v1453_v34 = vmul.f32 %v1450_v0, %v282_v19  ;;  %v1653_v3 = vmul.f32 %v1652_v20, %v487_v8 }
 0x1f8   :  { %136 = vadd.xlane.f32.xlu0 %v10303_v22  ;;  %v1753_v2 = vpop.xlane.xlu0 %1752  ;;  %v7986_v22 = vld [vmem:[%s9289_s3] sm:$0xff]  ;;  %v7999_v28 = vpop.xlane.xlu1 %693 }
 0x1f9   :  { %v2514_v45 = vperm.slane %v7986_v22, 0  ;;  %v9709_v59 = vperm.slane %v7986_v22, 2  ;;  %v9708_v6 = vperm.slane %v7986_v22, 3  ;;  %v9707_v30 = vperm.slane %v7986_v22, 4  ;;  %v1854_v50 = vpop.xlane.xlu2 %1853 }
 0x1fa   :  { %v9706_v52 = vperm.slane %v7986_v22, 5  ;;  %v9705_v46 = vperm.slane %v7986_v22, 6  ;;  %v9702_v17 = vperm.slane %v7986_v22, 7 }
 0x1fb   :  { %1260 = vadd.xlane.f32.xlu2 %v10313_v56  ;;  %v2515_v10 = vmul.f32 0.0, %v2514_v45  ;;  %v2520_v58 = vmul.f32 0.0, %v9709_v59  ;;  %v2523_v16 = vmul.f32 0.0, %v9708_v6  ;;  %v594_v56 = vperm.slane %v8018_v55, 3 }
 0x1fc   :  { %v2529_v60 = vmul.f32 0.0, %v9706_v52  ;;  %v2532_v43 = vmul.f32 0.0, %v9705_v46  ;;  %v2535_v26 = vmul.f32 0.0, %v9702_v17 }
 0x200   :  { %138 = vadd.xlane.f32.xlu0 %v10305_v42  ;;  %v2516_v42 = vperm.slane %v7986_v22, 1  ;;  %v8004_v40 = vpop.xlane.xlu0 %797  ;;  %v1955_v24 = vpop.xlane.xlu1 %1954 }
 0x203   :  { %1264 = vadd.xlane.f32.xlu2 %v10314_v35 }
 0x208   :  { %140 = vadd.xlane.f32.xlu0 %v10307_v54  ;;  %v2517_v54 = vmul.f32 0.0, %v2516_v42  ;;  %v2056_v35 = vpop.xlane.xlu0 %2055 }
 0x20a   :  { %v2518_v18 = vadd.f32 %v2517_v54, %v2515_v10  ;;  %v8050_v10 = vpop.xlane.xlu2 %901  ;;  %v1655_v54 = vmul.f32 %v1652_v20, %v490_v39  ;;  %v1754_v20 = vmul.f32 %v1753_v2, %v591_v9 }
 0x20c   :  { %v2521_v41 = vadd.f32 %v2520_v58, %v2518_v18  ;;  %v1553_v58 = vadd.f32 %v1552_v27, %v1451_v25  ;;  %v1555_v18 = vadd.f32 %v1554_v15, %v1453_v34 }
 0x20e   :  { %v2524_v47 = vadd.f32 %v2523_v16, %v2521_v41  ;;  %v4468_v16 = vld [vmem:[%s9286_s0 + $0x28] sm:$0xff]  ;;  %v2538_v41 = vmul.f32 0.0, %v9701_v49 }
 0x210   :  { %144 = vadd.xlane.f32.xlu0 %v10310_v1  ;;  %v2526_v1 = vmul.f32 0.0, %v9707_v30  ;;  %v9710_v30 = vperm.slane %v8033_v32, 4 }
 0x212   :  { %v2527_v37 = vadd.f32 %v2526_v1, %v2524_v47  ;;  %v9703_v47 = vperm.slane %v8033_v32, 1  ;;  %v695_v1 = vperm.slane %v8013_v12, 4 }
 0x214   :  { %v2530_v31 = vadd.f32 %v2529_v60, %v2527_v37  ;;  %v698_v37 = vperm.slane %v8018_v55, 4  ;;  %v799_v60 = vperm.slane %v8013_v12, 5  ;;  %v1855_v27 = vmul.f32 %v1854_v50, %v695_v1 }
 0x215   :  { %v2541_v34 = vmul.f32 0.0, %v9703_v47  ;;  %v1007_v47 = vperm.slane %v8013_v12, 7 }
 0x216   :  { %v2533_v7 = vadd.f32 %v2532_v43, %v2530_v31  ;;  %v1654_v43 = vadd.f32 %v1653_v3, %v1553_v58  ;;  %v1656_v31 = vadd.f32 %v1655_v54, %v1555_v18  ;;  %v1857_v15 = vmul.f32 %v1854_v50, %v698_v37 }
 0x217   :  { %v903_v3 = vperm.slane %v8013_v12, 6  ;;  %v906_v54 = vperm.slane %v8018_v55, 6  ;;  %v1956_v58 = vmul.f32 %v1955_v24, %v799_v60 }
 0x218   :  { %1258 = vadd.xlane.f32.xlu0 %v4467_v44  ;;  %v2536_v0 = vadd.f32 %v2535_v26, %v2533_v7  ;;  %v1756_v44 = vmul.f32 %v1753_v2, %v594_v56  ;;  %v802_v7 = vperm.slane %v8018_v55, 5  ;;  %v8074_v26 = vpop.xlane.xlu1 %1005  ;;  %v9704_v2 = vperm.slane %v8033_v32, 2 }
 0x21a   :  { %v2539_v25 = vadd.f32 %v2538_v41, %v2536_v0  ;;  %v1757_v49 = vadd.f32 %v1756_v44, %v1656_v31  ;;  %v1958_v50 = vmul.f32 %v1955_v24, %v802_v7  ;;  %v4469_v0 = vld [vmem:[%s9286_s0 + $0x98] sm:$0xff]  ;;  %v8088_v41 = vpop.xlane.xlu0 %1109  ;;  %v9758_v31 = vperm.slane %v8033_v32, 3 }
 0x21b   :  { %v1010_v24 = vperm.slane %v8018_v55, 7 }
 0x21c   :  { %v1858_v17 = vadd.f32 %v1857_v15, %v1757_v49  ;;  %v2542_v44 = vadd.f32 %v2541_v34, %v2539_v25  ;;  %v2057_v49 = vmul.f32 %v2056_v35, %v903_v3  ;;  %v280_v15 = vmul.f32 %v279_v5, %v7972_v23  ;;  %v8103_v25 = vld [vmem:[%s9288_s2 + $0x8] sm:$0x3]  ;;  %v8108_v34 = vld [vmem:[%s9288_s2 + $0x12] sm:$0x3]  ;;  %s3839_s2 = sshll.u32 %s9298_s12, 4  ;;  %s3840_s2 = int_to_ptr.hbm [resolvable:$true] %s3839_s2 }
 0x21d   :  { %v283_v5 = vmul.f32 %v282_v19, %v7972_v23  ;;  %v2547_v52 = vmul.f32 0.0, %v9758_v31  ;;  %v387_v23 = vmul.f32 %v386_v48, %v7970_v62  ;;  %v9757_v48 = vperm.slane %v8033_v32, 5 }
 0x220   :  { %1262 = vadd.xlane.f32.xlu0 %v4468_v16  ;;  %v1755_v16 = vadd.f32 %v1754_v20, %v1654_v43  ;;  %v2157_v20 = vpop.xlane.xlu2 %2156  ;;  %v2544_v43 = vmul.f32 0.0, %v9704_v2  ;;  %v2258_v19 = vpop.xlane.xlu1 %2257 }
 0x221   :  { %v2158_v2 = vmul.f32 %v2157_v20, %v1007_v47 }
 0x222   :  { %v1856_v18 = vadd.f32 %v1855_v27, %v1755_v16  ;;  %v2059_v27 = vmul.f32 %v2056_v35, %v906_v54  ;;  %v2160_v35 = vmul.f32 %v2157_v20, %v1010_v24  ;;  %v2545_v46 = vadd.f32 %v2544_v43, %v2542_v44 }
 0x223   :  { %v1218_v20 = vperm.slane %v8108_v34, 1 }
 0x224   :  { %v1957_v16 = vadd.f32 %v1956_v58, %v1856_v18  ;;  %v1114_v58 = vperm.slane %v8108_v34, 0  ;;  %v1215_v18 = vperm.slane %v8103_v25, 1 }
 0x226   :  { %v2058_v6 = vadd.f32 %v2057_v49, %v1957_v16  ;;  %v2261_v43 = vmul.f32 %v2258_v19, %v1114_v58  ;;  %v2548_v16 = vadd.f32 %v2547_v52, %v2545_v46  ;;  %v595_v52 = vmul.f32 %v594_v56, %v7981_v13 }
 0x227   :  { %v699_v56 = vmul.f32 %v698_v37, %v7999_v28  ;;  %v1115_v12 = vmul.f32 %v1114_v58, %v8088_v41 }
 0x228   :  { %1276 = vadd.xlane.f32.xlu0 %v4469_v0  ;;  %v1959_v0 = vadd.f32 %v1958_v50, %v1858_v17  ;;  %v1111_v17 = vperm.slane %v8103_v25, 0  ;;  %v384_v50 = vmul.f32 %v383_v57, %v7970_v62  ;;  %v2159_v49 = vadd.f32 %v2158_v2, %v2058_v6  ;;  %v4470_v57 = vld [vmem:[%s9286_s0 + $0xd8] sm:$0xff] }
 0x229   :  { %v2550_v62 = vmul.f32 0.0, %v9710_v30  ;;  %v491_v6 = vmul.f32 %v490_v39, %v7977_v61  ;;  %v388_v2 = vadd.f32 %v387_v23, %v283_v5  ;;  %v2553_v39 = vmul.f32 0.0, %v9757_v48  ;;  %v4486_v48 = vld [vmem:[%s9286_s0 + $0x158] sm:$0xff] }
 0x22a   :  { %v2060_v59 = vadd.f32 %v2059_v27, %v1959_v0  ;;  %v2259_v44 = vmul.f32 %v2258_v19, %v1111_v17  ;;  %v488_v0 = vmul.f32 %v487_v8, %v7977_v61 }
 0x22b   :  { %v2551_v61 = vadd.f32 %v2550_v62, %v2548_v16  ;;  %v492_v5 = vadd.f32 %v491_v6, %v388_v2  ;;  %v9755_v16 = vperm.slane %v8033_v32, 7  ;;  %v904_v6 = vmul.f32 %v903_v3, %v8050_v10 }
 0x22c   :  { %v2161_v27 = vadd.f32 %v2160_v35, %v2060_v59  ;;  %v385_v59 = vadd.f32 %v384_v50, %v280_v15  ;;  %v592_v35 = vmul.f32 %v591_v9, %v7981_v13  ;;  %v2260_v19 = vadd.f32 %v2259_v44, %v2159_v49 }
 0x22d   :  { %v9756_v15 = vperm.slane %v8033_v32, 6  ;;  %v696_v13 = vmul.f32 %v695_v1, %v7999_v28  ;;  %v2554_v49 = vadd.f32 %v2553_v39, %v2551_v61  ;;  %v8174_v1 = vld [vmem:[%s9289_s3 + $0x10] sm:$0xf]  ;;  %v803_v28 = vmul.f32 %v802_v7, %v8004_v40 }
 0x22e   :  { %v489_v9 = vadd.f32 %v488_v0, %v385_v59  ;;  %v2559_v2 = vmul.f32 0.0, %v9755_v16  ;;  %v1008_v7 = vmul.f32 %v1007_v47, %v8074_v26  ;;  %v1011_v3 = vmul.f32 %v1010_v24, %v8074_v26  ;;  %v4485_v16 = vld [vmem:[%s9286_s0 + $0x128] sm:$0xff] }
 0x22f   :  { %v9752_v55 = vperm.slane %v8174_v1, 2 }
 0x230   :  { %1284 = vadd.xlane.f32.xlu0 %v4470_v57  ;;  %v2262_v57 = vadd.f32 %v2261_v43, %v2161_v27  ;;  %v593_v44 = vadd.f32 %v592_v35, %v489_v9  ;;  %v596_v43 = vadd.f32 %v595_v52, %v492_v5  ;;  %v2556_v27 = vmul.f32 0.0, %v9756_v15 }
 0x231   :  { %v9754_v35 = vperm.slane %v8174_v1, 0 }
 0x232   :  { %v697_v62 = vadd.f32 %v696_v13, %v593_v44  ;;  %v700_v0 = vadd.f32 %v699_v56, %v596_v43  ;;  %v2557_v59 = vadd.f32 %v2556_v27, %v2554_v49  ;;  %v9751_v44 = vperm.slane %v8174_v1, 3 }
 0x233   :  { %v2359_v46 = vpop.xlane.xlu0 %2358 }
 0x234   :  { %v2360_v8 = vmul.f32 %v2359_v46, %v1215_v18  ;;  %v2362_v30 = vmul.f32 %v2359_v46, %v1218_v20  ;;  %v2571_v25 = vmul.f32 0.0, %v9751_v44 }
 0x236   :  { %v2361_v50 = vadd.f32 %v2360_v8, %v2260_v19  ;;  %v2363_v23 = vadd.f32 %v2362_v30, %v2262_v57  ;;  %v800_v30 = vmul.f32 %v799_v60, %v8004_v40  ;;  %v907_v60 = vmul.f32 %v906_v54, %v8050_v10 }
 0x237   :  { %v804_v40 = vadd.f32 %v803_v28, %v700_v0  ;;  %v2560_v57 = vadd.f32 %v2559_v2, %v2557_v59  ;;  %v2562_v10 = vmul.f32 0.0, %v9754_v35  ;;  %v9753_v54 = vperm.slane %v8174_v1, 1 }
 0x238   :  { %2367 = vst [vmem:[#allocation3 + $0x2] sm:$0x3] %v2361_v50  ;;  %v801_v52 = vadd.f32 %v800_v30, %v697_v62  ;;  %v1112_v8 = vmul.f32 %v1111_v17, %v8088_v41  ;;  %v2568_v41 = vmul.f32 0.0, %v9752_v55  ;;  %v8224_v30 = vld [vmem:[%s9290_s4] ss:$0 sm:$0xff]  ;;  %v4482_v55 = vld [vmem:[%s9286_s0 + $0x118] sm:$0xff] }
 0x239   :  { %2369 = vst [vmem:[#allocation4 + $0x2] sm:$0x3] %v2363_v23  ;;  %v908_v19 = vadd.f32 %v907_v60, %v804_v40  ;;  %v2563_v61 = vadd.f32 %v2562_v10, %v2560_v57  ;;  %v2565_v39 = vmul.f32 0.0, %v9753_v54  ;;  %v2403_v10 = vlaneseq  ;;  %s4542_s4 = smov 22  }
 0x23a   :  { %v905_v46 = vadd.f32 %v904_v6, %v801_v52 }
 0x23b   :  { %v8179_v37 = vpop.xlane.xlu0 %110  ;;  %v1012_v24 = vadd.f32 %v1011_v3, %v908_v19  ;;  %v2566_v56 = vadd.f32 %v2565_v39, %v2563_v61 }
 0x23c   :  { %v1009_v26 = vadd.f32 %v1008_v7, %v905_v46 }
 0x23d   :  { %v1116_v50 = vadd.f32 %v1115_v12, %v1012_v24  ;;  %v2569_v49 = vadd.f32 %v2568_v41, %v2566_v56  ;;  %v8253_v24 = vand.u32 127, %v2403_v10 }
 0x23e   :  { %v1113_v5 = vadd.f32 %v1112_v8, %v1009_v26  ;;  %v4471_v8 = vld [vmem:[%s9286_s0 + $0x48] sm:$0xff] }
 0x23f   :  { %v2572_v27 = vadd.f32 %v2571_v25, %v2569_v49  ;;  %v4473_v25 = vld [vmem:[%s9286_s0 + $0x78] sm:$0xff] }
 0x243   :  { %v8205_v47 = vpop.xlane.xlu0 %116 }
 0x246   :  { %v1214_v9 = vpop.xlane.xlu2 %1213 }
 0x247   :  { %v1216_v17 = vmul.f32 %v1215_v18, %v1214_v9  ;;  %v1219_v23 = vmul.f32 %v1218_v20, %v1214_v9  ;;  %v2512_v18 = vld [vmem:[#allocation4 + $0x2] sm:$0x3]  ;;  %v8257_v9 = vadd.s32 4294967288, %v8253_v24 }
 0x249   :  { %v1217_v58 = vadd.f32 %v1216_v17, %v1113_v5  ;;  %v1220_v13 = vadd.f32 %v1219_v23, %v1116_v50  ;;  %v4472_v50 = vld [vmem:[%s9286_s0 + $0x58] sm:$0xff]  ;;  %v8264_v17 = vadd.s32 4294967280, %v8253_v24 }
 0x24b   :  { %1223 = vst [vmem:[#allocation3] sm:$0x3] %v1217_v58  ;;  %v8217_v43 = vpop.xlane.xlu0 %120 }
 0x24c   :  { %1225 = vst [vmem:[#allocation4] sm:$0x3] %v1220_v13 }
 0x24e   :  { %v8234_v2 = vpop.xlane.xlu2 %108 }
 0x252   :  { %v2510_v34 = vld [vmem:[#allocation3] sm:$0x3] }
 0x253   :  { %v2513_v20 = vadd.f32 %v2512_v18, %v2510_v34  ;;  %v8226_v28 = vpop.xlane.xlu0 %124 }
 0x255   :  { %v2573_v62 = vadd.f32 %v2572_v27, %v2513_v20  ;;  %v4475_v20 = vld [vmem:[%s9286_s0 + $0xe8] sm:$0xff] }
 0x256   :  { %v8238_v40 = vpop.xlane.xlu2 %114 }
 0x257   :  { %v2577_v0 = vadd.f32 %v8224_v30, %v2573_v62  ;;  %10315 = vst [vmem:[#allocation25_spill] sm:$0xff] %v8238_v40 }
 0x259   :  { %4302 = vtanh.f32 %v2577_v0  ;;  %v4138_v26 = vmul.f32 -1.442695, %v2577_v0 }
 0x25b   :  { %v8229_v6 = vpop.xlane.xlu0 %128  ;;  %4304 = vpow2.f32 %v4138_v26 }
 0x25e   :  { %v8242_v3 = vpop.xlane.xlu2 %132 }
 0x25f   :  { %v4303_v60 = vpop.eup %4302 }
 0x260   :  { %2600 = vrot.lane.b32.xlu2 %v4303_v60, %s4520_s17 }
 0x263   :  { %v8232_v59 = vpop.xlane.xlu0 %134 }
 0x266   :  { %v8248_v57 = vpop.xlane.xlu2 %146 }
 0x267   :  { %10317 = vst [vmem:[#allocation28_spill] sm:$0xff] %v8248_v57  ;;  %v10322_v57 = vperm.slane %v7986_v22, 2 }
 0x26b   :  { %v8236_v52 = vpop.xlane.xlu0 %136 }
 0x26e   :  { %v1261_v61 = vpop.xlane.xlu2 %1260 }
 0x26f   :  { %v1323_v5 = vadd.f32 %v1261_v61, %v7948_v11  ;;  %v4305_v11 = vpop.eup %4304 }
 0x270   :  { %v2581_v18 = vadd.f32 1.0, %v4305_v11 }
 0x271   :  { %v2407_v58 = vperm.slane %v1323_v5, %v8257_v9 }
 0x272   :  { %4306 = vrcp.f32 %v2581_v18  ;;  %vm2587_vm5 = vweird.f32 %v2581_v18 }
 0x273   :  { %v8240_v7 = vpop.xlane.xlu0 %138 }
 0x276   :  { %v8283_v60 = vpop.xlane.xlu2 %1264 }
 0x278   :  { %v4307_v27 = vpop.eup %4306 }
 0x279   :  { %v2583_v34 = vmul.f32 %v4307_v27, %v2581_v18  ;;  %vm2588_vm4 = vweird.f32 %v4307_v27 }
 0x27a   :  { %vm2589_vm6 = vmor %vm2587_vm5, %vm2588_vm4 }
 0x27b   :  { %v8244_v46 = vpop.xlane.xlu0 %140  ;;  %v2584_v62 = vsub.f32 1.0, %v2583_v34 }
 0x27d   :  { %v2585_v0 = vmul.f32 %v4307_v27, %v2584_v62 }
 0x27f   :  { %v2586_v10 = vadd.f32 %v4307_v27, %v2585_v0 }
 0x281   :  { %v2590_v26 = vsel %vm2589_vm6, %v4307_v27, %v2586_v10  ;;  %v9727_v10 = vmov 100  }
 0x282   :  { %4181 = vset.pattern.permute.xlu0 %v9727_v10 }
 0x283   :  { %v8246_v19 = vpop.xlane.xlu0 %144 }
 0x284   :  { %10316 = vst [vmem:[#allocation70_spill] sm:$0xff] %v8246_v19 }
 0x289   :  { %1266 = vadd.xlane.f32.xlu2 %v4471_v8  ;;  %v2593_v8 = vand.u32 2147483648, %v2581_v18 }
 0x28b   :  { %v1259_v12 = vpop.xlane.xlu0 %1258  ;;  %v2594_v61 = vor.u32 1.1754944e-38, %v2593_v8  ;;  %v9749_v8 = vmov 97  }
 0x28c   :  { %v1322_v39 = vadd.f32 %v1259_v12, %v7939_v53  ;;  %v2591_v12 = vand.u32 2147483647, %v2581_v18  ;;  %4178 = vset.pattern.permute.xlu1 %v9749_v8 }
 0x28e   :  { %v2405_v23 = vperm.slane %v1322_v39, %v8253_v24  ;;  %vm2592_vm7 = vcmp.eq.f32.partialorder %v2591_v12, 8.507059e+37  ;;  %v9737_v12 = vmov 96  }
 0x28f   :  { %v2595_v5 = vsel %vm2592_vm7, %v2594_v61, %v2590_v26  ;;  %4177 = vset.pattern.permute.xlu2 %v9737_v12  ;;  %v9743_v12 = vmov 115  }
 0x290   :  { %v2409_v56 = vsel %vm2408_vm2, %v2407_v58, %v2405_v23  ;;  %v8286_v23 = vpop.xlane.xlu1 %106  ;;  %v4476_v58 = vld [vmem:[%s9286_s0 + $0xc8] sm:$0xff]  ;;  %v2598_v34 = vmul.f32 0.0, %v2595_v5 }
 0x291   :  { %1268 = vadd.xlane.f32.xlu2 %v4472_v50 }
 0x293   :  { %v1263_v41 = vpop.xlane.xlu0 %1262 }
 0x294   :  { %v1324_v53 = vadd.f32 %v1263_v41, %v7941_v21  ;;  %v4474_v21 = vld [vmem:[%s9286_s0 + $0xa8] sm:$0xff] }
 0x296   :  { %v2411_v13 = vperm.slane %v1324_v53, %v8264_v17 }
 0x298   :  { %v8272_v49 = vsel %vm2412_vm3, %v2411_v13, %v2409_v56  ;;  %v8288_v41 = vpop.xlane.xlu1 %112 }
 0x299   :  { %1272 = vadd.xlane.f32.xlu2 %v4473_v25  ;;  %10318 = vst [vmem:[#allocation26_spill] sm:$0xff] %v8288_v41 }
 0x29b   :  { %v8316_v26 = vpop.xlane.xlu0 %1276 }
 0x2a0   :  { %v8290_v53 = vpop.xlane.xlu1 %118 }
 0x2a1   :  { %1278 = vadd.xlane.f32.xlu2 %v4474_v21 }
 0x2a3   :  { %v8318_v61 = vpop.xlane.xlu0 %1284 }
 0x2a4   :  { %10320 = vst [vmem:[#allocation33_spill] sm:$0xff] %v8318_v61 }
 0x2a8   :  { %v8295_v13 = vpop.xlane.xlu1 %122 }
 0x2a9   :  { %1286 = vadd.xlane.f32.xlu2 %v4475_v20 }
 0x2b0   :  { %v8297_v11 = vpop.xlane.xlu1 %126 }
 0x2b8   :  { %v8299_v56 = vpop.xlane.xlu1 %130 }
 0x2ba   :  { %v2601_v39 = vpop.permute.xlu2 %2600 }
 0x2bb   :  { %v2603_v50 = vmul.f32 %v2601_v39, %v2595_v5 }
 0x2bd   :  { %2605 = vrot.lane.b32.xlu1 %v2603_v50, %s4521_s26 }
 0x2c0   :  { %v8301_v25 = vpop.xlane.xlu1 %142 }
 0x2c1   :  { %10319 = vst [vmem:[#allocation72_spill] sm:$0xff] %v8301_v25 }
 0x2c8   :  { %v8303_v18 = vpop.xlane.xlu1 %1270 }
 0x2d0   :  { %v8305_v21 = vpop.xlane.xlu1 %1274 }
 0x2d8   :  { %v8307_v27 = vpop.xlane.xlu1 %1280 }
 0x2e7   :  { %1282 = vadd.xlane.f32.xlu1 %v4476_v58  ;;  %v9711_v58 = vmov 111  }
 0x2fc   :  { %v8352_v10 = vpop.xlane.xlu2 %1266 }
 0x32f   :  { %v2606_v20 = vpop.permute.xlu1 %2605 }
 0x330   :  { %v8309_v62 = vadd.f32 %v2606_v20, %v2598_v34  ;;  %v9713_v34 = vmov 99   ;;  %v9745_v20 = vmov 98  }
 0x332   :  { %4308 = vtanh.f32 %v8309_v62 }
 0x338   :  { %v4309_v0 = vpop.eup %4308 }
 0x339   :  { %2611 = vrot.lane.b32.xlu0 %v4309_v0, %s4520_s17  ;;  %v9717_v0 = vmov 101  }
 0x35a   :  { %v8384_v8 = vpop.xlane.xlu1 %1282 }
 0x3ab   :  { %v2612_v39 = vpop.permute.xlu0 %2611 }
 0x3ac   :  { %v8320_v50 = vmul.f32 %v2612_v39, %v2595_v5  ;;  %v9715_v5 = vmov 102   ;;  %v9719_v39 = vmov 104  }
 0x3ae   :  { %2654 = vperm.xlu0 %4181, %v8320_v50   ;;  %2636 = vperm.xlu1 %4178, %v8320_v50  }
 0x3af   :  { %2631 = vperm.xlu2 %4177, %v8320_v50  }
 0x3b6   :  { %4192 = vset.pattern.permute.xlu0 %v9711_v58  ;;  %4180 = vset.pattern.permute.xlu1 %v9713_v34  ;;  %v9725_v58 = vmov 103   ;;  %v9721_v34 = vmov 106  }
 0x3b7   :  { %4179 = vset.pattern.permute.xlu2 %v9745_v20  ;;  %2720 = vperm.xlu0 %4192, %v8320_v50  }
 0x3b8   :  { %2648 = vperm.xlu1 %4180, %v8320_v50   ;;  %2642 = vperm.xlu2 %4179, %v8320_v50  }
 0x3c0   :  { %4183 = vset.pattern.permute.xlu1 %v9715_v5  ;;  %4182 = vset.pattern.permute.xlu2 %v9717_v0  ;;  %v9723_v5 = vmov 105   ;;  %v9731_v0 = vmov 108  }
 0x3c1   :  { %2666 = vperm.xlu1 %4183, %v8320_v50   ;;  %2660 = vperm.xlu2 %4182, %v8320_v50  }
 0x3c9   :  { %4185 = vset.pattern.permute.xlu1 %v9719_v39  ;;  %4184 = vset.pattern.permute.xlu2 %v9725_v58  ;;  %v9729_v39 = vmov 107   ;;  %v9733_v58 = vmov 109  }
 0x3ca   :  { %2678 = vperm.xlu1 %4185, %v8320_v50   ;;  %2672 = vperm.xlu2 %4184, %v8320_v50  }
 0x3d2   :  { %4187 = vset.pattern.permute.xlu1 %v9721_v34  ;;  %4186 = vset.pattern.permute.xlu2 %v9723_v5  ;;  %v4477_v34 = vld [vmem:[%s9286_s0 + $0x108] sm:$0xff]  ;;  %v9735_v5 = vmov 110  }
 0x3d3   :  { %2690 = vperm.xlu1 %4187, %v8320_v50   ;;  %2684 = vperm.xlu2 %4186, %v8320_v50  }
 0x3db   :  { %4189 = vset.pattern.permute.xlu1 %v9731_v0  ;;  %4188 = vset.pattern.permute.xlu2 %v9729_v39  ;;  %v4478_v39 = vld [vmem:[%s9286_s0 + $0x138] sm:$0xff]  ;;  %v9739_v0 = vmov 113  }
 0x3dc   :  { %2702 = vperm.xlu1 %4189, %v8320_v50   ;;  %2696 = vperm.xlu2 %4188, %v8320_v50  }
 0x3e1   :  { %1290 = vadd.xlane.f32.xlu0 %v4477_v34  ;;  %v9741_v34 = vmov 112  }
 0x3e4   :  { %4191 = vset.pattern.permute.xlu1 %v9735_v5  ;;  %4190 = vset.pattern.permute.xlu2 %v9733_v58  ;;  %v8363_v58 = vpop.xlane.xlu2 %1268  ;;  %v4479_v5 = vld [vmem:[%s9286_s0 + $0x168] sm:$0xff] }
 0x3e5   :  { %2714 = vperm.xlu1 %4191, %v8320_v50   ;;  %2708 = vperm.xlu2 %4190, %v8320_v50  }
 0x3e9   :  { %1296 = vadd.xlane.f32.xlu0 %v4478_v39  ;;  %v9747_v39 = vmov 114  }
 0x3ed   :  { %4194 = vset.pattern.permute.xlu1 %v9739_v0  ;;  %4193 = vset.pattern.permute.xlu2 %v9741_v34  ;;  %v8372_v0 = vpop.xlane.xlu2 %1272  ;;  %v4480_v34 = vld [vmem:[%s9286_s0 + $0x188] sm:$0xff] }
 0x3ee   :  { %2732 = vperm.xlu1 %4194, %v8320_v50   ;;  %2726 = vperm.xlu2 %4193, %v8320_v50  }
 0x3f1   :  { %1302 = vadd.xlane.f32.xlu0 %v4479_v5  ;;  %v4481_v5 = vld [vmem:[%s9286_s0 + $0x1a8] sm:$0xff] }
 0x3f6   :  { %4196 = vset.pattern.permute.xlu1 %v9743_v12  ;;  %4195 = vset.pattern.permute.xlu2 %v9747_v39  ;;  %v8380_v12 = vpop.xlane.xlu2 %1278 }
 0x3f7   :  { %2744 = vperm.xlu1 %4196, %v8320_v50   ;;  %2738 = vperm.xlu2 %4195, %v8320_v50  }
 0x3f9   :  { %1306 = vadd.xlane.f32.xlu0 %v4480_v34  ;;  %v4483_v34 = vld [vmem:[%s9286_s0 + $0xf8] sm:$0xff] }
 0x3fe   :  { %v8382_v20 = vpop.xlane.xlu2 %1286 }
 0x3ff   :  { %10321 = vst [vmem:[#allocation73_spill] sm:$0xff] %v8382_v20 }
 0x401   :  { %1310 = vadd.xlane.f32.xlu0 %v4481_v5  ;;  %v4484_v5 = vld [vmem:[%s9286_s0 + $0x148] sm:$0xff] }
 0x409   :  { %v2632_v39 = vpop.permute.xlu2 %2631 }
 0x412   :  { %v2643_v44 = vpop.permute.xlu2 %2642 }
 0x413   :  { %v2645_v19 = vmul.f32 %v2643_v44, %v10322_v57  ;;  %v10326_v57 = vperm.slane %v7986_v22, 6 }
 0x41b   :  { %v2661_v35 = vpop.permute.xlu2 %2660 }
 0x420   :  { %1292 = vadd.xlane.f32.xlu2 %v4482_v55  ;;  %v2637_v54 = vpop.permute.xlu1 %2636  ;;  %v2655_v40 = vpop.permute.xlu0 %2654 }
 0x421   :  { %1288 = vadd.xlane.f32.xlu1 %v4483_v34  ;;  %v2639_v55 = vmul.f32 %v2637_v54, %v2516_v42  ;;  %v2634_v34 = vmul.f32 %v2632_v39, %v2514_v45  ;;  %v4487_v42 = vld [vmem:[%s9286_s0 + $0x178] sm:$0xff]  ;;  %v10324_v54 = vperm.slane %v7986_v22, 4 }
 0x423   :  { %v2640_v25 = vadd.f32 %v2639_v55, %v2634_v34  ;;  %v2657_v45 = vmul.f32 %v2655_v40, %v10324_v54  ;;  %v10325_v34 = vperm.slane %v7986_v22, 5 }
 0x424   :  { %v2673_v31 = vpop.permute.xlu2 %2672 }
 0x425   :  { %v2646_v41 = vadd.f32 %v2645_v19, %v2640_v25  ;;  %v2663_v44 = vmul.f32 %v2661_v35, %v10325_v34  ;;  %v4488_v19 = vld [vmem:[%s9286_s0 + $0x198] sm:$0xff]  ;;  %v10329_v34 = vperm.slane %v8033_v32, 1 }
 0x426   :  { %v4489_v35 = vld [vmem:[%s9286_s0 + $0x1b8] sm:$0xff] }
 0x428   :  { %1298 = vadd.xlane.f32.xlu2 %v4484_v5 }
 0x429   :  { %1294 = vadd.xlane.f32.xlu1 %v4485_v16  ;;  %v10323_v16 = vperm.slane %v7986_v22, 3 }
 0x42a   :  { %v2649_v15 = vpop.permute.xlu1 %2648 }
 0x42b   :  { %v2651_v20 = vmul.f32 %v2649_v15, %v10323_v16 }
 0x42d   :  { %v2685_v61 = vpop.permute.xlu2 %2684 }
 0x431   :  { %1300 = vadd.xlane.f32.xlu1 %v4486_v48  ;;  %v2652_v48 = vadd.f32 %v2651_v20, %v2646_v41  ;;  %v10327_v20 = vperm.slane %v7986_v22, 7 }
 0x433   :  { %v2667_v5 = vpop.permute.xlu1 %2666  ;;  %v2658_v55 = vadd.f32 %v2657_v45, %v2652_v48  ;;  %v2675_v40 = vmul.f32 %v2673_v31, %v10327_v20  ;;  %v10332_v20 = vperm.slane %v8033_v32, 4 }
 0x434   :  { %v2669_v15 = vmul.f32 %v2667_v5, %v10326_v57  ;;  %v2687_v57 = vmul.f32 %v2685_v61, %v10329_v34 }
 0x435   :  { %v2664_v25 = vadd.f32 %v2663_v44, %v2658_v55  ;;  %v10330_v55 = vperm.slane %v8033_v32, 2 }
 0x436   :  { %v2697_v54 = vpop.permute.xlu2 %2696 }
 0x437   :  { %v2670_v16 = vadd.f32 %v2669_v15, %v2664_v25  ;;  %v10331_v25 = vperm.slane %v8033_v32, 3 }
 0x439   :  { %1304 = vadd.xlane.f32.xlu1 %v4487_v42  ;;  %v10328_v42 = vperm.slane %v8033_v32, 0  ;;  %v2676_v45 = vadd.f32 %v2675_v40, %v2670_v16  ;;  %v2699_v16 = vmul.f32 %v2697_v54, %v10331_v25 }
 0x43c   :  { %v2679_v39 = vpop.permute.xlu1 %2678 }
 0x43d   :  { %v2681_v48 = vmul.f32 %v2679_v39, %v10328_v42  ;;  %v4490_v39 = vld [vmem:[%s9286_s0 + $0x1e8] sm:$0xff] }
 0x43f   :  { %v2682_v5 = vadd.f32 %v2681_v48, %v2676_v45 }
 0x441   :  { %1308 = vadd.xlane.f32.xlu1 %v4488_v19  ;;  %v2688_v15 = vadd.f32 %v2687_v57, %v2682_v5  ;;  %v2709_v19 = vpop.permute.xlu2 %2708  ;;  %v2721_v57 = vpop.permute.xlu0 %2720 }
 0x445   :  { %v2691_v41 = vpop.permute.xlu1 %2690 }
 0x446   :  { %v2693_v44 = vmul.f32 %v2691_v41, %v10330_v55  ;;  %v10333_v41 = vperm.slane %v8033_v32, 5 }
 0x448   :  { %v2694_v31 = vadd.f32 %v2693_v44, %v2688_v15  ;;  %v2711_v45 = vmul.f32 %v2709_v19, %v10333_v41  ;;  %v10335_v15 = vperm.slane %v8033_v32, 7  ;;  %v2627_v41 = vld [vmem:[#allocation3 + $0x2] sm:$0x3] }
 0x449   :  { %1312 = vadd.xlane.f32.xlu1 %v4489_v35  ;;  %v10334_v35 = vperm.slane %v8033_v32, 6  ;;  %v2727_v55 = vpop.permute.xlu2 %2726  ;;  %v10339_v32 = vperm.slane %v8174_v1, 3 }
 0x44a   :  { %v2700_v42 = vadd.f32 %v2699_v16, %v2694_v31  ;;  %v10337_v16 = vperm.slane %v8174_v1, 1 }
 0x44e   :  { %v2703_v22 = vpop.permute.xlu1 %2702 }
 0x44f   :  { %v2705_v40 = vmul.f32 %v2703_v22, %v10332_v20  ;;  %v10336_v22 = vperm.slane %v8174_v1, 0 }
 0x451   :  { %1318 = vadd.xlane.f32.xlu1 %v4490_v39  ;;  %v2706_v61 = vadd.f32 %v2705_v40, %v2700_v42  ;;  %v2723_v39 = vmul.f32 %v2721_v57, %v10335_v15  ;;  %v2729_v31 = vmul.f32 %v2727_v55, %v10336_v22  ;;  %v2739_v19 = vpop.permute.xlu2 %2738 }
 0x453   :  { %v2712_v34 = vadd.f32 %v2711_v45, %v2706_v61  ;;  %v2628_v45 = vld [vmem:[#allocation4] sm:$0x3] }
 0x454   :  { %v2629_v57 = vadd.f32 %v2628_v45, %v2627_v41 }
 0x457   :  { %v2715_v48 = vpop.permute.xlu1 %2714 }
 0x458   :  { %v2717_v5 = vmul.f32 %v2715_v48, %v10334_v35  ;;  %v10338_v48 = vperm.slane %v8174_v1, 2  ;;  %v4491_v1 = vld [vmem:[%s9286_s0 + $0x1f8] sm:$0xff] }
 0x45a   :  { %v2718_v44 = vadd.f32 %v2717_v5, %v2712_v34  ;;  %v2741_v61 = vmul.f32 %v2739_v19, %v10338_v48  ;;  %v8471_v48 = vadd.s32 4294967272, %v8253_v24 }
 0x45c   :  { %v2724_v54 = vadd.f32 %v2723_v39, %v2718_v44 }
 0x45e   :  { %v2730_v40 = vadd.f32 %v2729_v31, %v2724_v54  ;;  %v1291_v54 = vpop.xlane.xlu0 %1290 }
 0x460   :  { %v2733_v25 = vpop.permute.xlu1 %2732 }
 0x461   :  { %v2735_v20 = vmul.f32 %v2733_v25, %v10337_v16 }
 0x463   :  { %v2736_v42 = vadd.f32 %v2735_v20, %v2730_v40 }
 0x465   :  { %v2742_v5 = vadd.f32 %v2741_v61, %v2736_v42 }
 0x466   :  { %v1297_v22 = vpop.xlane.xlu0 %1296 }
 0x467   :  { %v1341_v20 = vadd.f32 %v1297_v22, %v8295_v13 }
 0x469   :  { %v2745_v35 = vpop.permute.xlu1 %2744 }
 0x46a   :  { %v2747_v34 = vmul.f32 %v2745_v35, %v10339_v32  ;;  %2621 = vrot.lane.b32.xlu1 %v8320_v50, %s4542_s4  ;;  %v8484_v32 = vadd.s32 4294967264, %v8253_v24 }
 0x46c   :  { %v2748_v55 = vadd.f32 %v2747_v34, %v2742_v5  ;;  %v4492_v5 = vld [vmem:[%s9286_s0 + $0x1c8] sm:$0xff] }
 0x46e   :  { %v2749_v44 = vadd.f32 %v2748_v55, %v2629_v57  ;;  %v1303_v41 = vpop.xlane.xlu0 %1302  ;;  %v8488_v57 = vadd.s32 4294967256, %v8253_v24 }
 0x470   :  { %v8456_v15 = vadd.f32 %v8224_v30, %v2749_v44  ;;  %v1338_v30 = vadd.f32 %v1291_v54, %v8205_v47 }
 0x472   :  { %4310 = vtanh.f32 %v8456_v15  ;;  %v2466_v61 = vperm.slane %v1338_v30, %v8253_v24  ;;  %v8502_v30 = vadd.s32 4294967240, %v8253_v24 }
 0x478   :  { %v4311_v39 = vpop.eup %4310 }
 0x479   :  { %2773 = vrot.lane.b32.xlu0 %v4311_v39, %s4520_s17 }
 0x493   :  { %v1293_v31 = vpop.xlane.xlu2 %1292 }
 0x494   :  { %1320 = vadd.xlane.f32.xlu1 %v4491_v1  ;;  %v8463_v25 = vpop.xlane.xlu1 %1288  ;;  %v1339_v16 = vadd.f32 %v1293_v31, %v8290_v53  ;;  %v2471_v53 = vperm.slane %v1341_v20, %v8471_v48 }
 0x496   :  { %v2467_v40 = vperm.slane %v1339_v16, %v8257_v9 }
 0x498   :  { %v2468_v47 = vsel %vm2408_vm2, %v2467_v40, %v2466_v61  ;;  %v8506_v40 = vadd.s32 4294967232, %v8253_v24  ;;  %vm2448_vm2 = vcmask 786112  }
 0x49b   :  { %v1299_v45 = vpop.xlane.xlu2 %1298 }
 0x49c   :  { %v1295_v19 = vpop.xlane.xlu1 %1294  ;;  %v1342_v9 = vadd.f32 %v1299_v45, %v8226_v28  ;;  %v8492_v28 = vadd.s32 4294967248, %v8253_v24  ;;  %v8513_v45 = vadd.s32 4294967224, %v8253_v24 }
 0x49d   :  { %v1340_v42 = vadd.f32 %v1295_v19, %v8217_v43 }
 0x49e   :  { %v2473_v44 = vperm.slane %v1342_v9, %v8484_v32  ;;  %v8522_v9 = vadd.s32 4294967216, %v8253_v24 }
 0x49f   :  { %v2469_v35 = vperm.slane %v1340_v42, %v8264_v17  ;;  %v1344_v17 = vadd.f32 %v1303_v41, %v8229_v6  ;;  %v1307_v6 = vpop.xlane.xlu0 %1306 }
 0x4a1   :  { %v2470_v13 = vsel %vm2412_vm3, %v2469_v35, %v2468_v47  ;;  %v2477_v54 = vperm.slane %v1344_v17, %v8492_v28  ;;  %v4139_v17 = vmul.f32 -1.442695, %v8456_v15  ;;  %vm2619_vm3 = vcmask 74752  }
 0x4a2   :  { %v2472_v43 = vsel %vm2416_vm8, %v2471_v53, %v2470_v13 }
 0x4a3   :  { %1314 = vadd.xlane.f32.xlu0 %v4492_v5  ;;  %v2474_v1 = vsel %vm2420_vm9, %v2473_v44, %v2472_v43  ;;  %v8525_v5 = vadd.s32 4294967208, %v8253_v24  ;;  %4312 = vpow2.f32 %v4139_v17 }
 0x4a4   :  { %v1301_v34 = vpop.xlane.xlu1 %1300 }
 0x4a5   :  { %v1343_v55 = vadd.f32 %v1301_v34, %v8297_v11  ;;  %v1346_v11 = vadd.f32 %v1307_v6, %v8242_v3 }
 0x4a7   :  { %v2475_v39 = vperm.slane %v1343_v55, %v8488_v57  ;;  %v2481_v42 = vperm.slane %v1346_v11, %v8506_v40 }
 0x4a9   :  { %v2476_v22 = vsel %vm2424_vm10, %v2475_v39, %v2474_v1  ;;  %v4313_v44 = vpop.eup %4312 }
 0x4aa   :  { %v2478_v31 = vsel %vm2428_vm11, %v2477_v54, %v2476_v22  ;;  %v2754_v39 = vadd.f32 1.0, %v4313_v44 }
 0x4ac   :  { %v1305_v16 = vpop.xlane.xlu1 %1304  ;;  %4314 = vrcp.f32 %v2754_v39  ;;  %v2766_v11 = vand.u32 2147483648, %v2754_v39  ;;  %vm2760_vm5 = vweird.f32 %v2754_v39 }
 0x4ad   :  { %v1345_v20 = vadd.f32 %v1305_v16, %v8299_v56  ;;  %v1311_v56 = vpop.xlane.xlu0 %1310  ;;  %v2764_v16 = vand.u32 2147483647, %v2754_v39 }
 0x4ae   :  { %v1348_v13 = vadd.f32 %v1311_v56, %v8236_v52  ;;  %v4545_v56 = vmov 0  }
 0x4af   :  { %v2479_v19 = vperm.slane %v1345_v20, %v8502_v30  ;;  %vm2765_vm7 = vcmp.eq.f32.partialorder %v2764_v16, 8.507059e+37  ;;  %4197 = vset.pattern.permute.xlu2 %v4545_v56  ;;  %v1327_v16 = vadd.f32 %v8363_v58, %v7954_v63 }
 0x4b0   :  { %v2485_v34 = vperm.slane %v1348_v13, %v8522_v9 }
 0x4b1   :  { %v2480_v61 = vsel %vm2432_vm12, %v2479_v19, %v2478_v31  ;;  %v2767_v19 = vor.u32 1.1754944e-38, %v2766_v11  ;;  %v1325_v11 = vadd.f32 %v8283_v60, %v7950_v29 }
 0x4b2   :  { %v2482_v41 = vsel %vm2436_vm13, %v2481_v42, %v2480_v61  ;;  %v4315_v1 = vpop.eup %4314 }
 0x4b3   :  { %vm2761_vm4 = vweird.f32 %v4315_v1 }
 0x4b4   :  { %v1309_v3 = vpop.xlane.xlu1 %1308  ;;  %vm2762_vm6 = vmor %vm2760_vm5, %vm2761_vm4  ;;  %vm2452_vm4 = vcmask 851712  }
 0x4b5   :  { %v1347_v35 = vadd.f32 %v1309_v3, %v8232_v59  ;;  %v4543_v3 = vmov 1  }
 0x4b6   :  { %4198 = vset.pattern.permute.xlu0 %v4543_v3 }
 0x4b7   :  { %v2483_v53 = vperm.slane %v1347_v35, %v8513_v45  ;;  %2616 = vrot.lane.b32.xlu0 %v8320_v50, %s4521_s26  ;;  %v4544_v35 = vmov 3  }
 0x4b8   :  { %4201 = vset.pattern.permute.xlu1 %v4544_v35 }
 0x4b9   :  { %v2484_v47 = vsel %vm2440_vm14, %v2483_v53, %v2482_v41 }
 0x4ba   :  { %v2486_v55 = vsel %vm2444_vm15, %v2485_v34, %v2484_v47  ;;  %v8544_v47 = vadd.s32 4294967200, %v8253_v24 }
 0x4bc   :  { %v1313_v43 = vpop.xlane.xlu1 %1312 }
 0x4bd   :  { %v1349_v59 = vadd.f32 %v1313_v43, %v8240_v7  ;;  %v2756_v7 = vmul.f32 %v4315_v1, %v2754_v39  ;;  %v4493_v43 = vld [vmem:[%s9286_s0 + $0x1d8] sm:$0xff] }
 0x4bf   :  { %v2487_v50 = vperm.slane %v1349_v59, %v8525_v5  ;;  %v2757_v6 = vsub.f32 1.0, %v2756_v7  ;;  %v4548_v7 = vmov 6  }
 0x4c1   :  { %v2488_v52 = vsel %vm2448_vm2, %v2487_v50, %v2486_v55  ;;  %v2758_v22 = vmul.f32 %v4315_v1, %v2757_v6  ;;  %v4546_v55 = vmov 2  }
 0x4c3   :  { %v2759_v31 = vadd.f32 %v4315_v1, %v2758_v22  ;;  %v4550_v22 = vmov 8  }
 0x4c4   :  { %v8533_v54 = vpop.xlane.xlu1 %1318 }
 0x4c5   :  { %v2763_v20 = vsel %vm2762_vm6, %v4315_v1, %v2759_v31  ;;  %v1326_v31 = vadd.f32 %v8352_v10, %v7946_v14  ;;  %v1328_v14 = vadd.f32 %v8303_v18, %v7956_v51  ;;  %v1332_v51 = vadd.f32 %v8380_v12, %v7968_v36 }
 0x4c6   :  { %v8536_v61 = vsel %vm2765_vm7, %v2767_v19, %v2763_v20  ;;  %v2415_v19 = vperm.slane %v1325_v11, %v8471_v48  ;;  %v1330_v48 = vadd.f32 %v8305_v21, %v7962_v4  ;;  %v1334_v21 = vadd.f32 %v8384_v8, %v8234_v2 }
 0x4c7   :  { %v2771_v44 = vmul.f32 %v8536_v61, %v8309_v62  ;;  %v4551_v62 = vmov 0.0   ;;  %v2419_v20 = vperm.slane %v1326_v31, %v8484_v32  ;;  %v2427_v58 = vperm.slane %v1328_v14, %v8492_v28 }
 0x4c8   :  { %46 = vst [vmem:[#allocation2] sm:$0x3] %v4551_v62  ;;  %v2417_v29 = vsel %vm2416_vm8, %v2415_v19, %v8272_v49  ;;  %v4552_v32 = vmov 7   ;;  %v1331_v49 = vadd.f32 %v8316_v26, %v7964_v38  ;;  %v2443_v4 = vperm.slane %v1332_v51, %v8522_v9  ;;  %v10340_v9 = vld [vmem:[#allocation33_spill] sm:$0xff]  ;;  %v10346_v62 = vld [vmem:[#allocation72_spill] sm:$0xff] }
 0x4c9   :  { %v2421_v63 = vsel %vm2420_vm9, %v2419_v20, %v2417_v29  ;;  %v1333_v36 = vadd.f32 %v8307_v27, %v8286_v23  ;;  %v2451_v26 = vperm.slane %v1334_v21, %v8544_v47  ;;  %v1335_v2 = vadd.f32 %v10340_v9, %v8179_v37  ;;  %v8722_v9 = vld [vmem:[%s9291_s5 + $0x14] sm:$0xff] }
 0x4ca   :  { %v2439_v28 = vperm.slane %v1331_v49, %v8513_v45  ;;  %v2458_v45 = vadd.s32 4294967184, %v8253_v24  ;;  %v2462_v27 = vadd.s32 4294967176, %v8253_v24  ;;  %vm2456_vm8 = vcmask 917312  }
 0x4cb   :  { %vm2460_vm9 = vcmask 982912   ;;  %vm3756_vm6 = vcmp.eq.s32.totalorder %v8253_v24, 1  ;;  %vm3765_vm7 = vcmp.eq.s32.totalorder %v8253_v24, 2 }
 0x4cf   :  { %v2370_v29 = vld [vmem:[#allocation2] sm:$0x3] }
 0x4dc   :  { %v2622_v15 = vpop.permute.xlu1 %2621 }
 0x4dd   :  { %2625 = vst.msk [vmem:[#allocation8 + $0x2] sm:$0x3] %vm2619_vm3, %v2622_v15  ;;  %v4549_v15 = vmov 4  }
 0x4eb   :  { %v2774_v42 = vpop.permute.xlu0 %2773 }
 0x4ec   :  { %v2776_v41 = vmul.f32 %v2774_v42, %v8536_v61  ;;  %v2423_v42 = vperm.slane %v1327_v16, %v8488_v57 }
 0x4ee   :  { %2778 = vrot.lane.b32.xlu2 %v2776_v41, %s4521_s26  ;;  %v1329_v41 = vadd.f32 %v8372_v0, %v7959_v33  ;;  %v2425_v60 = vsel %vm2424_vm10, %v2423_v42, %v2421_v63  ;;  %v2435_v0 = vperm.slane %v1330_v48, %v8506_v40  ;;  %v2454_v40 = vadd.s32 4294967192, %v8253_v24 }
 0x4ef   :  { %v2429_v33 = vsel %vm2428_vm11, %v2427_v58, %v2425_v60  ;;  %vm2464_vm10 = vcmask 1048512   ;;  %v4553_v42 = vmov 9  }
 0x4f0   :  { %v2431_v10 = vperm.slane %v1329_v41, %v8502_v30  ;;  %v2447_v30 = vperm.slane %v1333_v36, %v8525_v5 }
 0x4f2   :  { %v2433_v18 = vsel %vm2432_vm12, %v2431_v10, %v2429_v33 }
 0x4f3   :  { %v2437_v57 = vsel %vm2436_vm13, %v2435_v0, %v2433_v18 }
 0x4f4   :  { %v2441_v12 = vsel %vm2440_vm14, %v2439_v28, %v2437_v57 }
 0x4f5   :  { %v2445_v38 = vsel %vm2444_vm15, %v2443_v4, %v2441_v12 }
 0x4f6   :  { %v2449_v23 = vsel %vm2448_vm2, %v2447_v30, %v2445_v38 }
 0x4f7   :  { %v2453_v5 = vsel %vm2452_vm4, %v2451_v26, %v2449_v23  ;;  %v8735_v23 = vld [vmem:[%s9291_s5 + $0x1e] sm:$0xff] }
 0x507   :  { %v1321_v8 = vpop.xlane.xlu1 %1320 }
 0x516   :  { %v1315_v53 = vpop.xlane.xlu0 %1314 }
 0x517   :  { %v1350_v13 = vadd.f32 %v1315_v53, %v8244_v46  ;;  %1316 = vadd.xlane.f32.xlu2 %v4493_v43  ;;  %v8560_v46 = vld [vmem:[#allocation8 + $0x2] sm:$0x3]  ;;  %v10341_v53 = vld [vmem:[#allocation25_spill] sm:$0xff] }
 0x518   :  { %v10343_v43 = vld [vmem:[#allocation73_spill] sm:$0xff] }
 0x519   :  { %v2489_v59 = vperm.slane %v1350_v13, %v8544_v47  ;;  %v1337_v13 = vadd.f32 %v8463_v25, %v10341_v53  ;;  %v10342_v47 = vld [vmem:[#allocation26_spill] sm:$0xff]  ;;  %v2840_v53 = vperm.slane %v8722_v9, 0 }
 0x51b   :  { %v8552_v17 = vsel %vm2452_vm4, %v2489_v59, %v2488_v52  ;;  %v4547_v52 = vmov 5   ;;  %v1336_v59 = vadd.f32 %v10343_v43, %v10342_v47  ;;  %v2463_v16 = vperm.slane %v1337_v13, %v2462_v27 }
 0x51c   :  { %v2948_v43 = vperm.slane %v8722_v9, 3  ;;  %vm3774_vm4 = vcmp.eq.s32.totalorder %v8253_v24, 3 }
 0x51d   :  { %v2459_v20 = vperm.slane %v1336_v59, %v2458_v45 }
 0x529   :  { %v2617_v34 = vpop.permute.xlu0 %2616 }
 0x52a   :  { %2620 = vst.msk [vmem:[#allocation7] sm:$0x3] %vm2619_vm3, %v2617_v34  ;;  %v10344_v34 = vld [vmem:[#allocation70_spill] sm:$0xff] }
 0x531   :  { %v8555_v50 = vld [vmem:[#allocation7] sm:$0x3] }
 0x532   :  { %2923 = vperm.xlu1 %4201, %v8555_v50   ;;  %2851 = vperm.xlu0 %4198, %v8555_v50  }
 0x533   :  { %2812 = vperm.xlu2 %4197, %v8555_v50  }
 0x53a   :  { %2940 = vperm.xlu1 %4201, %v8560_v46   ;;  %4200 = vset.pattern.permute.xlu0 %v4546_v55 }
 0x53b   :  { %2887 = vperm.xlu0 %4200, %v8555_v50  }
 0x542   :  { %4204 = vset.pattern.permute.xlu1 %v4547_v52 }
 0x543   :  { %2995 = vperm.xlu1 %4204, %v8555_v50   ;;  %2904 = vperm.xlu0 %4200, %v8560_v46  }
 0x548   :  { %v2779_v39 = vpop.permute.xlu2 %2778 }
 0x549   :  { %v2781_v1 = vadd.f32 %v2779_v39, %v2771_v44  ;;  %v1352_v44 = vadd.f32 %v8533_v54, %v10344_v34  ;;  %v2455_v39 = vperm.slane %v1335_v2, %v2454_v40 }
 0x54b   :  { %4316 = vtanh.f32 %v2781_v1  ;;  %4207 = vset.pattern.permute.xlu1 %v4548_v7  ;;  %4203 = vset.pattern.permute.xlu0 %v4549_v15  ;;  %v10345_v1 = vld [vmem:[#allocation28_spill] sm:$0xff]  ;;  %v2457_v11 = vsel %vm2456_vm8, %v2455_v39, %v2453_v5  ;;  %v2493_v19 = vperm.slane %v1352_v44, %v2458_v45  ;;  %v8730_v45 = vld [vmem:[%s9291_s5 + $0xa] sm:$0xff]  ;;  %v2876_v5 = vperm.slane %v8722_v9, 1 }
 0x54c   :  { %3048 = vperm.xlu1 %4207, %v8560_v46   ;;  %2976 = vperm.xlu0 %4203, %v8560_v46   ;;  %v2461_v14 = vsel %vm2460_vm9, %v2459_v20, %v2457_v11  ;;  %v9766_v34 = vperm.slane %v8730_v45, 3  ;;  %v9765_v44 = vperm.slane %v8735_v23, 3 }
 0x54d   :  { %v2465_v60 = vsel %vm2464_vm10, %v2463_v16, %v2461_v14 }
 0x551   :  { %v4317_v6 = vpop.eup %4316 }
 0x552   :  { %2784 = vrot.lane.b32.xlu2 %v4317_v6, %s4520_s17  ;;  %v1353_v6 = vadd.f32 %v1321_v8, %v10345_v1  ;;  %v2912_v1 = vperm.slane %v8722_v9, 2 }
 0x554   :  { %4209 = vset.pattern.permute.xlu1 %v4550_v22  ;;  %4206 = vset.pattern.permute.xlu0 %v4548_v7  ;;  %v2495_v41 = vperm.slane %v1353_v6, %v2462_v27  ;;  %v2835_v6 = vperm.slane %v8730_v45, 0 }
 0x555   :  { %3103 = vperm.xlu1 %4209, %v8555_v50  }
 0x55a   :  { %2832 = vperm.xlu2 %4197, %v8560_v46  }
 0x55d   :  { %3120 = vperm.xlu1 %4209, %v8560_v46  }
 0x562   :  { %4199 = vset.pattern.permute.xlu2 %v4543_v3 }
 0x563   :  { %2868 = vperm.xlu2 %4199, %v8560_v46  }
 0x565   :  { %4213 = vset.pattern.permute.xlu1 %v4543_v3 }
 0x56b   :  { %4202 = vset.pattern.permute.xlu2 %v4549_v15 }
 0x56c   :  { %2959 = vperm.xlu2 %4202, %v8555_v50  }
 0x574   :  { %4205 = vset.pattern.permute.xlu2 %v4547_v52 }
 0x575   :  { %3012 = vperm.xlu2 %4205, %v8560_v46  }
 0x57d   :  { %4208 = vset.pattern.permute.xlu2 %v4552_v32 }
 0x57e   :  { %3067 = vperm.xlu2 %4208, %v8555_v50  }
 0x586   :  { %3084 = vperm.xlu2 %4208, %v8560_v46  }
 0x58a   :  { %v1317_v37 = vpop.xlane.xlu2 %1316 }
 0x58b   :  { %v1351_v31 = vadd.f32 %v1317_v37, %v10346_v62  ;;  %v2845_v62 = vperm.slane %v8735_v23, 0 }
 0x58d   :  { %v2491_v25 = vperm.slane %v1351_v31, %v2454_v40  ;;  %v8717_v40 = vld [vmem:[%s9291_s5] sm:$0xff] }
 0x58e   :  { %4210 = vset.pattern.permute.xlu2 %v4553_v42  ;;  %v2820_v8 = vperm.slane %v8717_v40, 0  ;;  %v9759_v47 = vperm.slane %v8717_v40, 3  ;;  %v2858_v59 = vperm.slane %v8717_v40, 1  ;;  %v2894_v37 = vperm.slane %v8717_v40, 2 }
 0x58f   :  { %v2492_v54 = vsel %vm2456_vm8, %v2491_v25, %v8552_v17  ;;  %3139 = vperm.xlu2 %4210, %v8555_v50   ;;  %v2907_v25 = vperm.slane %v8730_v45, 2  ;;  %vm3783_vm8 = vcmp.eq.s32.totalorder %v8253_v24, 4 }
 0x590   :  { %v2494_v63 = vsel %vm2460_vm9, %v2493_v19, %v2492_v54  ;;  %v2871_v19 = vperm.slane %v8730_v45, 1  ;;  %v8768_v54 = vld [vmem:[%s9292_s6] sm:$0xff]  ;;  %vm3792_vm9 = vcmp.eq.s32.totalorder %v8253_v24, 5 }
 0x591   :  { %v2496_v10 = vsel %vm2464_vm10, %v2495_v41, %v2494_v63  ;;  %v9760_v63 = vperm.slane %v8768_v54, 0  ;;  %vm3801_vm10 = vcmp.eq.s32.totalorder %v8253_v24, 6 }
 0x592   :  { %v2497_v58 = vsel %vm272_vm0, %v2496_v10, %v2465_v60  ;;  %v8651_v33 = vpop.permute.xlu2 %2812  ;;  %v9761_v60 = vperm.slane %v8768_v54, 1 }
 0x593   :  { %v2499_v48 = vadd.f32 %v2497_v58, %v2370_v29  ;;  %v8750_v39 = vmul.f32 %v2820_v8, %v8651_v33  ;;  %v8756_v31 = vmul.f32 %v2840_v53, %v8651_v33 }
 0x594   :  { %v3189_v16 = vmul.f32 0.0, %v9761_v60 }
 0x595   :  { %2500 = vst [vmem:[#allocation2] sm:$0x3] %v2499_v48 }
 0x597   :  { %4212 = vset.pattern.permute.xlu2 %v4543_v3 }
 0x5a4   :  { %v8662_v17 = vpop.permute.xlu0 %2851 }
 0x5ac   :  { %v2785_v51 = vpop.permute.xlu2 %2784 }
 0x5ad   :  { %v8654_v49 = vmul.f32 %v2785_v51, %v8536_v61  ;;  %v8664_v18 = vpop.permute.xlu0 %2887 }
 0x5af   :  { %2789 = vrot.lane.b32.xlu0 %v8654_v49, %s4521_s26 }
 0x5b5   :  { %v8666_v3 = vpop.permute.xlu0 %2904 }
 0x5b7   :  { %2794 = vrot.lane.b32.xlu0 %v8654_v49, %s4542_s4 }
 0x5be   :  { %v8668_v0 = vpop.permute.xlu0 %2976 }
 0x5bf   :  { %3031 = vperm.xlu0 %4206, %v8555_v50  }
 0x5c7   :  { %4211 = vset.pattern.permute.xlu0 %v4545_v56  ;;  %v8675_v56 = vpop.permute.xlu2 %2832 }
 0x5c8   :  { %v2837_v58 = vmul.f32 %v2835_v6, %v8675_v56  ;;  %v2847_v48 = vmul.f32 %v2845_v62, %v8675_v56  ;;  %v9764_v56 = vperm.slane %v8768_v54, 2 }
 0x621   :  { %v2790_v61 = vpop.permute.xlu0 %2789 }
 0x622   :  { %2793 = vst.msk [vmem:[#allocation7 + $0x2] sm:$0x3] %vm2619_vm3, %v2790_v61 }
 0x629   :  { %v2795_v57 = vpop.permute.xlu0 %2794  ;;  %v2799_v4 = vld [vmem:[#allocation7 + $0x2] sm:$0x3] }
 0x62a   :  { %2797 = vst.msk [vmem:[#allocation8] sm:$0x3] %vm2619_vm3, %v2795_v57  ;;  %2855 = vperm.xlu2 %4212, %v2799_v4   ;;  %2817 = vperm.xlu0 %4211, %v2799_v4  }
 0x631   :  { %v2800_v50 = vld [vmem:[#allocation8] sm:$0x3]  ;;  %v8737_v27 = vpop.permute.xlu0 %3031 }
 0x632   :  { %4214 = vset.pattern.permute.xlu2 %v4546_v55  ;;  %2864 = vperm.xlu1 %4213, %v2800_v50   ;;  %v8680_v55 = vpop.permute.xlu2 %2868 }
 0x633   :  { %2827 = vperm.xlu0 %4211, %v2800_v50   ;;  %2891 = vperm.xlu2 %4214, %v2799_v4  }
 0x63a   :  { %4217 = vset.pattern.permute.xlu1 %v4549_v15  ;;  %v8685_v21 = vpop.permute.xlu2 %2959 }
 0x63b   :  { %4216 = vset.pattern.permute.xlu0 %v4544_v35  ;;  %2900 = vperm.xlu2 %4214, %v2800_v50  }
 0x63c   :  { %2963 = vperm.xlu1 %4217, %v2799_v4   ;;  %2936 = vperm.xlu0 %4216, %v2800_v50  }
 0x643   :  { %4215 = vset.pattern.permute.xlu2 %v4544_v35  ;;  %v8691_v35 = vpop.permute.xlu2 %3012 }
 0x644   :  { %4220 = vset.pattern.permute.xlu1 %v4547_v52  ;;  %4223 = vset.pattern.permute.xlu0 %v4552_v32 }
 0x645   :  { %2927 = vperm.xlu2 %4215, %v2799_v4   ;;  %3008 = vperm.xlu1 %4220, %v2800_v50  }
 0x646   :  { %3071 = vperm.xlu0 %4223, %v2799_v4  }
 0x64b   :  { %v8696_v28 = vpop.permute.xlu2 %3067 }
 0x64d   :  { %4218 = vset.pattern.permute.xlu2 %v4549_v15  ;;  %4221 = vset.pattern.permute.xlu1 %v4548_v7  ;;  %v10347_v15 = vmov 97  }
 0x64e   :  { %4226 = vset.pattern.permute.xlu0 %v4550_v22  ;;  %2972 = vperm.xlu2 %4218, %v2800_v50  }
 0x64f   :  { %3035 = vperm.xlu1 %4221, %v2799_v4   ;;  %3116 = vperm.xlu0 %4226, %v2800_v50  }
 0x653   :  { %v8700_v36 = vpop.permute.xlu2 %3084 }
 0x656   :  { %4219 = vset.pattern.permute.xlu2 %v4547_v52  ;;  %v10348_v52 = vmov 98  }
 0x657   :  { %4224 = vset.pattern.permute.xlu1 %v4552_v32  ;;  %4229 = vset.pattern.permute.xlu0 %v4553_v42  ;;  %v2924_v32 = vpop.permute.xlu1 %2923 }
 0x658   :  { %2999 = vperm.xlu2 %4219, %v2799_v4   ;;  %3080 = vperm.xlu1 %4224, %v2800_v50   ;;  %v8776_v10 = vmul.f32 %v9759_v47, %v2924_v32  ;;  %v8789_v11 = vmul.f32 %v2948_v43, %v2924_v32 }
 0x659   :  { %3156 = vperm.xlu0 %4229, %v8560_v46  }
 0x65b   :  { %v8706_v12 = vpop.permute.xlu2 %3139 }
 0x65f   :  { %v8703_v46 = vpop.permute.xlu1 %2940 }
 0x660   :  { %4222 = vset.pattern.permute.xlu2 %v4548_v7  ;;  %4227 = vset.pattern.permute.xlu1 %v4553_v42  ;;  %v10349_v7 = vmov 96  }
 0x661   :  { %3044 = vperm.xlu2 %4222, %v2800_v50   ;;  %3143 = vperm.xlu1 %4227, %v2799_v4  }
 0x662   :  { %4231 = vset.pattern.permute.xlu0 %v10347_v15 }
 0x667   :  { %v8708_v38 = vpop.permute.xlu1 %2995 }
 0x669   :  { %4225 = vset.pattern.permute.xlu2 %v4550_v22  ;;  %4232 = vset.pattern.permute.xlu1 %v10348_v52 }
 0x66a   :  { %3107 = vperm.xlu2 %4225, %v2799_v4  }
 0x66f   :  { %v8710_v30 = vpop.permute.xlu1 %3048 }
 0x672   :  { %4228 = vset.pattern.permute.xlu2 %v4553_v42  ;;  %v2881_v42 = vperm.slane %v8735_v23, 1 }
 0x673   :  { %3152 = vperm.xlu2 %4228, %v2800_v50   ;;  %v3187_v50 = vmul.f32 0.0, %v9760_v63 }
 0x674   :  { %v2883_v32 = vmul.f32 %v2881_v42, %v8680_v55 }
 0x675   :  { %v3190_v20 = vadd.f32 %v3189_v16, %v3187_v50 }
 0x677   :  { %v8724_v2 = vpop.permute.xlu1 %3103 }
 0x67b   :  { %4230 = vset.pattern.permute.xlu2 %v10349_v7 }
 0x67f   :  { %v8781_v51 = vpop.permute.xlu1 %3120 }
 0x684   :  { %v2856_v26 = vpop.permute.xlu2 %2855 }
 0x685   :  { %v2860_v29 = vmul.f32 %v2858_v59, %v2856_v26  ;;  %v2878_v14 = vmul.f32 %v2876_v5, %v2856_v26  ;;  %v3192_v26 = vmul.f32 0.0, %v9764_v56 }
 0x687   :  { %v3193_v50 = vadd.f32 %v3192_v26, %v3190_v20  ;;  %v2909_v20 = vmul.f32 %v2907_v25, %v8666_v3 }
 0x68d   :  { %v8712_v22 = vpop.permute.xlu2 %2891 }
 0x695   :  { %v8740_v13 = vpop.permute.xlu2 %2900 }
 0x69c   :  { %v2818_v61 = vpop.permute.xlu0 %2817 }
 0x69d   :  { %v2822_v57 = vmul.f32 %v2820_v8, %v2818_v61  ;;  %v2842_v4 = vmul.f32 %v2840_v53, %v2818_v61  ;;  %v9763_v8 = vperm.slane %v8768_v54, 3  ;;  %v2859_v53 = vmul.f32 %v2858_v59, %v8662_v17 }
 0x69e   :  { %v2873_v61 = vmul.f32 %v2871_v19, %v8680_v55  ;;  %v2877_v59 = vmul.f32 %v2876_v5, %v8662_v17  ;;  %v2955_v17 = vmul.f32 %v9765_v44, %v8703_v46  ;;  %v2895_v5 = vmul.f32 %v2894_v37, %v8664_v18 }
 0x69f   :  { %v2839_v33 = vadd.f32 %v2837_v58, %v2822_v57  ;;  %v2849_v41 = vadd.f32 %v2847_v48, %v2842_v4  ;;  %v2928_v47 = vpop.permute.xlu2 %2927  ;;  %v3195_v16 = vmul.f32 0.0, %v9763_v8  ;;  %v9762_v48 = vperm.slane %v8768_v54, 4 }
 0x6a0   :  { %v2896_v57 = vmul.f32 %v2894_v37, %v8712_v22  ;;  %v2914_v4 = vmul.f32 %v2912_v1, %v8712_v22  ;;  %v2913_v37 = vmul.f32 %v2912_v1, %v8664_v18  ;;  %v3203_v44 = vperm.slane %v8768_v54, 6 }
 0x6a1   :  { %v2862_v63 = vadd.f32 %v2860_v29, %v2839_v33  ;;  %v2880_v58 = vadd.f32 %v2878_v14, %v2849_v41  ;;  %v3198_v29 = vmul.f32 0.0, %v9762_v48  ;;  %v3200_v41 = vperm.slane %v8768_v54, 5 }
 0x6a2   :  { %v2945_v14 = vmul.f32 %v9766_v34, %v8703_v46  ;;  %v3196_v22 = vadd.f32 %v3195_v16, %v3193_v50  ;;  %v3015_v34 = vperm.slane %v8730_v45, 5  ;;  %v3206_v1 = vperm.slane %v8768_v54, 7 }
 0x6a3   :  { %v2875_v55 = vadd.f32 %v2873_v61, %v2862_v63  ;;  %v2885_v60 = vadd.f32 %v2883_v32, %v2880_v58  ;;  %v10350_v63 = vperm.slane %v8735_v23, 2  ;;  %v3201_v46 = vmul.f32 0.0, %v3200_v41 }
 0x6a4   :  { %v2865_v33 = vpop.permute.xlu1 %2864  ;;  %v3199_v56 = vadd.f32 %v3198_v29, %v3196_v22 }
 0x6a5   :  { %v2919_v61 = vmul.f32 %v10350_v63, %v8666_v3  ;;  %v2898_v32 = vadd.f32 %v2896_v57, %v2875_v55  ;;  %v2916_v26 = vadd.f32 %v2914_v4, %v2885_v60  ;;  %v2828_v58 = vpop.permute.xlu0 %2827  ;;  %v3025_v3 = vperm.slane %v8735_v23, 5 }
 0x6a6   :  { %v2836_v48 = vmul.f32 %v2835_v6, %v2828_v58  ;;  %v2846_v8 = vmul.f32 %v2845_v62, %v2828_v58  ;;  %v10351_v57 = vperm.slane %v8717_v40, 3  ;;  %v2950_v55 = vmul.f32 %v2948_v43, %v2928_v47 }
 0x6a7   :  { %v2911_v16 = vadd.f32 %v2909_v20, %v2898_v32  ;;  %v2921_v50 = vadd.f32 %v2919_v61, %v2916_v26  ;;  %v3202_v18 = vadd.f32 %v3201_v46, %v3199_v56  ;;  %v2872_v29 = vmul.f32 %v2871_v19, %v2865_v33 }
 0x6a8   :  { %v2838_v60 = vadd.f32 %v2836_v48, %v8750_v39  ;;  %v2848_v6 = vadd.f32 %v2846_v8, %v8756_v31  ;;  %v2973_v62 = vpop.permute.xlu2 %2972  ;;  %v2932_v4 = vmul.f32 %v10351_v57, %v2928_v47  ;;  %v2882_v22 = vmul.f32 %v2881_v42, %v2865_v33  ;;  %v8848_v31 = vld [vmem:[%s9292_s6 + $0x8] sm:$0xff] }
 0x6a9   :  { %v10352_v8 = vperm.slane %v8730_v45, 4  ;;  %v2952_v56 = vadd.f32 %v2950_v55, %v2921_v50  ;;  %v3204_v48 = vmul.f32 0.0, %v3203_v44  ;;  %v10353_v19 = vperm.slane %v8735_v23, 4 }
 0x6aa   :  { %v2861_v20 = vadd.f32 %v2859_v53, %v2838_v60  ;;  %v2879_v39 = vadd.f32 %v2877_v59, %v2848_v6  ;;  %v2934_v43 = vadd.f32 %v2932_v4, %v2911_v16  ;;  %v10354_v53 = vperm.slane %v8717_v40, 4 }
 0x6ab   :  { %v2981_v47 = vmul.f32 %v10352_v8, %v8668_v0  ;;  %v2991_v42 = vmul.f32 %v10353_v19, %v8668_v0  ;;  %v10355_v61 = vperm.slane %v8722_v9, 4  ;;  %v3205_v26 = vadd.f32 %v3204_v48, %v3202_v18 }
 0x6ac   :  { %v2967_v59 = vmul.f32 %v10354_v53, %v8685_v21  ;;  %v2874_v33 = vadd.f32 %v2872_v29, %v2861_v20  ;;  %v2884_v63 = vadd.f32 %v2882_v22, %v2879_v39  ;;  %v3207_v58 = vmul.f32 0.0, %v3206_v1 }
 0x6ad   :  { %v2985_v32 = vmul.f32 %v10355_v61, %v8685_v21  ;;  %v3209_v46 = vperm.slane %v8848_v31, 0  ;;  %v2908_v0 = vmul.f32 %v2907_v25, %v8740_v13  ;;  %v10356_v16 = vperm.slane %v8735_v23, 2 }
 0x6ae   :  { %v2964_v60 = vpop.permute.xlu1 %2963  ;;  %v2897_v6 = vadd.f32 %v2895_v5, %v2874_v33  ;;  %v2915_v57 = vadd.f32 %v2913_v37, %v2884_v63  ;;  %v2947_v4 = vadd.f32 %v2945_v14, %v2934_v43  ;;  %v2957_v55 = vadd.f32 %v2955_v17, %v2952_v56  ;;  %v2937_v20 = vpop.permute.xlu0 %2936 }
 0x6af   :  { %v2918_v50 = vmul.f32 %v10356_v16, %v8740_v13  ;;  %v10357_v21 = vmov %v10354_v53  ;;  %v10358_v29 = vmov %v10355_v61  ;;  %v3017_v25 = vmul.f32 %v3015_v34, %v8691_v35 }
 0x6b0   :  { %v2968_v18 = vmul.f32 %v10357_v21, %v2964_v60  ;;  %v2986_v22 = vmul.f32 %v10358_v29, %v2964_v60  ;;  %v2910_v39 = vadd.f32 %v2908_v0, %v2897_v6  ;;  %v3212_v13 = vperm.slane %v8848_v31, 1 }
 0x6b1   :  { %v2920_v8 = vadd.f32 %v2918_v50, %v2915_v57  ;;  %v3208_v37 = vadd.f32 %v3207_v58, %v3205_v26  ;;  %v3210_v14 = vmul.f32 0.0, %v3209_v46  ;;  %v10359_v43 = vperm.slane %v8730_v45, 3 }
 0x6b2   :  { %v2970_v48 = vadd.f32 %v2968_v18, %v2947_v4  ;;  %v2988_v5 = vadd.f32 %v2986_v22, %v2957_v55  ;;  %v2933_v17 = vadd.f32 %v8776_v10, %v2910_v39  ;;  %v10360_v53 = vperm.slane %v8735_v23, 3  ;;  %v3000_v63 = vpop.permute.xlu2 %2999 }
 0x6b3   :  { %v2944_v56 = vmul.f32 %v10359_v43, %v2937_v20  ;;  %v2951_v19 = vadd.f32 %v8789_v11, %v2920_v8  ;;  %v10361_v16 = vperm.slane %v8717_v40, 5  ;;  %v10362_v26 = vperm.slane %v8722_v9, 5 }
 0x6b4   :  { %v2954_v33 = vmul.f32 %v10360_v53, %v2937_v20  ;;  %v2983_v61 = vadd.f32 %v2981_v47, %v2970_v48  ;;  %v2993_v0 = vadd.f32 %v2991_v42, %v2988_v5  ;;  %v3027_v10 = vmul.f32 %v3025_v3, %v8691_v35 }
 0x6b5   :  { %v3004_v50 = vmul.f32 %v10361_v16, %v3000_v63  ;;  %v3022_v58 = vmul.f32 %v10362_v26, %v3000_v63  ;;  %v2946_v60 = vadd.f32 %v2944_v56, %v2933_v17  ;;  %v3215_v11 = vperm.slane %v8848_v31, 2 }
 0x6b6   :  { %v2956_v6 = vadd.f32 %v2954_v33, %v2951_v19  ;;  %v3211_v55 = vadd.f32 %v3210_v14, %v3208_v37  ;;  %v3213_v47 = vmul.f32 0.0, %v3212_v13  ;;  %v10363_v42 = vperm.slane %v8730_v45, 4 }
 0x6b7   :  { %v3006_v57 = vadd.f32 %v3004_v50, %v2983_v61  ;;  %v3024_v4 = vadd.f32 %v3022_v58, %v2993_v0  ;;  %v10364_v18 = vperm.slane %v8735_v23, 4  ;;  %v2969_v22 = vadd.f32 %v2967_v59, %v2946_v60  ;;  %v3009_v5 = vpop.permute.xlu1 %3008 }
 0x6b8   :  { %v2980_v21 = vmul.f32 %v10363_v42, %v2973_v62  ;;  %v2987_v20 = vadd.f32 %v2985_v32, %v2956_v6  ;;  %v10365_v35 = vmov %v10361_v16  ;;  %v10366_v8 = vmov %v10362_v26 }
 0x6b9   :  { %v2990_v29 = vmul.f32 %v10364_v18, %v2973_v62  ;;  %v3003_v39 = vmul.f32 %v10365_v35, %v8708_v38  ;;  %v3021_v48 = vmul.f32 %v10366_v8, %v8708_v38  ;;  %v3019_v37 = vadd.f32 %v3017_v25, %v3006_v57 }
 0x6ba   :  { %v3029_v14 = vadd.f32 %v3027_v10, %v3024_v4  ;;  %v3038_v17 = vperm.slane %v8717_v40, 6  ;;  %v3056_v43 = vperm.slane %v8722_v9, 6  ;;  %v2982_v56 = vadd.f32 %v2980_v21, %v2969_v22 }
 0x6bb   :  { %v2992_v19 = vadd.f32 %v2990_v29, %v2987_v20  ;;  %v3214_v62 = vadd.f32 %v3213_v47, %v3211_v55  ;;  %v3216_v59 = vmul.f32 0.0, %v3215_v11  ;;  %v9775_v32 = vperm.slane %v8848_v31, 3  ;;  %v3045_v16 = vpop.permute.xlu2 %3044 }
 0x6bc   :  { %v3005_v53 = vadd.f32 %v3003_v39, %v2982_v56  ;;  %v3016_v33 = vmul.f32 %v3015_v34, %v3009_v5  ;;  %v3026_v25 = vmul.f32 %v3025_v3, %v3009_v5  ;;  %v3051_v63 = vperm.slane %v8730_v45, 6 }
 0x6bd   :  { %v3023_v38 = vadd.f32 %v3021_v48, %v2992_v19  ;;  %v3061_v61 = vperm.slane %v8735_v23, 6  ;;  %v3074_v0 = vperm.slane %v8717_v40, 7  ;;  %v3039_v50 = vmul.f32 %v3038_v17, %v8737_v27  ;;  %v3072_v40 = vpop.permute.xlu0 %3071 }
 0x6be   :  { %v3057_v26 = vmul.f32 %v3056_v43, %v8737_v27  ;;  %v3018_v58 = vadd.f32 %v3016_v33, %v3005_v53  ;;  %v3092_v60 = vperm.slane %v8722_v9, 7  ;;  %v3217_v34 = vadd.f32 %v3216_v59, %v3214_v62 }
 0x6bf   :  { %v3028_v10 = vadd.f32 %v3026_v25, %v3023_v38  ;;  %v3219_v6 = vmul.f32 0.0, %v9775_v32  ;;  %v9774_v3 = vperm.slane %v8848_v31, 4  ;;  %v3052_v55 = vmul.f32 %v3051_v63, %v3045_v16 }
 0x6c0   :  { %v3041_v57 = vadd.f32 %v3039_v50, %v3018_v58  ;;  %v3062_v47 = vmul.f32 %v3061_v61, %v3045_v16  ;;  %v3075_v42 = vmul.f32 %v3074_v0, %v8696_v28  ;;  %v3093_v27 = vmul.f32 %v3092_v60, %v8696_v28  ;;  %v8939_v28 = vld [vmem:[%s9291_s5 + $0x8] sm:$0x3] }
 0x6c1   :  { %v3059_v4 = vadd.f32 %v3057_v26, %v3028_v10  ;;  %v3036_v29 = vpop.permute.xlu1 %3035  ;;  %v3220_v22 = vadd.f32 %v3219_v6, %v3217_v34  ;;  %v3222_v9 = vmul.f32 0.0, %v9774_v3  ;;  %v9773_v20 = vperm.slane %v8848_v31, 5 }
 0x6c2   :  { %v3054_v21 = vadd.f32 %v3052_v55, %v3041_v57  ;;  %v3040_v35 = vmul.f32 %v3038_v17, %v3036_v29  ;;  %v3058_v39 = vmul.f32 %v3056_v43, %v3036_v29  ;;  %v3087_v8 = vperm.slane %v8730_v45, 7  ;;  %v8944_v17 = vld [vmem:[%s9291_s5 + $0x1c] sm:$0x3] }
 0x6c3   :  { %v3064_v18 = vadd.f32 %v3062_v47, %v3059_v4  ;;  %v3097_v48 = vperm.slane %v8735_v23, 7  ;;  %v3053_v19 = vmul.f32 %v3051_v63, %v8710_v30  ;;  %v3063_v62 = vmul.f32 %v3061_v61, %v8710_v30 }
 0x6c4   :  { %v3077_v5 = vadd.f32 %v3075_v42, %v3054_v21  ;;  %v3042_v43 = vadd.f32 %v3040_v35, %v3019_v37  ;;  %v3060_v45 = vadd.f32 %v3058_v39, %v3029_v14  ;;  %v3223_v59 = vadd.f32 %v3222_v9, %v3220_v22  ;;  %v3108_v63 = vpop.permute.xlu2 %3107  ;;  %v2805_v14 = vld [vmem:[%s9291_s5 + $0x12] sm:$0x3] }
 0x6c5   :  { %v3095_v56 = vadd.f32 %v3093_v27, %v3064_v18  ;;  %v3225_v23 = vmul.f32 0.0, %v9773_v20  ;;  %v9772_v53 = vperm.slane %v8848_v31, 6  ;;  %v3076_v33 = vmul.f32 %v3074_v0, %v3072_v40  ;;  %v2809_v0 = vld [vmem:[%s9291_s5 + $0x26] sm:$0x3]  ;;  %v3117_v34 = vpop.permute.xlu0 %3116  ;;  %v8967_v42 = vld [vmem:[%s9292_s6 + $0x10] sm:$0xf] }
 0x6c6   :  { %v3094_v30 = vmul.f32 %v3092_v60, %v3072_v40  ;;  %v3055_v38 = vadd.f32 %v3053_v19, %v3042_v43  ;;  %v3065_v25 = vadd.f32 %v3063_v62, %v3060_v45  ;;  %v3110_v61 = vperm.slane %v8939_v28, 0 }
 0x6c7   :  { %v3128_v16 = vperm.slane %v8944_v17, 0  ;;  %v3089_v50 = vmul.f32 %v3087_v8, %v8700_v36  ;;  %v3146_v37 = vperm.slane %v8939_v28, 1  ;;  %v3099_v26 = vmul.f32 %v3097_v48, %v8700_v36 }
 0x6c8   :  { %v3078_v58 = vadd.f32 %v3076_v33, %v3055_v38  ;;  %v3096_v10 = vadd.f32 %v3094_v30, %v3065_v25  ;;  %v9771_v60 = vperm.slane %v8848_v31, 7  ;;  %v3226_v6 = vadd.f32 %v3225_v23, %v3223_v59 }
 0x6c9   :  { %v3228_v57 = vmul.f32 0.0, %v9772_v53  ;;  %v3164_v4 = vperm.slane %v8944_v17, 1  ;;  %v3123_v36 = vperm.slane %v2805_v14, 0  ;;  %v3133_v21 = vperm.slane %v2809_v0, 0 }
 0x6ca   :  { %v3091_v55 = vadd.f32 %v3089_v50, %v3078_v58  ;;  %v3101_v47 = vadd.f32 %v3099_v26, %v3096_v10  ;;  %v3081_v40 = vpop.permute.xlu1 %3080  ;;  %v3111_v29 = vmul.f32 %v3110_v61, %v8724_v2  ;;  %v3129_v22 = vmul.f32 %v3128_v16, %v8724_v2 }
 0x6cb   :  { %v3088_v18 = vmul.f32 %v3087_v8, %v3081_v40  ;;  %v3098_v27 = vmul.f32 %v3097_v48, %v3081_v40  ;;  %v3147_v9 = vmul.f32 %v3146_v37, %v8706_v12  ;;  %v3231_v35 = vmul.f32 0.0, %v9771_v60 }
 0x6cc   :  { %v3229_v62 = vadd.f32 %v3228_v57, %v3226_v6  ;;  %v9770_v28 = vperm.slane %v8967_v42, 0  ;;  %v3165_v17 = vmul.f32 %v3164_v4, %v8706_v12  ;;  %v3112_v43 = vmul.f32 %v3110_v61, %v3108_v63 }
 0x6cd   :  { %v3090_v39 = vadd.f32 %v3088_v18, %v3077_v5  ;;  %v3100_v19 = vadd.f32 %v3098_v27, %v3095_v56  ;;  %v3130_v45 = vmul.f32 %v3128_v16, %v3108_v63  ;;  %v9769_v8 = vperm.slane %v8967_v42, 1  ;;  %v3153_v50 = vpop.permute.xlu2 %3152  ;;  %v3157_v16 = vpop.permute.xlu0 %3156 }
 0x6ce   :  { %v3124_v48 = vmul.f32 %v3123_v36, %v3117_v34  ;;  %v3134_v59 = vmul.f32 %v3133_v21, %v3117_v34  ;;  %v3114_v33 = vadd.f32 %v3112_v43, %v3091_v55  ;;  %v3159_v38 = vperm.slane %v2805_v14, 1 }
 0x6cf   :  { %v3113_v23 = vadd.f32 %v3111_v29, %v3090_v39  ;;  %v3131_v2 = vadd.f32 %v3129_v22, %v3100_v19  ;;  %v3132_v30 = vadd.f32 %v3130_v45, %v3101_v47  ;;  %v3169_v25 = vperm.slane %v2809_v0, 1 }
 0x6d0   :  { %v3232_v26 = vadd.f32 %v3231_v35, %v3229_v62  ;;  %v3234_v58 = vmul.f32 0.0, %v9770_v28  ;;  %v3125_v12 = vmul.f32 %v3123_v36, %v8781_v51  ;;  %v3135_v63 = vmul.f32 %v3133_v21, %v8781_v51 }
 0x6d1   :  { %v3126_v5 = vadd.f32 %v3124_v48, %v3113_v23  ;;  %v3136_v56 = vadd.f32 %v3134_v59, %v3131_v2  ;;  %v3237_v61 = vmul.f32 0.0, %v9769_v8  ;;  %v3160_v6 = vmul.f32 %v3159_v38, %v3153_v50  ;;  %v8992_v23 = vld [vmem:[%s9293_s7] ss:$0 sm:$0xff] }
 0x6d2   :  { %v3170_v14 = vmul.f32 %v3169_v25, %v3153_v50  ;;  %v3127_v57 = vadd.f32 %v3125_v12, %v3114_v33  ;;  %v3137_v55 = vadd.f32 %v3135_v63, %v3132_v30  ;;  %v3235_v29 = vadd.f32 %v3234_v58, %v3232_v26 }
 0x6d3   :  { %v3149_v10 = vadd.f32 %v3147_v9, %v3126_v5  ;;  %v3167_v34 = vadd.f32 %v3165_v17, %v3136_v56  ;;  %v3144_v0 = vpop.permute.xlu1 %3143  ;;  %v9768_v36 = vperm.slane %v8967_v42, 2  ;;  %v3161_v22 = vmul.f32 %v3159_v38, %v3157_v16 }
 0x6d4   :  { %v3148_v47 = vmul.f32 %v3146_v37, %v3144_v0  ;;  %v3166_v40 = vmul.f32 %v3164_v4, %v3144_v0  ;;  %v3171_v51 = vmul.f32 %v3169_v25, %v3157_v16  ;;  %v3238_v19 = vadd.f32 %v3237_v61, %v3235_v29 }
 0x6d5   :  { %v3162_v18 = vadd.f32 %v3160_v6, %v3149_v10  ;;  %v3172_v27 = vadd.f32 %v3170_v14, %v3167_v34  ;;  %v3240_v62 = vmul.f32 0.0, %v9768_v36  ;;  %v9767_v37 = vperm.slane %v8967_v42, 3  ;;  %v3450_v36 = vld [vmem:[%s9294_s8] sm:$0xff] }
 0x6d6   :  { %v3150_v21 = vadd.f32 %v3148_v47, %v3127_v57  ;;  %v3168_v35 = vadd.f32 %v3166_v40, %v3137_v55  ;;  %v10368_v29 = vmov 112   ;;  %v10387_v8 = vperm.slane %v8768_v54, 3 }
 0x6d7   :  { %3174 = vst [vmem:[#allocation5] sm:$0x3] %v3162_v18  ;;  %v3241_v4 = vadd.f32 %v3240_v62, %v3238_v19  ;;  %v3243_v17 = vmul.f32 0.0, %v9767_v37  ;;  %v10375_v19 = vmov 108   ;;  %v10376_v62 = vmov 106  }
 0x6d8   :  { %3176 = vst [vmem:[#allocation6] sm:$0x3] %v3172_v27  ;;  %v3163_v9 = vadd.f32 %v3161_v22, %v3150_v21  ;;  %v3173_v39 = vadd.f32 %v3171_v51, %v3168_v35  ;;  %v10367_v27 = vmov 100   ;;  %v10369_v22 = vmov 99  }
 0x6d9   :  { %v3244_v43 = vadd.f32 %v3243_v17, %v3241_v4  ;;  %v10370_v51 = vmov 103   ;;  %v10371_v21 = vmov 101   ;;  %v10372_v35 = vmov 105  }
 0x6da   :  { %3175 = vst [vmem:[#allocation5 + $0x2] sm:$0x3] %v3163_v9  ;;  %v10373_v9 = vmov 102   ;;  %v10377_v4 = vmov 107   ;;  %v10378_v17 = vmov 110  }
 0x6db   :  { %3177 = vst [vmem:[#allocation6 + $0x2] sm:$0x3] %v3173_v39  ;;  %v10374_v39 = vmov 104  }
 0x6de   :  { %v3182_v45 = vld [vmem:[#allocation5] sm:$0x3] }
 0x6e2   :  { %v3184_v48 = vld [vmem:[#allocation6 + $0x2] sm:$0x3] }
 0x6e3   :  { %v3185_v59 = vadd.f32 %v3184_v48, %v3182_v45  ;;  %v10380_v45 = vmov 113   ;;  %v10381_v48 = vmov 111  }
 0x6e5   :  { %v3245_v2 = vadd.f32 %v3244_v43, %v3185_v59  ;;  %v10379_v43 = vmov 109   ;;  %v10382_v59 = vmov 114  }
 0x6e7   :  { %v3249_v33 = vadd.f32 %v8992_v23, %v3245_v2 }
 0x6e9   :  { %4318 = vtanh.f32 %v3249_v33  ;;  %v4140_v38 = vmul.f32 -1.442695, %v3249_v33 }
 0x6eb   :  { %4320 = vpow2.f32 %v4140_v38  ;;  %v10383_v38 = vmov 115  }
 0x6ef   :  { %v4319_v30 = vpop.eup %4318 }
 0x6f0   :  { %3272 = vrot.lane.b32.xlu1 %v4319_v30, %s4520_s17  ;;  %v4291_v30 = vld [vmem:[%s9296_s10 + $0x1] ss:$0 sm:$0xff] }
 0x6f1   :  { %v4321_v25 = vpop.eup %4320 }
 0x6f2   :  { %v3253_v50 = vadd.f32 1.0, %v4321_v25 }
 0x6f4   :  { %4322 = vrcp.f32 %v3253_v50  ;;  %v3265_v63 = vand.u32 2147483648, %v3253_v50  ;;  %vm3259_vm11 = vweird.f32 %v3253_v50  ;;  %v3263_v61 = vand.u32 2147483647, %v3253_v50 }
 0x6f6   :  { %v3266_v10 = vor.u32 1.1754944e-38, %v3265_v63  ;;  %vm3264_vm13 = vcmp.eq.f32.partialorder %v3263_v61, 8.507059e+37 }
 0x6fa   :  { %v4323_v5 = vpop.eup %4322 }
 0x6fb   :  { %v3255_v56 = vmul.f32 %v4323_v5, %v3253_v50  ;;  %vm3260_vm0 = vweird.f32 %v4323_v5 }
 0x6fc   :  { %vm3261_vm12 = vmor %vm3259_vm11, %vm3260_vm0  ;;  %vm3810_vm0 = vcmp.eq.s32.totalorder %v8253_v24, 7  ;;  %vm3819_vm11 = vcmp.eq.s32.totalorder %v8253_v24, 8 }
 0x6fd   :  { %v3256_v26 = vsub.f32 1.0, %v3255_v56 }
 0x6ff   :  { %v3257_v58 = vmul.f32 %v4323_v5, %v3256_v26 }
 0x701   :  { %v3258_v12 = vadd.f32 %v4323_v5, %v3257_v58 }
 0x703   :  { %v3262_v16 = vsel %vm3261_vm12, %v4323_v5, %v3258_v12  ;;  %vm3828_vm12 = vcmp.eq.s32.totalorder %v8253_v24, 9 }
 0x704   :  { %v3267_v6 = vsel %vm3264_vm13, %v3266_v10, %v3262_v16 }
 0x705   :  { %v3270_v0 = vmul.f32 0.0, %v3267_v6 }
 0x762   :  { %v3273_v34 = vpop.permute.xlu1 %3272 }
 0x763   :  { %v3275_v14 = vmul.f32 %v3273_v34, %v3267_v6 }
 0x765   :  { %3277 = vrot.lane.b32.xlu2 %v3275_v14, %s4521_s26 }
 0x7bf   :  { %v3278_v57 = vpop.permute.xlu2 %3277 }
 0x7c0   :  { %v8997_v55 = vadd.f32 %v3278_v57, %v3270_v0  ;;  %v10384_v0 = vperm.slane %v8768_v54, 1 }
 0x7c2   :  { %4324 = vtanh.f32 %v8997_v55 }
 0x7c8   :  { %v4325_v47 = vpop.eup %4324 }
 0x7c9   :  { %3283 = vrot.lane.b32.xlu1 %v4325_v47, %s4520_s17 }
 0x83b   :  { %v3284_v40 = vpop.permute.xlu1 %3283 }
 0x83c   :  { %v9001_v18 = vmul.f32 %v3284_v40, %v3267_v6  ;;  %v10385_v40 = vperm.slane %v8768_v54, 0 }
 0x83e   :  { %3304 = vperm.xlu1 %4232, %v9001_v18   ;;  %3298 = vperm.xlu0 %4231, %v9001_v18  }
 0x83f   :  { %3293 = vperm.xlu2 %4230, %v9001_v18  }
 0x846   :  { %4234 = vset.pattern.permute.xlu1 %v10367_v27  ;;  %4244 = vset.pattern.permute.xlu0 %v10368_v29 }
 0x847   :  { %4233 = vset.pattern.permute.xlu2 %v10369_v22  ;;  %3316 = vperm.xlu1 %4234, %v9001_v18  }
 0x848   :  { %3388 = vperm.xlu0 %4244, %v9001_v18   ;;  %3310 = vperm.xlu2 %4233, %v9001_v18  }
 0x84f   :  { %4236 = vset.pattern.permute.xlu1 %v10370_v51 }
 0x850   :  { %4248 = vset.pattern.permute.xlu0 %v10347_v15  ;;  %4235 = vset.pattern.permute.xlu2 %v10371_v21 }
 0x851   :  { %3334 = vperm.xlu1 %4236, %v9001_v18   ;;  %3460 = vperm.xlu0 %4248, %v8654_v49  }
 0x852   :  { %3322 = vperm.xlu2 %4235, %v9001_v18  }
 0x859   :  { %4238 = vset.pattern.permute.xlu1 %v10372_v35  ;;  %4249 = vset.pattern.permute.xlu0 %v10373_v9 }
 0x85a   :  { %4237 = vset.pattern.permute.xlu2 %v10374_v39  ;;  %3346 = vperm.xlu1 %4238, %v9001_v18  }
 0x85b   :  { %3328 = vperm.xlu0 %4249, %v9001_v18   ;;  %3340 = vperm.xlu2 %4237, %v9001_v18  }
 0x862   :  { %4240 = vset.pattern.permute.xlu1 %v10375_v19 }
 0x863   :  { %3495 = vperm.xlu0 %4249, %v8654_v49   ;;  %4239 = vset.pattern.permute.xlu2 %v10376_v62 }
 0x864   :  { %3364 = vperm.xlu1 %4240, %v9001_v18   ;;  %3352 = vperm.xlu2 %4239, %v9001_v18  }
 0x86b   :  { %4254 = vset.pattern.permute.xlu0 %v10377_v4 }
 0x86c   :  { %4242 = vset.pattern.permute.xlu1 %v10378_v17  ;;  %3358 = vperm.xlu0 %4254, %v9001_v18  }
 0x86d   :  { %4241 = vset.pattern.permute.xlu2 %v10379_v43  ;;  %3376 = vperm.xlu1 %4242, %v9001_v18  }
 0x86e   :  { %3370 = vperm.xlu2 %4241, %v9001_v18  }
 0x874   :  { %3530 = vperm.xlu0 %4254, %v8654_v49  }
 0x875   :  { %4245 = vset.pattern.permute.xlu1 %v10380_v45 }
 0x876   :  { %4243 = vset.pattern.permute.xlu2 %v10381_v48  ;;  %3394 = vperm.xlu1 %4245, %v9001_v18  }
 0x877   :  { %3382 = vperm.xlu2 %4243, %v9001_v18  }
 0x87c   :  { %4266 = vset.pattern.permute.xlu0 %v10382_v59 }
 0x87d   :  { %3579 = vperm.xlu0 %4266, %v8654_v49  }
 0x87e   :  { %4250 = vset.pattern.permute.xlu1 %v10348_v52 }
 0x87f   :  { %4246 = vset.pattern.permute.xlu2 %v10382_v59  ;;  %3467 = vperm.xlu1 %4250, %v8654_v49  }
 0x880   :  { %3400 = vperm.xlu2 %4246, %v9001_v18  }
 0x885   :  { %4270 = vset.pattern.permute.xlu0 %v10348_v52  ;;  %v2504_v52 = vld [vmem:[#allocation2] sm:$0x3] }
 0x886   :  { %v9059_v33 = vmul.f32 0.00390625, %v2504_v52 }
 0x887   :  { %4252 = vset.pattern.permute.xlu1 %v10367_v27 }
 0x888   :  { %4247 = vset.pattern.permute.xlu2 %v10349_v7  ;;  %3481 = vperm.xlu1 %4252, %v8654_v49   ;;  %v3752_v50 = vmul.f32 %v4291_v30, %v9059_v33 }
 0x889   :  { %3454 = vperm.xlu2 %4247, %v8654_v49  }
 0x88a   :  { %v3753_v5 = vsel %vm275_vm1, %v3752_v50, 0.0  ;;  %v10386_v50 = vperm.slane %v8768_v54, 2 }
 0x890   :  { %4255 = vset.pattern.permute.xlu1 %v10370_v51 }
 0x891   :  { %4251 = vset.pattern.permute.xlu2 %v10369_v22  ;;  %3502 = vperm.xlu1 %4255, %v8654_v49  }
 0x892   :  { %3474 = vperm.xlu2 %4251, %v8654_v49  }
 0x899   :  { %4257 = vset.pattern.permute.xlu1 %v10372_v35  ;;  %v3294_v2 = vpop.permute.xlu2 %3293 }
 0x89a   :  { %4253 = vset.pattern.permute.xlu2 %v10371_v21  ;;  %3516 = vperm.xlu1 %4257, %v8654_v49  }
 0x89b   :  { %3488 = vperm.xlu2 %4253, %v8654_v49  }
 0x8a2   :  { %4258 = vset.pattern.permute.xlu1 %v10383_v38  ;;  %v3311_v25 = vpop.permute.xlu2 %3310 }
 0x8a3   :  { %4256 = vset.pattern.permute.xlu2 %v10374_v39  ;;  %3406 = vperm.xlu1 %4258, %v9001_v18   ;;  %v3296_v18 = vmul.f32 %v3294_v2, %v10385_v40  ;;  %v3313_v28 = vmul.f32 %v3311_v25, %v10387_v8  ;;  %v3463_v40 = vperm.slane %v3450_v36, 1 }
 0x8a4   :  { %3509 = vperm.xlu2 %4256, %v8654_v49  }
 0x8a7   :  { %3754 = vadd.xlane.f32.xlu0 %v3753_v5 }
 0x8ab   :  { %4260 = vset.pattern.permute.xlu1 %v10375_v19 }
 0x8ac   :  { %3537 = vperm.xlu1 %4260, %v8654_v49   ;;  %v3323_v56 = vpop.permute.xlu2 %3322  ;;  %4259 = vset.pattern.permute.xlu2 %v10376_v62 }
 0x8ad   :  { %v3325_v53 = vmul.f32 %v3323_v56, %v3200_v41  ;;  %v3470_v56 = vperm.slane %v3450_v36, 2 }
 0x8b0   :  { %v3305_v26 = vpop.permute.xlu1 %3304  ;;  %v3299_v61 = vpop.permute.xlu0 %3298 }
 0x8b1   :  { %v3301_v57 = vmul.f32 %v3299_v61, %v10384_v0  ;;  %v3307_v5 = vmul.f32 %v3305_v26, %v10386_v50  ;;  %v10388_v61 = vperm.slane %v8768_v54, 4 }
 0x8b3   :  { %v3302_v30 = vadd.f32 %v3301_v57, %v3296_v18  ;;  %v4292_v57 = vld [vmem:[%s9296_s10 + $0x2] ss:$0 sm:$0xff]  ;;  %v3457_v18 = vperm.slane %v3450_v36, 0 }
 0x8b4   :  { %4264 = vset.pattern.permute.xlu1 %v10368_v29 }
 0x8b5   :  { %3565 = vperm.xlu1 %4264, %v8654_v49   ;;  %v3341_v58 = vpop.permute.xlu2 %3340  ;;  %v3308_v37 = vadd.f32 %v3307_v5, %v3302_v30  ;;  %v3761_v5 = vmul.f32 %v4292_v57, %v9059_v33 }
 0x8b6   :  { %v3343_v41 = vmul.f32 %v3341_v58, %v3209_v46  ;;  %v3484_v58 = vperm.slane %v3450_v36, 4 }
 0x8b7   :  { %v3314_v26 = vadd.f32 %v3313_v28, %v3308_v37  ;;  %v3762_v3 = vsel %vm275_vm1, %v3761_v5, 0.0  ;;  %v3491_v5 = vperm.slane %v3450_v36, 5 }
 0x8b9   :  { %v3317_v12 = vpop.permute.xlu1 %3316 }
 0x8ba   :  { %v9080_v34 = vpop.permute.xlu0 %3388  ;;  %v3319_v0 = vmul.f32 %v3317_v12, %v10388_v61 }
 0x8bc   :  { %v3320_v30 = vadd.f32 %v3319_v0, %v3314_v26  ;;  %v3477_v26 = vperm.slane %v3450_v36, 3 }
 0x8bd   :  { %4265 = vset.pattern.permute.xlu1 %v10380_v45 }
 0x8be   :  { %3572 = vperm.xlu1 %4265, %v8654_v49   ;;  %v3353_v63 = vpop.permute.xlu2 %3352  ;;  %v3326_v61 = vadd.f32 %v3325_v53, %v3320_v30 }
 0x8bf   :  { %v3355_v54 = vmul.f32 %v3353_v63, %v3215_v11  ;;  %v10391_v63 = vperm.slane %v8848_v31, 5 }
 0x8c3   :  { %v3335_v16 = vpop.permute.xlu1 %3334  ;;  %v3461_v47 = vpop.permute.xlu0 %3460 }
 0x8c4   :  { %v3464_v8 = vmul.f32 %v3463_v40, %v3461_v47  ;;  %v3337_v0 = vmul.f32 %v3335_v16, %v3206_v1  ;;  %v10389_v1 = vperm.slane %v8848_v31, 3 }
 0x8c6   :  { %4268 = vset.pattern.permute.xlu1 %v10349_v7 }
 0x8c8   :  { %v9078_v10 = vpop.permute.xlu2 %3370 }
 0x8cc   :  { %v3347_v6 = vpop.permute.xlu1 %3346 }
 0x8cd   :  { %v3329_v60 = vpop.permute.xlu0 %3328  ;;  %v3349_v53 = vmul.f32 %v3347_v6, %v3212_v13  ;;  %v10390_v6 = vperm.slane %v8848_v31, 4 }
 0x8ce   :  { %v3331_v25 = vmul.f32 %v3329_v60, %v3203_v44 }
 0x8d0   :  { %v3332_v32 = vadd.f32 %v3331_v25, %v3326_v61  ;;  %v3498_v61 = vperm.slane %v3450_v36, 6 }
 0x8d1   :  { %v9082_v14 = vpop.permute.xlu2 %3382 }
 0x8d2   :  { %v3338_v57 = vadd.f32 %v3337_v0, %v3332_v32 }
 0x8d4   :  { %v3344_v47 = vadd.f32 %v3343_v41, %v3338_v57 }
 0x8d5   :  { %v3496_v37 = vpop.permute.xlu0 %3495 }
 0x8d6   :  { %v3365_v52 = vpop.permute.xlu1 %3364  ;;  %v3350_v30 = vadd.f32 %v3349_v53, %v3344_v47  ;;  %v3373_v47 = vmul.f32 %v9078_v10, %v10391_v63 }
 0x8d7   :  { %v3367_v0 = vmul.f32 %v3365_v52, %v10390_v6  ;;  %v9128_v52 = vld [vmem:[%s9294_s8 + $0x8] sm:$0xff] }
 0x8d8   :  { %v3356_v16 = vadd.f32 %v3355_v54, %v3350_v30  ;;  %v10393_v54 = vperm.slane %v8848_v31, 7 }
 0x8da   :  { %v9090_v7 = vpop.permute.xlu2 %3400 }
 0x8df   :  { %v3377_v2 = vpop.permute.xlu1 %3376 }
 0x8e3   :  { %v3455_v50 = vpop.permute.xlu2 %3454 }
 0x8e4   :  { %v3458_v12 = vmul.f32 %v3457_v18, %v3455_v50  ;;  %v3359_v18 = vpop.permute.xlu0 %3358 }
 0x8e5   :  { %v3361_v32 = vmul.f32 %v3359_v18, %v10389_v1  ;;  %v3519_v1 = vperm.slane %v9128_v52, 1 }
 0x8e6   :  { %v3465_v20 = vadd.f32 %v3464_v8, %v3458_v12 }
 0x8e7   :  { %v3362_v8 = vadd.f32 %v3361_v32, %v3356_v16 }
 0x8e8   :  { %v3395_v28 = vpop.permute.xlu1 %3394  ;;  %3763 = vadd.xlane.f32.xlu1 %v3762_v3 }
 0x8e9   :  { %v3368_v41 = vadd.f32 %v3367_v0, %v3362_v8  ;;  %v3288_v0 = vld [vmem:[#allocation5 + $0x2] sm:$0x3] }
 0x8ec   :  { %v3475_v44 = vpop.permute.xlu2 %3474 }
 0x8ed   :  { %v3478_v3 = vmul.f32 %v3477_v26, %v3475_v44  ;;  %v3505_v26 = vperm.slane %v3450_v36, 7  ;;  %v3385_v36 = vmul.f32 %v9082_v14, %v10393_v54  ;;  %v10396_v14 = vperm.slane %v8967_v42, 2 }
 0x8ef   :  { %v3403_v6 = vmul.f32 %v9090_v7, %v10396_v14 }
 0x8f1   :  { %v3468_v60 = vpop.permute.xlu1 %3467 }
 0x8f2   :  { %v3471_v40 = vmul.f32 %v3470_v56, %v3468_v60  ;;  %v3499_v56 = vmul.f32 %v3498_v61, %v3496_v37  ;;  %v3374_v60 = vadd.f32 %v3373_v47, %v3368_v41  ;;  %v10395_v61 = vperm.slane %v8967_v42, 1 }
 0x8f3   :  { %v10397_v41 = vperm.slane %v8967_v42, 3 }
 0x8f4   :  { %v3472_v50 = vadd.f32 %v3471_v40, %v3465_v20  ;;  %v10392_v40 = vperm.slane %v8848_v31, 6  ;;  %v3397_v31 = vmul.f32 %v3395_v28, %v10395_v61 }
 0x8f5   :  { %v3489_v25 = vpop.permute.xlu2 %3488 }
 0x8f6   :  { %v3479_v46 = vadd.f32 %v3478_v3, %v3472_v50  ;;  %v3492_v57 = vmul.f32 %v3491_v5, %v3489_v25  ;;  %v3379_v18 = vmul.f32 %v3377_v2, %v10392_v40  ;;  %v3512_v50 = vperm.slane %v9128_v52, 0  ;;  %v4293_v40 = vld [vmem:[%s9296_s10] ss:$0 sm:$0xff] }
 0x8f7   :  { %v10394_v2 = vperm.slane %v8967_v42, 0 }
 0x8f8   :  { %v3380_v3 = vadd.f32 %v3379_v18, %v3374_v60 }
 0x8fa   :  { %v3482_v12 = vpop.permute.xlu1 %3481  ;;  %v3386_v32 = vadd.f32 %v3385_v36, %v3380_v3 }
 0x8fb   :  { %v3485_v13 = vmul.f32 %v3484_v58, %v3482_v12  ;;  %v3391_v58 = vmul.f32 %v9080_v34, %v10394_v2 }
 0x8fd   :  { %v3486_v20 = vadd.f32 %v3485_v13, %v3479_v46  ;;  %v3392_v25 = vadd.f32 %v3391_v58, %v3386_v32  ;;  %v3526_v58 = vperm.slane %v9128_v52, 2 }
 0x8fe   :  { %v3510_v10 = vpop.permute.xlu2 %3509 }
 0x8ff   :  { %v3493_v11 = vadd.f32 %v3492_v57, %v3486_v20  ;;  %v3513_v46 = vmul.f32 %v3512_v50, %v3510_v10  ;;  %v3398_v13 = vadd.f32 %v3397_v31, %v3392_v25  ;;  %v3540_v25 = vperm.slane %v9128_v52, 4 }
 0x901   :  { %v3500_v44 = vadd.f32 %v3499_v56, %v3493_v11  ;;  %v3404_v20 = vadd.f32 %v3403_v6, %v3398_v13  ;;  %v3289_v56 = vld [vmem:[#allocation6] sm:$0x3] }
 0x902   :  { %v3290_v11 = vadd.f32 %v3289_v56, %v3288_v0 }
 0x903   :  { %v3503_v53 = vpop.permute.xlu1 %3502 }
 0x904   :  { %v3506_v30 = vmul.f32 %v3505_v26, %v3503_v53 }
 0x906   :  { %v3507_v37 = vadd.f32 %v3506_v30, %v3500_v44  ;;  %v3743_v30 = vmul.f32 %v4293_v40, %v9059_v33 }
 0x908   :  { %v3514_v5 = vadd.f32 %v3513_v46, %v3507_v37 }
 0x90c   :  { %v3517_v16 = vpop.permute.xlu1 %3516 }
 0x90d   :  { %v3520_v8 = vmul.f32 %v3519_v1, %v3517_v16  ;;  %v3533_v16 = vperm.slane %v9128_v52, 3 }
 0x90f   :  { %v9138_v12 = vadd.f32 %v3520_v8, %v3514_v5  ;;  %v3531_v5 = vpop.permute.xlu0 %3530 }
 0x910   :  { %v3534_v13 = vmul.f32 %v3533_v16, %v3531_v5  ;;  %v4296_v5 = vld [vmem:[%s9296_s10 + $0x5] ss:$0 sm:$0xff] }
 0x915   :  { %v3407_v57 = vpop.permute.xlu1 %3406 }
 0x916   :  { %v3409_v34 = vmul.f32 %v3407_v57, %v10397_v41  ;;  %v3547_v57 = vperm.slane %v9128_v52, 5 }
 0x918   :  { %v3410_v63 = vadd.f32 %v3409_v34, %v3404_v20 }
 0x91a   :  { %v3411_v47 = vadd.f32 %v3410_v63, %v3290_v11  ;;  %v3554_v11 = vperm.slane %v9128_v52, 6 }
 0x91c   :  { %v3412_v26 = vadd.f32 %v8992_v23, %v3411_v47 }
 0x91e   :  { %4326 = vtanh.f32 %v3412_v26  ;;  %v4141_v42 = vmul.f32 -1.442695, %v3412_v26  ;;  %v3538_v31 = vpop.permute.xlu1 %3537 }
 0x91f   :  { %v3541_v6 = vmul.f32 %v3540_v25, %v3538_v31 }
 0x920   :  { %4328 = vpow2.f32 %v4141_v42  ;;  %v3561_v42 = vperm.slane %v9128_v52, 7 }
 0x924   :  { %v4327_v44 = vpop.eup %4326 }
 0x925   :  { %3435 = vrot.lane.b32.xlu2 %v4327_v44, %s4520_s17 }
 0x926   :  { %v4329_v23 = vpop.eup %4328 }
 0x927   :  { %v3416_v7 = vadd.f32 1.0, %v4329_v23  ;;  %v3566_v47 = vpop.permute.xlu1 %3565 }
 0x929   :  { %4330 = vrcp.f32 %v3416_v7  ;;  %v3428_v37 = vand.u32 2147483648, %v3416_v7  ;;  %vm3422_vm15 = vweird.f32 %v3416_v7  ;;  %v3426_v50 = vand.u32 2147483647, %v3416_v7 }
 0x92b   :  { %v3429_v36 = vor.u32 1.1754944e-38, %v3428_v37  ;;  %vm3427_vm5 = vcmp.eq.f32.partialorder %v3426_v50, 8.507059e+37 }
 0x92d   :  { %3523 = vperm.xlu2 %4259, %v8654_v49  }
 0x92f   :  { %v4331_v28 = vpop.eup %4330 }
 0x930   :  { %v3418_v60 = vmul.f32 %v4331_v28, %v3416_v7  ;;  %vm3423_vm14 = vweird.f32 %v4331_v28  ;;  %v3573_v40 = vpop.permute.xlu1 %3572 }
 0x931   :  { %vm3424_vm2 = vmor %vm3422_vm15, %vm3423_vm14 }
 0x932   :  { %v3419_v53 = vsub.f32 1.0, %v3418_v60 }
 0x934   :  { %v3420_v18 = vmul.f32 %v4331_v28, %v3419_v53  ;;  %v4295_v53 = vld [vmem:[%s9296_s10 + $0x4] ss:$0 sm:$0xff] }
 0x935   :  { %4261 = vset.pattern.permute.xlu2 %v10379_v43 }
 0x936   :  { %3544 = vperm.xlu2 %4261, %v8654_v49   ;;  %v3421_v3 = vadd.f32 %v4331_v28, %v3420_v18 }
 0x938   :  { %v3425_v54 = vsel %vm3424_vm2, %v4331_v28, %v3421_v3  ;;  %v3580_v3 = vpop.permute.xlu0 %3579 }
 0x939   :  { %v3430_v1 = vsel %vm3427_vm5, %v3429_v36, %v3425_v54 }
 0x93e   :  { %4262 = vset.pattern.permute.xlu2 %v10378_v17 }
 0x93f   :  { %3551 = vperm.xlu2 %4262, %v8654_v49  }
 0x947   :  { %4263 = vset.pattern.permute.xlu2 %v10381_v48 }
 0x948   :  { %3558 = vperm.xlu2 %4263, %v8654_v49  }
 0x950   :  { %4267 = vset.pattern.permute.xlu2 %v10383_v38 }
 0x951   :  { %3586 = vperm.xlu2 %4267, %v8654_v49   ;;  %v3744_v49 = vsel %vm275_vm1, %v3743_v30, 0.0 }
 0x959   :  { %4269 = vset.pattern.permute.xlu2 %v10347_v15  ;;  %v4294_v15 = vld [vmem:[%s9296_s10 + $0x3] ss:$0 sm:$0xff] }
 0x95a   :  { %v3770_v10 = vmul.f32 %v4294_v15, %v9059_v33  ;;  %v3779_v15 = vmul.f32 %v4295_v53, %v9059_v33 }
 0x95c   :  { %v3771_v2 = vsel %vm275_vm1, %v3770_v10, 0.0  ;;  %v3780_v10 = vsel %vm275_vm1, %v3779_v15, 0.0 }
 0x97a   :  { %3745 = vadd.xlane.f32.xlu2 %v3744_v49 }
 0x97f   :  { %v3436_v32 = vpop.permute.xlu2 %3435 }
 0x980   :  { %v3438_v46 = vmul.f32 %v3436_v32, %v3430_v1  ;;  %v9192_v32 = vpop.xlane.xlu0 %3754 }
 0x982   :  { %3440 = vrot.lane.b32.xlu0 %v3438_v46, %s4521_s26  ;;  %3772 = vadd.xlane.f32.xlu2 %v3771_v2  ;;  %v3433_v46 = vmul.f32 %v3430_v1, %v8997_v55  ;;  %v4297_v55 = vld [vmem:[%s9296_s10 + $0x7] ss:$0 sm:$0xff] }
 0x987   :  { %v3524_v8 = vpop.permute.xlu2 %3523 }
 0x988   :  { %v3527_v61 = vmul.f32 %v3526_v58, %v3524_v8  ;;  %v3788_v8 = vmul.f32 %v4296_v5, %v9059_v33 }
 0x98a   :  { %v3528_v14 = vadd.f32 %v3527_v61, %v9138_v12  ;;  %v9180_v12 = vld [vmem:[%s9294_s8 + $0x10] sm:$0xf]  ;;  %v3789_v25 = vsel %vm275_vm1, %v3788_v8, 0.0  ;;  %v9201_v61 = vpop.xlane.xlu1 %3763 }
 0x98b   :  { %v3568_v23 = vperm.slane %v9180_v12, 0  ;;  %v3575_v28 = vperm.slane %v9180_v12, 1  ;;  %v3582_v18 = vperm.slane %v9180_v12, 2 }
 0x98c   :  { %v3535_v0 = vadd.f32 %v3534_v13, %v3528_v14  ;;  %v3592_v14 = vld [vmem:[%s9295_s9] sm:$0xff] }
 0x98d   :  { %v3569_v30 = vmul.f32 %v3568_v23, %v3566_v47  ;;  %v3576_v49 = vmul.f32 %v3575_v28, %v3573_v40  ;;  %v3583_v50 = vmul.f32 %v3582_v18, %v3580_v3  ;;  %v3641_v18 = vperm.slane %v3592_v14, 6 }
 0x98e   :  { %v3542_v20 = vadd.f32 %v3541_v6, %v3535_v0  ;;  %v3600_v0 = vperm.slane %v3592_v14, 0  ;;  %v3648_v15 = vperm.slane %v3592_v14, 7 }
 0x990   :  { %v3545_v41 = vpop.permute.xlu2 %3544 }
 0x991   :  { %v3548_v34 = vmul.f32 %v3547_v57, %v3545_v41  ;;  %v3606_v57 = vperm.slane %v3592_v14, 1 }
 0x993   :  { %v3549_v56 = vadd.f32 %v3548_v34, %v3542_v20 }
 0x999   :  { %v3552_v63 = vpop.permute.xlu2 %3551 }
 0x99a   :  { %v3555_v26 = vmul.f32 %v3554_v11, %v3552_v63 }
 0x99c   :  { %v3556_v44 = vadd.f32 %v3555_v26, %v3549_v56  ;;  %v3620_v56 = vperm.slane %v3592_v14, 3 }
 0x9a2   :  { %v3559_v7 = vpop.permute.xlu2 %3558 }
 0x9a3   :  { %v3562_v60 = vmul.f32 %v3561_v42, %v3559_v7  ;;  %v3627_v42 = vperm.slane %v3592_v14, 4  ;;  %v3634_v7 = vperm.slane %v3592_v14, 5 }
 0x9a5   :  { %v3563_v52 = vadd.f32 %v3562_v60, %v3556_v44 }
 0x9a7   :  { %v3570_v37 = vadd.f32 %v3569_v30, %v3563_v52 }
 0x9a9   :  { %v3577_v54 = vadd.f32 %v3576_v49, %v3570_v37  ;;  %v3593_v49 = vld [vmem:[%s9295_s9 + $0x8] sm:$0xff] }
 0x9aa   :  { %v3662_v5 = vperm.slane %v3593_v49, 1 }
 0x9ab   :  { %v9189_v36 = vadd.f32 %v3583_v50, %v3577_v54  ;;  %v3655_v50 = vperm.slane %v3593_v49, 0 }
 0x9ac   :  { %3781 = vadd.xlane.f32.xlu0 %v3780_v10 }
 0x9f4   :  { %v3441_v2 = vpop.permute.xlu0 %3440 }
 0x9f5   :  { %v3443_v58 = vadd.f32 %v3441_v2, %v3433_v46 }
 0x9f7   :  { %4332 = vtanh.f32 %v3443_v58 }
 0x9fd   :  { %v4333_v16 = vpop.eup %4332 }
 0x9fe   :  { %3446 = vrot.lane.b32.xlu1 %v4333_v16, %s4520_s17 }
 0xa28   :  { %3790 = vadd.xlane.f32.xlu1 %v3789_v25  ;;  %v3669_v25 = vperm.slane %v3593_v49, 2 }
 0xa70   :  { %v3447_v31 = vpop.permute.xlu1 %3446 }
 0xa71   :  { %v3449_v13 = vmul.f32 %v3447_v31, %v3430_v1  ;;  %v9249_v1 = vpop.xlane.xlu0 %3781 }
 0xa73   :  { %3610 = vperm.xlu0 %4270, %v3449_v13   ;;  %3597 = vperm.xlu1 %4268, %v3449_v13  }
 0xa74   :  { %3603 = vperm.xlu2 %4269, %v3449_v13  }
 0xa7b   :  { %4275 = vset.pattern.permute.xlu0 %v10370_v51  ;;  %4271 = vset.pattern.permute.xlu1 %v10369_v22 }
 0xa7c   :  { %4272 = vset.pattern.permute.xlu2 %v10367_v27  ;;  %3645 = vperm.xlu0 %4275, %v3449_v13   ;;  %v3806_v27 = vmul.f32 %v4297_v55, %v9059_v33 }
 0xa7d   :  { %3617 = vperm.xlu1 %4271, %v3449_v13   ;;  %3624 = vperm.xlu2 %4272, %v3449_v13  }
 0xa7e   :  { %v3807_v22 = vsel %vm275_vm1, %v3806_v27, 0.0  ;;  %v3676_v27 = vperm.slane %v3593_v49, 3 }
 0xa84   :  { %4280 = vset.pattern.permute.xlu0 %v10375_v19 }
 0xa85   :  { %4273 = vset.pattern.permute.xlu1 %v10371_v21  ;;  %4274 = vset.pattern.permute.xlu2 %v10373_v9  ;;  %v9230_v21 = vpop.permute.xlu2 %3586  ;;  %v4299_v9 = vld [vmem:[%s9296_s10 + $0x9] ss:$0 sm:$0xff] }
 0xa86   :  { %3680 = vperm.xlu0 %4280, %v3449_v13   ;;  %3631 = vperm.xlu1 %4273, %v3449_v13  }
 0xa87   :  { %3638 = vperm.xlu2 %4274, %v3449_v13  }
 0xa8d   :  { %v9237_v19 = vpop.xlane.xlu2 %3745 }
 0xa8e   :  { %4283 = vset.pattern.permute.xlu0 %v10381_v48  ;;  %4276 = vset.pattern.permute.xlu1 %v10374_v39  ;;  %v3824_v39 = vmul.f32 %v4299_v9, %v9059_v33 }
 0xa8f   :  { %4277 = vset.pattern.permute.xlu2 %v10372_v35  ;;  %3701 = vperm.xlu0 %4283, %v3449_v13  }
 0xa90   :  { %3652 = vperm.xlu1 %4276, %v3449_v13   ;;  %3659 = vperm.xlu2 %4277, %v3449_v13  }
 0xa97   :  { %4288 = vset.pattern.permute.xlu0 %v10383_v38 }
 0xa98   :  { %4278 = vset.pattern.permute.xlu1 %v10376_v62  ;;  %4279 = vset.pattern.permute.xlu2 %v10377_v4  ;;  %v3825_v62 = vsel %vm275_vm1, %v3824_v39, 0.0 }
 0xa99   :  { %3666 = vperm.xlu1 %4278, %v3449_v13   ;;  %3673 = vperm.xlu2 %4279, %v3449_v13  }
 0xa9b   :  { %v9240_v4 = vpop.xlane.xlu1 %3790 }
 0xaa1   :  { %4281 = vset.pattern.permute.xlu1 %v10379_v43  ;;  %4284 = vset.pattern.permute.xlu2 %v10368_v29  ;;  %v4298_v29 = vld [vmem:[%s9296_s10 + $0x6] ss:$0 sm:$0xff] }
 0xaa2   :  { %3687 = vperm.xlu1 %4281, %v3449_v13   ;;  %3708 = vperm.xlu2 %4284, %v3449_v13   ;;  %v3797_v51 = vmul.f32 %v4298_v29, %v9059_v33 }
 0xaa4   :  { %v3798_v35 = vsel %vm275_vm1, %v3797_v51, 0.0 }
 0xaaa   :  { %4282 = vset.pattern.permute.xlu1 %v10378_v17  ;;  %4285 = vset.pattern.permute.xlu2 %v10380_v45  ;;  %v4300_v17 = vld [vmem:[%s9296_s10 + $0x8] ss:$0 sm:$0xff]  ;;  %v9246_v45 = vpop.xlane.xlu2 %3772 }
 0xaab   :  { %3694 = vperm.xlu1 %4282, %v3449_v13   ;;  %3715 = vperm.xlu2 %4285, %v3449_v13   ;;  %v3815_v43 = vmul.f32 %v4300_v17, %v9059_v33  ;;  %v3613_v33 = vperm.slane %v3592_v14, 2  ;;  %v3690_v17 = vperm.slane %v3593_v49, 5 }
 0xab3   :  { %4286 = vset.pattern.permute.xlu1 %v10382_v59  ;;  %v3816_v59 = vsel %vm275_vm1, %v3815_v43, 0.0  ;;  %vm3747_vm1 = vcmp.eq.s32.totalorder %v8253_v24, 0 }
 0xab4   :  { %3722 = vperm.xlu1 %4286, %v3449_v13  }
 0xab9   :  { %3808 = vadd.xlane.f32.xlu0 %v3807_v22 }
 0xabc   :  { %4287 = vset.pattern.permute.xlu1 %v10383_v38 }
 0xabd   :  { %3729 = vperm.xlu1 %4287, %v3449_v13  }
 0xace   :  { %v3604_v38 = vpop.permute.xlu2 %3603 }
 0xacf   :  { %v3607_v34 = vmul.f32 %v3606_v57, %v3604_v38  ;;  %v3697_v38 = vperm.slane %v3593_v49, 6  ;;  %v3704_v57 = vperm.slane %v3593_v49, 7 }
 0xad4   :  { %3799 = vadd.xlane.f32.xlu2 %v3798_v35 }
 0xad7   :  { %v3625_v41 = vpop.permute.xlu2 %3624 }
 0xad8   :  { %v3628_v53 = vmul.f32 %v3627_v42, %v3625_v41 }
 0xadc   :  { %3826 = vadd.xlane.f32.xlu2 %v3825_v62  ;;  %v3683_v62 = vperm.slane %v3593_v49, 4 }
 0xae1   :  { %v3639_v60 = vpop.permute.xlu2 %3638 }
 0xae2   :  { %v3642_v37 = vmul.f32 %v3641_v18, %v3639_v60  ;;  %v3589_v60 = vperm.slane %v9180_v12, 3 }
 0xae5   :  { %v3598_v48 = vpop.permute.xlu1 %3597  ;;  %v3611_v11 = vpop.permute.xlu0 %3610 }
 0xae6   :  { %v3601_v20 = vmul.f32 %v3600_v0, %v3598_v48  ;;  %v3614_v26 = vmul.f32 %v3613_v33, %v3611_v11 }
 0xae7   :  { %3817 = vadd.xlane.f32.xlu1 %v3816_v59 }
 0xae8   :  { %v3608_v63 = vadd.f32 %v3607_v34, %v3601_v20  ;;  %v3594_v34 = vld [vmem:[%s9295_s9 + $0x10] sm:$0xf] }
 0xae9   :  { %v3711_v11 = vperm.slane %v3594_v34, 0 }
 0xaea   :  { %v3615_v23 = vadd.f32 %v3614_v26, %v3608_v63  ;;  %v3660_v46 = vpop.permute.xlu2 %3659 }
 0xaeb   :  { %v3663_v13 = vmul.f32 %v3662_v5, %v3660_v46  ;;  %v3748_v46 = vsel %vm3747_vm1, %v9237_v19, 0.0  ;;  %v3775_v5 = vsel %vm3774_vm4, %v9246_v45, 0.0  ;;  %v3784_v19 = vsel %vm3783_vm8, %v9249_v1, 0.0 }
 0xaee   :  { %v3646_v54 = vpop.permute.xlu0 %3645 }
 0xaef   :  { %v3618_v6 = vpop.permute.xlu1 %3617  ;;  %v3649_v2 = vmul.f32 %v3648_v15, %v3646_v54 }
 0xaf0   :  { %v3621_v44 = vmul.f32 %v3620_v56, %v3618_v6 }
 0xaf2   :  { %v3622_v28 = vadd.f32 %v3621_v44, %v3615_v23  ;;  %v3718_v44 = vperm.slane %v3594_v34, 1 }
 0xaf3   :  { %v3674_v29 = vpop.permute.xlu2 %3673 }
 0xaf4   :  { %v3629_v30 = vadd.f32 %v3628_v53, %v3622_v28  ;;  %v3677_v39 = vmul.f32 %v3676_v27, %v3674_v29 }
 0xaf8   :  { %v3632_v47 = vpop.permute.xlu1 %3631  ;;  %v3681_v9 = vpop.permute.xlu0 %3680 }
 0xaf9   :  { %v3635_v40 = vmul.f32 %v3634_v7, %v3632_v47  ;;  %v3684_v48 = vmul.f32 %v3683_v62, %v3681_v9  ;;  %v3725_v7 = vperm.slane %v3594_v34, 2 }
 0xafb   :  { %v3636_v3 = vadd.f32 %v3635_v40, %v3629_v30  ;;  %v3732_v30 = vperm.slane %v3594_v34, 3 }
 0xafc   :  { %v3709_v6 = vpop.permute.xlu2 %3708 }
 0xafd   :  { %v3643_v10 = vadd.f32 %v3642_v37, %v3636_v3  ;;  %v3712_v26 = vmul.f32 %v3711_v11, %v3709_v6 }
 0xaff   :  { %v3650_v8 = vadd.f32 %v3649_v2, %v3643_v10 }
 0xb01   :  { %v3702_v33 = vpop.permute.xlu0 %3701 }
 0xb02   :  { %v3653_v52 = vpop.permute.xlu1 %3652  ;;  %v3705_v63 = vmul.f32 %v3704_v57, %v3702_v33 }
 0xb03   :  { %v3656_v58 = vmul.f32 %v3655_v50, %v3653_v52  ;;  %v3590_v52 = vmul.f32 %v3589_v60, %v9230_v21  ;;  %v4301_v50 = vld [vmem:[%s9297_s11] ss:$0 sm:$0xff]  ;;  %v3757_v21 = vsel %vm3756_vm6, %v9192_v32, 0.0  ;;  %s4554_s11 = smov [#allocation9]  }
 0xb04   :  { %s3837_s28 = sshll.u32 %s4554_s11, 4  ;;  %s3838_s28 = int_to_ptr.vmem [resolvable:$true] %s3837_s28 }
 0xb05   :  { %v3657_v31 = vadd.f32 %v3656_v58, %v3650_v8  ;;  %v3716_v23 = vpop.permute.xlu2 %3715  ;;  %v3591_v15 = vadd.f32 %v3590_v52, %v9189_v36  ;;  %v3766_v36 = vsel %vm3765_vm7, %v9201_v61, 0.0 }
 0xb06   :  { %v3719_v53 = vmul.f32 %v3718_v44, %v3716_v23 }
 0xb07   :  { %v3664_v22 = vadd.f32 %v3663_v13, %v3657_v31  ;;  %v3793_v31 = vsel %vm3792_vm9, %v9240_v4, 0.0 }
 0xb0b   :  { %v3667_v16 = vpop.permute.xlu1 %3666 }
 0xb0c   :  { %v3670_v55 = vmul.f32 %v3669_v25, %v3667_v16 }
 0xb0e   :  { %v3671_v51 = vadd.f32 %v3670_v55, %v3664_v22 }
 0xb10   :  { %v3678_v43 = vadd.f32 %v3677_v39, %v3671_v51 }
 0xb12   :  { %v3685_v14 = vadd.f32 %v3684_v48, %v3678_v43 }
 0xb14   :  { %v3688_v35 = vpop.permute.xlu1 %3687 }
 0xb15   :  { %v3691_v59 = vmul.f32 %v3690_v17, %v3688_v35 }
 0xb17   :  { %v3692_v20 = vadd.f32 %v3691_v59, %v3685_v14 }
 0xb1d   :  { %v3695_v0 = vpop.permute.xlu1 %3694 }
 0xb1e   :  { %v3698_v41 = vmul.f32 %v3697_v38, %v3695_v0 }
 0xb20   :  { %v3699_v56 = vadd.f32 %v3698_v41, %v3692_v20 }
 0xb22   :  { %v3706_v47 = vadd.f32 %v3705_v63, %v3699_v56 }
 0xb24   :  { %v3713_v28 = vadd.f32 %v3712_v26, %v3706_v47 }
 0xb26   :  { %v3723_v42 = vpop.permute.xlu1 %3722  ;;  %v3720_v40 = vadd.f32 %v3719_v53, %v3713_v28 }
 0xb27   :  { %v3726_v18 = vmul.f32 %v3725_v7, %v3723_v42 }
 0xb29   :  { %v3727_v49 = vadd.f32 %v3726_v18, %v3720_v40 }
 0xb2c   :  { %v3809_v55 = vpop.xlane.xlu0 %3808 }
 0xb2d   :  { %v3811_v45 = vsel %vm3810_vm0, %v3809_v55, 0.0 }
 0xb2f   :  { %v3730_v3 = vpop.permute.xlu1 %3729 }
 0xb30   :  { %v3733_v37 = vmul.f32 %v3732_v30, %v3730_v3 }
 0xb32   :  { %v3734_v54 = vadd.f32 %v3733_v37, %v3727_v49 }
 0xb34   :  { %v3735_v10 = vadd.f32 %v3734_v54, %v3591_v15 }
 0xb36   :  { %v3740_v12 = vadd.f32 %v4301_v50, %v3735_v10 }
 0xb38   :  { %v3749_v2 = vadd.f32 %v3748_v46, %v3740_v12 }
 0xb3a   :  { %v3758_v58 = vadd.f32 %v3757_v21, %v3749_v2 }
 0xb3c   :  { %v3767_v16 = vadd.f32 %v3766_v36, %v3758_v58 }
 0xb3e   :  { %v3776_v8 = vadd.f32 %v3775_v5, %v3767_v16 }
 0xb40   :  { %v3785_v25 = vadd.f32 %v3784_v19, %v3776_v8 }
 0xb42   :  { %v3794_v61 = vadd.f32 %v3793_v31, %v3785_v25 }
 0xb47   :  { %v3800_v32 = vpop.xlane.xlu2 %3799 }
 0xb48   :  { %v3802_v13 = vsel %vm3801_vm10, %v3800_v32, 0.0 }
 0xb49   :  { %v3803_v27 = vadd.f32 %v3802_v13, %v3794_v61 }
 0xb4b   :  { %v3812_v29 = vadd.f32 %v3811_v45, %v3803_v27 }
 0xb4f   :  { %v3827_v1 = vpop.xlane.xlu2 %3826 }
 0xb50   :  { %v3829_v35 = vsel %vm3828_vm12, %v3827_v1, 0.0 }
 0xb5a   :  { %v3818_v22 = vpop.xlane.xlu1 %3817 }
 0xb5b   :  { %v3820_v51 = vsel %vm3819_vm11, %v3818_v22, 0.0 }
 0xb5c   :  { %v3821_v4 = vadd.f32 %v3820_v51, %v3812_v29 }
 0xb5e   :  { %v3830_v9 = vadd.f32 %v3829_v35, %v3821_v4 }
 0xb60   :  { %3831 = vst.msk [vmem:[#allocation9] sm:$0x3] %vm2619_vm3, %v3830_v9 }
 0xb61   :  { %3842 = dma.vmem_to_hbm [thread:$0]  %s3838_s28, 32, %s3840_s2, [#allocation10]  }
 0xb62   :  { %4518 = dma.done.wait [#allocation10], 32  }
 0xb63   :  { %4519 = vsyncadd [#allocation10], 4294967264 }
 0xb64   :  { %3847 = vsyncpa [#allocation10], 1 }

</bundles_post_ra>
